<compile_context>
chip_gen: v7x
topology: tpu7x:2x2x1
jax: 0.10.0
libtpu: 0.0.40
codegen_flags: <defaults>
</compile_context>

<pallas_src>
import functools
import math

import jax
import jax.numpy as jnp
from jax import lax
from jax.experimental import pallas as pl
from jax.experimental.pallas import tpu as pltpu

LANE = 128


def _round_up(n, m=LANE):
    return ((n + m - 1) // m) * m


# ------------------------------- kernel --------------------------------------

def _residual_block_kernel(x_ref, w1_ref, b1_ref, w2_ref, b2_ref,
                           w3_ref, b3_ref, *rest, H, W,
                           has_projection, mxu_dtype):
    if has_projection:
        w4_ref, out_ref = rest
    else:
        (out_ref,) = rest

    HW = H * W
    x = x_ref[0]                                  # (HW, Cpad); mxu dtype if projection
    x_m = x if x.dtype == mxu_dtype else x.astype(mxu_dtype)   # single cast

    # ---- conv1 (1x1, BN1 scale folded into w1) + bias + ReLU ---------------
    h1 = jnp.dot(x_m, w1_ref[...], preferred_element_type=jnp.float32)
    h1 = jnp.maximum(h1 + b1_ref[...], 0.0)                    # (HW, Ppad) f32

    # ---- conv2 (3x3, pad=1): 9 accumulated MXU dots (no im2col concat) -----
    # Border masks hoisted out of the tap loop; only comparisons on one iota.
    t = lax.broadcasted_iota(jnp.int32, (HW, 1), 0)            # flat pixel index
    col = jnp.remainder(t, W)
    row_ok = (t >= W, None, t < HW - W)          # dy = 0,1,2 (None = always valid)
    col_ok = (col >= 1, None, col <= W - 2)      # dx = 0,1,2

    acc = None
    for dy in range(3):
        for dx in range(3):
            s = (dy - 1) * W + (dx - 1)
            shifted = h1 if s == 0 else pltpu.roll(h1, shift=(-s) % HW, axis=0)
            masks = [m for m in (row_ok[dy], col_ok[dx]) if m is not None]
            if masks:
                valid = masks[0] if len(masks) == 1 else masks[0] & masks[1]
                tap = jnp.where(valid, shifted, 0.0)
            else:
                tap = shifted
            d = jnp.dot(tap.astype(mxu_dtype), w2_ref[3 * dy + dx],
                        preferred_element_type=jnp.float32)
            acc = d if acc is None else acc + d
    h2 = jnp.maximum(acc + b2_ref[...], 0.0)                   # (HW, Ppad) f32

    # ---- conv3 (+ projection conv4 as a second accumulated dot) ------------
    out = jnp.dot(h2.astype(mxu_dtype), w3_ref[...],
                  preferred_element_type=jnp.float32)
    if has_projection:
        out = out + jnp.dot(x_m, w4_ref[...],
                            preferred_element_type=jnp.float32)
        out = out + b3_ref[...]                  # b3 already contains b3 + b4
    else:
        out = out + b3_ref[...] + x              # exact f32 identity residual add

    out_ref[0] = jnp.maximum(out, 0.0).astype(out_ref.dtype)


# ------------------------------- wrapper --------------------------------------

def residual_block_pallas(x_nchw, kp, *, H, W, out_dtype=jnp.float32):
    N, Cin, Hx, Wx = x_nchw.shape
    assert (Hx, Wx) == (H, W)
    HW = H * W
    Cpad = kp["w1"].shape[0]
    Epad = kp["w3"].shape[1]
    Pexp = kp["out_channels"]
    has_projection = kp["has_projection"]
    mxu_dtype = kp["w1"].dtype

    # NCHW -> NHWC -> (N, H*W, Cpad): channels on the 128-lane axis, padded so
    # all loads / MXU operands / stores are lane-dense.  Projection blocks only
    # ever use x as an MXU operand, so DMA it in the MXU dtype; identity blocks
    # keep f32 x for the exact residual add.
    x_dtype = mxu_dtype if has_projection else jnp.float32
    x_flat = jnp.transpose(x_nchw, (0, 2, 3, 1)).reshape(N, HW, Cin)
    x_flat = jnp.pad(x_flat, ((0, 0), (0, 0), (0, Cpad - Cin))).astype(x_dtype)

    names = ["w1", "b1", "w2", "b2", "w3", "b3"]
    if has_projection:
        names.append("w4")
    consts = [kp[n] for n in names]

    kern = functools.partial(_residual_block_kernel, H=H, W=W,
                             has_projection=has_projection,
                             mxu_dtype=mxu_dtype)

    def call(single_buffer_weights):
        def const_spec(a):
            nd = a.ndim
            kw = {}
            if single_buffer_weights:
                # Constant index_map across the grid -> second buffer is waste.
                kw["pipeline_mode"] = pl.Buffered(1)
            return pl.BlockSpec(a.shape, lambda n, _nd=nd: (0,) * _nd, **kw)

        in_specs = [pl.BlockSpec((1, HW, Cpad), lambda n: (n, 0, 0))]
        in_specs += [const_spec(a) for a in consts]
        return pl.pallas_call(
            kern,
            out_shape=jax.ShapeDtypeStruct((N, HW, Epad), out_dtype),
            grid=(N,),
            in_specs=in_specs,
            out_specs=pl.BlockSpec((1, HW, Epad), lambda n: (n, 0, 0)),
            compiler_params=pltpu.CompilerParams(
                dimension_semantics=("parallel",)),
        )(x_flat, *consts)

    try:
        out_flat = call(single_buffer_weights=True)
    except Exception:
        # Fallback for jax builds that reject pipeline_mode / Buffered(1) on
        # the pallas_call pipeline path: default double buffering.
        out_flat = call(single_buffer_weights=False)

    # (N, H*W, Epad) -> drop channel padding -> NHWC -> NCHW
    out = out_flat[..., :Pexp].reshape(N, H, W, Pexp)
    return jnp.transpose(out, (0, 3, 1, 2))


# ----------------------------- parameter setup --------------------------------

def init_torch_params(key, inplanes, planes, expansion=1):
    """Deterministic synthetic parameters in PyTorch layouts (OIHW conv)."""
    pexp = planes * expansion
    ks = jax.random.split(key, 20)

    def conv_w(k, out_c, in_c, kh, kw):
        bound = 1.0 / math.sqrt(in_c * kh * kw)
        return jax.random.uniform(k, (out_c, in_c, kh, kw), jnp.float32,
                                  -bound, bound)

    def bn_p(k4, c):
        kg, kb, km, kv = k4
        gamma = jax.random.uniform(kg, (c,), jnp.float32, 0.5, 1.5)
        beta = 0.1 * jax.random.normal(kb, (c,), jnp.float32)
        mean = 0.1 * jax.random.normal(km, (c,), jnp.float32)
        var = jax.random.uniform(kv, (c,), jnp.float32, 0.5, 1.5)
        return gamma, beta, mean, var

    return dict(
        w1=conv_w(ks[0], planes, inplanes, 1, 1),
        w2=conv_w(ks[1], planes, planes, 3, 3),
        w3=conv_w(ks[2], pexp, planes, 1, 1),
        w4=conv_w(ks[3], pexp, inplanes, 1, 1),
        bn1=bn_p(ks[4:8], planes),
        bn2=bn_p(ks[8:12], planes),
        bn3=bn_p(ks[12:16], pexp),
        bn4=bn_p(ks[16:20], pexp),
    )


def fold_bn(p, eps=1e-5):
    gamma, beta, mean, var = p
    scale = gamma / jnp.sqrt(var + eps)
    shift = beta - mean * scale
    return scale, shift


def _pad2(a, rows, cols):
    return jnp.pad(a, ((0, rows - a.shape[0]), (0, cols - a.shape[1])))


def make_kernel_params(tp, inplanes, planes, expansion=1,
                       mxu_dtype=jnp.float32):
    """Fold BN (eval mode) into conv weights and pad channels to 128.

    bf16 mxu_dtype is recommended on all chips (v5e/v6e/v7x MXUs are native
    bf16); biases / accumulation / residual add stay f32 in the kernel.
    """
    pexp = planes * expansion
    cpad, ppad, epad = _round_up(inplanes), _round_up(planes), _round_up(pexp)
    has_projection = inplanes != pexp

    s1, b1 = fold_bn(tp["bn1"])
    s2, b2 = fold_bn(tp["bn2"])
    s3, b3 = fold_bn(tp["bn3"])

    # conv1: OIHW (P, Cin, 1, 1) -> (Cin, P), BN1 scale folded into columns.
    w1 = jnp.transpose(tp["w1"][:, :, 0, 0]) * s1[None, :]
    # conv2: OIHW (P, P, 3, 3) -> (ky, kx, Pin, Pout), BN2 folded, channel-
    # padded, kept as (9, Ppad, Ppad) so the kernel accumulates 9 small dots
    # in (dy, dx) row-major tap order.
    w2 = jnp.transpose(tp["w2"], (2, 3, 1, 0)) * s2[None, None, None, :]
    w2 = jnp.pad(w2, ((0, 0), (0, 0), (0, ppad - planes), (0, ppad - planes)))
    w2 = w2.reshape(9, ppad, ppad)
    # conv3: OIHW (Pexp, P, 1, 1) -> (P, Pexp), BN3 scale folded.
    w3 = jnp.transpose(tp["w3"][:, :, 0, 0]) * s3[None, :]

    kp = dict(
        w1=_pad2(w1, cpad, ppad).astype(mxu_dtype),
        b1=_pad2(b1.reshape(1, -1), 1, ppad),
        w2=w2.astype(mxu_dtype),
        b2=_pad2(b2.reshape(1, -1), 1, ppad),
        w3=_pad2(w3, ppad, epad).astype(mxu_dtype),
        out_channels=pexp,
        has_projection=has_projection,
    )

    if has_projection:
        s4, b4 = fold_bn(tp["bn4"])
        w4 = jnp.transpose(tp["w4"][:, :, 0, 0]) * s4[None, :]
        kp["w4"] = _pad2(w4, cpad, epad).astype(mxu_dtype)   # kept split from w3
        kp["b3"] = _pad2((b3 + b4).reshape(1, -1), 1, epad)  # fused tail bias
    else:
        kp["b3"] = _pad2(b3.reshape(1, -1), 1, epad)
    return kp


# ------------------------- pure-JAX reference (NCHW) ---------------------------

def ref_forward(x_nchw, tp, inplanes, planes, expansion=1, eps=1e-5):
    def conv(x, w, padding=0):
        return lax.conv_general_dilated(
            x, w, (1, 1), [(padding, padding)] * 2,
            dimension_numbers=("NCHW", "OIHW", "NCHW"))

    def bnorm(x, p):
        gamma, beta, mean, var = p
        inv = gamma / jnp.sqrt(var + eps)
        return (x * inv[None, :, None, None]
                + (beta - mean * inv)[None, :, None, None])

    out = jax.nn.relu(bnorm(conv(x_nchw, tp["w1"]), tp["bn1"]))
    out = jax.nn.relu(bnorm(conv(out, tp["w2"], padding=1), tp["bn2"]))
    out = bnorm(conv(out, tp["w3"]), tp["bn3"])
    if inplanes != planes * expansion:
        identity = bnorm(conv(x_nchw, tp["w4"]), tp["bn4"])
    else:
        identity = x_nchw
    return jax.nn.relu(out + identity)


if __name__ == "__main__":
    key = jax.random.PRNGKey(0)

    # --- Case 1: projection shortcut (inplanes != planes*expansion), f32 MXU.
    N, Cin, H, W = 2, 4, 16, 16
    planes, expansion = 8, 1
    kx, kparams, key = jax.random.split(key, 3)
    x = jax.random.normal(kx, (N, Cin, H, W), jnp.float32)
    tp = init_torch_params(kparams, Cin, planes, expansion)

    kp = make_kernel_params(tp, Cin, planes, expansion, mxu_dtype=jnp.float32)
    y = jax.block_until_ready(residual_block_pallas(x, kp, H=H, W=W))
    y_ref = ref_forward(x, tp, Cin, planes, expansion)
    assert y.shape == (N, planes * expansion, H, W)
    err = float(jnp.max(jnp.abs(y - y_ref)))
    assert err < 1e-4, f"projection/f32 max abs err {err}"

    # --- Same block with bf16 MXU operands (recommended on v5e/v6e/v7x),
    #     f32 accumulation; x DMA'd in bf16 since this is a projection block.
    kp_bf16 = make_kernel_params(tp, Cin, planes, expansion,
                                 mxu_dtype=jnp.bfloat16)
    y_bf16 = jax.block_until_ready(residual_block_pallas(x, kp_bf16, H=H, W=W))
    err_bf16 = float(jnp.max(jnp.abs(y_bf16.astype(jnp.float32) - y_ref)))
    assert err_bf16 < 1e-1, f"projection/bf16 max abs err {err_bf16}"

    # --- Case 2: identity shortcut (inplanes == planes*expansion), f32 MXU,
    #     exact f32 residual add.
    Cin2 = 8
    kx2, kparams2, key = jax.random.split(key, 3)
    x2 = jax.random.normal(kx2, (N, Cin2, H, W), jnp.float32)
    tp2 = init_torch_params(kparams2, Cin2, planes, expansion)
    kp2 = make_kernel_params(tp2, Cin2, planes, expansion)
    y2 = jax.block_until_ready(residual_block_pallas(x2, kp2, H=H, W=W))
    y2_ref = ref_forward(x2, tp2, Cin2, planes, expansion)
    err2 = float(jnp.max(jnp.abs(y2 - y2_ref)))
    assert err2 < 1e-4, f"identity/f32 max abs err {err2}"

    print("KERNEL_OK")
</pallas_src>

<mosaic_0001>
module attributes {stable_mosaic.version = 11 : i64} {
  func.func @_residual_block_kernel(%arg0: i32, %arg1: memref<1x256x128xf32, #tpu.memory_space<vmem>>, %arg2: memref<128x128xf32, #tpu.memory_space<vmem>>, %arg3: memref<1x128xf32, #tpu.memory_space<vmem>>, %arg4: memref<9x128x128xf32, #tpu.memory_space<vmem>>, %arg5: memref<1x128xf32, #tpu.memory_space<vmem>>, %arg6: memref<128x128xf32, #tpu.memory_space<vmem>>, %arg7: memref<1x128xf32, #tpu.memory_space<vmem>>, %arg8: memref<128x128xf32, #tpu.memory_space<vmem>>, %arg9: memref<1x256x128xf32, #tpu.memory_space<vmem>>) attributes {dimension_semantics = [#tpu.dimension_semantics<parallel>], iteration_bounds = array<i64: 2>, scalar_prefetch = 0 : i64, scratch_operands = 0 : i64, tpu.core_type = #tpu.core_type<tc>, window_params = [{transform_indices = @transform_0, window_bounds = array<i64: 1, 256, 128>}, {pipeline_mode = #tpu.pipeline_mode<synchronous>, transform_indices = @transform_1, window_bounds = array<i64: 128, 128>}, {pipeline_mode = #tpu.pipeline_mode<synchronous>, transform_indices = @transform_2, window_bounds = array<i64: 1, 128>}, {pipeline_mode = #tpu.pipeline_mode<synchronous>, transform_indices = @transform_3, window_bounds = array<i64: 9, 128, 128>}, {pipeline_mode = #tpu.pipeline_mode<synchronous>, transform_indices = @transform_4, window_bounds = array<i64: 1, 128>}, {pipeline_mode = #tpu.pipeline_mode<synchronous>, transform_indices = @transform_5, window_bounds = array<i64: 128, 128>}, {pipeline_mode = #tpu.pipeline_mode<synchronous>, transform_indices = @transform_6, window_bounds = array<i64: 1, 128>}, {pipeline_mode = #tpu.pipeline_mode<synchronous>, transform_indices = @transform_7, window_bounds = array<i64: 128, 128>}, {transform_indices = @transform_8, window_bounds = array<i64: 1, 256, 128>}]} {
    %c0 = arith.constant 0 : index
    %c0_0 = arith.constant 0 : index
    %c0_1 = arith.constant 0 : index
    %0 = vector.load %arg1[%c0, %c0_0, %c0_1] : memref<1x256x128xf32, #tpu.memory_space<vmem>>, vector<1x256x128xf32>
    %1 = vector.shape_cast %0 : vector<1x256x128xf32> to vector<256x128xf32>
    %c0_2 = arith.constant 0 : index
    %c0_3 = arith.constant 0 : index
    %2 = vector.load %arg2[%c0_2, %c0_3] : memref<128x128xf32, #tpu.memory_space<vmem>>, vector<128x128xf32>
    %cst = arith.constant dense<0.000000e+00> : vector<256x128xf32>
    %3 = tpu.matmul %1, %2, %cst {dimension_numbers = #tpu.dot_dimension_numbers<[1], [0], [0], [1], [0, 0, 1, 1], [], []>} : vector<256x128xf32>, vector<128x128xf32>, vector<256x128xf32> -> vector<256x128xf32>
    %c0_4 = arith.constant 0 : index
    %c0_5 = arith.constant 0 : index
    %4 = vector.load %arg3[%c0_4, %c0_5] : memref<1x128xf32, #tpu.memory_space<vmem>>, vector<1x128xf32>
    %5 = vector.broadcast %4 : vector<1x128xf32> to vector<256x128xf32>
    %6 = arith.addf %3, %5 : vector<256x128xf32>
    %cst_6 = arith.constant 0.000000e+00 : f32
    %7 = vector.broadcast %cst_6 : f32 to vector<256x128xf32>
    %8 = arith.maximumf %6, %7 : vector<256x128xf32>
    %9 = tpu.iota {dimensions = array<i32: 0>} : vector<256x1xi32>
    %c16_i32 = arith.constant 16 : i32
    %c0_i32 = arith.constant 0 : i32
    %10 = arith.cmpi eq, %c16_i32, %c0_i32 : i32
    %c1_i32 = arith.constant 1 : i32
    %11 = arith.select %10, %c1_i32, %c16_i32 : i32
    %12 = vector.broadcast %11 : i32 to vector<256x1xi32>
    %13 = arith.remsi %9, %12 : vector<256x1xi32>
    %c0_i32_7 = arith.constant 0 : i32
    %14 = vector.broadcast %c0_i32_7 : i32 to vector<256x1xi32>
    %15 = arith.cmpi ne, %13, %14 : vector<256x1xi32>
    %c0_i32_8 = arith.constant 0 : i32
    %16 = vector.broadcast %c0_i32_8 : i32 to vector<256x1xi32>
    %17 = arith.cmpi slt, %13, %16 : vector<256x1xi32>
    %c0_i32_9 = arith.constant 0 : i32
    %18 = arith.cmpi slt, %11, %c0_i32_9 : i32
    %19 = vector.broadcast %18 : i1 to vector<256x1xi1>
    %20 = vector.broadcast %19 : vector<256x1xi1> to vector<256x1xi1>
    %21 = arith.xori %17, %20 : vector<256x1xi1>
    %22 = arith.andi %21, %15 : vector<256x1xi1>
    %23 = vector.broadcast %11 : i32 to vector<256x1xi32>
    %24 = arith.addi %13, %23 : vector<256x1xi32>
    %25 = arith.select %22, %24, %13 : vector<256x1xi1>, vector<256x1xi32>
    %c16_i32_10 = arith.constant 16 : i32
    %26 = vector.broadcast %c16_i32_10 : i32 to vector<256x1xi32>
    %27 = arith.cmpi sge, %9, %26 : vector<256x1xi32>
    %c240_i32 = arith.constant 240 : i32
    %28 = vector.broadcast %c240_i32 : i32 to vector<256x1xi32>
    %29 = arith.cmpi slt, %9, %28 : vector<256x1xi32>
    %c1_i32_11 = arith.constant 1 : i32
    %30 = vector.broadcast %c1_i32_11 : i32 to vector<256x1xi32>
    %31 = arith.cmpi sge, %25, %30 : vector<256x1xi32>
    %c14_i32 = arith.constant 14 : i32
    %32 = vector.broadcast %c14_i32 : i32 to vector<256x1xi32>
    %33 = arith.cmpi sle, %25, %32 : vector<256x1xi32>
    %c17_i32 = arith.constant 17 : i32
    %34 = tpu.dynamic_rotate %8 by %c17_i32 dim 0 : vector<256x128xf32>, i32 -> vector<256x128xf32>
    %35 = arith.andi %27, %31 : vector<256x1xi1>
    %cst_12 = arith.constant 0.000000e+00 : f32
    %36 = vector.shape_cast %35 : vector<256x1xi1> to vector<256x1xi1>
    %37 = vector.broadcast %36 : vector<256x1xi1> to vector<256x128xi1>
    %38 = vector.broadcast %cst_12 : f32 to vector<256x128xf32>
    %39 = arith.select %37, %34, %38 : vector<256x128xi1>, vector<256x128xf32>
    %c0_13 = arith.constant 0 : index
    %c0_14 = arith.constant 0 : index
    %c0_15 = arith.constant 0 : index
    %40 = vector.load %arg4[%c0_13, %c0_14, %c0_15] : memref<9x128x128xf32, #tpu.memory_space<vmem>>, vector<1x128x128xf32>
    %41 = vector.shape_cast %40 : vector<1x128x128xf32> to vector<128x128xf32>
    %cst_16 = arith.constant dense<0.000000e+00> : vector<256x128xf32>
    %42 = tpu.matmul %39, %41, %cst_16 {dimension_numbers = #tpu.dot_dimension_numbers<[1], [0], [0], [1], [0, 0, 1, 1], [], []>} : vector<256x128xf32>, vector<128x128xf32>, vector<256x128xf32> -> vector<256x128xf32>
    %c16_i32_17 = arith.constant 16 : i32
    %43 = tpu.dynamic_rotate %8 by %c16_i32_17 dim 0 : vector<256x128xf32>, i32 -> vector<256x128xf32>
    %cst_18 = arith.constant 0.000000e+00 : f32
    %44 = vector.shape_cast %27 : vector<256x1xi1> to vector<256x1xi1>
    %45 = vector.broadcast %44 : vector<256x1xi1> to vector<256x128xi1>
    %46 = vector.broadcast %cst_18 : f32 to vector<256x128xf32>
    %47 = arith.select %45, %43, %46 : vector<256x128xi1>, vector<256x128xf32>
    %c1 = arith.constant 1 : index
    %c0_19 = arith.constant 0 : index
    %c0_20 = arith.constant 0 : index
    %48 = vector.load %arg4[%c1, %c0_19, %c0_20] : memref<9x128x128xf32, #tpu.memory_space<vmem>>, vector<1x128x128xf32>
    %49 = vector.shape_cast %48 : vector<1x128x128xf32> to vector<128x128xf32>
    %cst_21 = arith.constant dense<0.000000e+00> : vector<256x128xf32>
    %50 = tpu.matmul %47, %49, %cst_21 {dimension_numbers = #tpu.dot_dimension_numbers<[1], [0], [0], [1], [0, 0, 1, 1], [], []>} : vector<256x128xf32>, vector<128x128xf32>, vector<256x128xf32> -> vector<256x128xf32>
    %51 = arith.addf %42, %50 : vector<256x128xf32>
    %c15_i32 = arith.constant 15 : i32
    %52 = tpu.dynamic_rotate %8 by %c15_i32 dim 0 : vector<256x128xf32>, i32 -> vector<256x128xf32>
    %53 = arith.andi %27, %33 : vector<256x1xi1>
    %cst_22 = arith.constant 0.000000e+00 : f32
    %54 = vector.shape_cast %53 : vector<256x1xi1> to vector<256x1xi1>
    %55 = vector.broadcast %54 : vector<256x1xi1> to vector<256x128xi1>
    %56 = vector.broadcast %cst_22 : f32 to vector<256x128xf32>
    %57 = arith.select %55, %52, %56 : vector<256x128xi1>, vector<256x128xf32>
    %c2 = arith.constant 2 : index
    %c0_23 = arith.constant 0 : index
    %c0_24 = arith.constant 0 : index
    %58 = vector.load %arg4[%c2, %c0_23, %c0_24] : memref<9x128x128xf32, #tpu.memory_space<vmem>>, vector<1x128x128xf32>
    %59 = vector.shape_cast %58 : vector<1x128x128xf32> to vector<128x128xf32>
    %cst_25 = arith.constant dense<0.000000e+00> : vector<256x128xf32>
    %60 = tpu.matmul %57, %59, %cst_25 {dimension_numbers = #tpu.dot_dimension_numbers<[1], [0], [0], [1], [0, 0, 1, 1], [], []>} : vector<256x128xf32>, vector<128x128xf32>, vector<256x128xf32> -> vector<256x128xf32>
    %61 = arith.addf %51, %60 : vector<256x128xf32>
    %c1_i32_26 = arith.constant 1 : i32
    %62 = tpu.dynamic_rotate %8 by %c1_i32_26 dim 0 : vector<256x128xf32>, i32 -> vector<256x128xf32>
    %cst_27 = arith.constant 0.000000e+00 : f32
    %63 = vector.shape_cast %31 : vector<256x1xi1> to vector<256x1xi1>
    %64 = vector.broadcast %63 : vector<256x1xi1> to vector<256x128xi1>
    %65 = vector.broadcast %cst_27 : f32 to vector<256x128xf32>
    %66 = arith.select %64, %62, %65 : vector<256x128xi1>, vector<256x128xf32>
    %c3 = arith.constant 3 : index
    %c0_28 = arith.constant 0 : index
    %c0_29 = arith.constant 0 : index
    %67 = vector.load %arg4[%c3, %c0_28, %c0_29] : memref<9x128x128xf32, #tpu.memory_space<vmem>>, vector<1x128x128xf32>
    %68 = vector.shape_cast %67 : vector<1x128x128xf32> to vector<128x128xf32>
    %cst_30 = arith.constant dense<0.000000e+00> : vector<256x128xf32>
    %69 = tpu.matmul %66, %68, %cst_30 {dimension_numbers = #tpu.dot_dimension_numbers<[1], [0], [0], [1], [0, 0, 1, 1], [], []>} : vector<256x128xf32>, vector<128x128xf32>, vector<256x128xf32> -> vector<256x128xf32>
    %70 = arith.addf %61, %69 : vector<256x128xf32>
    %c4 = arith.constant 4 : index
    %c0_31 = arith.constant 0 : index
    %c0_32 = arith.constant 0 : index
    %71 = vector.load %arg4[%c4, %c0_31, %c0_32] : memref<9x128x128xf32, #tpu.memory_space<vmem>>, vector<1x128x128xf32>
    %72 = vector.shape_cast %71 : vector<1x128x128xf32> to vector<128x128xf32>
    %cst_33 = arith.constant dense<0.000000e+00> : vector<256x128xf32>
    %73 = tpu.matmul %8, %72, %cst_33 {dimension_numbers = #tpu.dot_dimension_numbers<[1], [0], [0], [1], [0, 0, 1, 1], [], []>} : vector<256x128xf32>, vector<128x128xf32>, vector<256x128xf32> -> vector<256x128xf32>
    %74 = arith.addf %70, %73 : vector<256x128xf32>
    %c255_i32 = arith.constant 255 : i32
    %75 = tpu.dynamic_rotate %8 by %c255_i32 dim 0 : vector<256x128xf32>, i32 -> vector<256x128xf32>
    %cst_34 = arith.constant 0.000000e+00 : f32
    %76 = vector.shape_cast %33 : vector<256x1xi1> to vector<256x1xi1>
    %77 = vector.broadcast %76 : vector<256x1xi1> to vector<256x128xi1>
    %78 = vector.broadcast %cst_34 : f32 to vector<256x128xf32>
    %79 = arith.select %77, %75, %78 : vector<256x128xi1>, vector<256x128xf32>
    %c5 = arith.constant 5 : index
    %c0_35 = arith.constant 0 : index
    %c0_36 = arith.constant 0 : index
    %80 = vector.load %arg4[%c5, %c0_35, %c0_36] : memref<9x128x128xf32, #tpu.memory_space<vmem>>, vector<1x128x128xf32>
    %81 = vector.shape_cast %80 : vector<1x128x128xf32> to vector<128x128xf32>
    %cst_37 = arith.constant dense<0.000000e+00> : vector<256x128xf32>
    %82 = tpu.matmul %79, %81, %cst_37 {dimension_numbers = #tpu.dot_dimension_numbers<[1], [0], [0], [1], [0, 0, 1, 1], [], []>} : vector<256x128xf32>, vector<128x128xf32>, vector<256x128xf32> -> vector<256x128xf32>
    %83 = arith.addf %74, %82 : vector<256x128xf32>
    %c241_i32 = arith.constant 241 : i32
    %84 = tpu.dynamic_rotate %8 by %c241_i32 dim 0 : vector<256x128xf32>, i32 -> vector<256x128xf32>
    %85 = arith.andi %29, %31 : vector<256x1xi1>
    %cst_38 = arith.constant 0.000000e+00 : f32
    %86 = vector.shape_cast %85 : vector<256x1xi1> to vector<256x1xi1>
    %87 = vector.broadcast %86 : vector<256x1xi1> to vector<256x128xi1>
    %88 = vector.broadcast %cst_38 : f32 to vector<256x128xf32>
    %89 = arith.select %87, %84, %88 : vector<256x128xi1>, vector<256x128xf32>
    %c6 = arith.constant 6 : index
    %c0_39 = arith.constant 0 : index
    %c0_40 = arith.constant 0 : index
    %90 = vector.load %arg4[%c6, %c0_39, %c0_40] : memref<9x128x128xf32, #tpu.memory_space<vmem>>, vector<1x128x128xf32>
    %91 = vector.shape_cast %90 : vector<1x128x128xf32> to vector<128x128xf32>
    %cst_41 = arith.constant dense<0.000000e+00> : vector<256x128xf32>
    %92 = tpu.matmul %89, %91, %cst_41 {dimension_numbers = #tpu.dot_dimension_numbers<[1], [0], [0], [1], [0, 0, 1, 1], [], []>} : vector<256x128xf32>, vector<128x128xf32>, vector<256x128xf32> -> vector<256x128xf32>
    %93 = arith.addf %83, %92 : vector<256x128xf32>
    %c240_i32_42 = arith.constant 240 : i32
    %94 = tpu.dynamic_rotate %8 by %c240_i32_42 dim 0 : vector<256x128xf32>, i32 -> vector<256x128xf32>
    %cst_43 = arith.constant 0.000000e+00 : f32
    %95 = vector.shape_cast %29 : vector<256x1xi1> to vector<256x1xi1>
    %96 = vector.broadcast %95 : vector<256x1xi1> to vector<256x128xi1>
    %97 = vector.broadcast %cst_43 : f32 to vector<256x128xf32>
    %98 = arith.select %96, %94, %97 : vector<256x128xi1>, vector<256x128xf32>
    %c7 = arith.constant 7 : index
    %c0_44 = arith.constant 0 : index
    %c0_45 = arith.constant 0 : index
    %99 = vector.load %arg4[%c7, %c0_44, %c0_45] : memref<9x128x128xf32, #tpu.memory_space<vmem>>, vector<1x128x128xf32>
    %100 = vector.shape_cast %99 : vector<1x128x128xf32> to vector<128x128xf32>
    %cst_46 = arith.constant dense<0.000000e+00> : vector<256x128xf32>
    %101 = tpu.matmul %98, %100, %cst_46 {dimension_numbers = #tpu.dot_dimension_numbers<[1], [0], [0], [1], [0, 0, 1, 1], [], []>} : vector<256x128xf32>, vector<128x128xf32>, vector<256x128xf32> -> vector<256x128xf32>
    %102 = arith.addf %93, %101 : vector<256x128xf32>
    %c239_i32 = arith.constant 239 : i32
    %103 = tpu.dynamic_rotate %8 by %c239_i32 dim 0 : vector<256x128xf32>, i32 -> vector<256x128xf32>
    %104 = arith.andi %29, %33 : vector<256x1xi1>
    %cst_47 = arith.constant 0.000000e+00 : f32
    %105 = vector.shape_cast %104 : vector<256x1xi1> to vector<256x1xi1>
    %106 = vector.broadcast %105 : vector<256x1xi1> to vector<256x128xi1>
    %107 = vector.broadcast %cst_47 : f32 to vector<256x128xf32>
    %108 = arith.select %106, %103, %107 : vector<256x128xi1>, vector<256x128xf32>
    %c8 = arith.constant 8 : index
    %c0_48 = arith.constant 0 : index
    %c0_49 = arith.constant 0 : index
    %109 = vector.load %arg4[%c8, %c0_48, %c0_49] : memref<9x128x128xf32, #tpu.memory_space<vmem>>, vector<1x128x128xf32>
    %110 = vector.shape_cast %109 : vector<1x128x128xf32> to vector<128x128xf32>
    %cst_50 = arith.constant dense<0.000000e+00> : vector<256x128xf32>
    %111 = tpu.matmul %108, %110, %cst_50 {dimension_numbers = #tpu.dot_dimension_numbers<[1], [0], [0], [1], [0, 0, 1, 1], [], []>} : vector<256x128xf32>, vector<128x128xf32>, vector<256x128xf32> -> vector<256x128xf32>
    %112 = arith.addf %102, %111 : vector<256x128xf32>
    %c0_51 = arith.constant 0 : index
    %c0_52 = arith.constant 0 : index
    %113 = vector.load %arg5[%c0_51, %c0_52] : memref<1x128xf32, #tpu.memory_space<vmem>>, vector<1x128xf32>
    %114 = vector.broadcast %113 : vector<1x128xf32> to vector<256x128xf32>
    %115 = arith.addf %112, %114 : vector<256x128xf32>
    %cst_53 = arith.constant 0.000000e+00 : f32
    %116 = vector.broadcast %cst_53 : f32 to vector<256x128xf32>
    %117 = arith.maximumf %115, %116 : vector<256x128xf32>
    %c0_54 = arith.constant 0 : index
    %c0_55 = arith.constant 0 : index
    %118 = vector.load %arg6[%c0_54, %c0_55] : memref<128x128xf32, #tpu.memory_space<vmem>>, vector<128x128xf32>
    %cst_56 = arith.constant dense<0.000000e+00> : vector<256x128xf32>
    %119 = tpu.matmul %117, %118, %cst_56 {dimension_numbers = #tpu.dot_dimension_numbers<[1], [0], [0], [1], [0, 0, 1, 1], [], []>} : vector<256x128xf32>, vector<128x128xf32>, vector<256x128xf32> -> vector<256x128xf32>
    %c0_57 = arith.constant 0 : index
    %c0_58 = arith.constant 0 : index
    %120 = vector.load %arg8[%c0_57, %c0_58] : memref<128x128xf32, #tpu.memory_space<vmem>>, vector<128x128xf32>
    %cst_59 = arith.constant dense<0.000000e+00> : vector<256x128xf32>
    %121 = tpu.matmul %1, %120, %cst_59 {dimension_numbers = #tpu.dot_dimension_numbers<[1], [0], [0], [1], [0, 0, 1, 1], [], []>} : vector<256x128xf32>, vector<128x128xf32>, vector<256x128xf32> -> vector<256x128xf32>
    %122 = arith.addf %119, %121 : vector<256x128xf32>
    %c0_60 = arith.constant 0 : index
    %c0_61 = arith.constant 0 : index
    %123 = vector.load %arg7[%c0_60, %c0_61] : memref<1x128xf32, #tpu.memory_space<vmem>>, vector<1x128xf32>
    %124 = vector.broadcast %123 : vector<1x128xf32> to vector<256x128xf32>
    %125 = arith.addf %122, %124 : vector<256x128xf32>
    %cst_62 = arith.constant 0.000000e+00 : f32
    %126 = vector.broadcast %cst_62 : f32 to vector<256x128xf32>
    %127 = arith.maximumf %125, %126 : vector<256x128xf32>
    %c0_63 = arith.constant 0 : index
    %c0_64 = arith.constant 0 : index
    %c0_65 = arith.constant 0 : index
    %128 = vector.load %arg9[%c0_63, %c0_64, %c0_65] : memref<1x256x128xf32, #tpu.memory_space<vmem>>, vector<1x256x128xf32>
    %129 = vector.shape_cast %128 : vector<1x256x128xf32> to vector<256x128xf32>
    %130 = vector.shape_cast %127 : vector<256x128xf32> to vector<1x256x128xf32>
    tpu.vector_store %arg9[%c0_63, %c0_64, %c0_65], %130 {strides = array<i32>} : memref<1x256x128xf32, #tpu.memory_space<vmem>>, vector<1x256x128xf32>,
    return
  }
  func.func @transform_0(%arg0: i32) -> (i32, i32, i32) {
    %c0_i32 = arith.constant 0 : i32
    %c0_i32_0 = arith.constant 0 : i32
    %c0_i32_1 = arith.constant 0 : i32
    return %arg0, %c0_i32, %c0_i32_0 : i32, i32, i32
  }
  func.func @transform_1(%arg0: i32) -> (i32, i32) {
    %c0_i32 = arith.constant 0 : i32
    %c0_i32_0 = arith.constant 0 : i32
    %c0_i32_1 = arith.constant 0 : i32
    return %c0_i32, %c0_i32_0 : i32, i32
  }
  func.func @transform_2(%arg0: i32) -> (i32, i32) {
    %c0_i32 = arith.constant 0 : i32
    %c0_i32_0 = arith.constant 0 : i32
    %c0_i32_1 = arith.constant 0 : i32
    return %c0_i32, %c0_i32_0 : i32, i32
  }
  func.func @transform_3(%arg0: i32) -> (i32, i32, i32) {
    %c0_i32 = arith.constant 0 : i32
    %c0_i32_0 = arith.constant 0 : i32
    %c0_i32_1 = arith.constant 0 : i32
    %c0_i32_2 = arith.constant 0 : i32
    return %c0_i32, %c0_i32_0, %c0_i32_1 : i32, i32, i32
  }
  func.func @transform_4(%arg0: i32) -> (i32, i32) {
    %c0_i32 = arith.constant 0 : i32
    %c0_i32_0 = arith.constant 0 : i32
    %c0_i32_1 = arith.constant 0 : i32
    return %c0_i32, %c0_i32_0 : i32, i32
  }
  func.func @transform_5(%arg0: i32) -> (i32, i32) {
    %c0_i32 = arith.constant 0 : i32
    %c0_i32_0 = arith.constant 0 : i32
    %c0_i32_1 = arith.constant 0 : i32
    return %c0_i32, %c0_i32_0 : i32, i32
  }
  func.func @transform_6(%arg0: i32) -> (i32, i32) {
    %c0_i32 = arith.constant 0 : i32
    %c0_i32_0 = arith.constant 0 : i32
    %c0_i32_1 = arith.constant 0 : i32
    return %c0_i32, %c0_i32_0 : i32, i32
  }
  func.func @transform_7(%arg0: i32) -> (i32, i32) {
    %c0_i32 = arith.constant 0 : i32
    %c0_i32_0 = arith.constant 0 : i32
    %c0_i32_1 = arith.constant 0 : i32
    return %c0_i32, %c0_i32_0 : i32, i32
  }
  func.func @transform_8(%arg0: i32) -> (i32, i32, i32) {
    %c0_i32 = arith.constant 0 : i32
    %c0_i32_0 = arith.constant 0 : i32
    %c0_i32_1 = arith.constant 0 : i32
    return %arg0, %c0_i32, %c0_i32_0 : i32, i32, i32
  }
}

module attributes {stable_mosaic.version = 11 : i64} {
  func.func @_residual_block_kernel(%arg0: i32, %arg1: memref<1x256x128xf32, #tpu.memory_space<vmem>>, %arg2: memref<128x128xf32, #tpu.memory_space<vmem>>, %arg3: memref<1x128xf32, #tpu.memory_space<vmem>>, %arg4: memref<9x128x128xf32, #tpu.memory_space<vmem>>, %arg5: memref<1x128xf32, #tpu.memory_space<vmem>>, %arg6: memref<128x128xf32, #tpu.memory_space<vmem>>, %arg7: memref<1x128xf32, #tpu.memory_space<vmem>>, %arg8: memref<128x128xf32, #tpu.memory_space<vmem>>, %arg9: memref<1x256x128xf32, #tpu.memory_space<vmem>>) attributes {dimension_semantics = [#tpu.dimension_semantics<parallel>], iteration_bounds = array<i64: 2>, scalar_prefetch = 0 : i64, scratch_operands = 0 : i64, tpu.core_type = #tpu.core_type<tc>, window_params = [{transform_indices = @transform_0, window_bounds = array<i64: 1, 256, 128>}, {pipeline_mode = #tpu.pipeline_mode<synchronous>, transform_indices = @transform_1, window_bounds = array<i64: 128, 128>}, {pipeline_mode = #tpu.pipeline_mode<synchronous>, transform_indices = @transform_2, window_bounds = array<i64: 1, 128>}, {pipeline_mode = #tpu.pipeline_mode<synchronous>, transform_indices = @transform_3, window_bounds = array<i64: 9, 128, 128>}, {pipeline_mode = #tpu.pipeline_mode<synchronous>, transform_indices = @transform_4, window_bounds = array<i64: 1, 128>}, {pipeline_mode = #tpu.pipeline_mode<synchronous>, transform_indices = @transform_5, window_bounds = array<i64: 128, 128>}, {pipeline_mode = #tpu.pipeline_mode<synchronous>, transform_indices = @transform_6, window_bounds = array<i64: 1, 128>}, {pipeline_mode = #tpu.pipeline_mode<synchronous>, transform_indices = @transform_7, window_bounds = array<i64: 128, 128>}, {transform_indices = @transform_8, window_bounds = array<i64: 1, 256, 128>}]} {
    %c0 = arith.constant 0 : index
    %c0_0 = arith.constant 0 : index
    %c0_1 = arith.constant 0 : index
    %0 = vector.load %arg1[%c0, %c0_0, %c0_1] : memref<1x256x128xf32, #tpu.memory_space<vmem>>, vector<1x256x128xf32>
    %1 = vector.shape_cast %0 : vector<1x256x128xf32> to vector<256x128xf32>
    %c0_2 = arith.constant 0 : index
    %c0_3 = arith.constant 0 : index
    %2 = vector.load %arg2[%c0_2, %c0_3] : memref<128x128xf32, #tpu.memory_space<vmem>>, vector<128x128xf32>
    %cst = arith.constant dense<0.000000e+00> : vector<256x128xf32>
    %3 = tpu.matmul %1, %2, %cst {dimension_numbers = #tpu.dot_dimension_numbers<[1], [0], [0], [1], [0, 0, 1, 1], [], []>} : vector<256x128xf32>, vector<128x128xf32>, vector<256x128xf32> -> vector<256x128xf32>
    %c0_4 = arith.constant 0 : index
    %c0_5 = arith.constant 0 : index
    %4 = vector.load %arg3[%c0_4, %c0_5] : memref<1x128xf32, #tpu.memory_space<vmem>>, vector<1x128xf32>
    %5 = vector.broadcast %4 : vector<1x128xf32> to vector<256x128xf32>
    %6 = arith.addf %3, %5 : vector<256x128xf32>
    %cst_6 = arith.constant 0.000000e+00 : f32
    %7 = vector.broadcast %cst_6 : f32 to vector<256x128xf32>
    %8 = arith.maximumf %6, %7 : vector<256x128xf32>
    %9 = tpu.iota {dimensions = array<i32: 0>} : vector<256x1xi32>
    %c16_i32 = arith.constant 16 : i32
    %c0_i32 = arith.constant 0 : i32
    %10 = arith.cmpi eq, %c16_i32, %c0_i32 : i32
    %c1_i32 = arith.constant 1 : i32
    %11 = arith.select %10, %c1_i32, %c16_i32 : i32
    %12 = vector.broadcast %11 : i32 to vector<256x1xi32>
    %13 = arith.remsi %9, %12 : vector<256x1xi32>
    %c0_i32_7 = arith.constant 0 : i32
    %14 = vector.broadcast %c0_i32_7 : i32 to vector<256x1xi32>
    %15 = arith.cmpi ne, %13, %14 : vector<256x1xi32>
    %c0_i32_8 = arith.constant 0 : i32
    %16 = vector.broadcast %c0_i32_8 : i32 to vector<256x1xi32>
    %17 = arith.cmpi slt, %13, %16 : vector<256x1xi32>
    %c0_i32_9 = arith.constant 0 : i32
    %18 = arith.cmpi slt, %11, %c0_i32_9 : i32
    %19 = vector.broadcast %18 : i1 to vector<256x1xi1>
    %20 = vector.broadcast %19 : vector<256x1xi1> to vector<256x1xi1>
    %21 = arith.xori %17, %20 : vector<256x1xi1>
    %22 = arith.andi %21, %15 : vector<256x1xi1>
    %23 = vector.broadcast %11 : i32 to vector<256x1xi32>
    %24 = arith.addi %13, %23 : vector<256x1xi32>
    %25 = arith.select %22, %24, %13 : vector<256x1xi1>, vector<256x1xi32>
    %c16_i32_10 = arith.constant 16 : i32
    %26 = vector.broadcast %c16_i32_10 : i32 to vector<256x1xi32>
    %27 = arith.cmpi sge, %9, %26 : vector<256x1xi32>
    %c240_i32 = arith.constant 240 : i32
    %28 = vector.broadcast %c240_i32 : i32 to vector<256x1xi32>
    %29 = arith.cmpi slt, %9, %28 : vector<256x1xi32>
    %c1_i32_11 = arith.constant 1 : i32
    %30 = vector.broadcast %c1_i32_11 : i32 to vector<256x1xi32>
    %31 = arith.cmpi sge, %25, %30 : vector<256x1xi32>
    %c14_i32 = arith.constant 14 : i32
    %32 = vector.broadcast %c14_i32 : i32 to vector<256x1xi32>
    %33 = arith.cmpi sle, %25, %32 : vector<256x1xi32>
    %c17_i32 = arith.constant 17 : i32
    %34 = tpu.dynamic_rotate %8 by %c17_i32 dim 0 : vector<256x128xf32>, i32 -> vector<256x128xf32>
    %35 = arith.andi %27, %31 : vector<256x1xi1>
    %cst_12 = arith.constant 0.000000e+00 : f32
    %36 = vector.shape_cast %35 : vector<256x1xi1> to vector<256x1xi1>
    %37 = vector.broadcast %36 : vector<256x1xi1> to vector<256x128xi1>
    %38 = vector.broadcast %cst_12 : f32 to vector<256x128xf32>
    %39 = arith.select %37, %34, %38 : vector<256x128xi1>, vector<256x128xf32>
    %c0_13 = arith.constant 0 : index
    %c0_14 = arith.constant 0 : index
    %c0_15 = arith.constant 0 : index
    %40 = vector.load %arg4[%c0_13, %c0_14, %c0_15] : memref<9x128x128xf32, #tpu.memory_space<vmem>>, vector<1x128x128xf32>
    %41 = vector.shape_cast %40 : vector<1x128x128xf32> to vector<128x128xf32>
    %cst_16 = arith.constant dense<0.000000e+00> : vector<256x128xf32>
    %42 = tpu.matmul %39, %41, %cst_16 {dimension_numbers = #tpu.dot_dimension_numbers<[1], [0], [0], [1], [0, 0, 1, 1], [], []>} : vector<256x128xf32>, vector<128x128xf32>, vector<256x128xf32> -> vector<256x128xf32>
    %c16_i32_17 = arith.constant 16 : i32
    %43 = tpu.dynamic_rotate %8 by %c16_i32_17 dim 0 : vector<256x128xf32>, i32 -> vector<256x128xf32>
    %cst_18 = arith.constant 0.000000e+00 : f32
    %44 = vector.shape_cast %27 : vector<256x1xi1> to vector<256x1xi1>
    %45 = vector.broadcast %44 : vector<256x1xi1> to vector<256x128xi1>
    %46 = vector.broadcast %cst_18 : f32 to vector<256x128xf32>
    %47 = arith.select %45, %43, %46 : vector<256x128xi1>, vector<256x128xf32>
    %c1 = arith.constant 1 : index
    %c0_19 = arith.constant 0 : index
    %c0_20 = arith.constant 0 : index
    %48 = vector.load %arg4[%c1, %c0_19, %c0_20] : memref<9x128x128xf32, #tpu.memory_space<vmem>>, vector<1x128x128xf32>
    %49 = vector.shape_cast %48 : vector<1x128x128xf32> to vector<128x128xf32>
    %cst_21 = arith.constant dense<0.000000e+00> : vector<256x128xf32>
    %50 = tpu.matmul %47, %49, %cst_21 {dimension_numbers = #tpu.dot_dimension_numbers<[1], [0], [0], [1], [0, 0, 1, 1], [], []>} : vector<256x128xf32>, vector<128x128xf32>, vector<256x128xf32> -> vector<256x128xf32>
    %51 = arith.addf %42, %50 : vector<256x128xf32>
    %c15_i32 = arith.constant 15 : i32
    %52 = tpu.dynamic_rotate %8 by %c15_i32 dim 0 : vector<256x128xf32>, i32 -> vector<256x128xf32>
    %53 = arith.andi %27, %33 : vector<256x1xi1>
    %cst_22 = arith.constant 0.000000e+00 : f32
    %54 = vector.shape_cast %53 : vector<256x1xi1> to vector<256x1xi1>
    %55 = vector.broadcast %54 : vector<256x1xi1> to vector<256x128xi1>
    %56 = vector.broadcast %cst_22 : f32 to vector<256x128xf32>
    %57 = arith.select %55, %52, %56 : vector<256x128xi1>, vector<256x128xf32>
    %c2 = arith.constant 2 : index
    %c0_23 = arith.constant 0 : index
    %c0_24 = arith.constant 0 : index
    %58 = vector.load %arg4[%c2, %c0_23, %c0_24] : memref<9x128x128xf32, #tpu.memory_space<vmem>>, vector<1x128x128xf32>
    %59 = vector.shape_cast %58 : vector<1x128x128xf32> to vector<128x128xf32>
    %cst_25 = arith.constant dense<0.000000e+00> : vector<256x128xf32>
    %60 = tpu.matmul %57, %59, %cst_25 {dimension_numbers = #tpu.dot_dimension_numbers<[1], [0], [0], [1], [0, 0, 1, 1], [], []>} : vector<256x128xf32>, vector<128x128xf32>, vector<256x128xf32> -> vector<256x128xf32>
    %61 = arith.addf %51, %60 : vector<256x128xf32>
    %c1_i32_26 = arith.constant 1 : i32
    %62 = tpu.dynamic_rotate %8 by %c1_i32_26 dim 0 : vector<256x128xf32>, i32 -> vector<256x128xf32>
    %cst_27 = arith.constant 0.000000e+00 : f32
    %63 = vector.shape_cast %31 : vector<256x1xi1> to vector<256x1xi1>
    %64 = vector.broadcast %63 : vector<256x1xi1> to vector<256x128xi1>
    %65 = vector.broadcast %cst_27 : f32 to vector<256x128xf32>
    %66 = arith.select %64, %62, %65 : vector<256x128xi1>, vector<256x128xf32>
    %c3 = arith.constant 3 : index
    %c0_28 = arith.constant 0 : index
    %c0_29 = arith.constant 0 : index
    %67 = vector.load %arg4[%c3, %c0_28, %c0_29] : memref<9x128x128xf32, #tpu.memory_space<vmem>>, vector<1x128x128xf32>
    %68 = vector.shape_cast %67 : vector<1x128x128xf32> to vector<128x128xf32>
    %cst_30 = arith.constant dense<0.000000e+00> : vector<256x128xf32>
    %69 = tpu.matmul %66, %68, %cst_30 {dimension_numbers = #tpu.dot_dimension_numbers<[1], [0], [0], [1], [0, 0, 1, 1], [], []>} : vector<256x128xf32>, vector<128x128xf32>, vector<256x128xf32> -> vector<256x128xf32>
    %70 = arith.addf %61, %69 : vector<256x128xf32>
    %c4 = arith.constant 4 : index
    %c0_31 = arith.constant 0 : index
    %c0_32 = arith.constant 0 : index
    %71 = vector.load %arg4[%c4, %c0_31, %c0_32] : memref<9x128x128xf32, #tpu.memory_space<vmem>>, vector<1x128x128xf32>
    %72 = vector.shape_cast %71 : vector<1x128x128xf32> to vector<128x128xf32>
    %cst_33 = arith.constant dense<0.000000e+00> : vector<256x128xf32>
    %73 = tpu.matmul %8, %72, %cst_33 {dimension_numbers = #tpu.dot_dimension_numbers<[1], [0], [0], [1], [0, 0, 1, 1], [], []>} : vector<256x128xf32>, vector<128x128xf32>, vector<256x128xf32> -> vector<256x128xf32>
    %74 = arith.addf %70, %73 : vector<256x128xf32>
    %c255_i32 = arith.constant 255 : i32
    %75 = tpu.dynamic_rotate %8 by %c255_i32 dim 0 : vector<256x128xf32>, i32 -> vector<256x128xf32>
    %cst_34 = arith.constant 0.000000e+00 : f32
    %76 = vector.shape_cast %33 : vector<256x1xi1> to vector<256x1xi1>
    %77 = vector.broadcast %76 : vector<256x1xi1> to vector<256x128xi1>
    %78 = vector.broadcast %cst_34 : f32 to vector<256x128xf32>
    %79 = arith.select %77, %75, %78 : vector<256x128xi1>, vector<256x128xf32>
    %c5 = arith.constant 5 : index
    %c0_35 = arith.constant 0 : index
    %c0_36 = arith.constant 0 : index
    %80 = vector.load %arg4[%c5, %c0_35, %c0_36] : memref<9x128x128xf32, #tpu.memory_space<vmem>>, vector<1x128x128xf32>
    %81 = vector.shape_cast %80 : vector<1x128x128xf32> to vector<128x128xf32>
    %cst_37 = arith.constant dense<0.000000e+00> : vector<256x128xf32>
    %82 = tpu.matmul %79, %81, %cst_37 {dimension_numbers = #tpu.dot_dimension_numbers<[1], [0], [0], [1], [0, 0, 1, 1], [], []>} : vector<256x128xf32>, vector<128x128xf32>, vector<256x128xf32> -> vector<256x128xf32>
    %83 = arith.addf %74, %82 : vector<256x128xf32>
    %c241_i32 = arith.constant 241 : i32
    %84 = tpu.dynamic_rotate %8 by %c241_i32 dim 0 : vector<256x128xf32>, i32 -> vector<256x128xf32>
    %85 = arith.andi %29, %31 : vector<256x1xi1>
    %cst_38 = arith.constant 0.000000e+00 : f32
    %86 = vector.shape_cast %85 : vector<256x1xi1> to vector<256x1xi1>
    %87 = vector.broadcast %86 : vector<256x1xi1> to vector<256x128xi1>
    %88 = vector.broadcast %cst_38 : f32 to vector<256x128xf32>
    %89 = arith.select %87, %84, %88 : vector<256x128xi1>, vector<256x128xf32>
    %c6 = arith.constant 6 : index
    %c0_39 = arith.constant 0 : index
    %c0_40 = arith.constant 0 : index
    %90 = vector.load %arg4[%c6, %c0_39, %c0_40] : memref<9x128x128xf32, #tpu.memory_space<vmem>>, vector<1x128x128xf32>
    %91 = vector.shape_cast %90 : vector<1x128x128xf32> to vector<128x128xf32>
    %cst_41 = arith.constant dense<0.000000e+00> : vector<256x128xf32>
    %92 = tpu.matmul %89, %91, %cst_41 {dimension_numbers = #tpu.dot_dimension_numbers<[1], [0], [0], [1], [0, 0, 1, 1], [], []>} : vector<256x128xf32>, vector<128x128xf32>, vector<256x128xf32> -> vector<256x128xf32>
    %93 = arith.addf %83, %92 : vector<256x128xf32>
    %c240_i32_42 = arith.constant 240 : i32
    %94 = tpu.dynamic_rotate %8 by %c240_i32_42 dim 0 : vector<256x128xf32>, i32 -> vector<256x128xf32>
    %cst_43 = arith.constant 0.000000e+00 : f32
    %95 = vector.shape_cast %29 : vector<256x1xi1> to vector<256x1xi1>
    %96 = vector.broadcast %95 : vector<256x1xi1> to vector<256x128xi1>
    %97 = vector.broadcast %cst_43 : f32 to vector<256x128xf32>
    %98 = arith.select %96, %94, %97 : vector<256x128xi1>, vector<256x128xf32>
    %c7 = arith.constant 7 : index
    %c0_44 = arith.constant 0 : index
    %c0_45 = arith.constant 0 : index
    %99 = vector.load %arg4[%c7, %c0_44, %c0_45] : memref<9x128x128xf32, #tpu.memory_space<vmem>>, vector<1x128x128xf32>
    %100 = vector.shape_cast %99 : vector<1x128x128xf32> to vector<128x128xf32>
    %cst_46 = arith.constant dense<0.000000e+00> : vector<256x128xf32>
    %101 = tpu.matmul %98, %100, %cst_46 {dimension_numbers = #tpu.dot_dimension_numbers<[1], [0], [0], [1], [0, 0, 1, 1], [], []>} : vector<256x128xf32>, vector<128x128xf32>, vector<256x128xf32> -> vector<256x128xf32>
    %102 = arith.addf %93, %101 : vector<256x128xf32>
    %c239_i32 = arith.constant 239 : i32
    %103 = tpu.dynamic_rotate %8 by %c239_i32 dim 0 : vector<256x128xf32>, i32 -> vector<256x128xf32>
    %104 = arith.andi %29, %33 : vector<256x1xi1>
    %cst_47 = arith.constant 0.000000e+00 : f32
    %105 = vector.shape_cast %104 : vector<256x1xi1> to vector<256x1xi1>
    %106 = vector.broadcast %105 : vector<256x1xi1> to vector<256x128xi1>
    %107 = vector.broadcast %cst_47 : f32 to vector<256x128xf32>
    %108 = arith.select %106, %103, %107 : vector<256x128xi1>, vector<256x128xf32>
    %c8 = arith.constant 8 : index
    %c0_48 = arith.constant 0 : index
    %c0_49 = arith.constant 0 : index
    %109 = vector.load %arg4[%c8, %c0_48, %c0_49] : memref<9x128x128xf32, #tpu.memory_space<vmem>>, vector<1x128x128xf32>
    %110 = vector.shape_cast %109 : vector<1x128x128xf32> to vector<128x128xf32>
    %cst_50 = arith.constant dense<0.000000e+00> : vector<256x128xf32>
    %111 = tpu.matmul %108, %110, %cst_50 {dimension_numbers = #tpu.dot_dimension_numbers<[1], [0], [0], [1], [0, 0, 1, 1], [], []>} : vector<256x128xf32>, vector<128x128xf32>, vector<256x128xf32> -> vector<256x128xf32>
    %112 = arith.addf %102, %111 : vector<256x128xf32>
    %c0_51 = arith.constant 0 : index
    %c0_52 = arith.constant 0 : index
    %113 = vector.load %arg5[%c0_51, %c0_52] : memref<1x128xf32, #tpu.memory_space<vmem>>, vector<1x128xf32>
    %114 = vector.broadcast %113 : vector<1x128xf32> to vector<256x128xf32>
    %115 = arith.addf %112, %114 : vector<256x128xf32>
    %cst_53 = arith.constant 0.000000e+00 : f32
    %116 = vector.broadcast %cst_53 : f32 to vector<256x128xf32>
    %117 = arith.maximumf %115, %116 : vector<256x128xf32>
    %c0_54 = arith.constant 0 : index
    %c0_55 = arith.constant 0 : index
    %118 = vector.load %arg6[%c0_54, %c0_55] : memref<128x128xf32, #tpu.memory_space<vmem>>, vector<128x128xf32>
    %cst_56 = arith.constant dense<0.000000e+00> : vector<256x128xf32>
    %119 = tpu.matmul %117, %118, %cst_56 {dimension_numbers = #tpu.dot_dimension_numbers<[1], [0], [0], [1], [0, 0, 1, 1], [], []>} : vector<256x128xf32>, vector<128x128xf32>, vector<256x128xf32> -> vector<256x128xf32>
    %c0_57 = arith.constant 0 : index
    %c0_58 = arith.constant 0 : index
    %120 = vector.load %arg8[%c0_57, %c0_58] : memref<128x128xf32, #tpu.memory_space<vmem>>, vector<128x128xf32>
    %cst_59 = arith.constant dense<0.000000e+00> : vector<256x128xf32>
    %121 = tpu.matmul %1, %120, %cst_59 {dimension_numbers = #tpu.dot_dimension_numbers<[1], [0], [0], [1], [0, 0, 1, 1], [], []>} : vector<256x128xf32>, vector<128x128xf32>, vector<256x128xf32> -> vector<256x128xf32>
    %122 = arith.addf %119, %121 : vector<256x128xf32>
    %c0_60 = arith.constant 0 : index
    %c0_61 = arith.constant 0 : index
    %123 = vector.load %arg7[%c0_60, %c0_61] : memref<1x128xf32, #tpu.memory_space<vmem>>, vector<1x128xf32>
    %124 = vector.broadcast %123 : vector<1x128xf32> to vector<256x128xf32>
    %125 = arith.addf %122, %124 : vector<256x128xf32>
    %cst_62 = arith.constant 0.000000e+00 : f32
    %126 = vector.broadcast %cst_62 : f32 to vector<256x128xf32>
    %127 = arith.maximumf %125, %126 : vector<256x128xf32>
    %c0_63 = arith.constant 0 : index
    %c0_64 = arith.constant 0 : index
    %c0_65 = arith.constant 0 : index
    %128 = vector.load %arg9[%c0_63, %c0_64, %c0_65] : memref<1x256x128xf32, #tpu.memory_space<vmem>>, vector<1x256x128xf32>
    %129 = vector.shape_cast %128 : vector<1x256x128xf32> to vector<256x128xf32>
    %130 = vector.shape_cast %127 : vector<256x128xf32> to vector<1x256x128xf32>
    tpu.vector_store %arg9[%c0_63, %c0_64, %c0_65], %130 {strides = array<i32>} : memref<1x256x128xf32, #tpu.memory_space<vmem>>, vector<1x256x128xf32>,
    return
  }
  func.func @transform_0(%arg0: i32) -> (i32, i32, i32) {
    %c0_i32 = arith.constant 0 : i32
    %c0_i32_0 = arith.constant 0 : i32
    %c0_i32_1 = arith.constant 0 : i32
    return %arg0, %c0_i32, %c0_i32_0 : i32, i32, i32
  }
  func.func @transform_1(%arg0: i32) -> (i32, i32) {
    %c0_i32 = arith.constant 0 : i32
    %c0_i32_0 = arith.constant 0 : i32
    %c0_i32_1 = arith.constant 0 : i32
    return %c0_i32, %c0_i32_0 : i32, i32
  }
  func.func @transform_2(%arg0: i32) -> (i32, i32) {
    %c0_i32 = arith.constant 0 : i32
    %c0_i32_0 = arith.constant 0 : i32
    %c0_i32_1 = arith.constant 0 : i32
    return %c0_i32, %c0_i32_0 : i32, i32
  }
  func.func @transform_3(%arg0: i32) -> (i32, i32, i32) {
    %c0_i32 = arith.constant 0 : i32
    %c0_i32_0 = arith.constant 0 : i32
    %c0_i32_1 = arith.constant 0 : i32
    %c0_i32_2 = arith.constant 0 : i32
    return %c0_i32, %c0_i32_0, %c0_i32_1 : i32, i32, i32
  }
  func.func @transform_4(%arg0: i32) -> (i32, i32) {
    %c0_i32 = arith.constant 0 : i32
    %c0_i32_0 = arith.constant 0 : i32
    %c0_i32_1 = arith.constant 0 : i32
    return %c0_i32, %c0_i32_0 : i32, i32
  }
  func.func @transform_5(%arg0: i32) -> (i32, i32) {
    %c0_i32 = arith.constant 0 : i32
    %c0_i32_0 = arith.constant 0 : i32
    %c0_i32_1 = arith.constant 0 : i32
    return %c0_i32, %c0_i32_0 : i32, i32
  }
  func.func @transform_6(%arg0: i32) -> (i32, i32) {
    %c0_i32 = arith.constant 0 : i32
    %c0_i32_0 = arith.constant 0 : i32
    %c0_i32_1 = arith.constant 0 : i32
    return %c0_i32, %c0_i32_0 : i32, i32
  }
  func.func @transform_7(%arg0: i32) -> (i32, i32) {
    %c0_i32 = arith.constant 0 : i32
    %c0_i32_0 = arith.constant 0 : i32
    %c0_i32_1 = arith.constant 0 : i32
    return %c0_i32, %c0_i32_0 : i32, i32
  }
  func.func @transform_8(%arg0: i32) -> (i32, i32, i32) {
    %c0_i32 = arith.constant 0 : i32
    %c0_i32_0 = arith.constant 0 : i32
    %c0_i32_1 = arith.constant 0 : i32
    return %arg0, %c0_i32, %c0_i32_0 : i32, i32, i32
  }
}

</mosaic_0001>

<bundles_post_ra>
// kernel: tpu_custom_call.1
= control target key start
LH: loop header
LB: loop body
LE: loop exit
PB: predicated region body
PF: predicated region fallthrough
CT: control target
= control target key end

     0   :  { %13 = vsyncpa [#allocation3], 0  ;;  %s9808_s0 = inlined_call_operand.hbm [shape: f32[2,256,128], index: 0, kind: input, shape index: {}]   ;;  %s9809_s1 = inlined_call_operand.hbm [shape: f32[128,128], index: 1, kind: input, shape index: {}]   ;;  %s9810_s2 = inlined_call_operand.vmem [shape: f32[1,128], index: 2, kind: input, shape index: {}]   ;;  %s9811_s3 = inlined_call_operand.hbm [shape: f32[9,128,128], index: 3, kind: input, shape index: {}]   ;;  %s9812_s4 = inlined_call_operand.vmem [shape: f32[1,128], index: 4, kind: input, shape index: {}]   ;;  %s9813_s5 = inlined_call_operand.hbm [shape: f32[128,128], index: 5, kind: input, shape index: {}]   ;;  %s9814_s6 = inlined_call_operand.vmem [shape: f32[1,128], index: 6, kind: input, shape index: {}]   ;;  %s9815_s7 = inlined_call_operand.hbm [shape: f32[128,128], index: 7, kind: input, shape index: {}]   ;;  %s9816_s8 = inlined_call_operand.hbm [shape: f32[2,256,128], index: 8, kind: output, shape index: {}]  }
   0x1   :  { %15 = vsyncpa [#allocation3 + $0x1], 0 }
   0x2   :  { %16 = vsyncpa [#allocation6], 0 }
   0x3   :  { %17 = vsyncpa [#allocation9], 0 }
   0x4   :  { %18 = vsyncpa [#allocation4], 0 }
   0x5   :  { %20 = vsyncpa [#allocation4 + $0x1], 0  ;;  %s8172_s27 = smov 0   ;;  %s8174_s28 = smov 0  }
   0x6   :  { %s8176_s29 = smov 0   ;;  %s8178_s30 = smov 0  }
   0x7 LB: > { %9919 = sst [smem:[#allocation16_spill]] %s8102_s27  ;;  %s8193_s9 = sadd.s32 4294967295, %s8114_s30   ;;  %s8114_s30 = sphi %s8178_s30, %s10206_s30   ;;  %s8110_s29 = sphi %s8176_s29, %s10205_s29   ;;  %s8106_s28 = sphi %s8174_s28, %s10204_s28   ;;  %s8102_s27 = sphi %s8172_s27, %s10203_s27  }
   0x8   : > { %s5447_s10 = sadd.s32 4294967294, %s8114_s30   ;;  %p46_p0 = scmp.ne.s32.totalorder %s8106_s28, %s8102_s27 }
   0x9   : > { %p9817_p1 = scmp.eq.s32.totalorder %s8193_s9, 0  ;;  %p223_p3 = scmp.eq.s32.totalorder %s5447_s10, 1 }
   0xa   : > { %p5448_p5 = scmp.ge.s32.totalorder %s8114_s30, 1  ;;  %p230_p7 = scmp.lt.s32.totalorder %s8114_s30, 3 }
   0xb   : > { %p8202_p4 = por %p9817_p1, %p46_p0  ;;  %p8207_p6 = por %p223_p3, %p46_p0 }
   0xc   : > { %p8212_p8 = pnand %p5448_p5, %p230_p7  ;;  %s8116_s14 = smov [#allocation5]  }
   0xd   : > { %s9920_s11 = scalar_select %p8202_p4, 1, 0 }
   0xe   : > { %s9921_s12 = scalar_select %p8207_p6, 1, 0 }
   0xf   : > { %s9923_s13 = scalar_select %p8212_p8, 1, 0 }
  0x10   : > { %9922 = sst [smem:[#allocation17_spill]] %s9921_s12  ;;  %s242_s15 = sshll.u32 %s8116_s14, 4  ;;  %s8216_s15 = int_to_ptr.vmem [resolvable:$true] %s242_s15 }
  0x11   : > { %p7794_p9 = pneg %p8212_p8  ;;  %s8117_s17 = smov [#allocation8]  }
  0x12   : > { %s274_s18 = sshll.u32 %s8117_s17, 4  ;;  %s8118_s19 = smov [#allocation7]   ;;  %s8227_s18 = int_to_ptr.vmem [resolvable:$true] %s274_s18 }
  0x13   : > { %p8223_p11 = pnand %p7794_p9, %p9817_p1  ;;  %s8229_s20 = sshll.u32 %s8118_s19, 4  ;;  %s259_s20 = int_to_ptr.vmem [resolvable:$true] %s8229_s20 }
  0x14   : > { %s7898_s23 = scalar_lea.hbm %s9809_s1, 2048 }
  0x15   : > { %p7899_p12 = scmp.ne.s32.totalorder %s9809_s1, %s7898_s23  ;;  %p8239_p13 = pneg %p8223_p11 }
  0x16   : > { %p7905_p5 = scmp.lt.u32.totalorder %s7898_s23, %s9809_s1 }
  0x17   : > { %p7901_p0 = pnand %p8239_p13, %p7899_p12 }
  0x19   : > { %p7902_p3 = pneg %p7901_p0 }
  0x1b   : > { %p7907_p7 = pnand %p7905_p5, %p7902_p3 }
  0x1d   : > { %7910 = shalt.err (!%p7907_p7)
}
  0x1e   : > { %s7911_s17 = scalar_lea.vmem %s8216_s15, 2048  ;;  %p7919_p2 = scmp.lt.s32.totalorder %s8216_s15, %s8216_s15 }
  0x1f   : > { %p7912_p9 = scmp.ne.s32.totalorder %s8216_s15, %s7911_s17  ;;  %p7920_p6 = scmp.lt.s32.totalorder %s7911_s17, %s7911_s17 }
  0x21   : > { %p7914_p10 = pnand %p7912_p9, %p8239_p13  ;;  %p7921_p12 = por %p7920_p6, %p7919_p2 }
  0x23   : > { %p7915_p1 = pneg %p7914_p10 }
  0x25   : > { %p7922_p0 = pnand %p7921_p12, %p7915_p1 }
  0x27   : > { %7925 = shalt.err (!%p7922_p0)
}
  0x28   : > { %s8119_s19 = smov 128   ;;  %s8120_s21 = smov 8  }
  0x29   : > { %7797 = dma.hbm_to_vmem [thread:$0]  (!%p8223_p11), %s9809_s1, 2048, %s8216_s15, [#allocation6], %s8119_s19, %s8119_s19, %s8120_s21  }
  0x2a   : > { %s7926_s10 = scalar_lea.hbm %s9813_s5, 2048 }
  0x2b   : > { %p7927_p1 = scmp.ne.s32.totalorder %s9813_s5, %s7926_s10  ;;  %p7933_p10 = scmp.lt.u32.totalorder %s7926_s10, %s9813_s5 }
  0x2d   : > { %p7929_p2 = pnand %p7927_p1, %p8239_p13 }
  0x2f   : > { %p7930_p6 = pneg %p7929_p2 }
  0x31   : > { %p7935_p3 = pnand %p7933_p10, %p7930_p6 }
  0x33   : > { %7938 = shalt.err (!%p7935_p3)
}
  0x34   : > { %s7939_s15 = scalar_lea.vmem %s8227_s18, 2048  ;;  %p7947_p12 = scmp.lt.s32.totalorder %s8227_s18, %s8227_s18 }
  0x35   : > { %p7940_p5 = scmp.ne.s32.totalorder %s8227_s18, %s7939_s15  ;;  %p7948_p0 = scmp.lt.s32.totalorder %s7939_s15, %s7939_s15 }
  0x37   : > { %p7942_p7 = pnand %p7940_p5, %p8239_p13  ;;  %p7949_p1 = por %p7948_p0, %p7947_p12 }
  0x39   : > { %p7943_p9 = pneg %p7942_p7 }
  0x3b   : > { %p7950_p2 = pnand %p7949_p1, %p7943_p9 }
  0x3d   : > { %7953 = shalt.err (!%p7950_p2)
}
  0x3e   : > { %7803 = dma.hbm_to_vmem [thread:$0]  (!%p8223_p11), %s9813_s5, 2048, %s8227_s18, [#allocation9], %s8119_s19, %s8119_s19, %s8120_s21  }
  0x3f   : > { %s7954_s24 = scalar_lea.hbm %s9811_s3, 18432 }
  0x40   : > { %p7955_p6 = scmp.ne.s32.totalorder %s9811_s3, %s7954_s24  ;;  %p7961_p5 = scmp.lt.u32.totalorder %s7954_s24, %s9811_s3 }
  0x42   : > { %p7957_p10 = pnand %p7955_p6, %p8239_p13 }
  0x44   : > { %p7958_p3 = pneg %p7957_p10 }
  0x46   : > { %p7963_p7 = pnand %p7961_p5, %p7958_p3 }
  0x48   : > { %7966 = shalt.err (!%p7963_p7)
}
  0x49   : > { %s7967_s15 = scalar_lea.vmem %s259_s20, 18432  ;;  %p7975_p1 = scmp.lt.s32.totalorder %s259_s20, %s259_s20 }
  0x4a   : > { %p7968_p9 = scmp.ne.s32.totalorder %s259_s20, %s7967_s15  ;;  %p7976_p2 = scmp.lt.s32.totalorder %s7967_s15, %s7967_s15 }
  0x4c   : > { %p7970_p12 = pnand %p7968_p9, %p8239_p13  ;;  %p7977_p4 = por %p7976_p2, %p7975_p1 }
  0x4e   : > { %p7971_p0 = pneg %p7970_p12 }
  0x50   : > { %p7978_p8 = pnand %p7977_p4, %p7971_p0 }
  0x52   : > { %7981 = shalt.err (!%p7978_p8)
}
  0x53   : > { %7800 = dma.hbm_to_vmem [thread:$0]  (!%p8223_p11), %s9811_s3, 18432, %s259_s20, [#allocation6], %s8119_s19, %s8119_s19, %s8120_s21  }
  0x54   : > { %s8121_s12 = smov [#allocation10]   ;;  %s7982_s25 = scalar_lea.hbm %s9815_s7, 2048 }
  0x55   : > { %s290_s22 = sshll.u32 %s8121_s12, 4  ;;  %p7983_p4 = scmp.ne.s32.totalorder %s9815_s7, %s7982_s25  ;;  %s291_s22 = int_to_ptr.vmem [resolvable:$true] %s290_s22 }
  0x56   : > { %p7989_p10 = scmp.lt.u32.totalorder %s7982_s25, %s9815_s7 }
  0x57   : > { %p7985_p8 = pnand %p7983_p4, %p8239_p13 }
  0x59   : > { %p7986_p6 = pneg %p7985_p8 }
  0x5b   : > { %p7991_p3 = pnand %p7989_p10, %p7986_p6 }
  0x5d   : > { %7994 = shalt.err (!%p7991_p3)
}
  0x5e   : > { %s7995_s20 = scalar_lea.vmem %s291_s22, 2048  ;;  %p8003_p12 = scmp.lt.s32.totalorder %s291_s22, %s291_s22 }
  0x5f   : > { %p7996_p5 = scmp.ne.s32.totalorder %s291_s22, %s7995_s20  ;;  %p8004_p0 = scmp.lt.s32.totalorder %s7995_s20, %s7995_s20 }
  0x61   : > { %p7998_p7 = pnand %p7996_p5, %p8239_p13  ;;  %p8005_p1 = por %p8004_p0, %p8003_p12 }
  0x63   : > { %p7999_p9 = pneg %p7998_p7 }
  0x65   : > { %p8006_p2 = pnand %p8005_p1, %p7999_p9 }
  0x67   : > { %8009 = shalt.err (!%p8006_p2)
}
  0x68   : > { %7806 = dma.hbm_to_vmem [thread:$0]  (!%p8223_p11), %s9815_s7, 2048, %s291_s22, [#allocation9], %s8119_s19, %s8119_s19, %s8120_s21  }
  0x69   : > { %s8333_s26 = sadd.s32 1, %s8114_s30   ;;  %s33_s16 = sadd.s32 1, %s8110_s29 }
  0x6a   : > { %s30_s12 = ssub.s32 %s8114_s30, %s8333_s26  ;;  %p40_p13 = scmp.ne.s32.totalorder %s8110_s29, %s8106_s28 }
  0x6b   : > { %p31_p4 = scmp.eq.s32.totalorder %s30_s12, 0  ;;  %p41_p8 = scmp.eq.s32.totalorder %s8114_s30, 0 }
  0x6c   : > { %p9926_p6 = scmp.eq.s32.totalorder %s8193_s9, 1  ;;  %p7819_p3 = scmp.lt.s32.totalorder %s8114_s30, 2 }
  0x6d   : > { %s8349_s24 = scalar_select %p31_p4, %s8110_s29, %s33_s16  }
  0x6e   : > { %p8343_p10 = por %p9926_p6, %p40_p13  ;;  %p42_p5 = por %p41_p8, %p40_p13 }
  0x6f   : > { %s304_s25 = sand.u32 1, %s8110_s29   ;;  %s5564_s22 = sshll.u32 %s8114_s30, 12 }
  0x70   : > { %s5454_s10 = sshll.u32 %s304_s25, 8  ;;  %s8356_s15 = scalar_lea.hbm %s9808_s0, %s5564_s22 }
  0x71   : > { %s308_s20 = scalar_lea.vmem [#allocation2], %s5454_s10  ;;  %p8360_p11 = pnand %p7819_p3, %p42_p5 }
  0x72   : > { %s315_s18 = sshll.u32 %s308_s20, 4  ;;  %s8364_s16 = scalar_lea.sflag [#allocation3], %s304_s25  ;;  %s8358_s18 = int_to_ptr.vmem [resolvable:$true] %s315_s18 }
  0x73   : > { %s8010_s12 = scalar_lea.hbm %s8356_s15, 4096  ;;  %p8012_p9 = pneg %p8360_p11 }
  0x74   : > { %p8011_p7 = scmp.ne.s32.totalorder %s8356_s15, %s8010_s12  ;;  %s8015_s14 = scalar_lea.hbm %s9808_s0, 8192 }
  0x75   : > { %p8016_p1 = scmp.lt.u32.totalorder %s8356_s15, %s9808_s0  ;;  %p8017_p2 = scmp.lt.u32.totalorder %s8015_s14, %s8010_s12 }
  0x76   : > { %p8013_p12 = pnand %p8012_p9, %p8011_p7  ;;  %p8019_p4 = scmp.lt.u32.totalorder %s8010_s12, %s8356_s15 }
  0x77   : > { %p8018_p13 = por %p8017_p2, %p8016_p1 }
  0x78   : > { %p8014_p0 = pneg %p8013_p12 }
  0x79   : > { %p8020_p8 = por %p8019_p4, %p8018_p13 }
  0x7b   : > { %p8021_p6 = pnand %p8020_p8, %p8014_p0 }
  0x7d   : > { %8024 = shalt.err (!%p8021_p6)
}
  0x7e   : > { %s8025_s25 = scalar_lea.vmem %s8358_s18, 4096  ;;  %s8122_s10 = smov [#allocation2]  }
  0x7f   : > { %p8026_p3 = scmp.ne.s32.totalorder %s8358_s18, %s8025_s25  ;;  %s8030_s22 = sshll.u32 %s8122_s10, 4  ;;  %s8031_s22 = int_to_ptr.vmem [resolvable:$false] %s8030_s22 }
  0x80   : > { %s8032_s17 = scalar_lea.vmem %s8031_s22, 8192  ;;  %p8033_p12 = scmp.lt.s32.totalorder %s8358_s18, %s8031_s22 }
  0x81   : > { %p8028_p5 = pnand %p8026_p3, %p8012_p9  ;;  %p8034_p1 = scmp.lt.s32.totalorder %s8032_s17, %s8025_s25 }
  0x83   : > { %p8029_p7 = pneg %p8028_p5  ;;  %p8035_p2 = por %p8034_p1, %p8033_p12 }
  0x85   : > { %p8036_p13 = pnand %p8035_p2, %p8029_p7 }
  0x87   : > { %8039 = shalt.err (!%p8036_p13)
}
  0x88   : > { %7810 = dma.hbm_to_vmem [thread:$0]  (!%p8360_p11), %s8356_s15, 4096, %s8358_s18, %s8364_s16, %s8119_s19, %s8119_s19, %s8120_s21  }
  0x89   : > { %p9929_p9 = scmp.ne.s32.totalorder %s9923_s13, 0 }
  0x8b   : > { %327 = sbr.rel (%p9929_p9) target bundleno = 1304 (0x518), region = 52 }
  0x92   : > { %s8398_s12 = sand.u32 1, %s8106_s28   ;;  %p9930_p0 = scmp.ne.s32.totalorder %s9920_s11, 0 }
  0x93   : > { %s5458_s14 = sshll.u32 %s8398_s12, 8  ;;  %s330_s20 = scalar_lea.sflag [#allocation3], %s8398_s12 }
  0x94   : > { %s8404_s27 = scalar_lea.vmem [#allocation2], %s5458_s14 }
  0x95   : > { %8085 = dma.done.wait (%p9930_p0), %s330_s20, 4096  }
  0x96   : > { %8087 = vsyncadd (%p9930_p0), %s330_s20, 4294963200  ;;  %p9931_p11 = scmp.eq.s32.totalorder %s8193_s9, 0 }
  0x98   : > { %8089 = dma.done.wait (%p9931_p11), [#allocation6], 20480   ;;  %p9932_p4 = pmov %p9931_p11 }
  0x9a   : > { %8091 = vsyncadd (%p9932_p4), [#allocation6], 4294946816  ;;  %p9933_p8 = pmov %p9932_p4 }
  0x9b   : > { %p9934_p6 = pmov %p9932_p4 }
  0x9c   : > { %8093 = dma.done.wait (%p9933_p8), [#allocation9], 4096  }
  0x9d   : > { %8095 = vsyncadd (%p9934_p6), [#allocation9], 4294963200  ;;  %v414_v0 = vld [vmem:[#allocation5] sm:$0xff]  ;;  %v415_v1 = vld [vmem:[#allocation5 + $0x8] sm:$0xff]  ;;  %s9693_s16 = scalar_lea.vmem [#allocation11], %s5458_s14  ;;  %s5565_s25 = sshll.u32 %s8193_s9, 12 }
  0x9e   : > { %v416_v2 = vld [vmem:[#allocation5 + $0x10] sm:$0xff]  ;;  %v7102_v3 = vpack.c.bf16 %v415_v1, %v414_v0  ;;  %v417_v4 = vld [vmem:[#allocation5 + $0x18] sm:$0xff]  ;;  %v418_v6 = vld [vmem:[#allocation5 + $0x20] sm:$0xff]  ;;  %s5336_s10 = sshll.u32 %s9693_s16, 4  ;;  %s9760_s14 = scalar_lea.hbm %s9816_s8, %s5565_s25  ;;  %s9762_s10 = int_to_ptr.vmem [resolvable:$true] %s5336_s10 }
  0x9f   : > { %v7106_v5 = vpack.c.bf16 %v417_v4, %v416_v2  ;;  %v419_v7 = vld [vmem:[#allocation5 + $0x28] sm:$0xff]  ;;  %v382_v9 = vld [vmem:[%s8404_s27] sm:$0xff]  ;;  %v420_v10 = vld [vmem:[#allocation5 + $0x30] sm:$0xff]  ;;  %s5323_s9 = scalar_lea.sflag [#allocation4], %s8398_s12  ;;  %s8040_s20 = scalar_lea.vmem %s9762_s10, 4096 }
  0xa0   : > { %7103 = vmatprep.subr.bf16.mxu0 %v7102_v3  ;;  %v7110_v8 = vpack.c.bf16 %v419_v7, %v418_v6  ;;  %v421_v11 = vld [vmem:[#allocation5 + $0x38] sm:$0xff]  ;;  %6174 = vmatprep.mubr.f32.mxu0 %v382_v9  ;;  %v422_v13 = vld [vmem:[#allocation5 + $0x40] sm:$0xff]  ;;  %v423_v14 = vld [vmem:[#allocation5 + $0x48] sm:$0xff]  ;;  %p8041_p3 = scmp.ne.s32.totalorder %s9762_s10, %s8040_s20 }
  0xa1   : > { %7105 = vmatpush3.bf16.msra.mxu0 %v7102_v3  ;;  %v7114_v12 = vpack.c.bf16 %v421_v11, %v420_v10  ;;  %v7118_v15 = vpack.c.bf16 %v423_v14, %v422_v13  ;;  %v424_v16 = vld [vmem:[#allocation5 + $0x50] sm:$0xff]  ;;  %v425_v17 = vld [vmem:[#allocation5 + $0x58] sm:$0xff]  ;;  %v426_v19 = vld [vmem:[#allocation5 + $0x60] sm:$0xff] }
  0xa2   : > { %7107 = vmatprep.subr.bf16.mxu0 %v7106_v5  ;;  %v7122_v18 = vpack.c.bf16 %v425_v17, %v424_v16  ;;  %v427_v20 = vld [vmem:[#allocation5 + $0x68] sm:$0xff]  ;;  %v428_v22 = vld [vmem:[#allocation5 + $0x70] sm:$0xff]  ;;  %v429_v23 = vld [vmem:[#allocation5 + $0x78] sm:$0xff]  ;;  %v9824_v16 = vmov 0.0   ;;  %p8042_p5 = pnand %p8041_p3, %p8343_p10 }
  0xa3   : > { %v7126_v21 = vpack.c.bf16 %v427_v20, %v426_v19  ;;  %v7130_v24 = vpack.c.bf16 %v429_v23, %v428_v22  ;;  %v1545_v25 = vld [vmem:[#allocation7 + $0x80] sm:$0xff]  ;;  %v1546_v26 = vld [vmem:[#allocation7 + $0x88] sm:$0xff]  ;;  %v1547_v28 = vld [vmem:[#allocation7 + $0x90] sm:$0xff] }
  0xa4   : > { %v7134_v27 = vpack.c.bf16 %v1546_v26, %v1545_v25  ;;  %v1548_v29 = vld [vmem:[#allocation7 + $0x98] sm:$0xff]  ;;  %v383_v30 = vld [vmem:[%s8404_s27 + $0x8] sm:$0xff]  ;;  %v384_v31 = vld [vmem:[%s8404_s27 + $0x10] sm:$0xff]  ;;  %p8043_p7 = pneg %p8042_p5 }
  0xa5   : > { %7109 = vmatpush3.bf16.msra.mxu0 %v7106_v5  ;;  %v7138_v32 = vpack.c.bf16 %v1548_v29, %v1547_v28  ;;  %v1549_v33 = vld [vmem:[#allocation7 + $0xa0] sm:$0xff]  ;;  %v1550_v34 = vld [vmem:[#allocation7 + $0xa8] sm:$0xff]  ;;  %v385_v35 = vld [vmem:[%s8404_s27 + $0x18] sm:$0xff] }
  0xa6   : > { %7111 = vmatprep.subr.bf16.mxu0 %v7110_v8  ;;  %v386_v36 = vld [vmem:[%s8404_s27 + $0x20] sm:$0xff]  ;;  %v7142_v37 = vpack.c.bf16 %v1550_v34, %v1549_v33  ;;  %v1551_v38 = vld [vmem:[#allocation7 + $0xb0] sm:$0xff]  ;;  %v1552_v39 = vld [vmem:[#allocation7 + $0xb8] sm:$0xff] }
  0xa7   : > { %v387_v40 = vld [vmem:[%s8404_s27 + $0x28] sm:$0xff]  ;;  %v388_v41 = vld [vmem:[%s8404_s27 + $0x30] sm:$0xff]  ;;  %v7146_v42 = vpack.c.bf16 %v1552_v39, %v1551_v38  ;;  %v1553_v43 = vld [vmem:[#allocation7 + $0xc0] sm:$0xff] }
  0xa8   : > { %v1554_v44 = vld [vmem:[#allocation7 + $0xc8] sm:$0xff]  ;;  %v389_v45 = vld [vmem:[%s8404_s27 + $0x38] sm:$0xff]  ;;  %v390_v46 = vld [vmem:[%s8404_s27 + $0x40] sm:$0xff] }
  0xa9   : > { %7113 = vmatpush3.bf16.msra.mxu0 %v7110_v8  ;;  %v7150_v47 = vpack.c.bf16 %v1554_v44, %v1553_v43  ;;  %v1555_v48 = vld [vmem:[#allocation7 + $0xd0] sm:$0xff]  ;;  %v1556_v49 = vld [vmem:[#allocation7 + $0xd8] sm:$0xff]  ;;  %v391_v50 = vld [vmem:[%s8404_s27 + $0x48] sm:$0xff] }
  0xaa   : > { %7115 = vmatprep.subr.bf16.mxu0 %v7114_v12  ;;  %v392_v51 = vld [vmem:[%s8404_s27 + $0x50] sm:$0xff]  ;;  %v7154_v52 = vpack.c.bf16 %v1556_v49, %v1555_v48  ;;  %v1557_v53 = vld [vmem:[#allocation7 + $0xe0] sm:$0xff]  ;;  %v1558_v54 = vld [vmem:[#allocation7 + $0xe8] sm:$0xff] }
  0xab   : > { %v393_v55 = vld [vmem:[%s8404_s27 + $0x58] sm:$0xff]  ;;  %v394_v56 = vld [vmem:[%s8404_s27 + $0x60] sm:$0xff]  ;;  %v7158_v57 = vpack.c.bf16 %v1558_v54, %v1557_v53  ;;  %v1559_v58 = vld [vmem:[#allocation7 + $0xf0] sm:$0xff] }
  0xac   : > { %v1560_v59 = vld [vmem:[#allocation7 + $0xf8] sm:$0xff]  ;;  %v395_v60 = vld [vmem:[%s8404_s27 + $0x68] sm:$0xff]  ;;  %v396_v61 = vld [vmem:[%s8404_s27 + $0x70] sm:$0xff] }
  0xad   : > { %7117 = vmatpush3.bf16.msra.mxu0 %v7114_v12  ;;  %v7162_v62 = vpack.c.bf16 %v1560_v59, %v1559_v58  ;;  %v397_v63 = vld [vmem:[%s8404_s27 + $0x78] sm:$0xff]  ;;  %v398_v0 = vld [vmem:[%s8404_s27 + $0x80] sm:$0xff]  ;;  %v399_v1 = vld [vmem:[%s8404_s27 + $0x88] sm:$0xff] }
  0xae   : > { %7119 = vmatprep.subr.bf16.mxu0 %v7118_v15  ;;  %v400_v2 = vld [vmem:[%s8404_s27 + $0x90] sm:$0xff]  ;;  %v401_v3 = vld [vmem:[%s8404_s27 + $0x98] sm:$0xff]  ;;  %v402_v4 = vld [vmem:[%s8404_s27 + $0xa0] sm:$0xff] }
  0xaf   : > { %v403_v5 = vld [vmem:[%s8404_s27 + $0xa8] sm:$0xff]  ;;  %v404_v6 = vld [vmem:[%s8404_s27 + $0xb0] sm:$0xff]  ;;  %v405_v7 = vld [vmem:[%s8404_s27 + $0xb8] sm:$0xff] }
  0xb0   : > { %v406_v8 = vld [vmem:[%s8404_s27 + $0xc0] sm:$0xff]  ;;  %v407_v9 = vld [vmem:[%s8404_s27 + $0xc8] sm:$0xff]  ;;  %v408_v10 = vld [vmem:[%s8404_s27 + $0xd0] sm:$0xff] }
  0xb1   : > { %7121 = vmatpush3.bf16.msra.mxu0 %v7118_v15  ;;  %v409_v11 = vld [vmem:[%s8404_s27 + $0xd8] sm:$0xff]  ;;  %v410_v12 = vld [vmem:[%s8404_s27 + $0xe0] sm:$0xff]  ;;  %v411_v13 = vld [vmem:[%s8404_s27 + $0xe8] sm:$0xff] }
  0xb2   : > { %7123 = vmatprep.subr.bf16.mxu0 %v7122_v18  ;;  %v412_v14 = vld [vmem:[%s8404_s27 + $0xf0] sm:$0xff]  ;;  %v413_v15 = vld [vmem:[%s8404_s27 + $0xf8] sm:$0xff]  ;;  %v1432_v17 = vld [vmem:[#allocation7] sm:$0xff] }
  0xb3   : > { %v2575_v20 = vld [vmem:[#allocation7 + $0x180] sm:$0xff]  ;;  %v1434_v23 = vld [vmem:[#allocation7 + $0x10] sm:$0xff]  ;;  %v2580_v33 = vld [vmem:[#allocation7 + $0x1a8] sm:$0xff] }
  0xb4   : > { %v2577_v26 = vld [vmem:[#allocation7 + $0x190] sm:$0xff]  ;;  %v1436_v29 = vld [vmem:[#allocation7 + $0x20] sm:$0xff]  ;;  %v2582_v39 = vld [vmem:[#allocation7 + $0x1b8] sm:$0xff] }
  0xb5   : > { %7125 = vmatpush3.bf16.msra.mxu0 %v7122_v18  ;;  %v1433_v18 = vld [vmem:[#allocation7 + $0x8] sm:$0xff]  ;;  %v2581_v38 = vld [vmem:[#allocation7 + $0x1b0] sm:$0xff]  ;;  %v2583_v44 = vld [vmem:[#allocation7 + $0x1c0] sm:$0xff] }
  0xb6   : > { %7127 = vmatprep.subr.bf16.mxu0 %v7126_v21  ;;  %v7166_v19 = vpack.c.bf16 %v1433_v18, %v1432_v17  ;;  %v1443_v48 = vld [vmem:[#allocation7 + $0x58] sm:$0xff]  ;;  %v1444_v53 = vld [vmem:[#allocation7 + $0x60] sm:$0xff]  ;;  %v1445_v54 = vld [vmem:[#allocation7 + $0x68] sm:$0xff] }
  0xb7   : > { %v1446_v59 = vld [vmem:[#allocation7 + $0x70] sm:$0xff] }
  0xb9   : > { %7129 = vmatpush3.bf16.msra.mxu0 %v7126_v21  ;;  %v2576_v21 = vld [vmem:[#allocation7 + $0x188] sm:$0xff] }
  0xba   : > { %7131 = vmatprep.subr.bf16.mxu0 %v7130_v24  ;;  %v7230_v22 = vpack.c.bf16 %v2576_v21, %v2575_v20 }
  0xbc   : > { %7231 = vmatprep.subr.bf16.mxu1 %v7230_v22 }
  0xbd   : > { %7133 = vmatpush3.bf16.msra.mxu0 %v7130_v24  ;;  %v1435_v24 = vld [vmem:[#allocation7 + $0x18] sm:$0xff]  ;;  %7233 = vmatpush3.bf16.msra.mxu1 %v7230_v22 }
  0xbe   : > { %7135 = vmatprep.subr.bf16.mxu0 %v7134_v27  ;;  %v7170_v25 = vpack.c.bf16 %v1435_v24, %v1434_v23 }
  0xc0   : > { %6175 = vmatmul.mubr.f32.vlgmr.msra.gmra.mrb[0].mxu0 %v383_v30  ;;  %v1437_v30 = vld [vmem:[#allocation7 + $0x28] sm:$0xff] }
  0xc1   : > { %6177 = vmatprep.mubr.f32.mxu0 %v384_v31  ;;  %7137 = vmatpush3.bf16.msra.mxu0 %v7134_v27  ;;  %v2578_v27 = vld [vmem:[#allocation7 + $0x198] sm:$0xff]  ;;  %v7174_v31 = vpack.c.bf16 %v1437_v30, %v1436_v29 }
  0xc2   : > { %7139 = vmatprep.subr.bf16.mxu0 %v7138_v32  ;;  %v7234_v28 = vpack.c.bf16 %v2578_v27, %v2577_v26 }
  0xc4   : > { %6178 = vmatmul.mubr.f32.gmra.mrb[2].mxu0 %v385_v35  ;;  %7235 = vmatprep.subr.bf16.mxu1 %v7234_v28  ;;  %v1438_v35 = vld [vmem:[#allocation7 + $0x30] sm:$0xff] }
  0xc5   : > { %6180 = vmatprep.mubr.f32.mxu0 %v386_v36  ;;  %7141 = vmatpush3.bf16.msra.mxu0 %v7138_v32  ;;  %v2579_v32 = vld [vmem:[#allocation7 + $0x1a0] sm:$0xff]  ;;  %v1439_v36 = vld [vmem:[#allocation7 + $0x38] sm:$0xff] }
  0xc6   : > { %7143 = vmatprep.subr.bf16.mxu0 %v7142_v37  ;;  %7237 = vmatpush3.bf16.msra.mxu1 %v7234_v28  ;;  %v7238_v34 = vpack.c.bf16 %v2580_v33, %v2579_v32 }
  0xc8   : > { %6181 = vmatmul.mubr.f32.gmra.mrb[4].mxu0 %v387_v40  ;;  %7239 = vmatprep.subr.bf16.mxu1 %v7238_v34  ;;  %v7242_v40 = vpack.c.bf16 %v2582_v39, %v2581_v38 }
  0xc9   : > { %6183 = vmatprep.mubr.f32.mxu0 %v388_v41  ;;  %7145 = vmatpush3.bf16.msra.mxu0 %v7142_v37  ;;  %v7178_v37 = vpack.c.bf16 %v1439_v36, %v1438_v35  ;;  %v1440_v41 = vld [vmem:[#allocation7 + $0x40] sm:$0xff] }
  0xca   : > { %7147 = vmatprep.subr.bf16.mxu0 %v7146_v42  ;;  %7241 = vmatpush3.bf16.msra.mxu1 %v7238_v34 }
  0xcb   : > { %7243 = vmatprep.subr.bf16.mxu1 %v7242_v40 }
  0xcc   : > { %6184 = vmatmul.mubr.f32.gmra.mrb[6].mxu0 %v389_v45  ;;  %v2584_v45 = vld [vmem:[#allocation7 + $0x1c8] sm:$0xff] }
  0xcd   : > { %6186 = vmatprep.mubr.f32.mxu0 %v390_v46  ;;  %7149 = vmatpush3.bf16.msra.mxu0 %v7146_v42  ;;  %v1441_v42 = vld [vmem:[#allocation7 + $0x48] sm:$0xff]  ;;  %v7246_v46 = vpack.c.bf16 %v2584_v45, %v2583_v44 }
  0xce   : > { %7151 = vmatprep.subr.bf16.mxu0 %v7150_v47  ;;  %v7182_v43 = vpack.c.bf16 %v1441_v42, %v1440_v41  ;;  %7245 = vmatpush3.bf16.msra.mxu1 %v7242_v40 }
  0xcf   : > { %7247 = vmatprep.subr.bf16.mxu1 %v7246_v46 }
  0xd0   : > { %6187 = vmatmul.mubr.f32.gmra.mrb[8].mxu0 %v391_v50  ;;  %v2585_v50 = vld [vmem:[#allocation7 + $0x1d0] sm:$0xff] }
  0xd1   : > { %6189 = vmatprep.mubr.f32.mxu0 %v392_v51  ;;  %7153 = vmatpush3.bf16.msra.mxu0 %v7150_v47  ;;  %v1442_v47 = vld [vmem:[#allocation7 + $0x50] sm:$0xff]  ;;  %v2586_v51 = vld [vmem:[#allocation7 + $0x1d8] sm:$0xff] }
  0xd2   : > { %7155 = vmatprep.subr.bf16.mxu0 %v7154_v52  ;;  %v7186_v49 = vpack.c.bf16 %v1443_v48, %v1442_v47  ;;  %7249 = vmatpush3.bf16.msra.mxu1 %v7246_v46 }
  0xd4   : > { %6190 = vmatmul.mubr.f32.gmra.mrb[10].mxu0 %v393_v55  ;;  %v7190_v55 = vpack.c.bf16 %v1445_v54, %v1444_v53 }
  0xd5   : > { %6192 = vmatprep.mubr.f32.mxu0 %v394_v56  ;;  %7157 = vmatpush3.bf16.msra.mxu0 %v7154_v52  ;;  %v7250_v52 = vpack.c.bf16 %v2586_v51, %v2585_v50  ;;  %v2587_v56 = vld [vmem:[#allocation7 + $0x1e0] sm:$0xff] }
  0xd6   : > { %7159 = vmatprep.subr.bf16.mxu0 %v7158_v57 }
  0xd7   : > { %7251 = vmatprep.subr.bf16.mxu1 %v7250_v52 }
  0xd8   : > { %6193 = vmatmul.mubr.f32.gmra.mrb[12].mxu0 %v395_v60  ;;  %7253 = vmatpush3.bf16.msra.mxu1 %v7250_v52  ;;  %v1447_v60 = vld [vmem:[#allocation7 + $0x78] sm:$0xff] }
  0xd9   : > { %6195 = vmatprep.mubr.f32.mxu0 %v396_v61  ;;  %7161 = vmatpush3.bf16.msra.mxu0 %v7158_v57  ;;  %v2588_v57 = vld [vmem:[#allocation7 + $0x1e8] sm:$0xff]  ;;  %v7194_v61 = vpack.c.bf16 %v1447_v60, %v1446_v59 }
  0xda   : > { %7163 = vmatprep.subr.bf16.mxu0 %v7162_v62  ;;  %v7254_v58 = vpack.c.bf16 %v2588_v57, %v2587_v56 }
  0xdc   : > { %6196 = vmatmul.mubr.f32.gmra.mrb[14].mxu0 %v397_v63  ;;  %7255 = vmatprep.subr.bf16.mxu1 %v7254_v58  ;;  %v2590_v63 = vld [vmem:[#allocation7 + $0x1f8] sm:$0xff] }
  0xdd   : > { %6198 = vmatprep.mubr.f32.mxu0 %v398_v0  ;;  %7165 = vmatpush3.bf16.msra.mxu0 %v7162_v62  ;;  %v2589_v62 = vld [vmem:[#allocation7 + $0x1f0] sm:$0xff] }
  0xde   : > { %7167 = vmatprep.subr.bf16.mxu0 %v7166_v19  ;;  %7257 = vmatpush3.bf16.msra.mxu1 %v7254_v58  ;;  %v7258_v0 = vpack.c.bf16 %v2590_v63, %v2589_v62 }
  0xe0   : > { %6199 = vmatmul.mubr.f32.gmra.mrb[16].mxu0 %v399_v1  ;;  %7259 = vmatprep.subr.bf16.mxu1 %v7258_v0  ;;  %v2849_v1 = vld [vmem:[#allocation7 + $0x200] sm:$0xff] }
  0xe1   : > { %6201 = vmatprep.mubr.f32.mxu0 %v400_v2  ;;  %v2850_v2 = vld [vmem:[#allocation7 + $0x208] sm:$0xff] }
  0xe2   : > { %7261 = vmatpush3.bf16.msra.mxu1 %v7258_v0 }
  0xe4   : > { %6202 = vmatmul.mubr.f32.gmra.mrb[18].mxu0 %v401_v3  ;;  %v8452_v3 = vpack.c.bf16 %v2850_v2, %v2849_v1 }
  0xe5   : > { %6204 = vmatprep.mubr.f32.mxu0 %v402_v4  ;;  %v2205_v4 = vld [vmem:[#allocation7 + $0x100] sm:$0xff] }
  0xe6   : > { %7263 = vmatprep.subr.bf16.mxu1 %v8452_v3 }
  0xe8   : > { %6205 = vmatmul.mubr.f32.gmra.mrb[20].mxu0 %v403_v5  ;;  %v2206_v5 = vld [vmem:[#allocation7 + $0x108] sm:$0xff] }
  0xe9   : > { %6207 = vmatprep.mubr.f32.mxu0 %v404_v6  ;;  %v8455_v6 = vpack.c.bf16 %v2206_v5, %v2205_v4 }
  0xec   : > { %6208 = vmatmul.mubr.f32.gmra.mrb[22].mxu0 %v405_v7  ;;  %v8461_v7 = vld [vmem:[%s9810_s2] ss:$0 sm:$0xff] }
  0xed   : > { %6210 = vmatprep.mubr.f32.mxu0 %v406_v8 }
  0xf0   : > { %6211 = vmatmul.mubr.f32.gmra.mrb[24].mxu0 %v407_v9 }
  0xf1   : > { %6213 = vmatprep.mubr.f32.mxu0 %v408_v10 }
  0xf4   : > { %6214 = vmatmul.mubr.f32.gmra.mrb[26].mxu0 %v409_v11 }
  0xf5   : > { %6216 = vmatprep.mubr.f32.mxu0 %v410_v12 }
  0xf8   : > { %6217 = vmatmul.mubr.f32.gmra.mrb[28].mxu0 %v411_v13 }
  0xf9   : > { %6219 = vmatprep.mubr.f32.mxu0 %v412_v14 }
  0xfc   : > { %6220 = vmatmul.mubr.f32.gmra.mrb[30].mxu0 %v413_v15 }
  0xfd   : > { %6254 = vmatprep.mubr.f32.mxu0 %v9824_v16 }
 0x100   : > { %6255 = vmatmul.mubr.f32.vlgmr.msra.gmra.mrb[32].mxu0 %v9824_v16 }
 0x101   : > { %7169 = vmatpush3.bf16.msra.mxu0 %v7166_v19 }
 0x102   : > { %7171 = vmatprep.subr.bf16.mxu0 %v7170_v25 }
 0x105   : > { %7173 = vmatpush3.bf16.msra.mxu0 %v7170_v25 }
 0x106   : > { %7175 = vmatprep.subr.bf16.mxu0 %v7174_v31 }
 0x109   : > { %7177 = vmatpush3.bf16.msra.mxu0 %v7174_v31 }
 0x10a   : > { %7179 = vmatprep.subr.bf16.mxu0 %v7178_v37 }
 0x10d   : > { %7181 = vmatpush3.bf16.msra.mxu0 %v7178_v37 }
 0x10e   : > { %7183 = vmatprep.subr.bf16.mxu0 %v7182_v43 }
 0x111   : > { %7185 = vmatpush3.bf16.msra.mxu0 %v7182_v43 }
 0x112   : > { %7187 = vmatprep.subr.bf16.mxu0 %v7186_v49 }
 0x115   : > { %7189 = vmatpush3.bf16.msra.mxu0 %v7186_v49 }
 0x116   : > { %7191 = vmatprep.subr.bf16.mxu0 %v7190_v55 }
 0x119   : > { %7193 = vmatpush3.bf16.msra.mxu0 %v7190_v55 }
 0x11a   : > { %7195 = vmatprep.subr.bf16.mxu0 %v7194_v61 }
 0x11d   : > { %7197 = vmatpush3.bf16.msra.mxu0 %v7194_v61 }
 0x11e   : > { %7199 = vmatprep.subr.bf16.mxu0 %v8455_v6 }
 0x193   : > { %v6176_v8 = vpop.f32.mrb[0].mxu0 }
 0x194   : > { %v509_v9 = vadd.f32 %v6176_v8, %v8461_v7  ;;  %v503_v10 = vpop.f32.mrb[1].mxu0 }
 0x195   : > { %v504_v11 = vadd.f32 %v8461_v7, %v503_v10 }
 0x196   : > { %v8467_v14 = vmax.f32 %v509_v9, 0.0 }
 0x197   : > { %v8465_v12 = vmax.f32 %v504_v11, 0.0  ;;  %v6179_v13 = vpop.f32.mrb[2].mxu0 }
 0x198   : > { %v519_v15 = vadd.f32 %v6179_v13, %v8461_v7  ;;  %v513_v17 = vpop.f32.mrb[3].mxu0 }
 0x199   : > { %v514_v18 = vadd.f32 %v8461_v7, %v513_v17  ;;  %6257 = vmatprep.mubr.f32.mxu0 %v8465_v12 }
 0x19a   : > { %6258 = vmatmul.mubr.f32.gmra.mrb[34].mxu0 %v8467_v14  ;;  %v8475_v21 = vmax.f32 %v519_v15, 0.0 }
 0x19b   : > { %v8473_v19 = vmax.f32 %v514_v18, 0.0  ;;  %v6182_v20 = vpop.f32.mrb[4].mxu0 }
 0x19c   : > { %9936 = vst [vmem:[#allocation19_spill] sm:$0xff] %v8475_v21  ;;  %v529_v22 = vadd.f32 %v6182_v20, %v8461_v7  ;;  %v523_v23 = vpop.f32.mrb[5].mxu0 }
 0x19d   : > { %9935 = vst [vmem:[#allocation18_spill] sm:$0xff] %v8473_v19  ;;  %v524_v24 = vadd.f32 %v8461_v7, %v523_v23  ;;  %6260 = vmatprep.mubr.f32.mxu0 %v8473_v19 }
 0x19e   : > { %6261 = vmatmul.mubr.f32.gmra.mrb[36].mxu0 %v8475_v21  ;;  %v8483_v27 = vmax.f32 %v529_v22, 0.0 }
 0x19f   : > { %v8481_v25 = vmax.f32 %v524_v24, 0.0  ;;  %v6185_v26 = vpop.f32.mrb[6].mxu0 }
 0x1a0   : > { %9938 = vst [vmem:[#allocation21_spill] sm:$0xff] %v8483_v27  ;;  %v539_v28 = vadd.f32 %v6185_v26, %v8461_v7  ;;  %v533_v29 = vpop.f32.mrb[7].mxu0 }
 0x1a1   : > { %9937 = vst [vmem:[#allocation20_spill] sm:$0xff] %v8481_v25  ;;  %v534_v30 = vadd.f32 %v8461_v7, %v533_v29  ;;  %6263 = vmatprep.mubr.f32.mxu0 %v8481_v25 }
 0x1a2   : > { %6264 = vmatmul.mubr.f32.gmra.mrb[38].mxu0 %v8483_v27  ;;  %v8491_v33 = vmax.f32 %v539_v28, 0.0 }
 0x1a3   : > { %v8489_v31 = vmax.f32 %v534_v30, 0.0  ;;  %v6188_v32 = vpop.f32.mrb[8].mxu0 }
 0x1a4   : > { %9940 = vst [vmem:[#allocation23_spill] sm:$0xff] %v8491_v33  ;;  %v549_v34 = vadd.f32 %v6188_v32, %v8461_v7  ;;  %v543_v35 = vpop.f32.mrb[9].mxu0  ;;  %v694_v32 = vlaneseq }
 0x1a5   : > { %9939 = vst [vmem:[#allocation22_spill] sm:$0xff] %v8489_v31  ;;  %v544_v36 = vadd.f32 %v8461_v7, %v543_v35  ;;  %6266 = vmatprep.mubr.f32.mxu0 %v8489_v31 }
 0x1a6   : > { %6267 = vmatmul.mubr.f32.gmra.mrb[40].mxu0 %v8491_v33  ;;  %v8499_v39 = vmax.f32 %v549_v34, 0.0 }
 0x1a7   : > { %v8497_v37 = vmax.f32 %v544_v36, 0.0  ;;  %v6191_v38 = vpop.f32.mrb[10].mxu0 }
 0x1a8   : > { %9942 = vst [vmem:[#allocation25_spill] sm:$0xff] %v8499_v39  ;;  %v559_v40 = vadd.f32 %v6191_v38, %v8461_v7  ;;  %v553_v41 = vpop.f32.mrb[11].mxu0 }
 0x1a9   : > { %9941 = vst [vmem:[#allocation24_spill] sm:$0xff] %v8497_v37  ;;  %v554_v42 = vadd.f32 %v8461_v7, %v553_v41  ;;  %6269 = vmatprep.mubr.f32.mxu0 %v8497_v37 }
 0x1aa   : > { %6270 = vmatmul.mubr.f32.gmra.mrb[42].mxu0 %v8499_v39  ;;  %v8507_v45 = vmax.f32 %v559_v40, 0.0 }
 0x1ab   : > { %v8505_v43 = vmax.f32 %v554_v42, 0.0  ;;  %v6194_v44 = vpop.f32.mrb[12].mxu0  ;;  %v8569_v42 = vshrl.u32 %v694_v32, 7  ;;  %v2208_v32 = vld [vmem:[#allocation7 + $0x118] sm:$0xff] }
 0x1ac   : > { %9944 = vst [vmem:[#allocation27_spill] sm:$0xff] %v8507_v45  ;;  %v569_v46 = vadd.f32 %v6194_v44, %v8461_v7  ;;  %v563_v47 = vpop.f32.mrb[13].mxu0 }
 0x1ad   : > { %9943 = vst [vmem:[#allocation26_spill] sm:$0xff] %v8505_v43  ;;  %v564_v48 = vadd.f32 %v8461_v7, %v563_v47  ;;  %6272 = vmatprep.mubr.f32.mxu0 %v8505_v43  ;;  %vm1271_vm0 = vcmp.lt.s32.totalorder %v8569_v42, 1  ;;  %vm9845_vm4 = vcmp.lt.s32.totalorder %v8569_v42, 7 }
 0x1ae   : > { %6273 = vmatmul.mubr.f32.gmra.mrb[44].mxu0 %v8507_v45  ;;  %v8515_v51 = vmax.f32 %v569_v46, 0.0 }
 0x1af   : > { %v8513_v49 = vmax.f32 %v564_v48, 0.0  ;;  %v6197_v50 = vpop.f32.mrb[14].mxu0 }
 0x1b0   : > { %9946 = vst [vmem:[#allocation29_spill] sm:$0xff] %v8515_v51  ;;  %v579_v52 = vadd.f32 %v6197_v50, %v8461_v7  ;;  %v573_v53 = vpop.f32.mrb[15].mxu0 }
 0x1b1   : > { %9945 = vst [vmem:[#allocation28_spill] sm:$0xff] %v8513_v49  ;;  %v574_v54 = vadd.f32 %v8461_v7, %v573_v53  ;;  %6275 = vmatprep.mubr.f32.mxu0 %v8513_v49 }
 0x1b2   : > { %6276 = vmatmul.mubr.f32.gmra.mrb[46].mxu0 %v8515_v51  ;;  %v8523_v57 = vmax.f32 %v579_v52, 0.0  ;;  %v697_v52 = vadd.s32 16, %v8569_v42 }
 0x1b3   : > { %v8521_v55 = vmax.f32 %v574_v54, 0.0  ;;  %v6200_v56 = vpop.f32.mrb[16].mxu0  ;;  %v699_v54 = vadd.s32 32, %v8569_v42 }
 0x1b4   : > { %9948 = vst [vmem:[#allocation31_spill] sm:$0xff] %v8523_v57  ;;  %v589_v58 = vadd.f32 %v6200_v56, %v8461_v7  ;;  %v583_v59 = vpop.f32.mrb[17].mxu0 }
 0x1b5   : > { %9947 = vst [vmem:[#allocation30_spill] sm:$0xff] %v8521_v55  ;;  %v584_v60 = vadd.f32 %v8461_v7, %v583_v59  ;;  %6278 = vmatprep.mubr.f32.mxu0 %v8521_v55 }
 0x1b6   : > { %6279 = vmatmul.mubr.f32.gmra.mrb[48].mxu0 %v8523_v57  ;;  %v8531_v63 = vmax.f32 %v589_v58, 0.0 }
 0x1b7   : > { %v8529_v61 = vmax.f32 %v584_v60, 0.0  ;;  %v6203_v62 = vpop.f32.mrb[18].mxu0 }
 0x1b8   : > { %9950 = vst [vmem:[#allocation33_spill] sm:$0xff] %v8531_v63  ;;  %v599_v0 = vadd.f32 %v6203_v62, %v8461_v7  ;;  %v593_v1 = vpop.f32.mrb[19].mxu0 }
 0x1b9   : > { %9949 = vst [vmem:[#allocation32_spill] sm:$0xff] %v8529_v61  ;;  %v594_v2 = vadd.f32 %v8461_v7, %v593_v1  ;;  %6281 = vmatprep.mubr.f32.mxu0 %v8529_v61  ;;  %v731_v1 = vand.u32 15, %v8569_v42 }
 0x1ba   : > { %6282 = vmatmul.mubr.f32.gmra.mrb[50].mxu0 %v8531_v63  ;;  %v8539_v8 = vmax.f32 %v599_v0, 0.0  ;;  %v745_v0 = vand.u32 15, %v697_v52 }
 0x1bb   : > { %v8537_v4 = vmax.f32 %v594_v2, 0.0  ;;  %v6206_v5 = vpop.f32.mrb[20].mxu0  ;;  %vm8604_vm2 = vcmp.ge.s32.totalorder %v731_v1, 1  ;;  %v1243_v1 = vrot.slane %v8481_v25, 7 }
 0x1bc   : > { %9952 = vst [vmem:[#allocation35_spill] sm:$0xff] %v8539_v8  ;;  %v609_v9 = vadd.f32 %v6206_v5, %v8461_v7  ;;  %v603_v10 = vpop.f32.mrb[21].mxu0  ;;  %v759_v5 = vand.u32 15, %v699_v54  ;;  %vm8599_vm1 = vcmp.ge.s32.totalorder %v745_v0, 1  ;;  %v703_v54 = vadd.s32 64, %v8569_v42 }
 0x1bd   : > { %9951 = vst [vmem:[#allocation34_spill] sm:$0xff] %v8537_v4  ;;  %v604_v11 = vadd.f32 %v8461_v7, %v603_v10  ;;  %6284 = vmatprep.mubr.f32.mxu0 %v8537_v4  ;;  %v701_v10 = vadd.s32 48, %v8569_v42 }
 0x1be   : > { %6285 = vmatmul.mubr.f32.gmra.mrb[52].mxu0 %v8539_v8  ;;  %v8547_v17 = vmax.f32 %v609_v9, 0.0  ;;  %vm8609_vm3 = vcmp.ge.s32.totalorder %v759_v5, 1  ;;  %v2210_v5 = vld [vmem:[#allocation7 + $0x128] sm:$0xff] }
 0x1bf   : > { %v8545_v13 = vmax.f32 %v604_v11, 0.0  ;;  %v6209_v15 = vpop.f32.mrb[22].mxu0 }
 0x1c0   : > { %9954 = vst [vmem:[#allocation37_spill] sm:$0xff] %v8547_v17  ;;  %v619_v18 = vadd.f32 %v6209_v15, %v8461_v7  ;;  %v613_v20 = vpop.f32.mrb[23].mxu0  ;;  %v1239_v15 = vrot.slane %v8465_v12, 7 }
 0x1c1   : > { %9953 = vst [vmem:[#allocation36_spill] sm:$0xff] %v8545_v13  ;;  %v614_v22 = vadd.f32 %v8461_v7, %v613_v20  ;;  %6287 = vmatprep.mubr.f32.mxu0 %v8545_v13  ;;  %v2852_v20 = vld [vmem:[#allocation7 + $0x218] sm:$0xff] }
 0x1c2   : > { %6288 = vmatmul.mubr.f32.gmra.mrb[54].mxu0 %v8547_v17  ;;  %v8555_v26 = vmax.f32 %v619_v18, 0.0  ;;  %v1240_v18 = vrot.slane %v8467_v14, 7 }
 0x1c3   : > { %v8553_v23 = vmax.f32 %v614_v22, 0.0  ;;  %v6212_v24 = vpop.f32.mrb[24].mxu0  ;;  %v9964_v22 = vmov 0 }
 0x1c4   : > { %9956 = vst [vmem:[#allocation39_spill] sm:$0xff] %v8555_v26  ;;  %v629_v28 = vadd.f32 %v6212_v24, %v8461_v7  ;;  %v623_v29 = vpop.f32.mrb[25].mxu0  ;;  %v9965_v22 = vsel %vm8599_vm1, 4294967295, %v9964_v22  ;;  %v1302_v52 = vsel %vm1271_vm0, %v1239_v15, %v1240_v18 }
 0x1c5   : > { %9955 = vst [vmem:[#allocation38_spill] sm:$0xff] %v8553_v23  ;;  %v624_v30 = vadd.f32 %v8461_v7, %v623_v29  ;;  %6290 = vmatprep.mubr.f32.mxu0 %v8553_v23  ;;  %v1241_v29 = vrot.slane %v8473_v19, 7 }
 0x1c6   : > { %6291 = vmatmul.mubr.f32.gmra.mrb[56].mxu0 %v8555_v26  ;;  %v8563_v36 = vmax.f32 %v629_v28, 0.0  ;;  %v9966_v28 = vmov 0 }
 0x1c7   : > { %v8561_v34 = vmax.f32 %v624_v30, 0.0  ;;  %v6215_v35 = vpop.f32.mrb[26].mxu0  ;;  %v9967_v28 = vsel %vm8604_vm2, 4294967295, %v9966_v28  ;;  %v2207_v30 = vld [vmem:[#allocation7 + $0x110] sm:$0xff]  ;;  %v8632_v0 = vsel %vm1271_vm0, %v1240_v18, %v1241_v29 }
 0x1c8   : > { %9958 = vst [vmem:[#allocation41_spill] sm:$0xff] %v8563_v36  ;;  %v639_v38 = vadd.f32 %v6215_v35, %v8461_v7  ;;  %v633_v40 = vpop.f32.mrb[27].mxu0  ;;  %v9968_v35 = vmov 0 }
 0x1c9   : > { %9957 = vst [vmem:[#allocation40_spill] sm:$0xff] %v8561_v34  ;;  %v634_v41 = vadd.f32 %v8461_v7, %v633_v40  ;;  %6293 = vmatprep.mubr.f32.mxu0 %v8561_v34  ;;  %v9969_v35 = vsel %vm8609_vm3, 4294967295, %v9968_v35 }
 0x1ca   : > { %6294 = vmatmul.mubr.f32.gmra.mrb[58].mxu0 %v8563_v36  ;;  %v8573_v47 = vmax.f32 %v639_v38, 0.0  ;;  %9970 = vst [vmem:[#allocation47_spill] sm:$0xff] %v9969_v35  ;;  %v2216_v35 = vld [vmem:[#allocation7 + $0x158] sm:$0xff] }
 0x1cb   : > { %v8571_v44 = vmax.f32 %v634_v41, 0.0  ;;  %v6218_v46 = vpop.f32.mrb[28].mxu0 }
 0x1cc   : > { %9960 = vst [vmem:[#allocation43_spill] sm:$0xff] %v8573_v47  ;;  %v649_v48 = vadd.f32 %v6218_v46, %v8461_v7  ;;  %v643_v50 = vpop.f32.mrb[29].mxu0  ;;  %v773_v46 = vand.u32 15, %v701_v10 }
 0x1cd   : > { %9959 = vst [vmem:[#allocation42_spill] sm:$0xff] %v8571_v44  ;;  %v644_v53 = vadd.f32 %v8461_v7, %v643_v50  ;;  %6296 = vmatprep.mubr.f32.mxu0 %v8571_v44  ;;  %v9823_v50 = vrot.slane %v8465_v12, 1 }
 0x1ce   : > { %6297 = vmatmul.mubr.f32.gmra.mrb[60].mxu0 %v8573_v47  ;;  %v8583_v59 = vmax.f32 %v649_v48, 0.0  ;;  %vm8665_vm5 = vcmp.ge.s32.totalorder %v773_v46, 1 }
 0x1cf   : > { %v8581_v56 = vmax.f32 %v644_v53, 0.0  ;;  %v6221_v58 = vpop.f32.mrb[30].mxu0  ;;  %v1242_v53 = vrot.slane %v8475_v21, 7 }
 0x1d0   : > { %9962 = vst [vmem:[#allocation45_spill] sm:$0xff] %v8583_v59  ;;  %v659_v60 = vadd.f32 %v6221_v58, %v8461_v7  ;;  %v653_v62 = vpop.f32.mrb[31].mxu0  ;;  %v2853_v58 = vld [vmem:[#allocation7 + $0x220] sm:$0xff] }
 0x1d1   : > { %9961 = vst [vmem:[#allocation44_spill] sm:$0xff] %v8581_v56  ;;  %v654_v2 = vadd.f32 %v8461_v7, %v653_v62  ;;  %6299 = vmatprep.mubr.f32.mxu0 %v8581_v56  ;;  %v2851_v7 = vld [vmem:[#allocation7 + $0x210] sm:$0xff]  ;;  %v7202_v62 = vpack.c.bf16 %v2208_v32, %v2207_v30  ;;  %v8657_v18 = vsel %vm1271_vm0, %v1241_v29, %v1242_v53  ;;  %v1245_v29 = vrot.slane %v8489_v31, 7 }
 0x1d2   : > { %v8589_v9 = vmax.f32 %v659_v60, 0.0  ;;  %6300 = vmatmul.mubr.f32.gmra.mrb[62].mxu0 %v8583_v59  ;;  %v7266_v48 = vpack.c.bf16 %v2852_v20, %v2851_v7  ;;  %v2854_v60 = vld [vmem:[#allocation7 + $0x228] sm:$0xff]  ;;  %v1244_v7 = vrot.slane %v8483_v27, 7  ;;  %v787_v20 = vand.u32 15, %v703_v54  ;;  %v2855_v30 = vld [vmem:[#allocation7 + $0x230] sm:$0xff] }
 0x1d3   : > { %v8593_v11 = vmax.f32 %v654_v2, 0.0  ;;  %6334 = vmatprep.mubr.f32.mxu0 %v9824_v16  ;;  %v2209_v2 = vld [vmem:[#allocation7 + $0x120] sm:$0xff]  ;;  %v2211_v54 = vld [vmem:[#allocation7 + $0x130] sm:$0xff] }
 0x1d4   : > { %9963 = vst [vmem:[#allocation46_spill] sm:$0xff] %v8589_v9  ;;  %v9826_v24 = vrot.slane %v8589_v9, 7  ;;  %v2042_v40 = vrot.slane %v8589_v9, 1  ;;  %v7206_v32 = vpack.c.bf16 %v2210_v5, %v2209_v2  ;;  %v8680_v46 = vsel %vm1271_vm0, %v1243_v1, %v1244_v7  ;;  %v2857_v2 = vld [vmem:[#allocation7 + $0x240] sm:$0xff] }
 0x1d5   : > { %v9822_v38 = vrot.slane %v8593_v11, 1  ;;  %9975 = vst [vmem:[#allocation50_spill] sm:$0xff] %v8680_v46  ;;  %vm8682_vm6 = vcmp.ge.s32.totalorder %v787_v20, 1  ;;  %v707_v20 = vadd.s32 96, %v8569_v42 }
 0x1d6   : > { %6335 = vmatmul.mubr.f32.vlgmr.msra.gmra.mrb[32].mxu0 %v9824_v16  ;;  %v1303_v41 = vsel %vm1271_vm0, %v9826_v24, %v1239_v15  ;;  %v8646_v15 = vsel %vm9845_vm4, %v2042_v40, %v9823_v50  ;;  %v2214_v50 = vld [vmem:[#allocation7 + $0x148] sm:$0xff]  ;;  %v2860_v16 = vld [vmem:[#allocation7 + $0x258] sm:$0xff] }
 0x1d7   : > { %6337 = vmatprep.mubr.msk.f32.mxu0 %vm8599_vm1, %v1303_v41  ;;  %6494 = vmatprep.mubr.msk.f32.mxu1 %vm8604_vm2, %v1303_v41  ;;  %v8640_v10 = vsel %vm9845_vm4, %v9822_v38, %v2042_v40  ;;  %9971 = vst [vmem:[#allocation48_spill] sm:$0xff] %v8646_v15  ;;  %v8663_v40 = vsel %vm1271_vm0, %v1242_v53, %v1243_v1  ;;  %v9972_v41 = vmov 0  ;;  %v2213_v38 = vld [vmem:[#allocation7 + $0x140] sm:$0xff]  ;;  %v815_v24 = vand.u32 15, %v707_v20  ;;  %v2862_v20 = vld [vmem:[#allocation7 + $0x268] sm:$0xff] }
 0x1d8   : > { %6495 = vmatmul.mubr.f32.vlgmr.msra.gmra.mrb[0].mxu1 %v1302_v52  ;;  %7201 = vmatpush3.bf16.msra.mxu0 %v8455_v6  ;;  %v7270_v6 = vpack.c.bf16 %v2854_v60, %v2853_v58  ;;  %v9973_v41 = vsel %vm8665_vm5, 4294967295, %v9972_v41  ;;  %v2212_v58 = vld [vmem:[#allocation7 + $0x138] sm:$0xff]  ;;  %v9976_v60 = vmov 0 }
 0x1d9   : > { %7265 = vmatpush3.bf16.msra.mxu1 %v8452_v3  ;;  %6497 = vmatprep.mubr.msk.f32.mxu1 %vm8599_vm1, %v8632_v0  ;;  %v2856_v3 = vld [vmem:[#allocation7 + $0x238] sm:$0xff]  ;;  %9974 = vst [vmem:[#allocation49_spill] sm:$0xff] %v9973_v41  ;;  %v9977_v60 = vsel %vm8682_vm6, 4294967295, %v9976_v60  ;;  %v7210_v5 = vpack.c.bf16 %v2212_v58, %v2211_v54  ;;  %v2859_v58 = vld [vmem:[#allocation7 + $0x250] sm:$0xff]  ;;  %vm8734_vm8 = vcmp.ge.s32.totalorder %v815_v24, 1 }
 0x1da   : > { %6338 = vmatmul.mubr.f32.gmra.mrb[34].mxu0 %v1302_v52  ;;  %7267 = vmatprep.subr.bf16.mxu1 %v7266_v48  ;;  %v705_v52 = vadd.s32 80, %v8569_v42  ;;  %v7274_v53 = vpack.c.bf16 %v2856_v3, %v2855_v30  ;;  %9978 = vst [vmem:[#allocation51_spill] sm:$0xff] %v9977_v60  ;;  %v8690_v30 = vsel %vm1271_vm0, %v1244_v7, %v1245_v29  ;;  %v1247_v3 = vrot.slane %v8497_v37, 7  ;;  %v2215_v41 = vld [vmem:[#allocation7 + $0x150] sm:$0xff] }
 0x1db   : > { %6340 = vmatprep.mubr.msk.f32.mxu0 %vm8609_vm3, %v8632_v0  ;;  %7203 = vmatprep.subr.bf16.mxu0 %v7202_v62  ;;  %9979 = vst [vmem:[#allocation52_spill] sm:$0xff] %v8690_v30  ;;  %v7218_v60 = vpack.c.bf16 %v2216_v35, %v2215_v41  ;;  %v9991_v41 = vmov 0 }
 0x1dc   : > { %6498 = vmatmul.mubr.f32.gmra.mrb[2].mxu1 %v8657_v18  ;;  %7205 = vmatpush3.bf16.msra.mxu0 %v7202_v62  ;;  %v1246_v62 = vrot.slane %v8491_v33, 7  ;;  %v801_v1 = vand.u32 15, %v705_v52  ;;  %v709_v52 = vadd.s32 112, %v8569_v42 }
 0x1dd   : > { %6500 = vmatprep.mubr.msk.f32.mxu1 %vm8609_vm3, %v8663_v40  ;;  %7269 = vmatpush3.bf16.msra.mxu1 %v7266_v48  ;;  %v2858_v48 = vld [vmem:[#allocation7 + $0x248] sm:$0xff] }
 0x1de   : > { %6341 = vmatmul.mubr.f32.gmra.mrb[36].mxu0 %v8657_v18  ;;  %7271 = vmatprep.subr.bf16.mxu1 %v7270_v6  ;;  %v7278_v54 = vpack.c.bf16 %v2858_v48, %v2857_v2  ;;  %v8703_v7 = vsel %vm1271_vm0, %v1245_v29, %v1246_v62  ;;  %v8710_v2 = vsel %vm1271_vm0, %v1246_v62, %v1247_v3  ;;  %vm8712_vm7 = vcmp.ge.s32.totalorder %v801_v1, 1  ;;  %v2861_v1 = vld [vmem:[#allocation7 + $0x260] sm:$0xff] }
 0x1df   : > { %6343 = vmatprep.mubr.msk.f32.mxu0 %vm8665_vm5, %v8663_v40  ;;  %7207 = vmatprep.subr.bf16.mxu0 %v7206_v32  ;;  %9980 = vst [vmem:[#allocation53_spill] sm:$0xff] %v8703_v7  ;;  %9981 = vst [vmem:[#allocation54_spill] sm:$0xff] %v8710_v2  ;;  %v9982_v48 = vmov 0  ;;  %v1249_v29 = vrot.slane %v8505_v43, 7  ;;  %v1250_v62 = vrot.slane %v8507_v45, 7  ;;  %v7286_v35 = vpack.c.bf16 %v2862_v20, %v2861_v1 }
 0x1e0   : > { %6501 = vmatmul.mubr.f32.gmra.mrb[4].mxu1 %v8680_v46  ;;  %7209 = vmatpush3.bf16.msra.mxu0 %v7206_v32  ;;  %v1248_v32 = vrot.slane %v8499_v39, 7  ;;  %v9983_v48 = vsel %vm8712_vm7, 4294967295, %v9982_v48  ;;  %v1253_v20 = vrot.slane %v8521_v55, 7 }
 0x1e1   : > { %6503 = vmatprep.mubr.msk.f32.mxu1 %vm8665_vm5, %v8690_v30  ;;  %7273 = vmatpush3.bf16.msra.mxu1 %v7270_v6  ;;  %v7214_v6 = vpack.c.bf16 %v2214_v50, %v2213_v38  ;;  %9984 = vst [vmem:[#allocation55_spill] sm:$0xff] %v9983_v48  ;;  %v7282_v38 = vpack.c.bf16 %v2860_v16, %v2859_v58  ;;  %v711_v58 = vadd.s32 128, %v8569_v42  ;;  %v2864_v48 = vld [vmem:[#allocation7 + $0x278] sm:$0xff] }
 0x1e2   : > { %6344 = vmatmul.mubr.f32.gmra.mrb[38].mxu0 %v8680_v46  ;;  %7275 = vmatprep.subr.bf16.mxu1 %v7274_v53  ;;  %v8726_v50 = vsel %vm1271_vm0, %v1247_v3, %v1248_v32  ;;  %v8732_v16 = vsel %vm1271_vm0, %v1248_v32, %v1249_v29  ;;  %v1251_v3 = vrot.slane %v8513_v49, 7  ;;  %v8749_v24 = vsel %vm1271_vm0, %v1249_v29, %v1250_v62  ;;  %v7866_v46 = vld [vmem:[%s8404_s27] sm:$0xff] }
 0x1e3   : > { %6346 = vmatprep.mubr.msk.f32.mxu0 %vm8682_vm6, %v8690_v30  ;;  %7211 = vmatprep.subr.bf16.mxu0 %v7210_v5  ;;  %9985 = vst [vmem:[#allocation56_spill] sm:$0xff] %v8726_v50  ;;  %9986 = vst [vmem:[#allocation57_spill] sm:$0xff] %v8732_v16  ;;  %v1252_v32 = vrot.slane %v8515_v51, 7  ;;  %v843_v29 = vand.u32 15, %v711_v58  ;;  %v715_v58 = vadd.s32 160, %v8569_v42 }
 0x1e4   : > { %6504 = vmatmul.mubr.f32.gmra.mrb[6].mxu1 %v8703_v7  ;;  %7213 = vmatpush3.bf16.msra.mxu0 %v7210_v5  ;;  %v829_v5 = vand.u32 15, %v709_v52  ;;  %v2217_v52 = vld [vmem:[#allocation7 + $0x160] sm:$0xff]  ;;  %9990 = vst [vmem:[#allocation59_spill] sm:$0xff] %v8749_v24  ;;  %v8759_v1 = vsel %vm1271_vm0, %v1250_v62, %v1251_v3 }
 0x1e5   : > { %6506 = vmatprep.mubr.msk.f32.mxu1 %vm8682_vm6, %v8710_v2  ;;  %7277 = vmatpush3.bf16.msra.mxu1 %v7274_v53  ;;  %v9987_v53 = vmov 0  ;;  %9994 = vst [vmem:[#allocation61_spill] sm:$0xff] %v8759_v1  ;;  %v8772_v62 = vsel %vm1271_vm0, %v1251_v3, %v1252_v32  ;;  %vm8781_vm10 = vcmp.ge.s32.totalorder %v843_v29, 1  ;;  %v1255_v3 = vrot.slane %v8529_v61, 7 }
 0x1e6   : > { %6347 = vmatmul.mubr.f32.gmra.mrb[40].mxu0 %v8703_v7  ;;  %7279 = vmatprep.subr.bf16.mxu1 %v7278_v54  ;;  %v9988_v53 = vsel %vm8734_vm8, 4294967295, %v9987_v53  ;;  %vm8751_vm9 = vcmp.ge.s32.totalorder %v829_v5, 1  ;;  %v713_v5 = vadd.s32 144, %v8569_v42  ;;  %9995 = vst [vmem:[#allocation62_spill] sm:$0xff] %v8772_v62  ;;  %v1257_v29 = vrot.slane %v8537_v4, 7 }
 0x1e7   : > { %6349 = vmatprep.mubr.msk.f32.mxu0 %vm8712_vm7, %v8710_v2  ;;  %7215 = vmatprep.subr.bf16.mxu0 %v7214_v6  ;;  %9989 = vst [vmem:[#allocation58_spill] sm:$0xff] %v9988_v53  ;;  %v2218_v2 = vld [vmem:[#allocation7 + $0x168] sm:$0xff]  ;;  %v9992_v41 = vsel %vm8751_vm9, 4294967295, %v9991_v41  ;;  %v3219_v53 = vld [vmem:[#allocation7 + $0x280] sm:$0xff] }
 0x1e8   : > { %6507 = vmatmul.mubr.f32.gmra.mrb[8].mxu1 %v8726_v50  ;;  %7217 = vmatpush3.bf16.msra.mxu0 %v7214_v6  ;;  %9993 = vst [vmem:[#allocation60_spill] sm:$0xff] %v9992_v41  ;;  %v2863_v6 = vld [vmem:[#allocation7 + $0x270] sm:$0xff]  ;;  %v3223_v41 = vld [vmem:[#allocation7 + $0x2a0] sm:$0xff] }
 0x1e9   : > { %6509 = vmatprep.mubr.msk.f32.mxu1 %vm8712_vm7, %v8732_v16  ;;  %7281 = vmatpush3.bf16.msra.mxu1 %v7278_v54  ;;  %v7222_v54 = vpack.c.bf16 %v2218_v2, %v2217_v52  ;;  %v7290_v2 = vpack.c.bf16 %v2864_v48, %v2863_v6  ;;  %v8779_v48 = vsel %vm1271_vm0, %v1252_v32, %v1253_v20  ;;  %v9997_v6 = vmov 0 }
 0x1ea   : > { %6350 = vmatmul.mubr.f32.gmra.mrb[42].mxu0 %v8726_v50  ;;  %7283 = vmatprep.subr.bf16.mxu1 %v7282_v38  ;;  %v2220_v50 = vld [vmem:[#allocation7 + $0x178] sm:$0xff]  ;;  %9996 = vst [vmem:[#allocation63_spill] sm:$0xff] %v8779_v48  ;;  %v9998_v6 = vsel %vm8781_vm10, 4294967295, %v9997_v6  ;;  %v1256_v32 = vrot.slane %v8531_v63, 7 }
 0x1eb   : > { %6352 = vmatprep.mubr.msk.f32.mxu0 %vm8734_vm8, %v8732_v16  ;;  %7219 = vmatprep.subr.bf16.mxu0 %v7218_v60  ;;  %v2219_v16 = vld [vmem:[#allocation7 + $0x170] sm:$0xff]  ;;  %9999 = vst [vmem:[#allocation64_spill] sm:$0xff] %v9998_v6  ;;  %v1261_v6 = vrot.slane %v8553_v23, 7 }
 0x1ec   : > { %6510 = vmatmul.mubr.f32.gmra.mrb[10].mxu1 %v8749_v24  ;;  %7221 = vmatpush3.bf16.msra.mxu0 %v7218_v60  ;;  %v1254_v60 = vrot.slane %v8523_v57, 7  ;;  %v7226_v52 = vpack.c.bf16 %v2220_v50, %v2219_v16 }
 0x1ed   : > { %6512 = vmatprep.mubr.msk.f32.mxu1 %vm8734_vm8, %v8759_v1  ;;  %7285 = vmatpush3.bf16.msra.mxu1 %v7282_v38  ;;  %v3220_v38 = vld [vmem:[#allocation7 + $0x288] sm:$0xff] }
 0x1ee   : > { %6353 = vmatmul.mubr.f32.gmra.mrb[44].mxu0 %v8749_v24  ;;  %7287 = vmatprep.subr.bf16.mxu1 %v7286_v35  ;;  %v8790_v50 = vpack.c.bf16 %v3220_v38, %v3219_v53  ;;  %v8797_v16 = vsel %vm1271_vm0, %v1253_v20, %v1254_v60  ;;  %v10002_v53 = vmov 0  ;;  %v10006_v20 = vmov 0  ;;  %v3622_v24 = vld [vmem:[#allocation7 + $0x308] sm:$0xff] }
 0x1ef   : > { %6355 = vmatprep.mubr.msk.f32.mxu0 %vm8751_vm9, %v8759_v1  ;;  %7223 = vmatprep.subr.bf16.mxu0 %v7222_v54  ;;  %v857_v1 = vand.u32 15, %v713_v5  ;;  %10000 = vst [vmem:[#allocation65_spill] sm:$0xff] %v8797_v16  ;;  %v717_v5 = vadd.s32 176, %v8569_v42  ;;  %v719_v38 = vadd.s32 192, %v8569_v42 }
 0x1f0   : > { %6513 = vmatmul.mubr.f32.gmra.mrb[12].mxu1 %v8772_v62  ;;  %7225 = vmatpush3.bf16.msra.mxu0 %v7222_v54  ;;  %v871_v54 = vand.u32 15, %v715_v58  ;;  %v1259_v58 = vrot.slane %v8545_v13, 7 }
 0x1f1   : > { %6515 = vmatprep.mubr.msk.f32.mxu1 %vm8751_vm9, %v8779_v48  ;;  %7289 = vmatpush3.bf16.msra.mxu1 %v7286_v35  ;;  %v8803_v35 = vsel %vm1271_vm0, %v1254_v60, %v1255_v3  ;;  %vm8805_vm11 = vcmp.ge.s32.totalorder %v857_v1, 1  ;;  %v8821_v1 = vsel %vm1271_vm0, %v1255_v3, %v1256_v32  ;;  %v1258_v60 = vrot.slane %v8539_v8, 7 }
 0x1f2   : > { %6356 = vmatmul.mubr.f32.gmra.mrb[46].mxu0 %v8772_v62  ;;  %7291 = vmatprep.subr.bf16.mxu1 %v7290_v2  ;;  %10001 = vst [vmem:[#allocation66_spill] sm:$0xff] %v8803_v35  ;;  %v10003_v53 = vsel %vm8805_vm11, 4294967295, %v10002_v53  ;;  %10005 = vst [vmem:[#allocation68_spill] sm:$0xff] %v8821_v1  ;;  %vm8823_vm12 = vcmp.ge.s32.totalorder %v871_v54, 1  ;;  %v721_v54 = vadd.s32 208, %v8569_v42  ;;  %v3234_v62 = vld [vmem:[#allocation7 + $0x2f8] sm:$0xff] }
 0x1f3   : > { %6358 = vmatprep.mubr.msk.f32.mxu0 %vm8781_vm10, %v8779_v48  ;;  %7227 = vmatprep.subr.bf16.mxu0 %v7226_v52  ;;  %10004 = vst [vmem:[#allocation67_spill] sm:$0xff] %v10003_v53  ;;  %v10007_v20 = vsel %vm8823_vm12, 4294967295, %v10006_v20  ;;  %v8844_v3 = vsel %vm1271_vm0, %v1257_v29, %v1258_v60  ;;  %v10012_v53 = vmov 0  ;;  %v3232_v48 = vld [vmem:[#allocation7 + $0x2e8] sm:$0xff] }
 0x1f4   : > { %6516 = vmatmul.mubr.f32.gmra.mrb[14].mxu1 %v8797_v16  ;;  %7229 = vmatpush3.bf16.msra.mxu0 %v7226_v52  ;;  %10008 = vst [vmem:[#allocation69_spill] sm:$0xff] %v10007_v20  ;;  %v885_v52 = vand.u32 15, %v717_v5  ;;  %10010 = vst [vmem:[#allocation71_spill] sm:$0xff] %v8844_v3  ;;  %v8851_v5 = vsel %vm1271_vm0, %v1258_v60, %v1259_v58  ;;  %v1262_v60 = vrot.slane %v8555_v26, 7  ;;  %v10017_v20 = vmov 0 }
 0x1f5   : > { %6518 = vmatprep.mubr.msk.f32.mxu1 %vm8781_vm10, %v8803_v35  ;;  %7293 = vmatpush3.bf16.msra.mxu1 %v7290_v2  ;;  %v8831_v2 = vsel %vm1271_vm0, %v1256_v32, %v1257_v29  ;;  %v1260_v32 = vrot.slane %v8547_v17, 7  ;;  %10011 = vst [vmem:[#allocation72_spill] sm:$0xff] %v8851_v5 }
 0x1f6   : > { %6359 = vmatmul.mubr.f32.gmra.mrb[48].mxu0 %v8797_v16  ;;  %7295 = vmatprep.subr.bf16.mxu1 %v8790_v50  ;;  %10009 = vst [vmem:[#allocation70_spill] sm:$0xff] %v8831_v2  ;;  %vm8853_vm13 = vcmp.ge.s32.totalorder %v885_v52, 1  ;;  %v913_v52 = vand.u32 15, %v721_v54  ;;  %v3230_v16 = vld [vmem:[#allocation7 + $0x2d8] sm:$0xff] }
 0x1f7   : > { %6361 = vmatprep.mubr.msk.f32.mxu0 %vm8805_vm11, %v8803_v35  ;;  %v10013_v53 = vsel %vm8853_vm13, 4294967295, %v10012_v53  ;;  %v8867_v29 = vsel %vm1271_vm0, %v1259_v58, %v1260_v32  ;;  %v10021_v58 = vmov 0  ;;  %v3228_v35 = vld [vmem:[#allocation7 + $0x2c8] sm:$0xff] }
 0x1f8   : > { %6519 = vmatmul.mubr.f32.gmra.mrb[16].mxu1 %v8821_v1  ;;  %10014 = vst [vmem:[#allocation73_spill] sm:$0xff] %v10013_v53  ;;  %10015 = vst [vmem:[#allocation74_spill] sm:$0xff] %v8867_v29  ;;  %vm8892_vm15 = vcmp.ge.s32.totalorder %v913_v52, 1  ;;  %v1265_v53 = vrot.slane %v8571_v44, 7  ;;  %v10027_v52 = vmov 0 }
 0x1f9   : > { %6521 = vmatprep.mubr.msk.f32.mxu1 %vm8805_vm11, %v8831_v2  ;;  %v10022_v58 = vsel %vm8892_vm15, 4294967295, %v10021_v58 }
 0x1fa   : > { %6362 = vmatmul.mubr.f32.gmra.mrb[50].mxu0 %v8821_v1  ;;  %10023 = vst [vmem:[#allocation78_spill] sm:$0xff] %v10022_v58  ;;  %v698_v58 = vadd.s32 24, %v8569_v42  ;;  %v702_v1 = vadd.s32 56, %v8569_v42 }
 0x1fb   : > { %6364 = vmatprep.mubr.msk.f32.mxu0 %vm8823_vm12, %v8831_v2  ;;  %v899_v2 = vand.u32 15, %v719_v38  ;;  %v8873_v38 = vsel %vm1271_vm0, %v1260_v32, %v1261_v6  ;;  %v1264_v32 = vrot.slane %v8563_v36, 7 }
 0x1fc   : > { %6522 = vmatmul.mubr.f32.gmra.mrb[18].mxu1 %v8844_v3  ;;  %10016 = vst [vmem:[#allocation75_spill] sm:$0xff] %v8873_v38 }
 0x1fd   : > { %6524 = vmatprep.mubr.msk.f32.mxu1 %vm8823_vm12, %v8851_v5  ;;  %vm8875_vm14 = vcmp.ge.s32.totalorder %v899_v2, 1  ;;  %v8890_v2 = vsel %vm1271_vm0, %v1261_v6, %v1262_v60 }
 0x1fe   : > { %6365 = vmatmul.mubr.f32.gmra.mrb[52].mxu0 %v8844_v3  ;;  %v10018_v20 = vsel %vm8875_vm14, 4294967295, %v10017_v20  ;;  %v1263_v3 = vrot.slane %v8561_v34, 7  ;;  %10020 = vst [vmem:[#allocation77_spill] sm:$0xff] %v8890_v2 }
 0x1ff   : > { %6367 = vmatprep.mubr.msk.f32.mxu0 %vm8853_vm13, %v8851_v5  ;;  %10019 = vst [vmem:[#allocation76_spill] sm:$0xff] %v10018_v20  ;;  %v723_v5 = vadd.s32 224, %v8569_v42  ;;  %v1267_v20 = vrot.slane %v8581_v56, 7 }
 0x200   : > { %6525 = vmatmul.mubr.f32.gmra.mrb[20].mxu1 %v8867_v29  ;;  %v8900_v54 = vsel %vm1271_vm0, %v1262_v60, %v1263_v3  ;;  %v8913_v6 = vsel %vm1271_vm0, %v1263_v3, %v1264_v32  ;;  %v1266_v60 = vrot.slane %v8573_v47, 7 }
 0x201   : > { %6527 = vmatprep.mubr.msk.f32.mxu1 %vm8853_vm13, %v8873_v38  ;;  %10024 = vst [vmem:[#allocation79_spill] sm:$0xff] %v8900_v54  ;;  %10025 = vst [vmem:[#allocation80_spill] sm:$0xff] %v8913_v6 }
 0x202   : > { %6368 = vmatmul.mubr.f32.gmra.mrb[54].mxu0 %v8867_v29  ;;  %v927_v29 = vand.u32 15, %v723_v5  ;;  %v8919_v5 = vsel %vm1271_vm0, %v1264_v32, %v1265_v53  ;;  %v8935_v3 = vsel %vm1271_vm0, %v1265_v53, %v1266_v60  ;;  %v1269_v32 = vrot.slane %v8593_v11, 7 }
 0x203   : > { %6370 = vmatprep.mubr.msk.f32.mxu0 %vm8875_vm14, %v8873_v38  ;;  %v725_v38 = vadd.s32 240, %v8569_v42  ;;  %10026 = vst [vmem:[#allocation81_spill] sm:$0xff] %v8919_v5  ;;  %10030 = vst [vmem:[#allocation83_spill] sm:$0xff] %v8935_v3 }
 0x204   : > { %6528 = vmatmul.mubr.f32.gmra.mrb[22].mxu1 %v8890_v2  ;;  %vm8921_vm4 = vcmp.ge.s32.totalorder %v927_v29, 1  ;;  %v1268_v29 = vrot.slane %v8583_v59, 7 }
 0x205   : > { %6530 = vmatprep.mubr.msk.f32.mxu1 %vm8875_vm14, %v8900_v54  ;;  %v10028_v52 = vsel %vm8921_vm4, 4294967295, %v10027_v52 }
 0x206   : > { %6371 = vmatmul.mubr.f32.gmra.mrb[56].mxu0 %v8890_v2  ;;  %10029 = vst [vmem:[#allocation82_spill] sm:$0xff] %v10028_v52  ;;  %v941_v2 = vand.u32 15, %v725_v38  ;;  %v8941_v38 = vsel %vm1271_vm0, %v1266_v60, %v1267_v20  ;;  %v8951_v53 = vsel %vm1271_vm0, %v1267_v20, %v1268_v29  ;;  %v2012_v60 = vrot.slane %v8467_v14, 1 }
 0x207   : > { %6373 = vmatprep.mubr.msk.f32.mxu0 %vm8892_vm15, %v8900_v54  ;;  %10031 = vst [vmem:[#allocation84_spill] sm:$0xff] %v8941_v38  ;;  %10032 = vst [vmem:[#allocation85_spill] sm:$0xff] %v8951_v53  ;;  %v10034_v52 = vrot.slane %v8589_v9, 7 }
 0x208   : > { %6531 = vmatmul.mubr.f32.gmra.mrb[24].mxu1 %v8913_v6  ;;  %vm1205_vm14 = vcmp.ge.s32.totalorder %v941_v2, 1  ;;  %v8957_v2 = vsel %vm1271_vm0, %v1268_v29, %v1269_v32  ;;  %v3222_v29 = vld [vmem:[#allocation7 + $0x298] sm:$0xff] }
 0x209   : > { %6533 = vmatprep.mubr.msk.f32.mxu1 %vm8892_vm15, %v8919_v5  ;;  %10033 = vst [vmem:[#allocation86_spill] sm:$0xff] %v8957_v2  ;;  %v8966_v20 = vsel %vm1271_vm0, %v1269_v32, %v10034_v52  ;;  %vm10038_vm0 = vcmp.lt.s32.totalorder %v8569_v42, 7 }
 0x20a   : > { %6374 = vmatmul.mubr.f32.gmra.mrb[58].mxu0 %v8913_v6  ;;  %10035 = vst [vmem:[#allocation87_spill] sm:$0xff] %v8966_v20  ;;  %v3221_v6 = vld [vmem:[#allocation7 + $0x290] sm:$0xff]  ;;  %vm10062_vm8 = vmmov %vm10038_vm0 }
 0x20b   : > { %6376 = vmatprep.mubr.msk.f32.mxu0 %vm8921_vm4, %v8919_v5  ;;  %v700_v5 = vadd.s32 40, %v8569_v42  ;;  %v7298_v32 = vpack.c.bf16 %v3222_v29, %v3221_v6  ;;  %v2015_v6 = vrot.slane %v8481_v25, 1  ;;  %v3225_v29 = vld [vmem:[#allocation7 + $0x2b0] sm:$0xff] }
 0x20c   : > { %6534 = vmatmul.mubr.f32.gmra.mrb[26].mxu1 %v8935_v3 }
 0x20d   : > { %6536 = vmatprep.mubr.msk.f32.mxu1 %vm8921_vm4, %v8941_v38  ;;  %vm10041_vm4 = vmmov %vm10038_vm0 }
 0x20e   : > { %6377 = vmatmul.mubr.f32.gmra.mrb[60].mxu0 %v8935_v3  ;;  %v752_v3 = vand.u32 15, %v698_v58  ;;  %v2014_v58 = vrot.slane %v8475_v21, 1 }
 0x20f   : > { %6379 = vmatprep.mubr.msk.f32.mxu0 %vm1205_vm14, %v8941_v38  ;;  %v10036_v38 = vmov 0.0  }
 0x210   : > { %6537 = vmatmul.mubr.f32.gmra.mrb[28].mxu1 %v8951_v53 }
 0x211   : > { %6539 = vmatprep.mubr.msk.f32.mxu1 %vm1205_vm14, %v8957_v2  ;;  %v2013_v2 = vrot.slane %v8473_v19, 1  ;;  %vm8982_vm14 = vcmp.le.s32.totalorder %v752_v3, 14 }
 0x212   : > { %6380 = vmatmul.mubr.f32.gmra.mrb[62].mxu0 %v8951_v53  ;;  %v10037_v53 = vrot.slane %v8465_v12, 1 }
 0x213   : > { %6414 = vmatprep.mubr.f32.mxu0 %v10036_v38 }
 0x214   : > { %6540 = vmatmul.mubr.f32.gmra.mrb[30].mxu1 %v8966_v20  ;;  %v8978_v52 = vsel %vm10038_vm0, %v10037_v53, %v2012_v60  ;;  %v766_v20 = vand.u32 15, %v700_v5  ;;  %v9000_v5 = vsel %vm10041_vm4, %v2013_v2, %v2014_v58  ;;  %v780_v53 = vand.u32 15, %v702_v1  ;;  %vm10044_vm4 = vmmov %vm10038_vm0 }
 0x215   : > { %6574 = vmatprep.mubr.f32.mxu1 %v8465_v12  ;;  %v8992_v12 = vsel %vm10038_vm0, %v2012_v60, %v2013_v2  ;;  %v704_v60 = vadd.s32 72, %v8569_v42  ;;  %v9013_v2 = vsel %vm10044_vm4, %v2014_v58, %v2015_v6  ;;  %vm10047_vm4 = vmmov %vm10038_vm0  ;;  %v7892_v58 = vld [vmem:[%s8404_s27 + $0xd0] sm:$0xff] }
 0x216   : > { %6415 = vmatmul.mubr.f32.vlgmr.msra.gmra.mrb[32].mxu0 %v10036_v38  ;;  %v3224_v38 = vld [vmem:[#allocation7 + $0x2a8] sm:$0xff]  ;;  %vm9004_vm15 = vcmp.le.s32.totalorder %v766_v20, 14  ;;  %vm9025_vm13 = vcmp.le.s32.totalorder %v780_v53, 14 }
 0x217   : > { %6417 = vmatprep.mubr.f32.mxu0 %v8978_v52 }
 0x218   : > { %6575 = vmatmul.mubr.f32.vlgmr.msra.gmra.mrb[0].mxu1 %v8467_v14  ;;  %v2016_v14 = vrot.slane %v8483_v27, 1 }
 0x219   : > { %7297 = vmatpush3.bf16.msra.mxu1 %v8790_v50  ;;  %6577 = vmatprep.mubr.f32.mxu1 %v8473_v19  ;;  %v7302_v50 = vpack.c.bf16 %v3224_v38, %v3223_v41  ;;  %v3226_v19 = vld [vmem:[#allocation7 + $0x2b8] sm:$0xff]  ;;  %v2017_v41 = vrot.slane %v8489_v31, 1  ;;  %v2018_v38 = vrot.slane %v8491_v33, 1 }
 0x21a   : > { %6418 = vmatmul.mubr.msk.f32.gmra.mrb[34].mxu0 %vm8982_vm14, %v8992_v12  ;;  %7299 = vmatprep.subr.bf16.mxu1 %v7298_v32  ;;  %v9021_v1 = vsel %vm10038_vm0, %v2015_v6, %v2016_v14  ;;  %v7306_v20 = vpack.c.bf16 %v3226_v19, %v3225_v29  ;;  %v2019_v19 = vrot.slane %v8497_v37, 1 }
 0x21b   : > { %6420 = vmatprep.mubr.f32.mxu0 %v9000_v5  ;;  %v9034_v6 = vsel %vm10047_vm4, %v2016_v14, %v2017_v41  ;;  %v9042_v53 = vsel %vm10038_vm0, %v2017_v41, %v2018_v38  ;;  %vm10050_vm4 = vmmov %vm10038_vm0  ;;  %v7896_v14 = vld [vmem:[%s8404_s27 + $0xf0] sm:$0xff] }
 0x21c   : > { %6578 = vmatmul.mubr.f32.gmra.mrb[2].mxu1 %v8475_v21  ;;  %v3227_v21 = vld [vmem:[#allocation7 + $0x2c0] sm:$0xff]  ;;  %v9055_v41 = vsel %vm10050_vm4, %v2018_v38, %v2019_v19  ;;  %vm10053_vm4 = vmmov %vm10038_vm0 }
 0x21d   : > { %6580 = vmatprep.mubr.f32.mxu1 %v8481_v25  ;;  %7301 = vmatpush3.bf16.msra.mxu1 %v7298_v32  ;;  %v794_v32 = vand.u32 15, %v704_v60  ;;  %v706_v25 = vadd.s32 88, %v8569_v42  ;;  %v2020_v60 = vrot.slane %v8499_v39, 1  ;;  %v7310_v29 = vpack.c.bf16 %v3228_v35, %v3227_v21 }
 0x21e   : > { %6421 = vmatmul.mubr.msk.f32.gmra.mrb[36].mxu0 %vm9004_vm15, %v9013_v2  ;;  %7303 = vmatprep.subr.bf16.mxu1 %v7302_v50  ;;  %v2021_v21 = vrot.slane %v8505_v43, 1  ;;  %v2022_v35 = vrot.slane %v8507_v45, 1 }
 0x21f   : > { %6423 = vmatprep.mubr.f32.mxu0 %v9021_v1  ;;  %vm9046_vm12 = vcmp.le.s32.totalorder %v794_v32, 14 }
 0x220   : > { %6581 = vmatmul.mubr.f32.gmra.mrb[4].mxu1 %v8483_v27  ;;  %v3229_v27 = vld [vmem:[#allocation7 + $0x2d0] sm:$0xff] }
 0x221   : > { %6583 = vmatprep.mubr.f32.mxu1 %v8489_v31  ;;  %7305 = vmatpush3.bf16.msra.mxu1 %v7302_v50  ;;  %v808_v31 = vand.u32 15, %v706_v25  ;;  %v708_v50 = vadd.s32 104, %v8569_v42  ;;  %v9063_v25 = vsel %vm10038_vm0, %v2019_v19, %v2020_v60  ;;  %v7314_v32 = vpack.c.bf16 %v3230_v16, %v3229_v27 }
 0x222   : > { %6424 = vmatmul.mubr.msk.f32.gmra.mrb[38].mxu0 %vm9025_vm13, %v9034_v6  ;;  %7307 = vmatprep.subr.bf16.mxu1 %v7306_v20  ;;  %v9076_v19 = vsel %vm10053_vm4, %v2020_v60, %v2021_v21  ;;  %v2023_v27 = vrot.slane %v8513_v49, 1  ;;  %v2024_v16 = vrot.slane %v8515_v51, 1  ;;  %vm10056_vm4 = vmmov %vm10038_vm0 }
 0x223   : > { %6426 = vmatprep.mubr.f32.mxu0 %v9042_v53  ;;  %vm9067_vm11 = vcmp.le.s32.totalorder %v808_v31, 14  ;;  %v9084_v31 = vsel %vm10038_vm0, %v2021_v21, %v2022_v35 }
 0x224   : > { %6584 = vmatmul.mubr.f32.gmra.mrb[6].mxu1 %v8491_v33  ;;  %v3231_v33 = vld [vmem:[#allocation7 + $0x2e0] sm:$0xff]  ;;  %v9097_v21 = vsel %vm10056_vm4, %v2022_v35, %v2023_v27  ;;  %vm10059_vm4 = vmmov %vm10038_vm0 }
 0x225   : > { %6586 = vmatprep.mubr.f32.mxu1 %v8497_v37  ;;  %7309 = vmatpush3.bf16.msra.mxu1 %v7306_v20  ;;  %v822_v37 = vand.u32 15, %v708_v50  ;;  %v710_v20 = vadd.s32 120, %v8569_v42  ;;  %v7318_v50 = vpack.c.bf16 %v3232_v48, %v3231_v33  ;;  %v2025_v33 = vrot.slane %v8521_v55, 1 }
 0x226   : > { %6427 = vmatmul.mubr.msk.f32.gmra.mrb[40].mxu0 %vm9046_vm12, %v9055_v41  ;;  %7311 = vmatprep.subr.bf16.mxu1 %v7310_v29  ;;  %v2026_v48 = vrot.slane %v8523_v57, 1 }
 0x227   : > { %6429 = vmatprep.mubr.f32.mxu0 %v9063_v25  ;;  %vm9088_vm10 = vcmp.le.s32.totalorder %v822_v37, 14  ;;  %v9105_v37 = vsel %vm10038_vm0, %v2023_v27, %v2024_v16  ;;  %v9118_v27 = vsel %vm10059_vm4, %v2024_v16, %v2025_v33 }
 0x228   : > { %6587 = vmatmul.mubr.f32.gmra.mrb[8].mxu1 %v8499_v39  ;;  %v3233_v39 = vld [vmem:[#allocation7 + $0x2f0] sm:$0xff] }
 0x229   : > { %6589 = vmatprep.mubr.f32.mxu1 %v8505_v43  ;;  %7313 = vmatpush3.bf16.msra.mxu1 %v7310_v29  ;;  %v836_v43 = vand.u32 15, %v710_v20  ;;  %v712_v29 = vadd.s32 136, %v8569_v42  ;;  %v7322_v20 = vpack.c.bf16 %v3234_v62, %v3233_v39  ;;  %v2027_v39 = vrot.slane %v8529_v61, 1 }
 0x22a   : > { %6430 = vmatmul.mubr.msk.f32.gmra.mrb[42].mxu0 %vm9067_vm11, %v9076_v19  ;;  %7315 = vmatprep.subr.bf16.mxu1 %v7314_v32  ;;  %v2028_v62 = vrot.slane %v8531_v63, 1 }
 0x22b   : > { %6432 = vmatprep.mubr.f32.mxu0 %v9084_v31  ;;  %vm9109_vm9 = vcmp.le.s32.totalorder %v836_v43, 14  ;;  %v9126_v43 = vsel %vm10038_vm0, %v2025_v33, %v2026_v48  ;;  %v9141_v33 = vsel %vm10038_vm0, %v2026_v48, %v2027_v39 }
 0x22c   : > { %6590 = vmatmul.mubr.f32.gmra.mrb[10].mxu1 %v8507_v45  ;;  %v3621_v45 = vld [vmem:[#allocation7 + $0x300] sm:$0xff] }
 0x22d   : > { %6592 = vmatprep.mubr.f32.mxu1 %v8513_v49  ;;  %7317 = vmatpush3.bf16.msra.mxu1 %v7314_v32  ;;  %v850_v49 = vand.u32 15, %v712_v29  ;;  %v714_v32 = vadd.s32 152, %v8569_v42  ;;  %v9129_v29 = vpack.c.bf16 %v3622_v24, %v3621_v45  ;;  %v2029_v45 = vrot.slane %v8537_v4, 1 }
 0x22e   : > { %6433 = vmatmul.mubr.msk.f32.gmra.mrb[44].mxu0 %vm9088_vm10, %v9097_v21  ;;  %7319 = vmatprep.subr.bf16.mxu1 %v7318_v50  ;;  %v2030_v24 = vrot.slane %v8539_v8, 1 }
 0x22f   : > { %6435 = vmatprep.mubr.f32.mxu0 %v9105_v37  ;;  %vm9132_vm4 = vcmp.le.s32.totalorder %v850_v49, 14  ;;  %v9149_v49 = vsel %vm10062_vm8, %v2027_v39, %v2028_v62  ;;  %vm10065_vm8 = vmmov %vm10038_vm0 }
 0x230   : > { %6593 = vmatmul.mubr.f32.gmra.mrb[12].mxu1 %v8515_v51  ;;  %v9163_v39 = vsel %vm10065_vm8, %v2028_v62, %v2029_v45  ;;  %vm10068_vm8 = vmmov %vm10038_vm0 }
 0x231   : > { %6595 = vmatprep.mubr.f32.mxu1 %v8521_v55  ;;  %7321 = vmatpush3.bf16.msra.mxu1 %v7318_v50  ;;  %v864_v50 = vand.u32 15, %v714_v32  ;;  %v716_v55 = vadd.s32 168, %v8569_v42 }
 0x232   : > { %6436 = vmatmul.mubr.msk.f32.gmra.mrb[46].mxu0 %vm9109_vm9, %v9118_v27  ;;  %7323 = vmatprep.subr.bf16.mxu1 %v7322_v20 }
 0x233   : > { %6438 = vmatprep.mubr.f32.mxu0 %v9126_v43  ;;  %vm9154_vm7 = vcmp.le.s32.totalorder %v864_v50, 14  ;;  %v878_v32 = vand.u32 15, %v716_v55  ;;  %v9171_v50 = vsel %vm10038_vm0, %v2029_v45, %v2030_v24  ;;  %v2032_v55 = vrot.slane %v8547_v17, 1 }
 0x234   : > { %6596 = vmatmul.mubr.f32.gmra.mrb[14].mxu1 %v8523_v57  ;;  %v2033_v45 = vrot.slane %v8553_v23, 1 }
 0x235   : > { %6598 = vmatprep.mubr.f32.mxu1 %v8529_v61  ;;  %7325 = vmatpush3.bf16.msra.mxu1 %v7322_v20  ;;  %v718_v20 = vadd.s32 184, %v8569_v42  ;;  %v2031_v61 = vrot.slane %v8545_v13, 1  ;;  %vm9175_vm6 = vcmp.le.s32.totalorder %v878_v32, 14 }
 0x236   : > { %6439 = vmatmul.mubr.msk.f32.gmra.mrb[48].mxu0 %vm9132_vm4, %v9141_v33  ;;  %7327 = vmatprep.subr.bf16.mxu1 %v9129_v29 }
 0x237   : > { %6441 = vmatprep.mubr.f32.mxu0 %v9149_v49  ;;  %v892_v62 = vand.u32 15, %v718_v20  ;;  %v9184_v57 = vsel %vm10068_vm8, %v2030_v24, %v2031_v61  ;;  %v9192_v32 = vsel %vm10038_vm0, %v2031_v61, %v2032_v55  ;;  %v2034_v20 = vrot.slane %v8555_v26, 1  ;;  %vm10071_vm8 = vmmov %vm10038_vm0 }
 0x238   : > { %6599 = vmatmul.mubr.f32.gmra.mrb[16].mxu1 %v8531_v63  ;;  %v720_v63 = vadd.s32 200, %v8569_v42  ;;  %v9205_v51 = vsel %vm10071_vm8, %v2032_v55, %v2033_v45  ;;  %v2035_v61 = vrot.slane %v8561_v34, 1  ;;  %vm10074_vm8 = vmmov %vm10038_vm0 }
 0x239   : > { %6601 = vmatprep.mubr.f32.mxu1 %v8537_v4  ;;  %vm9196_vm5 = vcmp.le.s32.totalorder %v892_v62, 14  ;;  %v9213_v62 = vsel %vm10038_vm0, %v2033_v45, %v2034_v20  ;;  %v2037_v45 = vrot.slane %v8571_v44, 1  ;;  %v4751_v4 = vld [vmem:[#allocation8 + $0x70] sm:$0xff] }
 0x23a   : > { %6442 = vmatmul.mubr.msk.f32.gmra.mrb[50].mxu0 %vm9154_vm7, %v9163_v39  ;;  %v906_v24 = vand.u32 15, %v720_v63  ;;  %v2036_v63 = vrot.slane %v8563_v36, 1  ;;  %v9226_v7 = vsel %vm10074_vm8, %v2034_v20, %v2035_v61  ;;  %vm10077_vm8 = vmmov %vm10038_vm0 }
 0x23b   : > { %6444 = vmatprep.mubr.f32.mxu0 %v9171_v50 }
 0x23c   : > { %6602 = vmatmul.mubr.f32.gmra.mrb[18].mxu1 %v8539_v8  ;;  %v722_v8 = vadd.s32 216, %v8569_v42  ;;  %vm9217_vm3 = vcmp.le.s32.totalorder %v906_v24, 14  ;;  %v9234_v24 = vsel %vm10038_vm0, %v2035_v61, %v2036_v63  ;;  %v9247_v30 = vsel %vm10077_vm8, %v2036_v63, %v2037_v45  ;;  %vm10081_vm8 = vmmov %vm10038_vm0 }
 0x23d   : > { %6604 = vmatprep.mubr.f32.mxu1 %v8545_v13  ;;  %v2039_v61 = vrot.slane %v8581_v56, 1  ;;  %v4752_v13 = vld [vmem:[#allocation8 + $0x78] sm:$0xff] }
 0x23e   : > { %6445 = vmatmul.mubr.msk.f32.gmra.mrb[52].mxu0 %vm9175_vm6, %v9184_v57  ;;  %v920_v55 = vand.u32 15, %v722_v8  ;;  %v2038_v8 = vrot.slane %v8573_v47, 1 }
 0x23f   : > { %6447 = vmatprep.mubr.f32.mxu0 %v9192_v32 }
 0x240   : > { %6605 = vmatmul.mubr.f32.gmra.mrb[20].mxu1 %v8547_v17  ;;  %v724_v17 = vadd.s32 232, %v8569_v42  ;;  %vm9238_vm1 = vcmp.le.s32.totalorder %v920_v55, 14  ;;  %v9255_v55 = vsel %vm10038_vm0, %v2037_v45, %v2038_v8  ;;  %v696_v45 = vadd.s32 8, %v8569_v42 }
 0x241   : > { %6607 = vmatprep.mubr.f32.mxu1 %v8553_v23  ;;  %v10072_v23 = vmov 0 }
 0x242   : > { %6448 = vmatmul.mubr.msk.f32.gmra.mrb[54].mxu0 %vm9196_vm5, %v9205_v51  ;;  %v10073_v23 = vsel %vm9217_vm3, 4294967295, %v10072_v23  ;;  %v934_v20 = vand.u32 15, %v724_v17  ;;  %v2040_v17 = vrot.slane %v8583_v59, 1 }
 0x243   : > { %6450 = vmatprep.mubr.f32.mxu0 %v9213_v62 }
 0x244   : > { %6608 = vmatmul.mubr.f32.gmra.mrb[22].mxu1 %v8555_v26  ;;  %v726_v26 = vadd.s32 248, %v8569_v42  ;;  %vm9259_vm2 = vcmp.le.s32.totalorder %v934_v20, 14  ;;  %v9275_v20 = vsel %vm10038_vm0, %v2039_v61, %v2040_v17 }
 0x245   : > { %6610 = vmatprep.mubr.f32.mxu1 %v8561_v34  ;;  %v10075_v34 = vmov 0 }
 0x246   : > { %6451 = vmatmul.mubr.msk.f32.gmra.mrb[56].mxu0 %vm9217_vm3, %v9226_v7  ;;  %v10076_v34 = vsel %vm9238_vm1, 4294967295, %v10075_v34  ;;  %v948_v63 = vand.u32 15, %v726_v26  ;;  %v10091_v26 = vld [vmem:[#allocation50_spill] sm:$0xff] }
 0x247   : > { %6453 = vmatprep.mubr.f32.mxu0 %v9234_v24 }
 0x248   : > { %6611 = vmatmul.mubr.f32.gmra.mrb[24].mxu1 %v8563_v36  ;;  %v9267_v36 = vsel %vm10081_vm8, %v2038_v8, %v2039_v61  ;;  %v10084_v8 = vrot.slane %v8593_v11, 1  ;;  %vm10085_vm8 = vmmov %vm10038_vm0  ;;  %v3623_v61 = vld [vmem:[#allocation7 + $0x310] sm:$0xff] }
 0x249   : > { %6613 = vmatprep.mubr.f32.mxu1 %v8571_v44  ;;  %v10078_v44 = vmov 0 }
 0x24a   : > { %6454 = vmatmul.mubr.msk.f32.gmra.mrb[58].mxu0 %vm9238_vm1, %v9247_v30  ;;  %v10079_v44 = vsel %vm9259_vm2, 4294967295, %v10078_v44  ;;  %vm9278_vm1 = vcmp.le.s32.totalorder %v948_v63, 14  ;;  %v3624_v63 = vld [vmem:[#allocation7 + $0x318] sm:$0xff] }
 0x24b   : > { %6456 = vmatprep.mubr.f32.mxu0 %v9255_v55  ;;  %10080 = vst [vmem:[#allocation88_spill] sm:$0xff] %v10079_v44  ;;  %v7330_v42 = vpack.c.bf16 %v3624_v63, %v3623_v61  ;;  %v3630_v61 = vld [vmem:[#allocation7 + $0x348] sm:$0xff]  ;;  %v3632_v63 = vld [vmem:[#allocation7 + $0x358] sm:$0xff] }
 0x24c   : > { %6614 = vmatmul.mubr.f32.gmra.mrb[26].mxu1 %v8573_v47  ;;  %v738_v47 = vand.u32 15, %v696_v45  ;;  %v3627_v45 = vld [vmem:[#allocation7 + $0x330] sm:$0xff] }
 0x24d   : > { %6616 = vmatprep.mubr.f32.mxu1 %v8581_v56  ;;  %v9288_v56 = vsel %vm10085_vm8, %v2040_v17, %v10084_v8  ;;  %v3625_v17 = vld [vmem:[#allocation7 + $0x320] sm:$0xff]  ;;  %v3626_v8 = vld [vmem:[#allocation7 + $0x328] sm:$0xff]  ;;  %vm10088_vm8 = vnez %v10076_v34 }
 0x24e   : > { %6457 = vmatmul.mubr.msk.f32.gmra.mrb[60].mxu0 %vm9259_vm2, %v9267_v36  ;;  %vm9296_vm0 = vcmp.le.s32.totalorder %v738_v47, 14 }
 0x24f   : > { %6459 = vmatprep.mubr.f32.mxu0 %v9275_v20 }
 0x250   : > { %6617 = vmatmul.mubr.f32.gmra.mrb[28].mxu1 %v8583_v59 }
 0x251   : > { %6619 = vmatprep.mubr.f32.mxu1 %v8593_v11 }
 0x252   : > { %6460 = vmatmul.mubr.msk.f32.gmra.mrb[62].mxu0 %vm9278_vm1, %v9288_v56 }
 0x253   : > { %6974 = vmatprep.mubr.f32.mxu0 %v7866_v46  ;;  %v7334_v46 = vpack.c.bf16 %v3626_v8, %v3625_v17  ;;  %v3634_v17 = vld [vmem:[#allocation7 + $0x368] sm:$0xff] }
 0x254   : > { %6620 = vmatmul.mubr.f32.gmra.mrb[30].mxu1 %v8589_v9  ;;  %v3628_v9 = vld [vmem:[#allocation7 + $0x338] sm:$0xff] }
 0x255   : > { %6654 = vmatprep.mubr.f32.mxu1 %v8978_v52  ;;  %v7338_v47 = vpack.c.bf16 %v3628_v9, %v3627_v45  ;;  %v3629_v52 = vld [vmem:[#allocation7 + $0x340] sm:$0xff]  ;;  %v3636_v45 = vld [vmem:[#allocation7 + $0x378] sm:$0xff] }
 0x258   : > { %6655 = vmatmul.mubr.msk.f32.vlgmr.msra.gmra.mrb[0].mxu1 %vm9296_vm0, %v8992_v12  ;;  %v7342_v12 = vpack.c.bf16 %v3630_v61, %v3629_v52  ;;  %v3991_v52 = vld [vmem:[#allocation7 + $0x380] sm:$0xff]  ;;  %v3992_v61 = vld [vmem:[#allocation7 + $0x388] sm:$0xff] }
 0x259   : > { %7329 = vmatpush3.bf16.msra.mxu1 %v9129_v29  ;;  %6657 = vmatprep.mubr.f32.mxu1 %v9000_v5  ;;  %v3631_v29 = vld [vmem:[#allocation7 + $0x350] sm:$0xff] }
 0x25a   : > { %7331 = vmatprep.subr.bf16.mxu1 %v7330_v42  ;;  %v7346_v9 = vpack.c.bf16 %v3632_v63, %v3631_v29  ;;  %v3993_v29 = vld [vmem:[#allocation7 + $0x390] sm:$0xff]  ;;  %v3994_v63 = vld [vmem:[#allocation7 + $0x398] sm:$0xff] }
 0x25c   : > { %6658 = vmatmul.mubr.msk.f32.gmra.mrb[2].mxu1 %vm8982_vm14, %v9013_v2 }
 0x25d   : > { %6660 = vmatprep.mubr.f32.mxu1 %v9021_v1  ;;  %7333 = vmatpush3.bf16.msra.mxu1 %v7330_v42  ;;  %v3633_v42 = vld [vmem:[#allocation7 + $0x360] sm:$0xff] }
 0x25e   : > { %7335 = vmatprep.subr.bf16.mxu1 %v7334_v46  ;;  %v7350_v8 = vpack.c.bf16 %v3634_v17, %v3633_v42  ;;  %v3995_v42 = vld [vmem:[#allocation7 + $0x3a0] sm:$0xff]  ;;  %v3996_v17 = vld [vmem:[#allocation7 + $0x3a8] sm:$0xff] }
 0x260   : > { %6661 = vmatmul.mubr.msk.f32.gmra.mrb[4].mxu1 %vm9004_vm15, %v9034_v6 }
 0x261   : > { %6663 = vmatprep.mubr.f32.mxu1 %v9042_v53  ;;  %7337 = vmatpush3.bf16.msra.mxu1 %v7334_v46  ;;  %v3635_v46 = vld [vmem:[#allocation7 + $0x370] sm:$0xff] }
 0x262   : > { %7339 = vmatprep.subr.bf16.mxu1 %v7338_v47 }
 0x264   : > { %6664 = vmatmul.mubr.msk.f32.gmra.mrb[6].mxu1 %vm9025_vm13, %v9055_v41 }
 0x265   : > { %6666 = vmatprep.mubr.f32.mxu1 %v9063_v25  ;;  %7341 = vmatpush3.bf16.msra.mxu1 %v7338_v47  ;;  %v7354_v47 = vpack.c.bf16 %v3636_v45, %v3635_v46  ;;  %v3997_v46 = vld [vmem:[#allocation7 + $0x3b0] sm:$0xff]  ;;  %v3998_v45 = vld [vmem:[#allocation7 + $0x3b8] sm:$0xff] }
 0x266   : > { %7343 = vmatprep.subr.bf16.mxu1 %v7342_v12 }
 0x268   : > { %6667 = vmatmul.mubr.msk.f32.gmra.mrb[8].mxu1 %vm9046_vm12, %v9076_v19 }
 0x269   : > { %6669 = vmatprep.mubr.f32.mxu1 %v9084_v31  ;;  %7345 = vmatpush3.bf16.msra.mxu1 %v7342_v12  ;;  %v7358_v12 = vpack.c.bf16 %v3992_v61, %v3991_v52  ;;  %v10093_v52 = vld [vmem:[#allocation47_spill] sm:$0xff]  ;;  %v10095_v61 = vld [vmem:[#allocation53_spill] sm:$0xff] }
 0x26a   : > { %7347 = vmatprep.subr.bf16.mxu1 %v7346_v9 }
 0x26c   : > { %6670 = vmatmul.mubr.msk.f32.gmra.mrb[10].mxu1 %vm9067_vm11, %v9097_v21 }
 0x26d   : > { %6672 = vmatprep.mubr.f32.mxu1 %v9105_v37  ;;  %7349 = vmatpush3.bf16.msra.mxu1 %v7346_v9  ;;  %v7362_v9 = vpack.c.bf16 %v3994_v63, %v3993_v29  ;;  %v4001_v29 = vld [vmem:[#allocation7 + $0x3d0] sm:$0xff]  ;;  %v4002_v63 = vld [vmem:[#allocation7 + $0x3d8] sm:$0xff] }
 0x26e   : > { %7351 = vmatprep.subr.bf16.mxu1 %v7350_v8 }
 0x270   : > { %6673 = vmatmul.mubr.msk.f32.gmra.mrb[12].mxu1 %vm9088_vm10, %v9118_v27 }
 0x271   : > { %6675 = vmatprep.mubr.f32.mxu1 %v9126_v43  ;;  %7353 = vmatpush3.bf16.msra.mxu1 %v7350_v8  ;;  %v7366_v8 = vpack.c.bf16 %v3996_v17, %v3995_v42  ;;  %v10099_v42 = vld [vmem:[#allocation56_spill] sm:$0xff]  ;;  %v10100_v17 = vld [vmem:[#allocation57_spill] sm:$0xff] }
 0x272   : > { %7355 = vmatprep.subr.bf16.mxu1 %v7354_v47 }
 0x274   : > { %6676 = vmatmul.mubr.msk.f32.gmra.mrb[14].mxu1 %vm9109_vm9, %v9141_v33 }
 0x275   : > { %6678 = vmatprep.mubr.f32.mxu1 %v9149_v49  ;;  %7357 = vmatpush3.bf16.msra.mxu1 %v7354_v47  ;;  %v10092_v47 = vld [vmem:[#allocation52_spill] sm:$0xff] }
 0x276   : > { %7359 = vmatprep.subr.bf16.mxu1 %v7358_v12 }
 0x278   : > { %6679 = vmatmul.mubr.msk.f32.gmra.mrb[16].mxu1 %vm9132_vm4, %v9163_v39 }
 0x279   : > { %6681 = vmatprep.mubr.f32.mxu1 %v9171_v50 }
 0x27c   : > { %6682 = vmatmul.mubr.msk.f32.gmra.mrb[18].mxu1 %vm9154_vm7, %v9184_v57 }
 0x27d   : > { %6684 = vmatprep.mubr.f32.mxu1 %v9192_v32 }
 0x280   : > { %6685 = vmatmul.mubr.msk.f32.gmra.mrb[20].mxu1 %vm9175_vm6, %v9205_v51 }
 0x281   : > { %6687 = vmatprep.mubr.f32.mxu1 %v9213_v62 }
 0x284   : > { %6688 = vmatmul.mubr.msk.f32.gmra.mrb[22].mxu1 %vm9196_vm5, %v9226_v7 }
 0x285   : > { %6690 = vmatprep.mubr.f32.mxu1 %v9234_v24 }
 0x288   : > { %6691 = vmatmul.mubr.msk.f32.gmra.mrb[24].mxu1 %vm9217_vm3, %v9247_v30  ;;  %vm10089_vm3 = vnez %v9967_v28  ;;  %v7370_v28 = vpack.c.bf16 %v3998_v45, %v3997_v46  ;;  %v4003_v46 = vld [vmem:[#allocation7 + $0x3e0] sm:$0xff]  ;;  %v4004_v45 = vld [vmem:[#allocation7 + $0x3e8] sm:$0xff] }
 0x289   : > { %6693 = vmatprep.mubr.f32.mxu1 %v9255_v55 }
 0x28c   : > { %6694 = vmatmul.mubr.msk.f32.gmra.mrb[26].mxu1 %vm10088_vm8, %v9267_v36 }
 0x28d   : > { %6696 = vmatprep.mubr.f32.mxu1 %v9275_v20 }
 0x290   : > { %6697 = vmatmul.mubr.msk.f32.gmra.mrb[28].mxu1 %vm9259_vm2, %v9288_v56  ;;  %vm10090_vm2 = vnez %v9965_v22  ;;  %v10097_v22 = vld [vmem:[#allocation49_spill] sm:$0xff] }
 0x291   : > { %6699 = vmatprep.mubr.f32.mxu1 %v8640_v10 }
 0x294   : > { %6700 = vmatmul.mubr.msk.f32.gmra.mrb[30].mxu1 %vm9278_vm1, %v8646_v15  ;;  %vm10094_vm1 = vnez %v10093_v52  ;;  %v10104_v52 = vld [vmem:[#allocation61_spill] sm:$0xff]  ;;  %v4399_v15 = vld [vmem:[#allocation7 + $0x430] sm:$0xff] }
 0x295   : > { %6734 = vmatprep.mubr.msk.f32.mxu1 %vm10089_vm3, %v8632_v0  ;;  %v3999_v0 = vld [vmem:[#allocation7 + $0x3c0] sm:$0xff] }
 0x298   : > { %6735 = vmatmul.mubr.f32.vlgmr.msra.gmra.mrb[0].mxu1 %v8657_v18  ;;  %v4000_v18 = vld [vmem:[#allocation7 + $0x3c8] sm:$0xff] }
 0x299   : > { %7361 = vmatpush3.bf16.msra.mxu1 %v7358_v12  ;;  %6737 = vmatprep.mubr.msk.f32.mxu1 %vm10090_vm2, %v8663_v40  ;;  %v10096_v12 = vld [vmem:[#allocation54_spill] sm:$0xff]  ;;  %vm10098_vm2 = vnez %v10097_v22  ;;  %v7374_v40 = vpack.c.bf16 %v4000_v18, %v3999_v0  ;;  %v4005_v0 = vld [vmem:[#allocation7 + $0x3f0] sm:$0xff]  ;;  %v4006_v18 = vld [vmem:[#allocation7 + $0x3f8] sm:$0xff] }
 0x29a   : > { %7363 = vmatprep.subr.bf16.mxu1 %v7362_v9  ;;  %v10108_v22 = vld [vmem:[#allocation63_spill] sm:$0xff] }
 0x29c   : > { %6738 = vmatmul.mubr.f32.gmra.mrb[2].mxu1 %v10091_v26  ;;  %v10101_v26 = vld [vmem:[#allocation51_spill] sm:$0xff] }
 0x29d   : > { %6740 = vmatprep.mubr.msk.f32.mxu1 %vm10094_vm1, %v10092_v47  ;;  %7365 = vmatpush3.bf16.msra.mxu1 %v7362_v9  ;;  %vm10102_vm3 = vnez %v10101_v26  ;;  %v7378_v9 = vpack.c.bf16 %v4002_v63, %v4001_v29  ;;  %v10103_v47 = vld [vmem:[#allocation59_spill] sm:$0xff]  ;;  %v4393_v29 = vld [vmem:[#allocation7 + $0x400] sm:$0xff] }
 0x29e   : > { %7367 = vmatprep.subr.bf16.mxu1 %v7366_v8  ;;  %v4394_v63 = vld [vmem:[#allocation7 + $0x408] sm:$0xff]  ;;  %v10112_v26 = vld [vmem:[#allocation66_spill] sm:$0xff] }
 0x2a0   : > { %6741 = vmatmul.mubr.f32.gmra.mrb[4].mxu1 %v10095_v61  ;;  %v10105_v61 = vld [vmem:[#allocation55_spill] sm:$0xff] }
 0x2a1   : > { %6743 = vmatprep.mubr.msk.f32.mxu1 %vm10098_vm2, %v10096_v12  ;;  %7369 = vmatpush3.bf16.msra.mxu1 %v7366_v8  ;;  %vm10106_vm1 = vnez %v10105_v61  ;;  %v7382_v8 = vpack.c.bf16 %v4004_v45, %v4003_v46  ;;  %v10107_v12 = vld [vmem:[#allocation62_spill] sm:$0xff]  ;;  %v10115_v46 = vld [vmem:[#allocation68_spill] sm:$0xff] }
 0x2a2   : > { %7371 = vmatprep.subr.bf16.mxu1 %v7370_v28  ;;  %v10116_v45 = vld [vmem:[#allocation70_spill] sm:$0xff]  ;;  %v10120_v61 = vld [vmem:[#allocation72_spill] sm:$0xff] }
 0x2a4   : > { %6744 = vmatmul.mubr.f32.gmra.mrb[6].mxu1 %v10099_v42  ;;  %v10109_v42 = vld [vmem:[#allocation58_spill] sm:$0xff] }
 0x2a5   : > { %6746 = vmatprep.mubr.msk.f32.mxu1 %vm10102_vm3, %v10100_v17  ;;  %7373 = vmatpush3.bf16.msra.mxu1 %v7370_v28  ;;  %vm10110_vm2 = vnez %v10109_v42  ;;  %v7386_v28 = vpack.c.bf16 %v4006_v18, %v4005_v0  ;;  %v10111_v17 = vld [vmem:[#allocation65_spill] sm:$0xff]  ;;  %v10121_v0 = vld [vmem:[#allocation67_spill] sm:$0xff]  ;;  %v10123_v18 = vld [vmem:[#allocation74_spill] sm:$0xff] }
 0x2a6   : > { %7375 = vmatprep.subr.bf16.mxu1 %v7374_v40  ;;  %v10128_v42 = vld [vmem:[#allocation79_spill] sm:$0xff] }
 0x2a8   : > { %6747 = vmatmul.mubr.f32.gmra.mrb[8].mxu1 %v10103_v47  ;;  %v10113_v47 = vld [vmem:[#allocation60_spill] sm:$0xff] }
 0x2a9   : > { %6749 = vmatprep.mubr.msk.f32.mxu1 %vm10106_vm1, %v10104_v52  ;;  %7377 = vmatpush3.bf16.msra.mxu1 %v7374_v40  ;;  %vm10114_vm3 = vnez %v10113_v47  ;;  %v7390_v40 = vpack.c.bf16 %v4394_v63, %v4393_v29  ;;  %v10117_v52 = vld [vmem:[#allocation64_spill] sm:$0xff]  ;;  %v10129_v29 = vld [vmem:[#allocation73_spill] sm:$0xff] }
 0x2aa   : > { %7379 = vmatprep.subr.bf16.mxu1 %v7378_v9  ;;  %vm10118_vm1 = vnez %v10117_v52  ;;  %vm10130_vm8 = vnez %v10129_v29  ;;  %v10132_v63 = vld [vmem:[#allocation81_spill] sm:$0xff]  ;;  %v10136_v47 = vld [vmem:[#allocation84_spill] sm:$0xff]  ;;  %v10140_v52 = vld [vmem:[#allocation86_spill] sm:$0xff] }
 0x2ab   : > { %v10145_v29 = vld [vmem:[#allocation18_spill] sm:$0xff] }
 0x2ac   : > { %6750 = vmatmul.mubr.f32.gmra.mrb[10].mxu1 %v10107_v12  ;;  %v10124_v12 = vld [vmem:[#allocation75_spill] sm:$0xff] }
 0x2ad   : > { %6752 = vmatprep.mubr.msk.f32.mxu1 %vm10110_vm2, %v10108_v22  ;;  %7381 = vmatpush3.bf16.msra.mxu1 %v7378_v9  ;;  %v10119_v9 = vld [vmem:[#allocation71_spill] sm:$0xff]  ;;  %vm10122_vm2 = vnez %v10121_v0  ;;  %v10127_v22 = vld [vmem:[#allocation77_spill] sm:$0xff]  ;;  %v10144_v0 = vmov 0.0  }
 0x2ae   : > { %7383 = vmatprep.subr.bf16.mxu1 %v7382_v8 }
 0x2b0   : > { %6753 = vmatmul.mubr.f32.gmra.mrb[12].mxu1 %v10111_v17  ;;  %v10133_v17 = vld [vmem:[#allocation76_spill] sm:$0xff] }
 0x2b1   : > { %6755 = vmatprep.mubr.msk.f32.mxu1 %vm10114_vm3, %v10112_v26  ;;  %7385 = vmatpush3.bf16.msra.mxu1 %v7382_v8  ;;  %v10125_v8 = vld [vmem:[#allocation69_spill] sm:$0xff]  ;;  %v10135_v26 = vld [vmem:[#allocation83_spill] sm:$0xff] }
 0x2b2   : > { %7387 = vmatprep.subr.bf16.mxu1 %v7386_v28  ;;  %vm10126_vm3 = vnez %v10125_v8  ;;  %v4753_v8 = vld [vmem:[#allocation10] sm:$0xff] }
 0x2b4   : > { %6756 = vmatmul.mubr.f32.gmra.mrb[14].mxu1 %v10115_v46  ;;  %v10137_v46 = vld [vmem:[#allocation78_spill] sm:$0xff] }
 0x2b5   : > { %6758 = vmatprep.mubr.msk.f32.mxu1 %vm10118_vm1, %v10116_v45  ;;  %7389 = vmatpush3.bf16.msra.mxu1 %v7386_v28  ;;  %v10131_v28 = vld [vmem:[#allocation80_spill] sm:$0xff]  ;;  %vm10134_vm1 = vnez %v10133_v17  ;;  %v10139_v45 = vld [vmem:[#allocation85_spill] sm:$0xff] }
 0x2b6   : > { %7391 = vmatprep.subr.bf16.mxu1 %v7390_v40 }
 0x2b8   : > { %6759 = vmatmul.mubr.f32.gmra.mrb[16].mxu1 %v10119_v9  ;;  %v10141_v9 = vld [vmem:[#allocation82_spill] sm:$0xff] }
 0x2b9   : > { %6761 = vmatprep.mubr.msk.f32.mxu1 %vm10122_vm2, %v10120_v61  ;;  %vm10138_vm2 = vnez %v10137_v46  ;;  %v10143_v61 = vld [vmem:[#allocation87_spill] sm:$0xff] }
 0x2ba   : > { %v4398_v46 = vld [vmem:[#allocation7 + $0x428] sm:$0xff] }
 0x2bc   : > { %6762 = vmatmul.mubr.f32.gmra.mrb[18].mxu1 %v10123_v18  ;;  %v4395_v18 = vld [vmem:[#allocation7 + $0x410] sm:$0xff] }
 0x2bd   : > { %6764 = vmatprep.mubr.msk.f32.mxu1 %vm10126_vm3, %v10124_v12  ;;  %vm10142_vm3 = vnez %v10141_v9  ;;  %v4396_v12 = vld [vmem:[#allocation7 + $0x418] sm:$0xff]  ;;  %v10146_v9 = vld [vmem:[#allocation19_spill] sm:$0xff] }
 0x2be   : > { %v7394_v17 = vpack.c.bf16 %v4396_v12, %v4395_v18  ;;  %v4760_v18 = vld [vmem:[#allocation10 + $0x38] sm:$0xff] }
 0x2bf   : > { %v10148_v12 = vld [vmem:[#allocation21_spill] sm:$0xff] }
 0x2c0   : > { %6765 = vmatmul.mubr.f32.gmra.mrb[20].mxu1 %v10127_v22  ;;  %v4754_v22 = vld [vmem:[#allocation10 + $0x8] sm:$0xff] }
 0x2c1   : > { %6767 = vmatprep.mubr.msk.f32.mxu1 %vm10130_vm8, %v10128_v42  ;;  %v4755_v42 = vld [vmem:[#allocation10 + $0x10] sm:$0xff] }
 0x2c4   : > { %6768 = vmatmul.mubr.f32.gmra.mrb[22].mxu1 %v10131_v28  ;;  %v7422_v28 = vpack.c.bf16 %v4754_v22, %v4753_v8  ;;  %v4400_v8 = vld [vmem:[#allocation7 + $0x438] sm:$0xff]  ;;  %v4759_v22 = vld [vmem:[#allocation10 + $0x30] sm:$0xff] }
 0x2c5   : > { %6770 = vmatprep.mubr.msk.f32.mxu1 %vm10134_vm1, %v10132_v63  ;;  %v4756_v63 = vld [vmem:[#allocation10 + $0x18] sm:$0xff] }
 0x2c6   : > { %7423 = vmatprep.subr.bf16.mxu0 %v7422_v28 }
 0x2c7   : > { %7425 = vmatpush3.bf16.msra.mxu0 %v7422_v28  ;;  %v4401_v28 = vld [vmem:[#allocation7 + $0x440] sm:$0xff] }
 0x2c8   : > { %6771 = vmatmul.mubr.f32.gmra.mrb[24].mxu1 %v10135_v26  ;;  %v4397_v26 = vld [vmem:[#allocation7 + $0x420] sm:$0xff] }
 0x2c9   : > { %6773 = vmatprep.mubr.msk.f32.mxu1 %vm10138_vm2, %v10136_v47  ;;  %v7426_v47 = vpack.c.bf16 %v4756_v63, %v4755_v42  ;;  %v7398_v44 = vpack.c.bf16 %v4398_v46, %v4397_v26  ;;  %v10149_v42 = vld [vmem:[#allocation22_spill] sm:$0xff]  ;;  %v7402_v63 = vpack.c.bf16 %v4400_v8, %v4399_v15  ;;  %v4762_v26 = vld [vmem:[#allocation10 + $0x48] sm:$0xff]  ;;  %v4764_v15 = vld [vmem:[#allocation10 + $0x58] sm:$0xff] }
 0x2ca   : > { %v10150_v46 = vld [vmem:[#allocation23_spill] sm:$0xff]  ;;  %v10152_v8 = vld [vmem:[#allocation25_spill] sm:$0xff] }
 0x2cb   : > { %7427 = vmatprep.subr.bf16.mxu0 %v7426_v47 }
 0x2cc   : > { %6774 = vmatmul.mubr.f32.gmra.mrb[26].mxu1 %v10139_v45  ;;  %v4757_v45 = vld [vmem:[#allocation10 + $0x20] sm:$0xff]  ;;  %7429 = vmatpush3.bf16.msra.mxu0 %v7426_v47  ;;  %v4403_v47 = vld [vmem:[#allocation7 + $0x450] sm:$0xff] }
 0x2cd   : > { %6776 = vmatprep.mubr.msk.f32.mxu1 %vm10142_vm3, %v10140_v52  ;;  %v4758_v52 = vld [vmem:[#allocation10 + $0x28] sm:$0xff] }
 0x2d0   : > { %6777 = vmatmul.mubr.f32.gmra.mrb[28].mxu1 %v10143_v61  ;;  %v10147_v61 = vld [vmem:[#allocation20_spill] sm:$0xff] }
 0x2d1   : > { %6779 = vmatprep.mubr.f32.mxu1 %v10144_v0 }
 0x2d4   : > { %6780 = vmatmul.mubr.f32.gmra.mrb[30].mxu1 %v10144_v0 }
 0x2d5   : > { %6814 = vmatprep.mubr.f32.mxu1 %v10145_v29  ;;  %v7430_v29 = vpack.c.bf16 %v4758_v52, %v4757_v45  ;;  %v10151_v45 = vld [vmem:[#allocation24_spill] sm:$0xff] }
 0x2d7   : > { %7431 = vmatprep.subr.bf16.mxu0 %v7430_v29 }
 0x2d8   : > { %6815 = vmatmul.mubr.f32.vlgmr.msra.gmra.mrb[0].mxu1 %v10146_v9  ;;  %v4402_v9 = vld [vmem:[#allocation7 + $0x448] sm:$0xff]  ;;  %7433 = vmatpush3.bf16.msra.mxu0 %v7430_v29  ;;  %v4405_v29 = vld [vmem:[#allocation7 + $0x460] sm:$0xff] }
 0x2d9   : > { %7393 = vmatpush3.bf16.msra.mxu1 %v7390_v40  ;;  %6817 = vmatprep.mubr.f32.mxu1 %v10147_v61  ;;  %v7434_v40 = vpack.c.bf16 %v4760_v18, %v4759_v22  ;;  %v4761_v61 = vld [vmem:[#allocation10 + $0x40] sm:$0xff]  ;;  %v7406_v52 = vpack.c.bf16 %v4402_v9, %v4401_v28  ;;  %v4766_v28 = vld [vmem:[#allocation10 + $0x68] sm:$0xff] }
 0x2da   : > { %7395 = vmatprep.subr.bf16.mxu1 %v7394_v17  ;;  %v10153_v22 = vld [vmem:[#allocation26_spill] sm:$0xff]  ;;  %v10154_v9 = vld [vmem:[#allocation27_spill] sm:$0xff] }
 0x2db   : > { %7435 = vmatprep.subr.bf16.mxu0 %v7434_v40 }
 0x2dc   : > { %6818 = vmatmul.mubr.f32.gmra.mrb[2].mxu1 %v10148_v12  ;;  %v7438_v12 = vpack.c.bf16 %v4762_v26, %v4761_v61  ;;  %7437 = vmatpush3.bf16.msra.mxu0 %v7434_v40  ;;  %v10155_v61 = vld [vmem:[#allocation28_spill] sm:$0xff] }
 0x2dd   : > { %6820 = vmatprep.mubr.f32.mxu1 %v10149_v42  ;;  %7397 = vmatpush3.bf16.msra.mxu1 %v7394_v17  ;;  %v4404_v17 = vld [vmem:[#allocation7 + $0x458] sm:$0xff]  ;;  %v4763_v42 = vld [vmem:[#allocation10 + $0x50] sm:$0xff] }
 0x2de   : > { %7399 = vmatprep.subr.bf16.mxu1 %v7398_v44  ;;  %v7410_v18 = vpack.c.bf16 %v4404_v17, %v4403_v47  ;;  %7439 = vmatprep.subr.bf16.mxu0 %v7438_v12  ;;  %v4408_v17 = vld [vmem:[#allocation7 + $0x478] sm:$0xff] }
 0x2e0   : > { %6821 = vmatmul.mubr.f32.gmra.mrb[4].mxu1 %v10150_v46  ;;  %v7442_v46 = vpack.c.bf16 %v4764_v15, %v4763_v42  ;;  %7441 = vmatpush3.bf16.msra.mxu0 %v7438_v12  ;;  %v4767_v42 = vld [vmem:[#allocation10 + $0x70] sm:$0xff]  ;;  %v4768_v15 = vld [vmem:[#allocation10 + $0x78] sm:$0xff]  ;;  %v10158_v12 = vld [vmem:[#allocation30_spill] sm:$0xff] }
 0x2e1   : > { %6823 = vmatprep.mubr.f32.mxu1 %v10151_v45  ;;  %7401 = vmatpush3.bf16.msra.mxu1 %v7398_v44  ;;  %v4406_v44 = vld [vmem:[#allocation7 + $0x468] sm:$0xff]  ;;  %v4765_v45 = vld [vmem:[#allocation10 + $0x60] sm:$0xff] }
 0x2e2   : > { %7403 = vmatprep.subr.bf16.mxu1 %v7402_v63  ;;  %7443 = vmatprep.subr.bf16.mxu0 %v7442_v46  ;;  %v7446_v47 = vpack.c.bf16 %v4766_v28, %v4765_v45  ;;  %v10159_v45 = vld [vmem:[#allocation31_spill] sm:$0xff] }
 0x2e4   : > { %6824 = vmatmul.mubr.f32.gmra.mrb[6].mxu1 %v10152_v8  ;;  %v4407_v8 = vld [vmem:[#allocation7 + $0x470] sm:$0xff]  ;;  %7445 = vmatpush3.bf16.msra.mxu0 %v7442_v46 }
 0x2e5   : > { %6826 = vmatprep.mubr.f32.mxu1 %v10153_v22  ;;  %7405 = vmatpush3.bf16.msra.mxu1 %v7402_v63  ;;  %v7414_v63 = vpack.c.bf16 %v4406_v44, %v4405_v29  ;;  %v10157_v22 = vld [vmem:[#allocation29_spill] sm:$0xff]  ;;  %v7450_v29 = vpack.c.bf16 %v4768_v15, %v4767_v42  ;;  %v4737_v44 = vld [vmem:[#allocation8] sm:$0xff] }
 0x2e6   : > { %7407 = vmatprep.subr.bf16.mxu1 %v7406_v52  ;;  %7447 = vmatprep.subr.bf16.mxu0 %v7446_v47 }
 0x2e8   : > { %6827 = vmatmul.mubr.f32.gmra.mrb[8].mxu1 %v10154_v9  ;;  %7449 = vmatpush3.bf16.msra.mxu0 %v7446_v47  ;;  %v10163_v47 = vld [vmem:[#allocation34_spill] sm:$0xff] }
 0x2e9   : > { %6829 = vmatprep.mubr.f32.mxu1 %v10155_v61  ;;  %v9437_v26 = vpop.f32.mrb[32].mxu0  ;;  %7409 = vmatpush3.bf16.msra.mxu1 %v7406_v52  ;;  %v7418_v52 = vpack.c.bf16 %v4408_v17, %v4407_v8  ;;  %v4740_v8 = vld [vmem:[#allocation8 + $0x18] sm:$0xff] }
 0x2ea   : > { %v9439_v40 = vpop.f32.mrb[33].mxu0  ;;  %7411 = vmatprep.subr.bf16.mxu1 %v7410_v18  ;;  %7451 = vmatprep.subr.bf16.mxu0 %v7450_v29  ;;  %v10161_v17 = vld [vmem:[#allocation33_spill] sm:$0xff] }
 0x2eb   : > { %10156 = vst [vmem:[#allocation50_spill] sm:$0xff] %v9439_v40  ;;  %v4738_v40 = vld [vmem:[#allocation8 + $0x8] sm:$0xff] }
 0x2ec   : > { %6830 = vmatmul.mubr.f32.gmra.mrb[10].mxu1 %v10157_v22  ;;  %v10160_v22 = vld [vmem:[#allocation32_spill] sm:$0xff]  ;;  %7453 = vmatpush3.bf16.msra.mxu0 %v7450_v29 }
 0x2ed   : > { %v9442_v9 = vpop.f32.mrb[34].mxu0  ;;  %6832 = vmatprep.mubr.f32.mxu1 %v10158_v12  ;;  %7413 = vmatpush3.bf16.msra.mxu1 %v7410_v18  ;;  %v7454_v18 = vpack.c.bf16 %v4738_v40, %v4737_v44  ;;  %v4739_v12 = vld [vmem:[#allocation8 + $0x10] sm:$0xff]  ;;  %v4742_v40 = vld [vmem:[#allocation8 + $0x28] sm:$0xff] }
 0x2ee   : > { %v9445_v61 = vpop.f32.mrb[35].mxu0  ;;  %7415 = vmatprep.subr.bf16.mxu1 %v7414_v63  ;;  %v10165_v44 = vld [vmem:[#allocation35_spill] sm:$0xff]  ;;  %v10167_v29 = vld [vmem:[#allocation36_spill] sm:$0xff] }
 0x2ef   : > { %7455 = vmatprep.subr.bf16.mxu0 %v7454_v18 }
 0x2f0   : > { %6833 = vmatmul.mubr.f32.gmra.mrb[12].mxu1 %v10159_v45  ;;  %v7867_v45 = vld [vmem:[%s8404_s27 + $0x8] sm:$0xff] }
 0x2f1   : > { %v9448_v28 = vpop.f32.mrb[36].mxu0  ;;  %6835 = vmatprep.mubr.f32.mxu1 %v10160_v22  ;;  %7417 = vmatpush3.bf16.msra.mxu1 %v7414_v63  ;;  %v7458_v63 = vpack.c.bf16 %v4740_v8, %v4739_v12  ;;  %v4741_v22 = vld [vmem:[#allocation8 + $0x20] sm:$0xff]  ;;  %v7869_v12 = vld [vmem:[%s8404_s27 + $0x18] sm:$0xff]  ;;  %v4743_v8 = vld [vmem:[#allocation8 + $0x30] sm:$0xff] }
 0x2f2   : > { %v9451_v46 = vpop.f32.mrb[37].mxu0  ;;  %7419 = vmatprep.subr.bf16.mxu1 %v7418_v52  ;;  %6975 = vmatmul.mubr.f32.vlgmr.msra.gmra.mrb[64].mxu0 %v7867_v45  ;;  %v4744_v45 = vld [vmem:[#allocation8 + $0x38] sm:$0xff] }
 0x2f3   : > { %7457 = vmatpush3.bf16.msra.mxu0 %v7454_v18 }
 0x2f4   : > { %6836 = vmatmul.mubr.f32.gmra.mrb[14].mxu1 %v10161_v17  ;;  %7459 = vmatprep.subr.bf16.mxu0 %v7458_v63 }
 0x2f5   : > { %v9454_v42 = vpop.f32.mrb[38].mxu0  ;;  %6838 = vmatprep.mubr.f32.mxu1 %v10163_v47  ;;  %7421 = vmatpush3.bf16.msra.mxu1 %v7418_v52  ;;  %v7462_v47 = vpack.c.bf16 %v4742_v40, %v4741_v22  ;;  %v7871_v22 = vld [vmem:[%s8404_s27 + $0x28] sm:$0xff]  ;;  %v4745_v40 = vld [vmem:[#allocation8 + $0x40] sm:$0xff] }
 0x2f6   : > { %10162 = vst [vmem:[#allocation52_spill] sm:$0xff] %v9454_v42  ;;  %v9457_v15 = vpop.f32.mrb[39].mxu0  ;;  %v7868_v42 = vld [vmem:[%s8404_s27 + $0x10] sm:$0xff] }
 0x2f7   : > { %10164 = vst [vmem:[#allocation47_spill] sm:$0xff] %v9457_v15  ;;  %6977 = vmatprep.mubr.f32.mxu0 %v7868_v42  ;;  %v10169_v15 = vld [vmem:[#allocation37_spill] sm:$0xff]  ;;  %7461 = vmatpush3.bf16.msra.mxu0 %v7458_v63 }
 0x2f8   : > { %6839 = vmatmul.mubr.f32.gmra.mrb[16].mxu1 %v10165_v44  ;;  %6978 = vmatmul.mubr.f32.gmra.mrb[66].mxu0 %v7869_v12  ;;  %v7870_v44 = vld [vmem:[%s8404_s27 + $0x20] sm:$0xff]  ;;  %v4746_v12 = vld [vmem:[#allocation8 + $0x48] sm:$0xff] }
 0x2f9   : > { %v9461_v17 = vpop.f32.mrb[40].mxu0  ;;  %6841 = vmatprep.mubr.f32.mxu1 %v10167_v29  ;;  %6980 = vmatprep.mubr.f32.mxu0 %v7870_v44  ;;  %v7466_v29 = vpack.c.bf16 %v4744_v45, %v4743_v8  ;;  %v7873_v8 = vld [vmem:[%s8404_s27 + $0x38] sm:$0xff]  ;;  %v4747_v45 = vld [vmem:[#allocation8 + $0x50] sm:$0xff] }
 0x2fa   : > { %10166 = vst [vmem:[#allocation53_spill] sm:$0xff] %v9461_v17  ;;  %v9465_v52 = vpop.f32.mrb[41].mxu0  ;;  %v10171_v17 = vld [vmem:[#allocation38_spill] sm:$0xff]  ;;  %7463 = vmatprep.subr.bf16.mxu0 %v7462_v47 }
 0x2fb   : > { %10168 = vst [vmem:[#allocation54_spill] sm:$0xff] %v9465_v52  ;;  %v10173_v52 = vld [vmem:[#allocation39_spill] sm:$0xff]  ;;  %7465 = vmatpush3.bf16.msra.mxu0 %v7462_v47 }
 0x2fc   : > { %6842 = vmatmul.mubr.f32.gmra.mrb[18].mxu1 %v10169_v15  ;;  %6981 = vmatmul.mubr.f32.gmra.mrb[68].mxu0 %v7871_v22  ;;  %v7872_v15 = vld [vmem:[%s8404_s27 + $0x30] sm:$0xff]  ;;  %v4748_v22 = vld [vmem:[#allocation8 + $0x58] sm:$0xff] }
 0x2fd   : > { %v9470_v18 = vpop.f32.mrb[42].mxu0  ;;  %6844 = vmatprep.mubr.f32.mxu1 %v10171_v17  ;;  %6983 = vmatprep.mubr.f32.mxu0 %v7872_v15  ;;  %v7470_v17 = vpack.c.bf16 %v4746_v12, %v4745_v40  ;;  %v7875_v40 = vld [vmem:[%s8404_s27 + $0x48] sm:$0xff]  ;;  %v4749_v12 = vld [vmem:[#allocation8 + $0x60] sm:$0xff] }
 0x2fe   : > { %10170 = vst [vmem:[#allocation49_spill] sm:$0xff] %v9470_v18  ;;  %v9473_v42 = vpop.f32.mrb[43].mxu0  ;;  %v10175_v18 = vld [vmem:[#allocation40_spill] sm:$0xff]  ;;  %7467 = vmatprep.subr.bf16.mxu0 %v7466_v29 }
 0x2ff   : > { %10172 = vst [vmem:[#allocation56_spill] sm:$0xff] %v9473_v42  ;;  %v10177_v42 = vld [vmem:[#allocation41_spill] sm:$0xff]  ;;  %7469 = vmatpush3.bf16.msra.mxu0 %v7466_v29 }
 0x300   : > { %6845 = vmatmul.mubr.f32.gmra.mrb[20].mxu1 %v10173_v52  ;;  %6984 = vmatmul.mubr.f32.gmra.mrb[70].mxu0 %v7873_v8  ;;  %v7874_v52 = vld [vmem:[%s8404_s27 + $0x40] sm:$0xff]  ;;  %v4750_v8 = vld [vmem:[#allocation8 + $0x68] sm:$0xff] }
 0x301   : > { %v9478_v44 = vpop.f32.mrb[44].mxu0  ;;  %6847 = vmatprep.mubr.f32.mxu1 %v10175_v18  ;;  %6986 = vmatprep.mubr.f32.mxu0 %v7874_v52  ;;  %v7474_v18 = vpack.c.bf16 %v4748_v22, %v4747_v45  ;;  %v7877_v45 = vld [vmem:[%s8404_s27 + $0x58] sm:$0xff] }
 0x302   : > { %10174 = vst [vmem:[#allocation57_spill] sm:$0xff] %v9478_v44  ;;  %v9481_v63 = vpop.f32.mrb[45].mxu0  ;;  %v10179_v44 = vld [vmem:[#allocation42_spill] sm:$0xff]  ;;  %7471 = vmatprep.subr.bf16.mxu0 %v7470_v17  ;;  %v10182_v22 = vld [vmem:[#allocation45_spill] sm:$0xff] }
 0x303   : > { %10176 = vst [vmem:[#allocation51_spill] sm:$0xff] %v9481_v63  ;;  %v10180_v63 = vld [vmem:[#allocation43_spill] sm:$0xff]  ;;  %7473 = vmatpush3.bf16.msra.mxu0 %v7470_v17 }
 0x304   : > { %6848 = vmatmul.mubr.f32.gmra.mrb[22].mxu1 %v10177_v42  ;;  %6987 = vmatmul.mubr.f32.gmra.mrb[72].mxu0 %v7875_v40  ;;  %v7876_v42 = vld [vmem:[%s8404_s27 + $0x50] sm:$0xff]  ;;  %v7878_v40 = vld [vmem:[%s8404_s27 + $0x60] sm:$0xff]  ;;  %v7879_v17 = vld [vmem:[%s8404_s27 + $0x68] sm:$0xff] }
 0x305   : > { %v9486_v15 = vpop.f32.mrb[46].mxu0  ;;  %6850 = vmatprep.mubr.f32.mxu1 %v10179_v44  ;;  %6989 = vmatprep.mubr.f32.mxu0 %v7876_v42  ;;  %v7478_v44 = vpack.c.bf16 %v4750_v8, %v4749_v12  ;;  %v10183_v42 = vld [vmem:[#allocation46_spill] sm:$0xff]  ;;  %v7880_v12 = vld [vmem:[%s8404_s27 + $0x70] sm:$0xff] }
 0x306   : > { %10178 = vst [vmem:[#allocation59_spill] sm:$0xff] %v9486_v15  ;;  %v9489_v47 = vpop.f32.mrb[47].mxu0  ;;  %v10181_v15 = vld [vmem:[#allocation44_spill] sm:$0xff]  ;;  %7475 = vmatprep.subr.bf16.mxu0 %v7474_v18 }
 0x307   : > { %7477 = vmatpush3.bf16.msra.mxu0 %v7474_v18  ;;  %v7882_v18 = vld [vmem:[%s8404_s27 + $0x80] sm:$0xff] }
 0x308   : > { %6851 = vmatmul.mubr.f32.gmra.mrb[24].mxu1 %v10180_v63  ;;  %6990 = vmatmul.mubr.f32.gmra.mrb[74].mxu0 %v7877_v45 }
 0x309   : > { %v9494_v52 = vpop.f32.mrb[48].mxu0  ;;  %6853 = vmatprep.mubr.f32.mxu1 %v10181_v15  ;;  %6992 = vmatprep.mubr.f32.mxu0 %v7878_v40 }
 0x30a   : > { %v9497_v29 = vpop.f32.mrb[49].mxu0  ;;  %7479 = vmatprep.subr.bf16.mxu0 %v7478_v44 }
 0x30b   : > { %7481 = vmatpush3.bf16.msra.mxu0 %v7478_v44  ;;  %v7884_v44 = vld [vmem:[%s8404_s27 + $0x90] sm:$0xff] }
 0x30c   : > { %6854 = vmatmul.mubr.f32.gmra.mrb[26].mxu1 %v10182_v22  ;;  %6993 = vmatmul.mubr.f32.gmra.mrb[76].mxu0 %v7879_v17  ;;  %v7883_v17 = vld [vmem:[%s8404_s27 + $0x88] sm:$0xff] }
 0x30d   : > { %v9502_v63 = vpop.f32.mrb[50].mxu0  ;;  %6856 = vmatprep.mubr.f32.mxu1 %v8593_v11  ;;  %6995 = vmatprep.mubr.f32.mxu0 %v7880_v12  ;;  %v7881_v11 = vld [vmem:[%s8404_s27 + $0x78] sm:$0xff] }
 0x30e   : > { %v9505_v15 = vpop.f32.mrb[51].mxu0 }
 0x310   : > { %6857 = vmatmul.mubr.f32.gmra.mrb[28].mxu1 %v10183_v42  ;;  %6996 = vmatmul.mubr.f32.gmra.mrb[78].mxu0 %v7881_v11  ;;  %v7885_v11 = vld [vmem:[%s8404_s27 + $0x98] sm:$0xff] }
 0x311   : > { %v9510_v8 = vpop.f32.mrb[52].mxu0  ;;  %6859 = vmatprep.mubr.f32.mxu1 %v10144_v0  ;;  %6998 = vmatprep.mubr.f32.mxu0 %v7882_v18  ;;  %v7887_v18 = vld [vmem:[%s8404_s27 + $0xa8] sm:$0xff] }
 0x312   : > { %v9513_v45 = vpop.f32.mrb[53].mxu0 }
 0x314   : > { %6860 = vmatmul.mubr.f32.gmra.mrb[30].mxu1 %v10144_v0  ;;  %6999 = vmatmul.mubr.f32.gmra.mrb[80].mxu0 %v7883_v17  ;;  %v7890_v17 = vld [vmem:[%s8404_s27 + $0xc0] sm:$0xff] }
 0x315   : > { %v9518_v22 = vpop.f32.mrb[54].mxu0  ;;  %6894 = vmatprep.mubr.f32.mxu1 %v9000_v5  ;;  %7001 = vmatprep.mubr.f32.mxu0 %v7884_v44  ;;  %v7886_v5 = vld [vmem:[%s8404_s27 + $0xa0] sm:$0xff]  ;;  %v7895_v44 = vld [vmem:[%s8404_s27 + $0xe8] sm:$0xff] }
 0x316   : > { %v9521_v40 = vpop.f32.mrb[55].mxu0 }
 0x318   : > { %6895 = vmatmul.mubr.msk.f32.vlgmr.msra.gmra.mrb[0].mxu1 %vm9296_vm0, %v9013_v2  ;;  %7002 = vmatmul.mubr.f32.gmra.mrb[82].mxu0 %v7885_v11 }
 0x319   : > { %v9528_v42 = vpop.f32.mrb[56].mxu0  ;;  %6897 = vmatprep.mubr.f32.mxu1 %v9021_v1  ;;  %7004 = vmatprep.mubr.f32.mxu0 %v7886_v5  ;;  %v7888_v1 = vld [vmem:[%s8404_s27 + $0xb0] sm:$0xff] }
 0x31a   : > { %v9531_v12 = vpop.f32.mrb[57].mxu0 }
 0x31c   : > { %6898 = vmatmul.mubr.msk.f32.gmra.mrb[2].mxu1 %vm8982_vm14, %v9034_v6  ;;  %7005 = vmatmul.mubr.f32.gmra.mrb[84].mxu0 %v7887_v18  ;;  %v10191_v18 = vld [vmem:[#allocation47_spill] sm:$0xff] }
 0x31d   : > { %v9538_v59 = vpop.f32.mrb[58].mxu0  ;;  %6900 = vmatprep.mubr.f32.mxu1 %v9042_v53  ;;  %7007 = vmatprep.mubr.f32.mxu0 %v7888_v1  ;;  %v7889_v53 = vld [vmem:[%s8404_s27 + $0xb8] sm:$0xff] }
 0x31e   : > { %v9541_v2 = vpop.f32.mrb[59].mxu0 }
 0x320   : > { %6901 = vmatmul.mubr.msk.f32.gmra.mrb[4].mxu1 %vm9004_vm15, %v9055_v41  ;;  %7008 = vmatmul.mubr.f32.gmra.mrb[86].mxu0 %v7889_v53 }
 0x321   : > { %v9548_v54 = vpop.f32.mrb[60].mxu0  ;;  %6903 = vmatprep.mubr.f32.mxu1 %v9063_v25  ;;  %7010 = vmatprep.mubr.f32.mxu0 %v7890_v17  ;;  %v7891_v25 = vld [vmem:[%s8404_s27 + $0xc8] sm:$0xff] }
 0x322   : > { %v9551_v6 = vpop.f32.mrb[61].mxu0 }
 0x324   : > { %6904 = vmatmul.mubr.msk.f32.gmra.mrb[6].mxu1 %vm9025_vm13, %v9076_v19  ;;  %7011 = vmatmul.mubr.f32.gmra.mrb[88].mxu0 %v7891_v25  ;;  %v7893_v19 = vld [vmem:[%s8404_s27 + $0xd8] sm:$0xff] }
 0x325   : > { %v9558_v3 = vpop.f32.mrb[62].mxu0  ;;  %6906 = vmatprep.mubr.f32.mxu1 %v9084_v31  ;;  %7013 = vmatprep.mubr.f32.mxu0 %v7892_v58  ;;  %v7894_v31 = vld [vmem:[%s8404_s27 + $0xe0] sm:$0xff]  ;;  %v10192_v25 = vld [vmem:[#allocation53_spill] sm:$0xff] }
 0x326   : > { %v9561_v41 = vpop.f32.mrb[63].mxu0 }
 0x328   : > { %6907 = vmatmul.mubr.msk.f32.gmra.mrb[8].mxu1 %vm9046_vm12, %v9097_v21  ;;  %7014 = vmatmul.mubr.f32.gmra.mrb[90].mxu0 %v7893_v19  ;;  %v7897_v21 = vld [vmem:[%s8404_s27 + $0xf8] sm:$0xff]  ;;  %s8124_s27 = smov [#allocation11]  }
 0x329   : > { %6909 = vmatprep.mubr.f32.mxu1 %v9105_v37  ;;  %7016 = vmatprep.mubr.f32.mxu0 %v7894_v31  ;;  %s8044_s11 = sshll.u32 %s8124_s27, 4  ;;  %s8045_s11 = int_to_ptr.vmem [resolvable:$false] %s8044_s11 }
 0x32a   : > { %s8046_s13 = scalar_lea.vmem %s8045_s11, 8192  ;;  %p8047_p12 = scmp.lt.s32.totalorder %s9762_s10, %s8045_s11 }
 0x32b   : > { %p8048_p1 = scmp.lt.s32.totalorder %s8046_s13, %s8040_s20 }
 0x32c   : > { %6910 = vmatmul.mubr.msk.f32.gmra.mrb[10].mxu1 %vm9067_vm11, %v9118_v27  ;;  %7017 = vmatmul.mubr.f32.gmra.mrb[92].mxu0 %v7895_v44  ;;  %v10193_v44 = vld [vmem:[#allocation54_spill] sm:$0xff] }
 0x32d   : > { %6912 = vmatprep.mubr.f32.mxu1 %v9126_v43  ;;  %7019 = vmatprep.mubr.f32.mxu0 %v7896_v14  ;;  %p8049_p2 = por %p8048_p1, %p8047_p12 }
 0x32f   : > { %p8050_p13 = pnand %p8049_p2, %p8043_p7 }
 0x330   : > { %6913 = vmatmul.mubr.msk.f32.gmra.mrb[12].mxu1 %vm9088_vm10, %v9141_v33  ;;  %7020 = vmatmul.mubr.f32.gmra.mrb[94].mxu0 %v7897_v21 }
 0x331   : > { %6915 = vmatprep.mubr.f32.mxu1 %v9149_v49 }
 0x334   : > { %6916 = vmatmul.mubr.msk.f32.gmra.mrb[14].mxu1 %vm9109_vm9, %v9163_v39  ;;  %vm10184_vm9 = vnez %v10073_v23  ;;  %v7482_v23 = vpack.c.bf16 %v4752_v13, %v4751_v4  ;;  %v10194_v13 = vld [vmem:[#allocation49_spill] sm:$0xff] }
 0x335   : > { %6918 = vmatprep.mubr.f32.mxu1 %v9171_v50 }
 0x336   : > { %7483 = vmatprep.subr.bf16.mxu0 %v7482_v23 }
 0x337   : > { %7485 = vmatpush3.bf16.msra.mxu0 %v7482_v23 }
 0x338   : > { %6919 = vmatmul.mubr.msk.f32.gmra.mrb[16].mxu1 %vm9132_vm4, %v9184_v57  ;;  %v10187_v57 = vld [vmem:[#allocation88_spill] sm:$0xff] }
 0x339   : > { %6921 = vmatprep.mubr.f32.mxu1 %v9192_v32 }
 0x33c   : > { %6922 = vmatmul.mubr.msk.f32.gmra.mrb[18].mxu1 %vm9154_vm7, %v9205_v51  ;;  %vm10185_vm7 = vnez %v10076_v34  ;;  %v10186_v51 = vld [vmem:[#allocation48_spill] sm:$0xff]  ;;  %v9618_v34 = vld [vmem:[%s9812_s4] ss:$0 sm:$0xff] }
 0x33d   : > { %6924 = vmatprep.mubr.f32.mxu1 %v9213_v62 }
 0x340   : > { %6925 = vmatmul.mubr.msk.f32.gmra.mrb[20].mxu1 %vm9175_vm6, %v9226_v7  ;;  %vm10188_vm6 = vnez %v10187_v57 }
 0x341   : > { %6927 = vmatprep.mubr.f32.mxu1 %v9234_v24 }
 0x344   : > { %6928 = vmatmul.mubr.msk.f32.gmra.mrb[22].mxu1 %vm9196_vm5, %v9247_v30  ;;  %v10189_v30 = vld [vmem:[#allocation50_spill] sm:$0xff] }
 0x345   : > { %6930 = vmatprep.mubr.f32.mxu1 %v9255_v55 }
 0x348   : > { %6931 = vmatmul.mubr.msk.f32.gmra.mrb[24].mxu1 %vm10184_vm9, %v9267_v36 }
 0x349   : > { %6933 = vmatprep.mubr.f32.mxu1 %v9275_v20 }
 0x34c   : > { %6934 = vmatmul.mubr.msk.f32.gmra.mrb[26].mxu1 %vm10185_vm7, %v9288_v56 }
 0x34d   : > { %6936 = vmatprep.mubr.f32.mxu1 %v8640_v10 }
 0x350   : > { %6937 = vmatmul.mubr.msk.f32.gmra.mrb[28].mxu1 %vm10188_vm6, %v10186_v51 }
 0x351   : > { %6939 = vmatprep.mubr.f32.mxu1 %v10144_v0 }
 0x354   : > { %6940 = vmatmul.mubr.f32.gmra.mrb[30].mxu1 %v10144_v0 }
 0x3eb   : > { %v6896_v36 = vpop.f32.mrb[0].mxu1 }
 0x3ec   : > { %v7486_v56 = vadd.f32 %v6896_v36, %v9437_v26  ;;  %v4475_v10 = vpop.f32.mrb[1].mxu1 }
 0x3ed   : > { %v7487_v7 = vadd.f32 %v4475_v10, %v10189_v30  ;;  %v10195_v10 = vld [vmem:[#allocation56_spill] sm:$0xff] }
 0x3ee   : > { %v4674_v38 = vadd.f32 %v7486_v56, %v9618_v34 }
 0x3ef   : > { %v4673_v60 = vadd.f32 %v7487_v7, %v9618_v34  ;;  %v6899_v37 = vpop.f32.mrb[2].mxu1 }
 0x3f0   : > { %v7488_v35 = vadd.f32 %v6899_v37, %v9442_v9  ;;  %v4485_v27 = vpop.f32.mrb[3].mxu1  ;;  %v4706_v33 = vmax.f32 %v4674_v38, 0.0  ;;  %v10190_v9 = vld [vmem:[#allocation52_spill] sm:$0xff] }
 0x3f1   : > { %v4705_v43 = vmax.f32 %v4673_v60, 0.0  ;;  %v7489_v16 = vadd.f32 %v4485_v27, %v9445_v61 }
 0x3f2   : > { %v4676_v49 = vadd.f32 %v7488_v35, %v9618_v34  ;;  %v10196_v35 = vld [vmem:[#allocation57_spill] sm:$0xff] }
 0x3f3   : > { %v4675_v48 = vadd.f32 %v7489_v16, %v9618_v34  ;;  %v6902_v39 = vpop.f32.mrb[4].mxu1  ;;  %7054 = vmatprep.mubr.f32.mxu0 %v4705_v43 }
 0x3f4   : > { %v7490_v50 = vadd.f32 %v6902_v39, %v9448_v28  ;;  %v4495_v32 = vpop.f32.mrb[5].mxu1  ;;  %7055 = vmatmul.mubr.f32.vlgmr.msra.gmra.mrb[64].mxu0 %v4706_v33  ;;  %v4708_v55 = vmax.f32 %v4676_v49, 0.0  ;;  %v10197_v33 = vld [vmem:[#allocation51_spill] sm:$0xff] }
 0x3f5   : > { %v4707_v62 = vmax.f32 %v4675_v48, 0.0  ;;  %v7491_v24 = vadd.f32 %v4495_v32, %v9451_v46 }
 0x3f6   : > { %v4678_v20 = vadd.f32 %v7490_v50, %v9618_v34 }
 0x3f7   : > { %v4677_v0 = vadd.f32 %v7491_v24, %v9618_v34  ;;  %v6905_v26 = vpop.f32.mrb[6].mxu1  ;;  %7057 = vmatprep.mubr.f32.mxu0 %v4707_v62  ;;  %v10198_v62 = vld [vmem:[#allocation59_spill] sm:$0xff] }
 0x3f8   : > { %v7492_v61 = vadd.f32 %v6905_v26, %v10190_v9  ;;  %v4505_v11 = vpop.f32.mrb[7].mxu1  ;;  %7058 = vmatmul.mubr.f32.gmra.mrb[66].mxu0 %v4708_v55  ;;  %v4710_v28 = vmax.f32 %v4678_v20, 0.0 }
 0x3f9   : > { %v4709_v5 = vmax.f32 %v4677_v0, 0.0  ;;  %v7493_v1 = vadd.f32 %v4505_v11, %v10191_v18 }
 0x3fa   : > { %v4680_v53 = vadd.f32 %v7492_v61, %v9618_v34 }
 0x3fb   : > { %v4679_v17 = vadd.f32 %v7493_v1, %v9618_v34  ;;  %v6908_v46 = vpop.f32.mrb[8].mxu1  ;;  %7060 = vmatprep.mubr.f32.mxu0 %v4709_v5 }
 0x3fc   : > { %v7494_v58 = vadd.f32 %v6908_v46, %v10192_v25  ;;  %v4515_v19 = vpop.f32.mrb[9].mxu1  ;;  %7061 = vmatmul.mubr.f32.gmra.mrb[68].mxu0 %v4710_v28  ;;  %v4712_v21 = vmax.f32 %v4680_v53, 0.0 }
 0x3fd   : > { %v4711_v31 = vmax.f32 %v4679_v17, 0.0  ;;  %v7495_v14 = vadd.f32 %v4515_v19, %v10193_v44 }
 0x3fe   : > { %v4682_v51 = vadd.f32 %v7494_v58, %v9618_v34 }
 0x3ff   : > { %v4681_v57 = vadd.f32 %v7495_v14, %v9618_v34  ;;  %v6911_v4 = vpop.f32.mrb[10].mxu1  ;;  %7063 = vmatprep.mubr.f32.mxu0 %v4711_v31 }
 0x400   : > { %v7496_v23 = vadd.f32 %v6911_v4, %v10194_v13  ;;  %v4525_v36 = vpop.f32.mrb[11].mxu1  ;;  %7064 = vmatmul.mubr.f32.gmra.mrb[70].mxu0 %v4712_v21  ;;  %v4714_v7 = vmax.f32 %v4682_v51, 0.0 }
 0x401   : > { %v4713_v56 = vmax.f32 %v4681_v57, 0.0  ;;  %v7497_v30 = vadd.f32 %v4525_v36, %v10195_v10 }
 0x402   : > { %v4684_v38 = vadd.f32 %v7496_v23, %v9618_v34 }
 0x403   : > { %v4683_v60 = vadd.f32 %v7497_v30, %v9618_v34  ;;  %v6914_v37 = vpop.f32.mrb[12].mxu1  ;;  %7066 = vmatprep.mubr.f32.mxu0 %v4713_v56 }
 0x404   : > { %v7498_v27 = vadd.f32 %v6914_v37, %v10196_v35  ;;  %v4535_v43 = vpop.f32.mrb[13].mxu1  ;;  %7067 = vmatmul.mubr.f32.gmra.mrb[72].mxu0 %v4714_v7  ;;  %v4716_v48 = vmax.f32 %v4684_v38, 0.0 }
 0x405   : > { %v4715_v16 = vmax.f32 %v4683_v60, 0.0  ;;  %v7499_v49 = vadd.f32 %v4535_v43, %v10197_v33 }
 0x406   : > { %v4686_v39 = vadd.f32 %v7498_v27, %v9618_v34 }
 0x407   : > { %v4685_v50 = vadd.f32 %v7499_v49, %v9618_v34  ;;  %v6917_v32 = vpop.f32.mrb[14].mxu1  ;;  %7069 = vmatprep.mubr.f32.mxu0 %v4715_v16 }
 0x408   : > { %v7500_v24 = vadd.f32 %v6917_v32, %v10198_v62  ;;  %v4545_v55 = vpop.f32.mrb[15].mxu1  ;;  %7070 = vmatmul.mubr.f32.gmra.mrb[74].mxu0 %v4716_v48  ;;  %v4718_v26 = vmax.f32 %v4686_v39, 0.0 }
 0x409   : > { %v4717_v20 = vmax.f32 %v4685_v50, 0.0  ;;  %v7501_v0 = vadd.f32 %v4545_v55, %v9489_v47 }
 0x40a   : > { %v4688_v9 = vadd.f32 %v7500_v24, %v9618_v34 }
 0x40b   : > { %v4687_v61 = vadd.f32 %v7501_v0, %v9618_v34  ;;  %v6920_v11 = vpop.f32.mrb[16].mxu1  ;;  %7072 = vmatprep.mubr.f32.mxu0 %v4717_v20 }
 0x40c   : > { %v7502_v5 = vadd.f32 %v6920_v11, %v9494_v52  ;;  %v4555_v18 = vpop.f32.mrb[17].mxu1  ;;  %7073 = vmatmul.mubr.f32.gmra.mrb[76].mxu0 %v4718_v26  ;;  %v4720_v53 = vmax.f32 %v4688_v9, 0.0 }
 0x40d   : > { %v4719_v1 = vmax.f32 %v4687_v61, 0.0  ;;  %v7503_v28 = vadd.f32 %v4555_v18, %v9497_v29 }
 0x40e   : > { %v4690_v17 = vadd.f32 %v7502_v5, %v9618_v34 }
 0x40f   : > { %v4689_v46 = vadd.f32 %v7503_v28, %v9618_v34  ;;  %v6923_v47 = vpop.f32.mrb[18].mxu1  ;;  %7075 = vmatprep.mubr.f32.mxu0 %v4719_v1 }
 0x410   : > { %v7504_v25 = vadd.f32 %v6923_v47, %v9502_v63  ;;  %v4565_v58 = vpop.f32.mrb[19].mxu1  ;;  %7076 = vmatmul.mubr.f32.gmra.mrb[78].mxu0 %v4720_v53  ;;  %v4722_v52 = vmax.f32 %v4690_v17, 0.0 }
 0x411   : > { %v4721_v19 = vmax.f32 %v4689_v46, 0.0  ;;  %v7505_v31 = vadd.f32 %v4565_v58, %v9505_v15 }
 0x412   : > { %v4692_v44 = vadd.f32 %v7504_v25, %v9618_v34 }
 0x413   : > { %v4691_v14 = vadd.f32 %v7505_v31, %v9618_v34  ;;  %v6926_v29 = vpop.f32.mrb[20].mxu1  ;;  %7078 = vmatprep.mubr.f32.mxu0 %v4721_v19 }
 0x414   : > { %v7506_v21 = vadd.f32 %v6926_v29, %v9510_v8  ;;  %v4575_v51 = vpop.f32.mrb[21].mxu1  ;;  %7079 = vmatmul.mubr.f32.gmra.mrb[80].mxu0 %v4722_v52  ;;  %v4724_v63 = vmax.f32 %v4692_v44, 0.0 }
 0x415   : > { %v4723_v57 = vmax.f32 %v4691_v14, 0.0  ;;  %v7507_v4 = vadd.f32 %v4575_v51, %v9513_v45 }
 0x416   : > { %v4694_v13 = vadd.f32 %v7506_v21, %v9618_v34 }
 0x417   : > { %v4693_v23 = vadd.f32 %v7507_v4, %v9618_v34  ;;  %v6929_v15 = vpop.f32.mrb[22].mxu1  ;;  %7081 = vmatprep.mubr.f32.mxu0 %v4723_v57 }
 0x418   : > { %v7508_v36 = vadd.f32 %v6929_v15, %v9518_v22  ;;  %v4585_v56 = vpop.f32.mrb[23].mxu1  ;;  %7082 = vmatmul.mubr.f32.gmra.mrb[82].mxu0 %v4724_v63  ;;  %v4726_v8 = vmax.f32 %v4694_v13, 0.0 }
 0x419   : > { %v4725_v10 = vmax.f32 %v4693_v23, 0.0  ;;  %v7509_v30 = vadd.f32 %v4585_v56, %v9521_v40 }
 0x41a   : > { %v4696_v7 = vadd.f32 %v7508_v36, %v9618_v34 }
 0x41b   : > { %v4695_v38 = vadd.f32 %v7509_v30, %v9618_v34  ;;  %v6932_v45 = vpop.f32.mrb[24].mxu1  ;;  %7084 = vmatprep.mubr.f32.mxu0 %v4725_v10 }
 0x41c   : > { %v7510_v60 = vadd.f32 %v6932_v45, %v9528_v42  ;;  %v4595_v37 = vpop.f32.mrb[25].mxu1  ;;  %7085 = vmatmul.mubr.f32.gmra.mrb[84].mxu0 %v4726_v8  ;;  %v4728_v22 = vmax.f32 %v4696_v7, 0.0 }
 0x41d   : > { %v4727_v35 = vmax.f32 %v4695_v38, 0.0  ;;  %v7511_v27 = vadd.f32 %v4595_v37, %v9531_v12 }
 0x41e   : > { %v4698_v43 = vadd.f32 %v7510_v60, %v9618_v34 }
 0x41f   : > { %v4697_v16 = vadd.f32 %v7511_v27, %v9618_v34  ;;  %v6935_v40 = vpop.f32.mrb[26].mxu1  ;;  %7087 = vmatprep.mubr.f32.mxu0 %v4727_v35 }
 0x420   : > { %v7512_v33 = vadd.f32 %v6935_v40, %v9538_v59  ;;  %v4605_v49 = vpop.f32.mrb[27].mxu1  ;;  %7088 = vmatmul.mubr.f32.gmra.mrb[86].mxu0 %v4728_v22  ;;  %v4730_v42 = vmax.f32 %v4698_v43, 0.0 }
 0x421   : > { %v4729_v48 = vmax.f32 %v4697_v16, 0.0  ;;  %v7513_v39 = vadd.f32 %v4605_v49, %v9541_v2 }
 0x422   : > { %v4700_v50 = vadd.f32 %v7512_v33, %v9618_v34 }
 0x423   : > { %v4699_v32 = vadd.f32 %v7513_v39, %v9618_v34  ;;  %v6938_v12 = vpop.f32.mrb[28].mxu1  ;;  %7090 = vmatprep.mubr.f32.mxu0 %v4729_v48 }
 0x424   : > { %v7514_v62 = vadd.f32 %v6938_v12, %v9548_v54  ;;  %v4615_v24 = vpop.f32.mrb[29].mxu1  ;;  %7091 = vmatmul.mubr.f32.gmra.mrb[88].mxu0 %v4730_v42  ;;  %v4732_v59 = vmax.f32 %v4700_v50, 0.0 }
 0x425   : > { %v4731_v55 = vmax.f32 %v4699_v32, 0.0  ;;  %v7515_v20 = vadd.f32 %v4615_v24, %v9551_v6 }
 0x426   : > { %v4702_v0 = vadd.f32 %v7514_v62, %v9618_v34 }
 0x427   : > { %v4701_v26 = vadd.f32 %v7515_v20, %v9618_v34  ;;  %v6941_v2 = vpop.f32.mrb[30].mxu1  ;;  %7093 = vmatprep.mubr.f32.mxu0 %v4731_v55 }
 0x428   : > { %v7516_v9 = vadd.f32 %v6941_v2, %v9558_v3  ;;  %v4625_v61 = vpop.f32.mrb[31].mxu1  ;;  %7094 = vmatmul.mubr.f32.gmra.mrb[90].mxu0 %v4732_v59  ;;  %v4734_v54 = vmax.f32 %v4702_v0, 0.0  ;;  %v9687_v3 = vld [vmem:[%s9814_s6] ss:$0 sm:$0xff] }
 0x429   : > { %v4733_v11 = vmax.f32 %v4701_v26, 0.0  ;;  %v7517_v5 = vadd.f32 %v4625_v61, %v9561_v41 }
 0x42a   : > { %v4704_v18 = vadd.f32 %v7516_v9, %v9618_v34 }
 0x42b   : > { %v4703_v6 = vadd.f32 %v7517_v5, %v9618_v34  ;;  %7096 = vmatprep.mubr.f32.mxu0 %v4733_v11 }
 0x42c   : > { %7097 = vmatmul.mubr.f32.gmra.mrb[92].mxu0 %v4734_v54  ;;  %v4736_v28 = vmax.f32 %v4704_v18, 0.0 }
 0x42d   : > { %v4735_v1 = vmax.f32 %v4703_v6, 0.0 }
 0x42f   : > { %7099 = vmatprep.mubr.f32.mxu0 %v4735_v1 }
 0x430   : > { %7100 = vmatmul.mubr.f32.gmra.mrb[94].mxu0 %v4736_v28 }
 0x4c7   : > { %v7056_v53 = vpop.f32.mrb[64].mxu0 }
 0x4c8   : > { %v5227_v41 = vadd.f32 %v7056_v53, %v9687_v3  ;;  %v5060_v17 = vpop.f32.mrb[65].mxu0 }
 0x4c9   : > { %v5226_v46 = vadd.f32 %v9687_v3, %v5060_v17 }
 0x4ca   : > { %v5259_v47 = vmax.f32 %v5227_v41, 0.0 }
 0x4cb   : > { %v5258_v25 = vmax.f32 %v5226_v46, 0.0  ;;  %v7059_v34 = vpop.f32.mrb[66].mxu0 }
 0x4cc   : > { %5291 = vst [vmem:[%s9693_s16 + $0x8] sm:$0xff] %v5259_v47  ;;  %v5229_v58 = vadd.f32 %v7059_v34, %v9687_v3  ;;  %v5070_v19 = vpop.f32.mrb[67].mxu0 }
 0x4cd   : > { %5290 = vst [vmem:[%s9693_s16] sm:$0xff] %v5258_v25  ;;  %v5228_v31 = vadd.f32 %v9687_v3, %v5070_v19 }
 0x4ce   : > { %v5261_v52 = vmax.f32 %v5229_v58, 0.0 }
 0x4cf   : > { %v5260_v44 = vmax.f32 %v5228_v31, 0.0  ;;  %v7062_v14 = vpop.f32.mrb[68].mxu0 }
 0x4d0   : > { %5293 = vst [vmem:[%s9693_s16 + $0x18] sm:$0xff] %v5261_v52  ;;  %v5231_v29 = vadd.f32 %v7062_v14, %v9687_v3  ;;  %v5080_v21 = vpop.f32.mrb[69].mxu0 }
 0x4d1   : > { %5292 = vst [vmem:[%s9693_s16 + $0x10] sm:$0xff] %v5260_v44  ;;  %v5230_v51 = vadd.f32 %v9687_v3, %v5080_v21 }
 0x4d2   : > { %v5263_v57 = vmax.f32 %v5231_v29, 0.0 }
 0x4d3   : > { %v5262_v4 = vmax.f32 %v5230_v51, 0.0  ;;  %v7065_v63 = vpop.f32.mrb[70].mxu0 }
 0x4d4   : > { %5295 = vst [vmem:[%s9693_s16 + $0x28] sm:$0xff] %v5263_v57  ;;  %v5233_v13 = vadd.f32 %v7065_v63, %v9687_v3  ;;  %v5090_v23 = vpop.f32.mrb[71].mxu0 }
 0x4d5   : > { %5294 = vst [vmem:[%s9693_s16 + $0x20] sm:$0xff] %v5262_v4  ;;  %v5232_v15 = vadd.f32 %v9687_v3, %v5090_v23 }
 0x4d6   : > { %v5265_v36 = vmax.f32 %v5233_v13, 0.0 }
 0x4d7   : > { %v5264_v56 = vmax.f32 %v5232_v15, 0.0  ;;  %v7068_v10 = vpop.f32.mrb[72].mxu0 }
 0x4d8   : > { %5297 = vst [vmem:[%s9693_s16 + $0x38] sm:$0xff] %v5265_v36  ;;  %v5235_v30 = vadd.f32 %v7068_v10, %v9687_v3  ;;  %v5100_v8 = vpop.f32.mrb[73].mxu0 }
 0x4d9   : > { %5296 = vst [vmem:[%s9693_s16 + $0x30] sm:$0xff] %v5264_v56  ;;  %v5234_v7 = vadd.f32 %v9687_v3, %v5100_v8 }
 0x4da   : > { %v5267_v38 = vmax.f32 %v5235_v30, 0.0 }
 0x4db   : > { %v5266_v45 = vmax.f32 %v5234_v7, 0.0  ;;  %v7071_v60 = vpop.f32.mrb[74].mxu0 }
 0x4dc   : > { %5299 = vst [vmem:[%s9693_s16 + $0x48] sm:$0xff] %v5267_v38  ;;  %v5237_v37 = vadd.f32 %v7071_v60, %v9687_v3  ;;  %v5110_v35 = vpop.f32.mrb[75].mxu0 }
 0x4dd   : > { %5298 = vst [vmem:[%s9693_s16 + $0x40] sm:$0xff] %v5266_v45  ;;  %v5236_v27 = vadd.f32 %v9687_v3, %v5110_v35 }
 0x4de   : > { %v5269_v22 = vmax.f32 %v5237_v37, 0.0 }
 0x4df   : > { %v5268_v43 = vmax.f32 %v5236_v27, 0.0  ;;  %v7074_v16 = vpop.f32.mrb[76].mxu0 }
 0x4e0   : > { %5301 = vst [vmem:[%s9693_s16 + $0x58] sm:$0xff] %v5269_v22  ;;  %v5239_v40 = vadd.f32 %v7074_v16, %v9687_v3  ;;  %v5120_v33 = vpop.f32.mrb[77].mxu0 }
 0x4e1   : > { %5300 = vst [vmem:[%s9693_s16 + $0x50] sm:$0xff] %v5268_v43  ;;  %v5238_v49 = vadd.f32 %v9687_v3, %v5120_v33 }
 0x4e2   : > { %v5271_v48 = vmax.f32 %v5239_v40, 0.0 }
 0x4e3   : > { %v5270_v39 = vmax.f32 %v5238_v49, 0.0  ;;  %v7077_v42 = vpop.f32.mrb[78].mxu0 }
 0x4e4   : > { %5303 = vst [vmem:[%s9693_s16 + $0x68] sm:$0xff] %v5271_v48  ;;  %v5241_v50 = vadd.f32 %v7077_v42, %v9687_v3  ;;  %v5130_v32 = vpop.f32.mrb[79].mxu0 }
 0x4e5   : > { %5302 = vst [vmem:[%s9693_s16 + $0x60] sm:$0xff] %v5270_v39  ;;  %v5240_v12 = vadd.f32 %v9687_v3, %v5130_v32 }
 0x4e6   : > { %v5273_v62 = vmax.f32 %v5241_v50, 0.0 }
 0x4e7   : > { %v5272_v24 = vmax.f32 %v5240_v12, 0.0  ;;  %v7080_v55 = vpop.f32.mrb[80].mxu0 }
 0x4e8   : > { %5305 = vst [vmem:[%s9693_s16 + $0x78] sm:$0xff] %v5273_v62  ;;  %v5243_v20 = vadd.f32 %v7080_v55, %v9687_v3  ;;  %v5140_v59 = vpop.f32.mrb[81].mxu0 }
 0x4e9   : > { %5304 = vst [vmem:[%s9693_s16 + $0x70] sm:$0xff] %v5272_v24  ;;  %v5242_v0 = vadd.f32 %v9687_v3, %v5140_v59 }
 0x4ea   : > { %v5275_v26 = vmax.f32 %v5243_v20, 0.0 }
 0x4eb   : > { %v5274_v2 = vmax.f32 %v5242_v0, 0.0  ;;  %v7083_v9 = vpop.f32.mrb[82].mxu0 }
 0x4ec   : > { %5307 = vst [vmem:[%s9693_s16 + $0x88] sm:$0xff] %v5275_v26  ;;  %v5245_v61 = vadd.f32 %v7083_v9, %v9687_v3  ;;  %v5150_v11 = vpop.f32.mrb[83].mxu0 }
 0x4ed   : > { %5306 = vst [vmem:[%s9693_s16 + $0x80] sm:$0xff] %v5274_v2  ;;  %v5244_v5 = vadd.f32 %v9687_v3, %v5150_v11 }
 0x4ee   : > { %v5277_v54 = vmax.f32 %v5245_v61, 0.0 }
 0x4ef   : > { %v5276_v18 = vmax.f32 %v5244_v5, 0.0  ;;  %v7086_v6 = vpop.f32.mrb[84].mxu0 }
 0x4f0   : > { %5309 = vst [vmem:[%s9693_s16 + $0x98] sm:$0xff] %v5277_v54  ;;  %v5247_v1 = vadd.f32 %v7086_v6, %v9687_v3  ;;  %v5160_v28 = vpop.f32.mrb[85].mxu0 }
 0x4f1   : > { %5308 = vst [vmem:[%s9693_s16 + $0x90] sm:$0xff] %v5276_v18  ;;  %v5246_v53 = vadd.f32 %v9687_v3, %v5160_v28 }
 0x4f2   : > { %v5279_v41 = vmax.f32 %v5247_v1, 0.0 }
 0x4f3   : > { %v5278_v17 = vmax.f32 %v5246_v53, 0.0  ;;  %v7089_v46 = vpop.f32.mrb[86].mxu0 }
 0x4f4   : > { %5311 = vst [vmem:[%s9693_s16 + $0xa8] sm:$0xff] %v5279_v41  ;;  %v5249_v47 = vadd.f32 %v7089_v46, %v9687_v3  ;;  %v5170_v25 = vpop.f32.mrb[87].mxu0 }
 0x4f5   : > { %5310 = vst [vmem:[%s9693_s16 + $0xa0] sm:$0xff] %v5278_v17  ;;  %v5248_v34 = vadd.f32 %v9687_v3, %v5170_v25 }
 0x4f6   : > { %v5281_v58 = vmax.f32 %v5249_v47, 0.0 }
 0x4f7   : > { %v5280_v19 = vmax.f32 %v5248_v34, 0.0  ;;  %v7092_v31 = vpop.f32.mrb[88].mxu0 }
 0x4f8   : > { %5313 = vst [vmem:[%s9693_s16 + $0xb8] sm:$0xff] %v5281_v58  ;;  %v5251_v52 = vadd.f32 %v7092_v31, %v9687_v3  ;;  %v5180_v44 = vpop.f32.mrb[89].mxu0 }
 0x4f9   : > { %5312 = vst [vmem:[%s9693_s16 + $0xb0] sm:$0xff] %v5280_v19  ;;  %v5250_v14 = vadd.f32 %v9687_v3, %v5180_v44 }
 0x4fa   : > { %v5283_v29 = vmax.f32 %v5251_v52, 0.0 }
 0x4fb   : > { %v5282_v21 = vmax.f32 %v5250_v14, 0.0  ;;  %v7095_v51 = vpop.f32.mrb[90].mxu0 }
 0x4fc   : > { %5315 = vst [vmem:[%s9693_s16 + $0xc8] sm:$0xff] %v5283_v29  ;;  %v5253_v57 = vadd.f32 %v7095_v51, %v9687_v3  ;;  %v5190_v4 = vpop.f32.mrb[91].mxu0 }
 0x4fd   : > { %5314 = vst [vmem:[%s9693_s16 + $0xc0] sm:$0xff] %v5282_v21  ;;  %v5252_v63 = vadd.f32 %v9687_v3, %v5190_v4 }
 0x4fe   : > { %v5285_v13 = vmax.f32 %v5253_v57, 0.0 }
 0x4ff   : > { %v5284_v23 = vmax.f32 %v5252_v63, 0.0  ;;  %v7098_v15 = vpop.f32.mrb[92].mxu0 }
 0x500   : > { %5317 = vst [vmem:[%s9693_s16 + $0xd8] sm:$0xff] %v5285_v13  ;;  %v5255_v36 = vadd.f32 %v7098_v15, %v9687_v3  ;;  %v5200_v56 = vpop.f32.mrb[93].mxu0 }
 0x501   : > { %5316 = vst [vmem:[%s9693_s16 + $0xd0] sm:$0xff] %v5284_v23  ;;  %v5254_v10 = vadd.f32 %v9687_v3, %v5200_v56 }
 0x502   : > { %v5287_v30 = vmax.f32 %v5255_v36, 0.0 }
 0x503   : > { %v5286_v8 = vmax.f32 %v5254_v10, 0.0  ;;  %v7101_v7 = vpop.f32.mrb[94].mxu0 }
 0x504   : > { %5319 = vst [vmem:[%s9693_s16 + $0xe8] sm:$0xff] %v5287_v30  ;;  %v5257_v38 = vadd.f32 %v7101_v7, %v9687_v3  ;;  %v5210_v45 = vpop.f32.mrb[95].mxu0 }
 0x505   : > { %5318 = vst [vmem:[%s9693_s16 + $0xe0] sm:$0xff] %v5286_v8  ;;  %v5256_v60 = vadd.f32 %v9687_v3, %v5210_v45 }
 0x506   : > { %v5289_v37 = vmax.f32 %v5257_v38, 0.0 }
 0x507   : > { %v5288_v35 = vmax.f32 %v5256_v60, 0.0 }
 0x508   : > { %5321 = vst [vmem:[%s9693_s16 + $0xf8] sm:$0xff] %v5289_v37 }
 0x509   : > { %5320 = vst [vmem:[%s9693_s16 + $0xf0] sm:$0xff] %v5288_v35 }
 0x50a   : > { %8053 = shalt.err (!%p8050_p13)
}
 0x50b   : > { %s8054_s19 = scalar_lea.hbm %s9760_s14, 4096  ;;  %s8058_s18 = scalar_lea.hbm %s9816_s8, 8192 }
 0x50c   : > { %p8055_p9 = scmp.ne.s32.totalorder %s9760_s14, %s8054_s19  ;;  %p8059_p4 = scmp.lt.u32.totalorder %s9760_s14, %s9816_s8 }
 0x50d   : > { %p8060_p8 = scmp.lt.u32.totalorder %s8058_s18, %s8054_s19  ;;  %p8062_p3 = scmp.lt.u32.totalorder %s8054_s19, %s9760_s14 }
 0x50e   : > { %p8056_p0 = pnand %p8055_p9, %p8343_p10 }
 0x50f   : > { %p8061_p6 = por %p8060_p8, %p8059_p4 }
 0x510   : > { %p8057_p11 = pneg %p8056_p0 }
 0x511   : > { %p8063_p5 = por %p8062_p3, %p8061_p6 }
 0x513   : > { %p8064_p7 = pnand %p8063_p5, %p8057_p11 }
 0x515   : > { %8067 = shalt.err (!%p8064_p7)
}
 0x516   : > { %s8125_s22 = smov 128   ;;  %s8126_s17 = smov 8  }
 0x517   : > { %7792 = dma.vmem_to_hbm [thread:$0]  (%p8343_p10), %s9762_s10, 4096, %s9760_s14, %s5323_s9, %s8125_s22, %s8125_s22, %s8126_s17  }
 0x518 PF: > { %s10199_s20 = sld [smem:[#allocation16_spill]]  ;;  %s10200_s27 = sld [smem:[#allocation17_spill]] }
 0x519   : > { %p10202_p1 = scmp.ge.s32.totalorder %s8114_s30, 2 }
 0x51e   : > { %s5351_s11 = sand.u32 1, %s10199_s20   ;;  %p10201_p12 = scmp.ne.s32.totalorder %s10200_s27, 0 }
 0x51f   : > { %s5352_s13 = scalar_lea.sflag [#allocation4], %s5351_s11 }
 0x520   : > { %p7812_p2 = pnand %p10202_p1, %p10201_p12 }
 0x522   : > { %8097 = dma.done.wait (!%p7812_p2), %s5352_s13, 4096  }
 0x523   : > { %8099 = vsyncadd (!%p7812_p2), %s5352_s13, 4294963200  ;;  %p23_p13 = scmp.ge.s32.totalorder %s8333_s26, 4   ;;  %s10203_s27 = smov %s8106_s28 }
 0x524   : > { %s10204_s28 = smov %s8110_s29  ;;  %s10205_s29 = smov %s8349_s24 }
 0x525   : > { %s10206_s30 = smov %s8333_s26  ;;  %25 = sbr.rel (!%p23_p13) target bundleno = 7 (0x7), region = 121 }
 0x52c   :  { %5357 = vsyncpa [#allocation3], 1 }
 0x52d   :  { %5359 = vsyncpa [#allocation3 + $0x1], 1 }
 0x52e   :  { %5360 = vsyncpa [#allocation6], 1 }
 0x52f   :  { %5361 = vsyncpa [#allocation9], 1 }
 0x530   :  { %5362 = vsyncpa [#allocation4], 1 }
 0x531   :  { %5364 = vsyncpa [#allocation4 + $0x1], 1 }

// kernel: tpu_custom_call.1
= control target key start
LH: loop header
LB: loop body
LE: loop exit
PB: predicated region body
PF: predicated region fallthrough
CT: control target
= control target key end

     0   :  { %13 = vsyncpa [#allocation3], 0  ;;  %s9808_s0 = inlined_call_operand.hbm [shape: f32[2,256,128], index: 0, kind: input, shape index: {}]   ;;  %s9809_s1 = inlined_call_operand.hbm [shape: f32[128,128], index: 1, kind: input, shape index: {}]   ;;  %s9810_s2 = inlined_call_operand.vmem [shape: f32[1,128], index: 2, kind: input, shape index: {}]   ;;  %s9811_s3 = inlined_call_operand.hbm [shape: f32[9,128,128], index: 3, kind: input, shape index: {}]   ;;  %s9812_s4 = inlined_call_operand.vmem [shape: f32[1,128], index: 4, kind: input, shape index: {}]   ;;  %s9813_s5 = inlined_call_operand.hbm [shape: f32[128,128], index: 5, kind: input, shape index: {}]   ;;  %s9814_s6 = inlined_call_operand.vmem [shape: f32[1,128], index: 6, kind: input, shape index: {}]   ;;  %s9815_s7 = inlined_call_operand.hbm [shape: f32[128,128], index: 7, kind: input, shape index: {}]   ;;  %s9816_s8 = inlined_call_operand.hbm [shape: f32[2,256,128], index: 8, kind: output, shape index: {}]  }
   0x1   :  { %15 = vsyncpa [#allocation3 + $0x1], 0 }
   0x2   :  { %16 = vsyncpa [#allocation6], 0 }
   0x3   :  { %17 = vsyncpa [#allocation9], 0 }
   0x4   :  { %18 = vsyncpa [#allocation4], 0 }
   0x5   :  { %20 = vsyncpa [#allocation4 + $0x1], 0  ;;  %s8172_s27 = smov 0   ;;  %s8174_s28 = smov 0  }
   0x6   :  { %s8176_s29 = smov 0   ;;  %s8178_s30 = smov 0  }
   0x7 LB: > { %9919 = sst [smem:[#allocation16_spill]] %s8102_s27  ;;  %s8193_s9 = sadd.s32 4294967295, %s8114_s30   ;;  %s8114_s30 = sphi %s8178_s30, %s10206_s30   ;;  %s8110_s29 = sphi %s8176_s29, %s10205_s29   ;;  %s8106_s28 = sphi %s8174_s28, %s10204_s28   ;;  %s8102_s27 = sphi %s8172_s27, %s10203_s27  }
   0x8   : > { %s5447_s10 = sadd.s32 4294967294, %s8114_s30   ;;  %p46_p0 = scmp.ne.s32.totalorder %s8106_s28, %s8102_s27 }
   0x9   : > { %p9817_p1 = scmp.eq.s32.totalorder %s8193_s9, 0  ;;  %p223_p3 = scmp.eq.s32.totalorder %s5447_s10, 1 }
   0xa   : > { %p5448_p5 = scmp.ge.s32.totalorder %s8114_s30, 1  ;;  %p230_p7 = scmp.lt.s32.totalorder %s8114_s30, 3 }
   0xb   : > { %p8202_p4 = por %p9817_p1, %p46_p0  ;;  %p8207_p6 = por %p223_p3, %p46_p0 }
   0xc   : > { %p8212_p8 = pnand %p5448_p5, %p230_p7  ;;  %s8116_s14 = smov [#allocation5]  }
   0xd   : > { %s9920_s11 = scalar_select %p8202_p4, 1, 0 }
   0xe   : > { %s9921_s12 = scalar_select %p8207_p6, 1, 0 }
   0xf   : > { %s9923_s13 = scalar_select %p8212_p8, 1, 0 }
  0x10   : > { %9922 = sst [smem:[#allocation17_spill]] %s9921_s12  ;;  %s242_s15 = sshll.u32 %s8116_s14, 4  ;;  %s8216_s15 = int_to_ptr.vmem [resolvable:$true] %s242_s15 }
  0x11   : > { %p7794_p9 = pneg %p8212_p8  ;;  %s8117_s17 = smov [#allocation8]  }
  0x12   : > { %s274_s18 = sshll.u32 %s8117_s17, 4  ;;  %s8118_s19 = smov [#allocation7]   ;;  %s8227_s18 = int_to_ptr.vmem [resolvable:$true] %s274_s18 }
  0x13   : > { %p8223_p11 = pnand %p7794_p9, %p9817_p1  ;;  %s8229_s20 = sshll.u32 %s8118_s19, 4  ;;  %s259_s20 = int_to_ptr.vmem [resolvable:$true] %s8229_s20 }
  0x14   : > { %s7898_s23 = scalar_lea.hbm %s9809_s1, 2048 }
  0x15   : > { %p7899_p12 = scmp.ne.s32.totalorder %s9809_s1, %s7898_s23  ;;  %p8239_p13 = pneg %p8223_p11 }
  0x16   : > { %p7905_p5 = scmp.lt.u32.totalorder %s7898_s23, %s9809_s1 }
  0x17   : > { %p7901_p0 = pnand %p8239_p13, %p7899_p12 }
  0x19   : > { %p7902_p3 = pneg %p7901_p0 }
  0x1b   : > { %p7907_p7 = pnand %p7905_p5, %p7902_p3 }
  0x1d   : > { %7910 = shalt.err (!%p7907_p7)
}
  0x1e   : > { %s7911_s17 = scalar_lea.vmem %s8216_s15, 2048  ;;  %p7919_p2 = scmp.lt.s32.totalorder %s8216_s15, %s8216_s15 }
  0x1f   : > { %p7912_p9 = scmp.ne.s32.totalorder %s8216_s15, %s7911_s17  ;;  %p7920_p6 = scmp.lt.s32.totalorder %s7911_s17, %s7911_s17 }
  0x21   : > { %p7914_p10 = pnand %p7912_p9, %p8239_p13  ;;  %p7921_p12 = por %p7920_p6, %p7919_p2 }
  0x23   : > { %p7915_p1 = pneg %p7914_p10 }
  0x25   : > { %p7922_p0 = pnand %p7921_p12, %p7915_p1 }
  0x27   : > { %7925 = shalt.err (!%p7922_p0)
}
  0x28   : > { %s8119_s19 = smov 128   ;;  %s8120_s21 = smov 8  }
  0x29   : > { %7797 = dma.hbm_to_vmem [thread:$0]  (!%p8223_p11), %s9809_s1, 2048, %s8216_s15, [#allocation6], %s8119_s19, %s8119_s19, %s8120_s21  }
  0x2a   : > { %s7926_s10 = scalar_lea.hbm %s9813_s5, 2048 }
  0x2b   : > { %p7927_p1 = scmp.ne.s32.totalorder %s9813_s5, %s7926_s10  ;;  %p7933_p10 = scmp.lt.u32.totalorder %s7926_s10, %s9813_s5 }
  0x2d   : > { %p7929_p2 = pnand %p7927_p1, %p8239_p13 }
  0x2f   : > { %p7930_p6 = pneg %p7929_p2 }
  0x31   : > { %p7935_p3 = pnand %p7933_p10, %p7930_p6 }
  0x33   : > { %7938 = shalt.err (!%p7935_p3)
}
  0x34   : > { %s7939_s15 = scalar_lea.vmem %s8227_s18, 2048  ;;  %p7947_p12 = scmp.lt.s32.totalorder %s8227_s18, %s8227_s18 }
  0x35   : > { %p7940_p5 = scmp.ne.s32.totalorder %s8227_s18, %s7939_s15  ;;  %p7948_p0 = scmp.lt.s32.totalorder %s7939_s15, %s7939_s15 }
  0x37   : > { %p7942_p7 = pnand %p7940_p5, %p8239_p13  ;;  %p7949_p1 = por %p7948_p0, %p7947_p12 }
  0x39   : > { %p7943_p9 = pneg %p7942_p7 }
  0x3b   : > { %p7950_p2 = pnand %p7949_p1, %p7943_p9 }
  0x3d   : > { %7953 = shalt.err (!%p7950_p2)
}
  0x3e   : > { %7803 = dma.hbm_to_vmem [thread:$0]  (!%p8223_p11), %s9813_s5, 2048, %s8227_s18, [#allocation9], %s8119_s19, %s8119_s19, %s8120_s21  }
  0x3f   : > { %s7954_s24 = scalar_lea.hbm %s9811_s3, 18432 }
  0x40   : > { %p7955_p6 = scmp.ne.s32.totalorder %s9811_s3, %s7954_s24  ;;  %p7961_p5 = scmp.lt.u32.totalorder %s7954_s24, %s9811_s3 }
  0x42   : > { %p7957_p10 = pnand %p7955_p6, %p8239_p13 }
  0x44   : > { %p7958_p3 = pneg %p7957_p10 }
  0x46   : > { %p7963_p7 = pnand %p7961_p5, %p7958_p3 }
  0x48   : > { %7966 = shalt.err (!%p7963_p7)
}
  0x49   : > { %s7967_s15 = scalar_lea.vmem %s259_s20, 18432  ;;  %p7975_p1 = scmp.lt.s32.totalorder %s259_s20, %s259_s20 }
  0x4a   : > { %p7968_p9 = scmp.ne.s32.totalorder %s259_s20, %s7967_s15  ;;  %p7976_p2 = scmp.lt.s32.totalorder %s7967_s15, %s7967_s15 }
  0x4c   : > { %p7970_p12 = pnand %p7968_p9, %p8239_p13  ;;  %p7977_p4 = por %p7976_p2, %p7975_p1 }
  0x4e   : > { %p7971_p0 = pneg %p7970_p12 }
  0x50   : > { %p7978_p8 = pnand %p7977_p4, %p7971_p0 }
  0x52   : > { %7981 = shalt.err (!%p7978_p8)
}
  0x53   : > { %7800 = dma.hbm_to_vmem [thread:$0]  (!%p8223_p11), %s9811_s3, 18432, %s259_s20, [#allocation6], %s8119_s19, %s8119_s19, %s8120_s21  }
  0x54   : > { %s8121_s12 = smov [#allocation10]   ;;  %s7982_s25 = scalar_lea.hbm %s9815_s7, 2048 }
  0x55   : > { %s290_s22 = sshll.u32 %s8121_s12, 4  ;;  %p7983_p4 = scmp.ne.s32.totalorder %s9815_s7, %s7982_s25  ;;  %s291_s22 = int_to_ptr.vmem [resolvable:$true] %s290_s22 }
  0x56   : > { %p7989_p10 = scmp.lt.u32.totalorder %s7982_s25, %s9815_s7 }
  0x57   : > { %p7985_p8 = pnand %p7983_p4, %p8239_p13 }
  0x59   : > { %p7986_p6 = pneg %p7985_p8 }
  0x5b   : > { %p7991_p3 = pnand %p7989_p10, %p7986_p6 }
  0x5d   : > { %7994 = shalt.err (!%p7991_p3)
}
  0x5e   : > { %s7995_s20 = scalar_lea.vmem %s291_s22, 2048  ;;  %p8003_p12 = scmp.lt.s32.totalorder %s291_s22, %s291_s22 }
  0x5f   : > { %p7996_p5 = scmp.ne.s32.totalorder %s291_s22, %s7995_s20  ;;  %p8004_p0 = scmp.lt.s32.totalorder %s7995_s20, %s7995_s20 }
  0x61   : > { %p7998_p7 = pnand %p7996_p5, %p8239_p13  ;;  %p8005_p1 = por %p8004_p0, %p8003_p12 }
  0x63   : > { %p7999_p9 = pneg %p7998_p7 }
  0x65   : > { %p8006_p2 = pnand %p8005_p1, %p7999_p9 }
  0x67   : > { %8009 = shalt.err (!%p8006_p2)
}
  0x68   : > { %7806 = dma.hbm_to_vmem [thread:$0]  (!%p8223_p11), %s9815_s7, 2048, %s291_s22, [#allocation9], %s8119_s19, %s8119_s19, %s8120_s21  }
  0x69   : > { %s8333_s26 = sadd.s32 1, %s8114_s30   ;;  %s33_s16 = sadd.s32 1, %s8110_s29 }
  0x6a   : > { %s30_s12 = ssub.s32 %s8114_s30, %s8333_s26  ;;  %p40_p13 = scmp.ne.s32.totalorder %s8110_s29, %s8106_s28 }
  0x6b   : > { %p31_p4 = scmp.eq.s32.totalorder %s30_s12, 0  ;;  %p41_p8 = scmp.eq.s32.totalorder %s8114_s30, 0 }
  0x6c   : > { %p9926_p6 = scmp.eq.s32.totalorder %s8193_s9, 1  ;;  %p7819_p3 = scmp.lt.s32.totalorder %s8114_s30, 2 }
  0x6d   : > { %s8349_s24 = scalar_select %p31_p4, %s8110_s29, %s33_s16  }
  0x6e   : > { %p8343_p10 = por %p9926_p6, %p40_p13  ;;  %p42_p5 = por %p41_p8, %p40_p13 }
  0x6f   : > { %s304_s25 = sand.u32 1, %s8110_s29   ;;  %s5564_s22 = sshll.u32 %s8114_s30, 12 }
  0x70   : > { %s5454_s10 = sshll.u32 %s304_s25, 8  ;;  %s8356_s15 = scalar_lea.hbm %s9808_s0, %s5564_s22 }
  0x71   : > { %s308_s20 = scalar_lea.vmem [#allocation2], %s5454_s10  ;;  %p8360_p11 = pnand %p7819_p3, %p42_p5 }
  0x72   : > { %s315_s18 = sshll.u32 %s308_s20, 4  ;;  %s8364_s16 = scalar_lea.sflag [#allocation3], %s304_s25  ;;  %s8358_s18 = int_to_ptr.vmem [resolvable:$true] %s315_s18 }
  0x73   : > { %s8010_s12 = scalar_lea.hbm %s8356_s15, 4096  ;;  %p8012_p9 = pneg %p8360_p11 }
  0x74   : > { %p8011_p7 = scmp.ne.s32.totalorder %s8356_s15, %s8010_s12  ;;  %s8015_s14 = scalar_lea.hbm %s9808_s0, 8192 }
  0x75   : > { %p8016_p1 = scmp.lt.u32.totalorder %s8356_s15, %s9808_s0  ;;  %p8017_p2 = scmp.lt.u32.totalorder %s8015_s14, %s8010_s12 }
  0x76   : > { %p8013_p12 = pnand %p8012_p9, %p8011_p7  ;;  %p8019_p4 = scmp.lt.u32.totalorder %s8010_s12, %s8356_s15 }
  0x77   : > { %p8018_p13 = por %p8017_p2, %p8016_p1 }
  0x78   : > { %p8014_p0 = pneg %p8013_p12 }
  0x79   : > { %p8020_p8 = por %p8019_p4, %p8018_p13 }
  0x7b   : > { %p8021_p6 = pnand %p8020_p8, %p8014_p0 }
  0x7d   : > { %8024 = shalt.err (!%p8021_p6)
}
  0x7e   : > { %s8025_s25 = scalar_lea.vmem %s8358_s18, 4096  ;;  %s8122_s10 = smov [#allocation2]  }
  0x7f   : > { %p8026_p3 = scmp.ne.s32.totalorder %s8358_s18, %s8025_s25  ;;  %s8030_s22 = sshll.u32 %s8122_s10, 4  ;;  %s8031_s22 = int_to_ptr.vmem [resolvable:$false] %s8030_s22 }
  0x80   : > { %s8032_s17 = scalar_lea.vmem %s8031_s22, 8192  ;;  %p8033_p12 = scmp.lt.s32.totalorder %s8358_s18, %s8031_s22 }
  0x81   : > { %p8028_p5 = pnand %p8026_p3, %p8012_p9  ;;  %p8034_p1 = scmp.lt.s32.totalorder %s8032_s17, %s8025_s25 }
  0x83   : > { %p8029_p7 = pneg %p8028_p5  ;;  %p8035_p2 = por %p8034_p1, %p8033_p12 }
  0x85   : > { %p8036_p13 = pnand %p8035_p2, %p8029_p7 }
  0x87   : > { %8039 = shalt.err (!%p8036_p13)
}
  0x88   : > { %7810 = dma.hbm_to_vmem [thread:$0]  (!%p8360_p11), %s8356_s15, 4096, %s8358_s18, %s8364_s16, %s8119_s19, %s8119_s19, %s8120_s21  }
  0x89   : > { %p9929_p9 = scmp.ne.s32.totalorder %s9923_s13, 0 }
  0x8b   : > { %327 = sbr.rel (%p9929_p9) target bundleno = 1304 (0x518), region = 52 }
  0x92   : > { %s8398_s12 = sand.u32 1, %s8106_s28   ;;  %p9930_p0 = scmp.ne.s32.totalorder %s9920_s11, 0 }
  0x93   : > { %s5458_s14 = sshll.u32 %s8398_s12, 8  ;;  %s330_s20 = scalar_lea.sflag [#allocation3], %s8398_s12 }
  0x94   : > { %s8404_s27 = scalar_lea.vmem [#allocation2], %s5458_s14 }
  0x95   : > { %8085 = dma.done.wait (%p9930_p0), %s330_s20, 4096  }
  0x96   : > { %8087 = vsyncadd (%p9930_p0), %s330_s20, 4294963200  ;;  %p9931_p11 = scmp.eq.s32.totalorder %s8193_s9, 0 }
  0x98   : > { %8089 = dma.done.wait (%p9931_p11), [#allocation6], 20480   ;;  %p9932_p4 = pmov %p9931_p11 }
  0x9a   : > { %8091 = vsyncadd (%p9932_p4), [#allocation6], 4294946816  ;;  %p9933_p8 = pmov %p9932_p4 }
  0x9b   : > { %p9934_p6 = pmov %p9932_p4 }
  0x9c   : > { %8093 = dma.done.wait (%p9933_p8), [#allocation9], 4096  }
  0x9d   : > { %8095 = vsyncadd (%p9934_p6), [#allocation9], 4294963200  ;;  %v414_v0 = vld [vmem:[#allocation5] sm:$0xff]  ;;  %v415_v1 = vld [vmem:[#allocation5 + $0x8] sm:$0xff]  ;;  %s9693_s16 = scalar_lea.vmem [#allocation11], %s5458_s14  ;;  %s5565_s25 = sshll.u32 %s8193_s9, 12 }
  0x9e   : > { %v416_v2 = vld [vmem:[#allocation5 + $0x10] sm:$0xff]  ;;  %v7102_v3 = vpack.c.bf16 %v415_v1, %v414_v0  ;;  %v417_v4 = vld [vmem:[#allocation5 + $0x18] sm:$0xff]  ;;  %v418_v6 = vld [vmem:[#allocation5 + $0x20] sm:$0xff]  ;;  %s5336_s10 = sshll.u32 %s9693_s16, 4  ;;  %s9760_s14 = scalar_lea.hbm %s9816_s8, %s5565_s25  ;;  %s9762_s10 = int_to_ptr.vmem [resolvable:$true] %s5336_s10 }
  0x9f   : > { %v7106_v5 = vpack.c.bf16 %v417_v4, %v416_v2  ;;  %v419_v7 = vld [vmem:[#allocation5 + $0x28] sm:$0xff]  ;;  %v382_v9 = vld [vmem:[%s8404_s27] sm:$0xff]  ;;  %v420_v10 = vld [vmem:[#allocation5 + $0x30] sm:$0xff]  ;;  %s5323_s9 = scalar_lea.sflag [#allocation4], %s8398_s12  ;;  %s8040_s20 = scalar_lea.vmem %s9762_s10, 4096 }
  0xa0   : > { %7103 = vmatprep.subr.bf16.mxu0 %v7102_v3  ;;  %v7110_v8 = vpack.c.bf16 %v419_v7, %v418_v6  ;;  %v421_v11 = vld [vmem:[#allocation5 + $0x38] sm:$0xff]  ;;  %6174 = vmatprep.mubr.f32.mxu0 %v382_v9  ;;  %v422_v13 = vld [vmem:[#allocation5 + $0x40] sm:$0xff]  ;;  %v423_v14 = vld [vmem:[#allocation5 + $0x48] sm:$0xff]  ;;  %p8041_p3 = scmp.ne.s32.totalorder %s9762_s10, %s8040_s20 }
  0xa1   : > { %7105 = vmatpush3.bf16.msra.mxu0 %v7102_v3  ;;  %v7114_v12 = vpack.c.bf16 %v421_v11, %v420_v10  ;;  %v7118_v15 = vpack.c.bf16 %v423_v14, %v422_v13  ;;  %v424_v16 = vld [vmem:[#allocation5 + $0x50] sm:$0xff]  ;;  %v425_v17 = vld [vmem:[#allocation5 + $0x58] sm:$0xff]  ;;  %v426_v19 = vld [vmem:[#allocation5 + $0x60] sm:$0xff] }
  0xa2   : > { %7107 = vmatprep.subr.bf16.mxu0 %v7106_v5  ;;  %v7122_v18 = vpack.c.bf16 %v425_v17, %v424_v16  ;;  %v427_v20 = vld [vmem:[#allocation5 + $0x68] sm:$0xff]  ;;  %v428_v22 = vld [vmem:[#allocation5 + $0x70] sm:$0xff]  ;;  %v429_v23 = vld [vmem:[#allocation5 + $0x78] sm:$0xff]  ;;  %v9824_v16 = vmov 0.0   ;;  %p8042_p5 = pnand %p8041_p3, %p8343_p10 }
  0xa3   : > { %v7126_v21 = vpack.c.bf16 %v427_v20, %v426_v19  ;;  %v7130_v24 = vpack.c.bf16 %v429_v23, %v428_v22  ;;  %v1545_v25 = vld [vmem:[#allocation7 + $0x80] sm:$0xff]  ;;  %v1546_v26 = vld [vmem:[#allocation7 + $0x88] sm:$0xff]  ;;  %v1547_v28 = vld [vmem:[#allocation7 + $0x90] sm:$0xff] }
  0xa4   : > { %v7134_v27 = vpack.c.bf16 %v1546_v26, %v1545_v25  ;;  %v1548_v29 = vld [vmem:[#allocation7 + $0x98] sm:$0xff]  ;;  %v383_v30 = vld [vmem:[%s8404_s27 + $0x8] sm:$0xff]  ;;  %v384_v31 = vld [vmem:[%s8404_s27 + $0x10] sm:$0xff]  ;;  %p8043_p7 = pneg %p8042_p5 }
  0xa5   : > { %7109 = vmatpush3.bf16.msra.mxu0 %v7106_v5  ;;  %v7138_v32 = vpack.c.bf16 %v1548_v29, %v1547_v28  ;;  %v1549_v33 = vld [vmem:[#allocation7 + $0xa0] sm:$0xff]  ;;  %v1550_v34 = vld [vmem:[#allocation7 + $0xa8] sm:$0xff]  ;;  %v385_v35 = vld [vmem:[%s8404_s27 + $0x18] sm:$0xff] }
  0xa6   : > { %7111 = vmatprep.subr.bf16.mxu0 %v7110_v8  ;;  %v386_v36 = vld [vmem:[%s8404_s27 + $0x20] sm:$0xff]  ;;  %v7142_v37 = vpack.c.bf16 %v1550_v34, %v1549_v33  ;;  %v1551_v38 = vld [vmem:[#allocation7 + $0xb0] sm:$0xff]  ;;  %v1552_v39 = vld [vmem:[#allocation7 + $0xb8] sm:$0xff] }
  0xa7   : > { %v387_v40 = vld [vmem:[%s8404_s27 + $0x28] sm:$0xff]  ;;  %v388_v41 = vld [vmem:[%s8404_s27 + $0x30] sm:$0xff]  ;;  %v7146_v42 = vpack.c.bf16 %v1552_v39, %v1551_v38  ;;  %v1553_v43 = vld [vmem:[#allocation7 + $0xc0] sm:$0xff] }
  0xa8   : > { %v1554_v44 = vld [vmem:[#allocation7 + $0xc8] sm:$0xff]  ;;  %v389_v45 = vld [vmem:[%s8404_s27 + $0x38] sm:$0xff]  ;;  %v390_v46 = vld [vmem:[%s8404_s27 + $0x40] sm:$0xff] }
  0xa9   : > { %7113 = vmatpush3.bf16.msra.mxu0 %v7110_v8  ;;  %v7150_v47 = vpack.c.bf16 %v1554_v44, %v1553_v43  ;;  %v1555_v48 = vld [vmem:[#allocation7 + $0xd0] sm:$0xff]  ;;  %v1556_v49 = vld [vmem:[#allocation7 + $0xd8] sm:$0xff]  ;;  %v391_v50 = vld [vmem:[%s8404_s27 + $0x48] sm:$0xff] }
  0xaa   : > { %7115 = vmatprep.subr.bf16.mxu0 %v7114_v12  ;;  %v392_v51 = vld [vmem:[%s8404_s27 + $0x50] sm:$0xff]  ;;  %v7154_v52 = vpack.c.bf16 %v1556_v49, %v1555_v48  ;;  %v1557_v53 = vld [vmem:[#allocation7 + $0xe0] sm:$0xff]  ;;  %v1558_v54 = vld [vmem:[#allocation7 + $0xe8] sm:$0xff] }
  0xab   : > { %v393_v55 = vld [vmem:[%s8404_s27 + $0x58] sm:$0xff]  ;;  %v394_v56 = vld [vmem:[%s8404_s27 + $0x60] sm:$0xff]  ;;  %v7158_v57 = vpack.c.bf16 %v1558_v54, %v1557_v53  ;;  %v1559_v58 = vld [vmem:[#allocation7 + $0xf0] sm:$0xff] }
  0xac   : > { %v1560_v59 = vld [vmem:[#allocation7 + $0xf8] sm:$0xff]  ;;  %v395_v60 = vld [vmem:[%s8404_s27 + $0x68] sm:$0xff]  ;;  %v396_v61 = vld [vmem:[%s8404_s27 + $0x70] sm:$0xff] }
  0xad   : > { %7117 = vmatpush3.bf16.msra.mxu0 %v7114_v12  ;;  %v7162_v62 = vpack.c.bf16 %v1560_v59, %v1559_v58  ;;  %v397_v63 = vld [vmem:[%s8404_s27 + $0x78] sm:$0xff]  ;;  %v398_v0 = vld [vmem:[%s8404_s27 + $0x80] sm:$0xff]  ;;  %v399_v1 = vld [vmem:[%s8404_s27 + $0x88] sm:$0xff] }
  0xae   : > { %7119 = vmatprep.subr.bf16.mxu0 %v7118_v15  ;;  %v400_v2 = vld [vmem:[%s8404_s27 + $0x90] sm:$0xff]  ;;  %v401_v3 = vld [vmem:[%s8404_s27 + $0x98] sm:$0xff]  ;;  %v402_v4 = vld [vmem:[%s8404_s27 + $0xa0] sm:$0xff] }
  0xaf   : > { %v403_v5 = vld [vmem:[%s8404_s27 + $0xa8] sm:$0xff]  ;;  %v404_v6 = vld [vmem:[%s8404_s27 + $0xb0] sm:$0xff]  ;;  %v405_v7 = vld [vmem:[%s8404_s27 + $0xb8] sm:$0xff] }
  0xb0   : > { %v406_v8 = vld [vmem:[%s8404_s27 + $0xc0] sm:$0xff]  ;;  %v407_v9 = vld [vmem:[%s8404_s27 + $0xc8] sm:$0xff]  ;;  %v408_v10 = vld [vmem:[%s8404_s27 + $0xd0] sm:$0xff] }
  0xb1   : > { %7121 = vmatpush3.bf16.msra.mxu0 %v7118_v15  ;;  %v409_v11 = vld [vmem:[%s8404_s27 + $0xd8] sm:$0xff]  ;;  %v410_v12 = vld [vmem:[%s8404_s27 + $0xe0] sm:$0xff]  ;;  %v411_v13 = vld [vmem:[%s8404_s27 + $0xe8] sm:$0xff] }
  0xb2   : > { %7123 = vmatprep.subr.bf16.mxu0 %v7122_v18  ;;  %v412_v14 = vld [vmem:[%s8404_s27 + $0xf0] sm:$0xff]  ;;  %v413_v15 = vld [vmem:[%s8404_s27 + $0xf8] sm:$0xff]  ;;  %v1432_v17 = vld [vmem:[#allocation7] sm:$0xff] }
  0xb3   : > { %v2575_v20 = vld [vmem:[#allocation7 + $0x180] sm:$0xff]  ;;  %v1434_v23 = vld [vmem:[#allocation7 + $0x10] sm:$0xff]  ;;  %v2580_v33 = vld [vmem:[#allocation7 + $0x1a8] sm:$0xff] }
  0xb4   : > { %v2577_v26 = vld [vmem:[#allocation7 + $0x190] sm:$0xff]  ;;  %v1436_v29 = vld [vmem:[#allocation7 + $0x20] sm:$0xff]  ;;  %v2582_v39 = vld [vmem:[#allocation7 + $0x1b8] sm:$0xff] }
  0xb5   : > { %7125 = vmatpush3.bf16.msra.mxu0 %v7122_v18  ;;  %v1433_v18 = vld [vmem:[#allocation7 + $0x8] sm:$0xff]  ;;  %v2581_v38 = vld [vmem:[#allocation7 + $0x1b0] sm:$0xff]  ;;  %v2583_v44 = vld [vmem:[#allocation7 + $0x1c0] sm:$0xff] }
  0xb6   : > { %7127 = vmatprep.subr.bf16.mxu0 %v7126_v21  ;;  %v7166_v19 = vpack.c.bf16 %v1433_v18, %v1432_v17  ;;  %v1443_v48 = vld [vmem:[#allocation7 + $0x58] sm:$0xff]  ;;  %v1444_v53 = vld [vmem:[#allocation7 + $0x60] sm:$0xff]  ;;  %v1445_v54 = vld [vmem:[#allocation7 + $0x68] sm:$0xff] }
  0xb7   : > { %v1446_v59 = vld [vmem:[#allocation7 + $0x70] sm:$0xff] }
  0xb9   : > { %7129 = vmatpush3.bf16.msra.mxu0 %v7126_v21  ;;  %v2576_v21 = vld [vmem:[#allocation7 + $0x188] sm:$0xff] }
  0xba   : > { %7131 = vmatprep.subr.bf16.mxu0 %v7130_v24  ;;  %v7230_v22 = vpack.c.bf16 %v2576_v21, %v2575_v20 }
  0xbc   : > { %7231 = vmatprep.subr.bf16.mxu1 %v7230_v22 }
  0xbd   : > { %7133 = vmatpush3.bf16.msra.mxu0 %v7130_v24  ;;  %v1435_v24 = vld [vmem:[#allocation7 + $0x18] sm:$0xff]  ;;  %7233 = vmatpush3.bf16.msra.mxu1 %v7230_v22 }
  0xbe   : > { %7135 = vmatprep.subr.bf16.mxu0 %v7134_v27  ;;  %v7170_v25 = vpack.c.bf16 %v1435_v24, %v1434_v23 }
  0xc0   : > { %6175 = vmatmul.mubr.f32.vlgmr.msra.gmra.mrb[0].mxu0 %v383_v30  ;;  %v1437_v30 = vld [vmem:[#allocation7 + $0x28] sm:$0xff] }
  0xc1   : > { %6177 = vmatprep.mubr.f32.mxu0 %v384_v31  ;;  %7137 = vmatpush3.bf16.msra.mxu0 %v7134_v27  ;;  %v2578_v27 = vld [vmem:[#allocation7 + $0x198] sm:$0xff]  ;;  %v7174_v31 = vpack.c.bf16 %v1437_v30, %v1436_v29 }
  0xc2   : > { %7139 = vmatprep.subr.bf16.mxu0 %v7138_v32  ;;  %v7234_v28 = vpack.c.bf16 %v2578_v27, %v2577_v26 }
  0xc4   : > { %6178 = vmatmul.mubr.f32.gmra.mrb[2].mxu0 %v385_v35  ;;  %7235 = vmatprep.subr.bf16.mxu1 %v7234_v28  ;;  %v1438_v35 = vld [vmem:[#allocation7 + $0x30] sm:$0xff] }
  0xc5   : > { %6180 = vmatprep.mubr.f32.mxu0 %v386_v36  ;;  %7141 = vmatpush3.bf16.msra.mxu0 %v7138_v32  ;;  %v2579_v32 = vld [vmem:[#allocation7 + $0x1a0] sm:$0xff]  ;;  %v1439_v36 = vld [vmem:[#allocation7 + $0x38] sm:$0xff] }
  0xc6   : > { %7143 = vmatprep.subr.bf16.mxu0 %v7142_v37  ;;  %7237 = vmatpush3.bf16.msra.mxu1 %v7234_v28  ;;  %v7238_v34 = vpack.c.bf16 %v2580_v33, %v2579_v32 }
  0xc8   : > { %6181 = vmatmul.mubr.f32.gmra.mrb[4].mxu0 %v387_v40  ;;  %7239 = vmatprep.subr.bf16.mxu1 %v7238_v34  ;;  %v7242_v40 = vpack.c.bf16 %v2582_v39, %v2581_v38 }
  0xc9   : > { %6183 = vmatprep.mubr.f32.mxu0 %v388_v41  ;;  %7145 = vmatpush3.bf16.msra.mxu0 %v7142_v37  ;;  %v7178_v37 = vpack.c.bf16 %v1439_v36, %v1438_v35  ;;  %v1440_v41 = vld [vmem:[#allocation7 + $0x40] sm:$0xff] }
  0xca   : > { %7147 = vmatprep.subr.bf16.mxu0 %v7146_v42  ;;  %7241 = vmatpush3.bf16.msra.mxu1 %v7238_v34 }
  0xcb   : > { %7243 = vmatprep.subr.bf16.mxu1 %v7242_v40 }
  0xcc   : > { %6184 = vmatmul.mubr.f32.gmra.mrb[6].mxu0 %v389_v45  ;;  %v2584_v45 = vld [vmem:[#allocation7 + $0x1c8] sm:$0xff] }
  0xcd   : > { %6186 = vmatprep.mubr.f32.mxu0 %v390_v46  ;;  %7149 = vmatpush3.bf16.msra.mxu0 %v7146_v42  ;;  %v1441_v42 = vld [vmem:[#allocation7 + $0x48] sm:$0xff]  ;;  %v7246_v46 = vpack.c.bf16 %v2584_v45, %v2583_v44 }
  0xce   : > { %7151 = vmatprep.subr.bf16.mxu0 %v7150_v47  ;;  %v7182_v43 = vpack.c.bf16 %v1441_v42, %v1440_v41  ;;  %7245 = vmatpush3.bf16.msra.mxu1 %v7242_v40 }
  0xcf   : > { %7247 = vmatprep.subr.bf16.mxu1 %v7246_v46 }
  0xd0   : > { %6187 = vmatmul.mubr.f32.gmra.mrb[8].mxu0 %v391_v50  ;;  %v2585_v50 = vld [vmem:[#allocation7 + $0x1d0] sm:$0xff] }
  0xd1   : > { %6189 = vmatprep.mubr.f32.mxu0 %v392_v51  ;;  %7153 = vmatpush3.bf16.msra.mxu0 %v7150_v47  ;;  %v1442_v47 = vld [vmem:[#allocation7 + $0x50] sm:$0xff]  ;;  %v2586_v51 = vld [vmem:[#allocation7 + $0x1d8] sm:$0xff] }
  0xd2   : > { %7155 = vmatprep.subr.bf16.mxu0 %v7154_v52  ;;  %v7186_v49 = vpack.c.bf16 %v1443_v48, %v1442_v47  ;;  %7249 = vmatpush3.bf16.msra.mxu1 %v7246_v46 }
  0xd4   : > { %6190 = vmatmul.mubr.f32.gmra.mrb[10].mxu0 %v393_v55  ;;  %v7190_v55 = vpack.c.bf16 %v1445_v54, %v1444_v53 }
  0xd5   : > { %6192 = vmatprep.mubr.f32.mxu0 %v394_v56  ;;  %7157 = vmatpush3.bf16.msra.mxu0 %v7154_v52  ;;  %v7250_v52 = vpack.c.bf16 %v2586_v51, %v2585_v50  ;;  %v2587_v56 = vld [vmem:[#allocation7 + $0x1e0] sm:$0xff] }
  0xd6   : > { %7159 = vmatprep.subr.bf16.mxu0 %v7158_v57 }
  0xd7   : > { %7251 = vmatprep.subr.bf16.mxu1 %v7250_v52 }
  0xd8   : > { %6193 = vmatmul.mubr.f32.gmra.mrb[12].mxu0 %v395_v60  ;;  %7253 = vmatpush3.bf16.msra.mxu1 %v7250_v52  ;;  %v1447_v60 = vld [vmem:[#allocation7 + $0x78] sm:$0xff] }
  0xd9   : > { %6195 = vmatprep.mubr.f32.mxu0 %v396_v61  ;;  %7161 = vmatpush3.bf16.msra.mxu0 %v7158_v57  ;;  %v2588_v57 = vld [vmem:[#allocation7 + $0x1e8] sm:$0xff]  ;;  %v7194_v61 = vpack.c.bf16 %v1447_v60, %v1446_v59 }
  0xda   : > { %7163 = vmatprep.subr.bf16.mxu0 %v7162_v62  ;;  %v7254_v58 = vpack.c.bf16 %v2588_v57, %v2587_v56 }
  0xdc   : > { %6196 = vmatmul.mubr.f32.gmra.mrb[14].mxu0 %v397_v63  ;;  %7255 = vmatprep.subr.bf16.mxu1 %v7254_v58  ;;  %v2590_v63 = vld [vmem:[#allocation7 + $0x1f8] sm:$0xff] }
  0xdd   : > { %6198 = vmatprep.mubr.f32.mxu0 %v398_v0  ;;  %7165 = vmatpush3.bf16.msra.mxu0 %v7162_v62  ;;  %v2589_v62 = vld [vmem:[#allocation7 + $0x1f0] sm:$0xff] }
  0xde   : > { %7167 = vmatprep.subr.bf16.mxu0 %v7166_v19  ;;  %7257 = vmatpush3.bf16.msra.mxu1 %v7254_v58  ;;  %v7258_v0 = vpack.c.bf16 %v2590_v63, %v2589_v62 }
  0xe0   : > { %6199 = vmatmul.mubr.f32.gmra.mrb[16].mxu0 %v399_v1  ;;  %7259 = vmatprep.subr.bf16.mxu1 %v7258_v0  ;;  %v2849_v1 = vld [vmem:[#allocation7 + $0x200] sm:$0xff] }
  0xe1   : > { %6201 = vmatprep.mubr.f32.mxu0 %v400_v2  ;;  %v2850_v2 = vld [vmem:[#allocation7 + $0x208] sm:$0xff] }
  0xe2   : > { %7261 = vmatpush3.bf16.msra.mxu1 %v7258_v0 }
  0xe4   : > { %6202 = vmatmul.mubr.f32.gmra.mrb[18].mxu0 %v401_v3  ;;  %v8452_v3 = vpack.c.bf16 %v2850_v2, %v2849_v1 }
  0xe5   : > { %6204 = vmatprep.mubr.f32.mxu0 %v402_v4  ;;  %v2205_v4 = vld [vmem:[#allocation7 + $0x100] sm:$0xff] }
  0xe6   : > { %7263 = vmatprep.subr.bf16.mxu1 %v8452_v3 }
  0xe8   : > { %6205 = vmatmul.mubr.f32.gmra.mrb[20].mxu0 %v403_v5  ;;  %v2206_v5 = vld [vmem:[#allocation7 + $0x108] sm:$0xff] }
  0xe9   : > { %6207 = vmatprep.mubr.f32.mxu0 %v404_v6  ;;  %v8455_v6 = vpack.c.bf16 %v2206_v5, %v2205_v4 }
  0xec   : > { %6208 = vmatmul.mubr.f32.gmra.mrb[22].mxu0 %v405_v7  ;;  %v8461_v7 = vld [vmem:[%s9810_s2] ss:$0 sm:$0xff] }
  0xed   : > { %6210 = vmatprep.mubr.f32.mxu0 %v406_v8 }
  0xf0   : > { %6211 = vmatmul.mubr.f32.gmra.mrb[24].mxu0 %v407_v9 }
  0xf1   : > { %6213 = vmatprep.mubr.f32.mxu0 %v408_v10 }
  0xf4   : > { %6214 = vmatmul.mubr.f32.gmra.mrb[26].mxu0 %v409_v11 }
  0xf5   : > { %6216 = vmatprep.mubr.f32.mxu0 %v410_v12 }
  0xf8   : > { %6217 = vmatmul.mubr.f32.gmra.mrb[28].mxu0 %v411_v13 }
  0xf9   : > { %6219 = vmatprep.mubr.f32.mxu0 %v412_v14 }
  0xfc   : > { %6220 = vmatmul.mubr.f32.gmra.mrb[30].mxu0 %v413_v15 }
  0xfd   : > { %6254 = vmatprep.mubr.f32.mxu0 %v9824_v16 }
 0x100   : > { %6255 = vmatmul.mubr.f32.vlgmr.msra.gmra.mrb[32].mxu0 %v9824_v16 }
 0x101   : > { %7169 = vmatpush3.bf16.msra.mxu0 %v7166_v19 }
 0x102   : > { %7171 = vmatprep.subr.bf16.mxu0 %v7170_v25 }
 0x105   : > { %7173 = vmatpush3.bf16.msra.mxu0 %v7170_v25 }
 0x106   : > { %7175 = vmatprep.subr.bf16.mxu0 %v7174_v31 }
 0x109   : > { %7177 = vmatpush3.bf16.msra.mxu0 %v7174_v31 }
 0x10a   : > { %7179 = vmatprep.subr.bf16.mxu0 %v7178_v37 }
 0x10d   : > { %7181 = vmatpush3.bf16.msra.mxu0 %v7178_v37 }
 0x10e   : > { %7183 = vmatprep.subr.bf16.mxu0 %v7182_v43 }
 0x111   : > { %7185 = vmatpush3.bf16.msra.mxu0 %v7182_v43 }
 0x112   : > { %7187 = vmatprep.subr.bf16.mxu0 %v7186_v49 }
 0x115   : > { %7189 = vmatpush3.bf16.msra.mxu0 %v7186_v49 }
 0x116   : > { %7191 = vmatprep.subr.bf16.mxu0 %v7190_v55 }
 0x119   : > { %7193 = vmatpush3.bf16.msra.mxu0 %v7190_v55 }
 0x11a   : > { %7195 = vmatprep.subr.bf16.mxu0 %v7194_v61 }
 0x11d   : > { %7197 = vmatpush3.bf16.msra.mxu0 %v7194_v61 }
 0x11e   : > { %7199 = vmatprep.subr.bf16.mxu0 %v8455_v6 }
 0x193   : > { %v6176_v8 = vpop.f32.mrb[0].mxu0 }
 0x194   : > { %v509_v9 = vadd.f32 %v6176_v8, %v8461_v7  ;;  %v503_v10 = vpop.f32.mrb[1].mxu0 }
 0x195   : > { %v504_v11 = vadd.f32 %v8461_v7, %v503_v10 }
 0x196   : > { %v8467_v14 = vmax.f32 %v509_v9, 0.0 }
 0x197   : > { %v8465_v12 = vmax.f32 %v504_v11, 0.0  ;;  %v6179_v13 = vpop.f32.mrb[2].mxu0 }
 0x198   : > { %v519_v15 = vadd.f32 %v6179_v13, %v8461_v7  ;;  %v513_v17 = vpop.f32.mrb[3].mxu0 }
 0x199   : > { %v514_v18 = vadd.f32 %v8461_v7, %v513_v17  ;;  %6257 = vmatprep.mubr.f32.mxu0 %v8465_v12 }
 0x19a   : > { %6258 = vmatmul.mubr.f32.gmra.mrb[34].mxu0 %v8467_v14  ;;  %v8475_v21 = vmax.f32 %v519_v15, 0.0 }
 0x19b   : > { %v8473_v19 = vmax.f32 %v514_v18, 0.0  ;;  %v6182_v20 = vpop.f32.mrb[4].mxu0 }
 0x19c   : > { %9936 = vst [vmem:[#allocation19_spill] sm:$0xff] %v8475_v21  ;;  %v529_v22 = vadd.f32 %v6182_v20, %v8461_v7  ;;  %v523_v23 = vpop.f32.mrb[5].mxu0 }
 0x19d   : > { %9935 = vst [vmem:[#allocation18_spill] sm:$0xff] %v8473_v19  ;;  %v524_v24 = vadd.f32 %v8461_v7, %v523_v23  ;;  %6260 = vmatprep.mubr.f32.mxu0 %v8473_v19 }
 0x19e   : > { %6261 = vmatmul.mubr.f32.gmra.mrb[36].mxu0 %v8475_v21  ;;  %v8483_v27 = vmax.f32 %v529_v22, 0.0 }
 0x19f   : > { %v8481_v25 = vmax.f32 %v524_v24, 0.0  ;;  %v6185_v26 = vpop.f32.mrb[6].mxu0 }
 0x1a0   : > { %9938 = vst [vmem:[#allocation21_spill] sm:$0xff] %v8483_v27  ;;  %v539_v28 = vadd.f32 %v6185_v26, %v8461_v7  ;;  %v533_v29 = vpop.f32.mrb[7].mxu0 }
 0x1a1   : > { %9937 = vst [vmem:[#allocation20_spill] sm:$0xff] %v8481_v25  ;;  %v534_v30 = vadd.f32 %v8461_v7, %v533_v29  ;;  %6263 = vmatprep.mubr.f32.mxu0 %v8481_v25 }
 0x1a2   : > { %6264 = vmatmul.mubr.f32.gmra.mrb[38].mxu0 %v8483_v27  ;;  %v8491_v33 = vmax.f32 %v539_v28, 0.0 }
 0x1a3   : > { %v8489_v31 = vmax.f32 %v534_v30, 0.0  ;;  %v6188_v32 = vpop.f32.mrb[8].mxu0 }
 0x1a4   : > { %9940 = vst [vmem:[#allocation23_spill] sm:$0xff] %v8491_v33  ;;  %v549_v34 = vadd.f32 %v6188_v32, %v8461_v7  ;;  %v543_v35 = vpop.f32.mrb[9].mxu0  ;;  %v694_v32 = vlaneseq }
 0x1a5   : > { %9939 = vst [vmem:[#allocation22_spill] sm:$0xff] %v8489_v31  ;;  %v544_v36 = vadd.f32 %v8461_v7, %v543_v35  ;;  %6266 = vmatprep.mubr.f32.mxu0 %v8489_v31 }
 0x1a6   : > { %6267 = vmatmul.mubr.f32.gmra.mrb[40].mxu0 %v8491_v33  ;;  %v8499_v39 = vmax.f32 %v549_v34, 0.0 }
 0x1a7   : > { %v8497_v37 = vmax.f32 %v544_v36, 0.0  ;;  %v6191_v38 = vpop.f32.mrb[10].mxu0 }
 0x1a8   : > { %9942 = vst [vmem:[#allocation25_spill] sm:$0xff] %v8499_v39  ;;  %v559_v40 = vadd.f32 %v6191_v38, %v8461_v7  ;;  %v553_v41 = vpop.f32.mrb[11].mxu0 }
 0x1a9   : > { %9941 = vst [vmem:[#allocation24_spill] sm:$0xff] %v8497_v37  ;;  %v554_v42 = vadd.f32 %v8461_v7, %v553_v41  ;;  %6269 = vmatprep.mubr.f32.mxu0 %v8497_v37 }
 0x1aa   : > { %6270 = vmatmul.mubr.f32.gmra.mrb[42].mxu0 %v8499_v39  ;;  %v8507_v45 = vmax.f32 %v559_v40, 0.0 }
 0x1ab   : > { %v8505_v43 = vmax.f32 %v554_v42, 0.0  ;;  %v6194_v44 = vpop.f32.mrb[12].mxu0  ;;  %v8569_v42 = vshrl.u32 %v694_v32, 7  ;;  %v2208_v32 = vld [vmem:[#allocation7 + $0x118] sm:$0xff] }
 0x1ac   : > { %9944 = vst [vmem:[#allocation27_spill] sm:$0xff] %v8507_v45  ;;  %v569_v46 = vadd.f32 %v6194_v44, %v8461_v7  ;;  %v563_v47 = vpop.f32.mrb[13].mxu0 }
 0x1ad   : > { %9943 = vst [vmem:[#allocation26_spill] sm:$0xff] %v8505_v43  ;;  %v564_v48 = vadd.f32 %v8461_v7, %v563_v47  ;;  %6272 = vmatprep.mubr.f32.mxu0 %v8505_v43  ;;  %vm1271_vm0 = vcmp.lt.s32.totalorder %v8569_v42, 1  ;;  %vm9845_vm4 = vcmp.lt.s32.totalorder %v8569_v42, 7 }
 0x1ae   : > { %6273 = vmatmul.mubr.f32.gmra.mrb[44].mxu0 %v8507_v45  ;;  %v8515_v51 = vmax.f32 %v569_v46, 0.0 }
 0x1af   : > { %v8513_v49 = vmax.f32 %v564_v48, 0.0  ;;  %v6197_v50 = vpop.f32.mrb[14].mxu0 }
 0x1b0   : > { %9946 = vst [vmem:[#allocation29_spill] sm:$0xff] %v8515_v51  ;;  %v579_v52 = vadd.f32 %v6197_v50, %v8461_v7  ;;  %v573_v53 = vpop.f32.mrb[15].mxu0 }
 0x1b1   : > { %9945 = vst [vmem:[#allocation28_spill] sm:$0xff] %v8513_v49  ;;  %v574_v54 = vadd.f32 %v8461_v7, %v573_v53  ;;  %6275 = vmatprep.mubr.f32.mxu0 %v8513_v49 }
 0x1b2   : > { %6276 = vmatmul.mubr.f32.gmra.mrb[46].mxu0 %v8515_v51  ;;  %v8523_v57 = vmax.f32 %v579_v52, 0.0  ;;  %v697_v52 = vadd.s32 16, %v8569_v42 }
 0x1b3   : > { %v8521_v55 = vmax.f32 %v574_v54, 0.0  ;;  %v6200_v56 = vpop.f32.mrb[16].mxu0  ;;  %v699_v54 = vadd.s32 32, %v8569_v42 }
 0x1b4   : > { %9948 = vst [vmem:[#allocation31_spill] sm:$0xff] %v8523_v57  ;;  %v589_v58 = vadd.f32 %v6200_v56, %v8461_v7  ;;  %v583_v59 = vpop.f32.mrb[17].mxu0 }
 0x1b5   : > { %9947 = vst [vmem:[#allocation30_spill] sm:$0xff] %v8521_v55  ;;  %v584_v60 = vadd.f32 %v8461_v7, %v583_v59  ;;  %6278 = vmatprep.mubr.f32.mxu0 %v8521_v55 }
 0x1b6   : > { %6279 = vmatmul.mubr.f32.gmra.mrb[48].mxu0 %v8523_v57  ;;  %v8531_v63 = vmax.f32 %v589_v58, 0.0 }
 0x1b7   : > { %v8529_v61 = vmax.f32 %v584_v60, 0.0  ;;  %v6203_v62 = vpop.f32.mrb[18].mxu0 }
 0x1b8   : > { %9950 = vst [vmem:[#allocation33_spill] sm:$0xff] %v8531_v63  ;;  %v599_v0 = vadd.f32 %v6203_v62, %v8461_v7  ;;  %v593_v1 = vpop.f32.mrb[19].mxu0 }
 0x1b9   : > { %9949 = vst [vmem:[#allocation32_spill] sm:$0xff] %v8529_v61  ;;  %v594_v2 = vadd.f32 %v8461_v7, %v593_v1  ;;  %6281 = vmatprep.mubr.f32.mxu0 %v8529_v61  ;;  %v731_v1 = vand.u32 15, %v8569_v42 }
 0x1ba   : > { %6282 = vmatmul.mubr.f32.gmra.mrb[50].mxu0 %v8531_v63  ;;  %v8539_v8 = vmax.f32 %v599_v0, 0.0  ;;  %v745_v0 = vand.u32 15, %v697_v52 }
 0x1bb   : > { %v8537_v4 = vmax.f32 %v594_v2, 0.0  ;;  %v6206_v5 = vpop.f32.mrb[20].mxu0  ;;  %vm8604_vm2 = vcmp.ge.s32.totalorder %v731_v1, 1  ;;  %v1243_v1 = vrot.slane %v8481_v25, 7 }
 0x1bc   : > { %9952 = vst [vmem:[#allocation35_spill] sm:$0xff] %v8539_v8  ;;  %v609_v9 = vadd.f32 %v6206_v5, %v8461_v7  ;;  %v603_v10 = vpop.f32.mrb[21].mxu0  ;;  %v759_v5 = vand.u32 15, %v699_v54  ;;  %vm8599_vm1 = vcmp.ge.s32.totalorder %v745_v0, 1  ;;  %v703_v54 = vadd.s32 64, %v8569_v42 }
 0x1bd   : > { %9951 = vst [vmem:[#allocation34_spill] sm:$0xff] %v8537_v4  ;;  %v604_v11 = vadd.f32 %v8461_v7, %v603_v10  ;;  %6284 = vmatprep.mubr.f32.mxu0 %v8537_v4  ;;  %v701_v10 = vadd.s32 48, %v8569_v42 }
 0x1be   : > { %6285 = vmatmul.mubr.f32.gmra.mrb[52].mxu0 %v8539_v8  ;;  %v8547_v17 = vmax.f32 %v609_v9, 0.0  ;;  %vm8609_vm3 = vcmp.ge.s32.totalorder %v759_v5, 1  ;;  %v2210_v5 = vld [vmem:[#allocation7 + $0x128] sm:$0xff] }
 0x1bf   : > { %v8545_v13 = vmax.f32 %v604_v11, 0.0  ;;  %v6209_v15 = vpop.f32.mrb[22].mxu0 }
 0x1c0   : > { %9954 = vst [vmem:[#allocation37_spill] sm:$0xff] %v8547_v17  ;;  %v619_v18 = vadd.f32 %v6209_v15, %v8461_v7  ;;  %v613_v20 = vpop.f32.mrb[23].mxu0  ;;  %v1239_v15 = vrot.slane %v8465_v12, 7 }
 0x1c1   : > { %9953 = vst [vmem:[#allocation36_spill] sm:$0xff] %v8545_v13  ;;  %v614_v22 = vadd.f32 %v8461_v7, %v613_v20  ;;  %6287 = vmatprep.mubr.f32.mxu0 %v8545_v13  ;;  %v2852_v20 = vld [vmem:[#allocation7 + $0x218] sm:$0xff] }
 0x1c2   : > { %6288 = vmatmul.mubr.f32.gmra.mrb[54].mxu0 %v8547_v17  ;;  %v8555_v26 = vmax.f32 %v619_v18, 0.0  ;;  %v1240_v18 = vrot.slane %v8467_v14, 7 }
 0x1c3   : > { %v8553_v23 = vmax.f32 %v614_v22, 0.0  ;;  %v6212_v24 = vpop.f32.mrb[24].mxu0  ;;  %v9964_v22 = vmov 0 }
 0x1c4   : > { %9956 = vst [vmem:[#allocation39_spill] sm:$0xff] %v8555_v26  ;;  %v629_v28 = vadd.f32 %v6212_v24, %v8461_v7  ;;  %v623_v29 = vpop.f32.mrb[25].mxu0  ;;  %v9965_v22 = vsel %vm8599_vm1, 4294967295, %v9964_v22  ;;  %v1302_v52 = vsel %vm1271_vm0, %v1239_v15, %v1240_v18 }
 0x1c5   : > { %9955 = vst [vmem:[#allocation38_spill] sm:$0xff] %v8553_v23  ;;  %v624_v30 = vadd.f32 %v8461_v7, %v623_v29  ;;  %6290 = vmatprep.mubr.f32.mxu0 %v8553_v23  ;;  %v1241_v29 = vrot.slane %v8473_v19, 7 }
 0x1c6   : > { %6291 = vmatmul.mubr.f32.gmra.mrb[56].mxu0 %v8555_v26  ;;  %v8563_v36 = vmax.f32 %v629_v28, 0.0  ;;  %v9966_v28 = vmov 0 }
 0x1c7   : > { %v8561_v34 = vmax.f32 %v624_v30, 0.0  ;;  %v6215_v35 = vpop.f32.mrb[26].mxu0  ;;  %v9967_v28 = vsel %vm8604_vm2, 4294967295, %v9966_v28  ;;  %v2207_v30 = vld [vmem:[#allocation7 + $0x110] sm:$0xff]  ;;  %v8632_v0 = vsel %vm1271_vm0, %v1240_v18, %v1241_v29 }
 0x1c8   : > { %9958 = vst [vmem:[#allocation41_spill] sm:$0xff] %v8563_v36  ;;  %v639_v38 = vadd.f32 %v6215_v35, %v8461_v7  ;;  %v633_v40 = vpop.f32.mrb[27].mxu0  ;;  %v9968_v35 = vmov 0 }
 0x1c9   : > { %9957 = vst [vmem:[#allocation40_spill] sm:$0xff] %v8561_v34  ;;  %v634_v41 = vadd.f32 %v8461_v7, %v633_v40  ;;  %6293 = vmatprep.mubr.f32.mxu0 %v8561_v34  ;;  %v9969_v35 = vsel %vm8609_vm3, 4294967295, %v9968_v35 }
 0x1ca   : > { %6294 = vmatmul.mubr.f32.gmra.mrb[58].mxu0 %v8563_v36  ;;  %v8573_v47 = vmax.f32 %v639_v38, 0.0  ;;  %9970 = vst [vmem:[#allocation47_spill] sm:$0xff] %v9969_v35  ;;  %v2216_v35 = vld [vmem:[#allocation7 + $0x158] sm:$0xff] }
 0x1cb   : > { %v8571_v44 = vmax.f32 %v634_v41, 0.0  ;;  %v6218_v46 = vpop.f32.mrb[28].mxu0 }
 0x1cc   : > { %9960 = vst [vmem:[#allocation43_spill] sm:$0xff] %v8573_v47  ;;  %v649_v48 = vadd.f32 %v6218_v46, %v8461_v7  ;;  %v643_v50 = vpop.f32.mrb[29].mxu0  ;;  %v773_v46 = vand.u32 15, %v701_v10 }
 0x1cd   : > { %9959 = vst [vmem:[#allocation42_spill] sm:$0xff] %v8571_v44  ;;  %v644_v53 = vadd.f32 %v8461_v7, %v643_v50  ;;  %6296 = vmatprep.mubr.f32.mxu0 %v8571_v44  ;;  %v9823_v50 = vrot.slane %v8465_v12, 1 }
 0x1ce   : > { %6297 = vmatmul.mubr.f32.gmra.mrb[60].mxu0 %v8573_v47  ;;  %v8583_v59 = vmax.f32 %v649_v48, 0.0  ;;  %vm8665_vm5 = vcmp.ge.s32.totalorder %v773_v46, 1 }
 0x1cf   : > { %v8581_v56 = vmax.f32 %v644_v53, 0.0  ;;  %v6221_v58 = vpop.f32.mrb[30].mxu0  ;;  %v1242_v53 = vrot.slane %v8475_v21, 7 }
 0x1d0   : > { %9962 = vst [vmem:[#allocation45_spill] sm:$0xff] %v8583_v59  ;;  %v659_v60 = vadd.f32 %v6221_v58, %v8461_v7  ;;  %v653_v62 = vpop.f32.mrb[31].mxu0  ;;  %v2853_v58 = vld [vmem:[#allocation7 + $0x220] sm:$0xff] }
 0x1d1   : > { %9961 = vst [vmem:[#allocation44_spill] sm:$0xff] %v8581_v56  ;;  %v654_v2 = vadd.f32 %v8461_v7, %v653_v62  ;;  %6299 = vmatprep.mubr.f32.mxu0 %v8581_v56  ;;  %v2851_v7 = vld [vmem:[#allocation7 + $0x210] sm:$0xff]  ;;  %v7202_v62 = vpack.c.bf16 %v2208_v32, %v2207_v30  ;;  %v8657_v18 = vsel %vm1271_vm0, %v1241_v29, %v1242_v53  ;;  %v1245_v29 = vrot.slane %v8489_v31, 7 }
 0x1d2   : > { %v8589_v9 = vmax.f32 %v659_v60, 0.0  ;;  %6300 = vmatmul.mubr.f32.gmra.mrb[62].mxu0 %v8583_v59  ;;  %v7266_v48 = vpack.c.bf16 %v2852_v20, %v2851_v7  ;;  %v2854_v60 = vld [vmem:[#allocation7 + $0x228] sm:$0xff]  ;;  %v1244_v7 = vrot.slane %v8483_v27, 7  ;;  %v787_v20 = vand.u32 15, %v703_v54  ;;  %v2855_v30 = vld [vmem:[#allocation7 + $0x230] sm:$0xff] }
 0x1d3   : > { %v8593_v11 = vmax.f32 %v654_v2, 0.0  ;;  %6334 = vmatprep.mubr.f32.mxu0 %v9824_v16  ;;  %v2209_v2 = vld [vmem:[#allocation7 + $0x120] sm:$0xff]  ;;  %v2211_v54 = vld [vmem:[#allocation7 + $0x130] sm:$0xff] }
 0x1d4   : > { %9963 = vst [vmem:[#allocation46_spill] sm:$0xff] %v8589_v9  ;;  %v9826_v24 = vrot.slane %v8589_v9, 7  ;;  %v2042_v40 = vrot.slane %v8589_v9, 1  ;;  %v7206_v32 = vpack.c.bf16 %v2210_v5, %v2209_v2  ;;  %v8680_v46 = vsel %vm1271_vm0, %v1243_v1, %v1244_v7  ;;  %v2857_v2 = vld [vmem:[#allocation7 + $0x240] sm:$0xff] }
 0x1d5   : > { %v9822_v38 = vrot.slane %v8593_v11, 1  ;;  %9975 = vst [vmem:[#allocation50_spill] sm:$0xff] %v8680_v46  ;;  %vm8682_vm6 = vcmp.ge.s32.totalorder %v787_v20, 1  ;;  %v707_v20 = vadd.s32 96, %v8569_v42 }
 0x1d6   : > { %6335 = vmatmul.mubr.f32.vlgmr.msra.gmra.mrb[32].mxu0 %v9824_v16  ;;  %v1303_v41 = vsel %vm1271_vm0, %v9826_v24, %v1239_v15  ;;  %v8646_v15 = vsel %vm9845_vm4, %v2042_v40, %v9823_v50  ;;  %v2214_v50 = vld [vmem:[#allocation7 + $0x148] sm:$0xff]  ;;  %v2860_v16 = vld [vmem:[#allocation7 + $0x258] sm:$0xff] }
 0x1d7   : > { %6337 = vmatprep.mubr.msk.f32.mxu0 %vm8599_vm1, %v1303_v41  ;;  %6494 = vmatprep.mubr.msk.f32.mxu1 %vm8604_vm2, %v1303_v41  ;;  %v8640_v10 = vsel %vm9845_vm4, %v9822_v38, %v2042_v40  ;;  %9971 = vst [vmem:[#allocation48_spill] sm:$0xff] %v8646_v15  ;;  %v8663_v40 = vsel %vm1271_vm0, %v1242_v53, %v1243_v1  ;;  %v9972_v41 = vmov 0  ;;  %v2213_v38 = vld [vmem:[#allocation7 + $0x140] sm:$0xff]  ;;  %v815_v24 = vand.u32 15, %v707_v20  ;;  %v2862_v20 = vld [vmem:[#allocation7 + $0x268] sm:$0xff] }
 0x1d8   : > { %6495 = vmatmul.mubr.f32.vlgmr.msra.gmra.mrb[0].mxu1 %v1302_v52  ;;  %7201 = vmatpush3.bf16.msra.mxu0 %v8455_v6  ;;  %v7270_v6 = vpack.c.bf16 %v2854_v60, %v2853_v58  ;;  %v9973_v41 = vsel %vm8665_vm5, 4294967295, %v9972_v41  ;;  %v2212_v58 = vld [vmem:[#allocation7 + $0x138] sm:$0xff]  ;;  %v9976_v60 = vmov 0 }
 0x1d9   : > { %7265 = vmatpush3.bf16.msra.mxu1 %v8452_v3  ;;  %6497 = vmatprep.mubr.msk.f32.mxu1 %vm8599_vm1, %v8632_v0  ;;  %v2856_v3 = vld [vmem:[#allocation7 + $0x238] sm:$0xff]  ;;  %9974 = vst [vmem:[#allocation49_spill] sm:$0xff] %v9973_v41  ;;  %v9977_v60 = vsel %vm8682_vm6, 4294967295, %v9976_v60  ;;  %v7210_v5 = vpack.c.bf16 %v2212_v58, %v2211_v54  ;;  %v2859_v58 = vld [vmem:[#allocation7 + $0x250] sm:$0xff]  ;;  %vm8734_vm8 = vcmp.ge.s32.totalorder %v815_v24, 1 }
 0x1da   : > { %6338 = vmatmul.mubr.f32.gmra.mrb[34].mxu0 %v1302_v52  ;;  %7267 = vmatprep.subr.bf16.mxu1 %v7266_v48  ;;  %v705_v52 = vadd.s32 80, %v8569_v42  ;;  %v7274_v53 = vpack.c.bf16 %v2856_v3, %v2855_v30  ;;  %9978 = vst [vmem:[#allocation51_spill] sm:$0xff] %v9977_v60  ;;  %v8690_v30 = vsel %vm1271_vm0, %v1244_v7, %v1245_v29  ;;  %v1247_v3 = vrot.slane %v8497_v37, 7  ;;  %v2215_v41 = vld [vmem:[#allocation7 + $0x150] sm:$0xff] }
 0x1db   : > { %6340 = vmatprep.mubr.msk.f32.mxu0 %vm8609_vm3, %v8632_v0  ;;  %7203 = vmatprep.subr.bf16.mxu0 %v7202_v62  ;;  %9979 = vst [vmem:[#allocation52_spill] sm:$0xff] %v8690_v30  ;;  %v7218_v60 = vpack.c.bf16 %v2216_v35, %v2215_v41  ;;  %v9991_v41 = vmov 0 }
 0x1dc   : > { %6498 = vmatmul.mubr.f32.gmra.mrb[2].mxu1 %v8657_v18  ;;  %7205 = vmatpush3.bf16.msra.mxu0 %v7202_v62  ;;  %v1246_v62 = vrot.slane %v8491_v33, 7  ;;  %v801_v1 = vand.u32 15, %v705_v52  ;;  %v709_v52 = vadd.s32 112, %v8569_v42 }
 0x1dd   : > { %6500 = vmatprep.mubr.msk.f32.mxu1 %vm8609_vm3, %v8663_v40  ;;  %7269 = vmatpush3.bf16.msra.mxu1 %v7266_v48  ;;  %v2858_v48 = vld [vmem:[#allocation7 + $0x248] sm:$0xff] }
 0x1de   : > { %6341 = vmatmul.mubr.f32.gmra.mrb[36].mxu0 %v8657_v18  ;;  %7271 = vmatprep.subr.bf16.mxu1 %v7270_v6  ;;  %v7278_v54 = vpack.c.bf16 %v2858_v48, %v2857_v2  ;;  %v8703_v7 = vsel %vm1271_vm0, %v1245_v29, %v1246_v62  ;;  %v8710_v2 = vsel %vm1271_vm0, %v1246_v62, %v1247_v3  ;;  %vm8712_vm7 = vcmp.ge.s32.totalorder %v801_v1, 1  ;;  %v2861_v1 = vld [vmem:[#allocation7 + $0x260] sm:$0xff] }
 0x1df   : > { %6343 = vmatprep.mubr.msk.f32.mxu0 %vm8665_vm5, %v8663_v40  ;;  %7207 = vmatprep.subr.bf16.mxu0 %v7206_v32  ;;  %9980 = vst [vmem:[#allocation53_spill] sm:$0xff] %v8703_v7  ;;  %9981 = vst [vmem:[#allocation54_spill] sm:$0xff] %v8710_v2  ;;  %v9982_v48 = vmov 0  ;;  %v1249_v29 = vrot.slane %v8505_v43, 7  ;;  %v1250_v62 = vrot.slane %v8507_v45, 7  ;;  %v7286_v35 = vpack.c.bf16 %v2862_v20, %v2861_v1 }
 0x1e0   : > { %6501 = vmatmul.mubr.f32.gmra.mrb[4].mxu1 %v8680_v46  ;;  %7209 = vmatpush3.bf16.msra.mxu0 %v7206_v32  ;;  %v1248_v32 = vrot.slane %v8499_v39, 7  ;;  %v9983_v48 = vsel %vm8712_vm7, 4294967295, %v9982_v48  ;;  %v1253_v20 = vrot.slane %v8521_v55, 7 }
 0x1e1   : > { %6503 = vmatprep.mubr.msk.f32.mxu1 %vm8665_vm5, %v8690_v30  ;;  %7273 = vmatpush3.bf16.msra.mxu1 %v7270_v6  ;;  %v7214_v6 = vpack.c.bf16 %v2214_v50, %v2213_v38  ;;  %9984 = vst [vmem:[#allocation55_spill] sm:$0xff] %v9983_v48  ;;  %v7282_v38 = vpack.c.bf16 %v2860_v16, %v2859_v58  ;;  %v711_v58 = vadd.s32 128, %v8569_v42  ;;  %v2864_v48 = vld [vmem:[#allocation7 + $0x278] sm:$0xff] }
 0x1e2   : > { %6344 = vmatmul.mubr.f32.gmra.mrb[38].mxu0 %v8680_v46  ;;  %7275 = vmatprep.subr.bf16.mxu1 %v7274_v53  ;;  %v8726_v50 = vsel %vm1271_vm0, %v1247_v3, %v1248_v32  ;;  %v8732_v16 = vsel %vm1271_vm0, %v1248_v32, %v1249_v29  ;;  %v1251_v3 = vrot.slane %v8513_v49, 7  ;;  %v8749_v24 = vsel %vm1271_vm0, %v1249_v29, %v1250_v62  ;;  %v7866_v46 = vld [vmem:[%s8404_s27] sm:$0xff] }
 0x1e3   : > { %6346 = vmatprep.mubr.msk.f32.mxu0 %vm8682_vm6, %v8690_v30  ;;  %7211 = vmatprep.subr.bf16.mxu0 %v7210_v5  ;;  %9985 = vst [vmem:[#allocation56_spill] sm:$0xff] %v8726_v50  ;;  %9986 = vst [vmem:[#allocation57_spill] sm:$0xff] %v8732_v16  ;;  %v1252_v32 = vrot.slane %v8515_v51, 7  ;;  %v843_v29 = vand.u32 15, %v711_v58  ;;  %v715_v58 = vadd.s32 160, %v8569_v42 }
 0x1e4   : > { %6504 = vmatmul.mubr.f32.gmra.mrb[6].mxu1 %v8703_v7  ;;  %7213 = vmatpush3.bf16.msra.mxu0 %v7210_v5  ;;  %v829_v5 = vand.u32 15, %v709_v52  ;;  %v2217_v52 = vld [vmem:[#allocation7 + $0x160] sm:$0xff]  ;;  %9990 = vst [vmem:[#allocation59_spill] sm:$0xff] %v8749_v24  ;;  %v8759_v1 = vsel %vm1271_vm0, %v1250_v62, %v1251_v3 }
 0x1e5   : > { %6506 = vmatprep.mubr.msk.f32.mxu1 %vm8682_vm6, %v8710_v2  ;;  %7277 = vmatpush3.bf16.msra.mxu1 %v7274_v53  ;;  %v9987_v53 = vmov 0  ;;  %9994 = vst [vmem:[#allocation61_spill] sm:$0xff] %v8759_v1  ;;  %v8772_v62 = vsel %vm1271_vm0, %v1251_v3, %v1252_v32  ;;  %vm8781_vm10 = vcmp.ge.s32.totalorder %v843_v29, 1  ;;  %v1255_v3 = vrot.slane %v8529_v61, 7 }
 0x1e6   : > { %6347 = vmatmul.mubr.f32.gmra.mrb[40].mxu0 %v8703_v7  ;;  %7279 = vmatprep.subr.bf16.mxu1 %v7278_v54  ;;  %v9988_v53 = vsel %vm8734_vm8, 4294967295, %v9987_v53  ;;  %vm8751_vm9 = vcmp.ge.s32.totalorder %v829_v5, 1  ;;  %v713_v5 = vadd.s32 144, %v8569_v42  ;;  %9995 = vst [vmem:[#allocation62_spill] sm:$0xff] %v8772_v62  ;;  %v1257_v29 = vrot.slane %v8537_v4, 7 }
 0x1e7   : > { %6349 = vmatprep.mubr.msk.f32.mxu0 %vm8712_vm7, %v8710_v2  ;;  %7215 = vmatprep.subr.bf16.mxu0 %v7214_v6  ;;  %9989 = vst [vmem:[#allocation58_spill] sm:$0xff] %v9988_v53  ;;  %v2218_v2 = vld [vmem:[#allocation7 + $0x168] sm:$0xff]  ;;  %v9992_v41 = vsel %vm8751_vm9, 4294967295, %v9991_v41  ;;  %v3219_v53 = vld [vmem:[#allocation7 + $0x280] sm:$0xff] }
 0x1e8   : > { %6507 = vmatmul.mubr.f32.gmra.mrb[8].mxu1 %v8726_v50  ;;  %7217 = vmatpush3.bf16.msra.mxu0 %v7214_v6  ;;  %9993 = vst [vmem:[#allocation60_spill] sm:$0xff] %v9992_v41  ;;  %v2863_v6 = vld [vmem:[#allocation7 + $0x270] sm:$0xff]  ;;  %v3223_v41 = vld [vmem:[#allocation7 + $0x2a0] sm:$0xff] }
 0x1e9   : > { %6509 = vmatprep.mubr.msk.f32.mxu1 %vm8712_vm7, %v8732_v16  ;;  %7281 = vmatpush3.bf16.msra.mxu1 %v7278_v54  ;;  %v7222_v54 = vpack.c.bf16 %v2218_v2, %v2217_v52  ;;  %v7290_v2 = vpack.c.bf16 %v2864_v48, %v2863_v6  ;;  %v8779_v48 = vsel %vm1271_vm0, %v1252_v32, %v1253_v20  ;;  %v9997_v6 = vmov 0 }
 0x1ea   : > { %6350 = vmatmul.mubr.f32.gmra.mrb[42].mxu0 %v8726_v50  ;;  %7283 = vmatprep.subr.bf16.mxu1 %v7282_v38  ;;  %v2220_v50 = vld [vmem:[#allocation7 + $0x178] sm:$0xff]  ;;  %9996 = vst [vmem:[#allocation63_spill] sm:$0xff] %v8779_v48  ;;  %v9998_v6 = vsel %vm8781_vm10, 4294967295, %v9997_v6  ;;  %v1256_v32 = vrot.slane %v8531_v63, 7 }
 0x1eb   : > { %6352 = vmatprep.mubr.msk.f32.mxu0 %vm8734_vm8, %v8732_v16  ;;  %7219 = vmatprep.subr.bf16.mxu0 %v7218_v60  ;;  %v2219_v16 = vld [vmem:[#allocation7 + $0x170] sm:$0xff]  ;;  %9999 = vst [vmem:[#allocation64_spill] sm:$0xff] %v9998_v6  ;;  %v1261_v6 = vrot.slane %v8553_v23, 7 }
 0x1ec   : > { %6510 = vmatmul.mubr.f32.gmra.mrb[10].mxu1 %v8749_v24  ;;  %7221 = vmatpush3.bf16.msra.mxu0 %v7218_v60  ;;  %v1254_v60 = vrot.slane %v8523_v57, 7  ;;  %v7226_v52 = vpack.c.bf16 %v2220_v50, %v2219_v16 }
 0x1ed   : > { %6512 = vmatprep.mubr.msk.f32.mxu1 %vm8734_vm8, %v8759_v1  ;;  %7285 = vmatpush3.bf16.msra.mxu1 %v7282_v38  ;;  %v3220_v38 = vld [vmem:[#allocation7 + $0x288] sm:$0xff] }
 0x1ee   : > { %6353 = vmatmul.mubr.f32.gmra.mrb[44].mxu0 %v8749_v24  ;;  %7287 = vmatprep.subr.bf16.mxu1 %v7286_v35  ;;  %v8790_v50 = vpack.c.bf16 %v3220_v38, %v3219_v53  ;;  %v8797_v16 = vsel %vm1271_vm0, %v1253_v20, %v1254_v60  ;;  %v10002_v53 = vmov 0  ;;  %v10006_v20 = vmov 0  ;;  %v3622_v24 = vld [vmem:[#allocation7 + $0x308] sm:$0xff] }
 0x1ef   : > { %6355 = vmatprep.mubr.msk.f32.mxu0 %vm8751_vm9, %v8759_v1  ;;  %7223 = vmatprep.subr.bf16.mxu0 %v7222_v54  ;;  %v857_v1 = vand.u32 15, %v713_v5  ;;  %10000 = vst [vmem:[#allocation65_spill] sm:$0xff] %v8797_v16  ;;  %v717_v5 = vadd.s32 176, %v8569_v42  ;;  %v719_v38 = vadd.s32 192, %v8569_v42 }
 0x1f0   : > { %6513 = vmatmul.mubr.f32.gmra.mrb[12].mxu1 %v8772_v62  ;;  %7225 = vmatpush3.bf16.msra.mxu0 %v7222_v54  ;;  %v871_v54 = vand.u32 15, %v715_v58  ;;  %v1259_v58 = vrot.slane %v8545_v13, 7 }
 0x1f1   : > { %6515 = vmatprep.mubr.msk.f32.mxu1 %vm8751_vm9, %v8779_v48  ;;  %7289 = vmatpush3.bf16.msra.mxu1 %v7286_v35  ;;  %v8803_v35 = vsel %vm1271_vm0, %v1254_v60, %v1255_v3  ;;  %vm8805_vm11 = vcmp.ge.s32.totalorder %v857_v1, 1  ;;  %v8821_v1 = vsel %vm1271_vm0, %v1255_v3, %v1256_v32  ;;  %v1258_v60 = vrot.slane %v8539_v8, 7 }
 0x1f2   : > { %6356 = vmatmul.mubr.f32.gmra.mrb[46].mxu0 %v8772_v62  ;;  %7291 = vmatprep.subr.bf16.mxu1 %v7290_v2  ;;  %10001 = vst [vmem:[#allocation66_spill] sm:$0xff] %v8803_v35  ;;  %v10003_v53 = vsel %vm8805_vm11, 4294967295, %v10002_v53  ;;  %10005 = vst [vmem:[#allocation68_spill] sm:$0xff] %v8821_v1  ;;  %vm8823_vm12 = vcmp.ge.s32.totalorder %v871_v54, 1  ;;  %v721_v54 = vadd.s32 208, %v8569_v42  ;;  %v3234_v62 = vld [vmem:[#allocation7 + $0x2f8] sm:$0xff] }
 0x1f3   : > { %6358 = vmatprep.mubr.msk.f32.mxu0 %vm8781_vm10, %v8779_v48  ;;  %7227 = vmatprep.subr.bf16.mxu0 %v7226_v52  ;;  %10004 = vst [vmem:[#allocation67_spill] sm:$0xff] %v10003_v53  ;;  %v10007_v20 = vsel %vm8823_vm12, 4294967295, %v10006_v20  ;;  %v8844_v3 = vsel %vm1271_vm0, %v1257_v29, %v1258_v60  ;;  %v10012_v53 = vmov 0  ;;  %v3232_v48 = vld [vmem:[#allocation7 + $0x2e8] sm:$0xff] }
 0x1f4   : > { %6516 = vmatmul.mubr.f32.gmra.mrb[14].mxu1 %v8797_v16  ;;  %7229 = vmatpush3.bf16.msra.mxu0 %v7226_v52  ;;  %10008 = vst [vmem:[#allocation69_spill] sm:$0xff] %v10007_v20  ;;  %v885_v52 = vand.u32 15, %v717_v5  ;;  %10010 = vst [vmem:[#allocation71_spill] sm:$0xff] %v8844_v3  ;;  %v8851_v5 = vsel %vm1271_vm0, %v1258_v60, %v1259_v58  ;;  %v1262_v60 = vrot.slane %v8555_v26, 7  ;;  %v10017_v20 = vmov 0 }
 0x1f5   : > { %6518 = vmatprep.mubr.msk.f32.mxu1 %vm8781_vm10, %v8803_v35  ;;  %7293 = vmatpush3.bf16.msra.mxu1 %v7290_v2  ;;  %v8831_v2 = vsel %vm1271_vm0, %v1256_v32, %v1257_v29  ;;  %v1260_v32 = vrot.slane %v8547_v17, 7  ;;  %10011 = vst [vmem:[#allocation72_spill] sm:$0xff] %v8851_v5 }
 0x1f6   : > { %6359 = vmatmul.mubr.f32.gmra.mrb[48].mxu0 %v8797_v16  ;;  %7295 = vmatprep.subr.bf16.mxu1 %v8790_v50  ;;  %10009 = vst [vmem:[#allocation70_spill] sm:$0xff] %v8831_v2  ;;  %vm8853_vm13 = vcmp.ge.s32.totalorder %v885_v52, 1  ;;  %v913_v52 = vand.u32 15, %v721_v54  ;;  %v3230_v16 = vld [vmem:[#allocation7 + $0x2d8] sm:$0xff] }
 0x1f7   : > { %6361 = vmatprep.mubr.msk.f32.mxu0 %vm8805_vm11, %v8803_v35  ;;  %v10013_v53 = vsel %vm8853_vm13, 4294967295, %v10012_v53  ;;  %v8867_v29 = vsel %vm1271_vm0, %v1259_v58, %v1260_v32  ;;  %v10021_v58 = vmov 0  ;;  %v3228_v35 = vld [vmem:[#allocation7 + $0x2c8] sm:$0xff] }
 0x1f8   : > { %6519 = vmatmul.mubr.f32.gmra.mrb[16].mxu1 %v8821_v1  ;;  %10014 = vst [vmem:[#allocation73_spill] sm:$0xff] %v10013_v53  ;;  %10015 = vst [vmem:[#allocation74_spill] sm:$0xff] %v8867_v29  ;;  %vm8892_vm15 = vcmp.ge.s32.totalorder %v913_v52, 1  ;;  %v1265_v53 = vrot.slane %v8571_v44, 7  ;;  %v10027_v52 = vmov 0 }
 0x1f9   : > { %6521 = vmatprep.mubr.msk.f32.mxu1 %vm8805_vm11, %v8831_v2  ;;  %v10022_v58 = vsel %vm8892_vm15, 4294967295, %v10021_v58 }
 0x1fa   : > { %6362 = vmatmul.mubr.f32.gmra.mrb[50].mxu0 %v8821_v1  ;;  %10023 = vst [vmem:[#allocation78_spill] sm:$0xff] %v10022_v58  ;;  %v698_v58 = vadd.s32 24, %v8569_v42  ;;  %v702_v1 = vadd.s32 56, %v8569_v42 }
 0x1fb   : > { %6364 = vmatprep.mubr.msk.f32.mxu0 %vm8823_vm12, %v8831_v2  ;;  %v899_v2 = vand.u32 15, %v719_v38  ;;  %v8873_v38 = vsel %vm1271_vm0, %v1260_v32, %v1261_v6  ;;  %v1264_v32 = vrot.slane %v8563_v36, 7 }
 0x1fc   : > { %6522 = vmatmul.mubr.f32.gmra.mrb[18].mxu1 %v8844_v3  ;;  %10016 = vst [vmem:[#allocation75_spill] sm:$0xff] %v8873_v38 }
 0x1fd   : > { %6524 = vmatprep.mubr.msk.f32.mxu1 %vm8823_vm12, %v8851_v5  ;;  %vm8875_vm14 = vcmp.ge.s32.totalorder %v899_v2, 1  ;;  %v8890_v2 = vsel %vm1271_vm0, %v1261_v6, %v1262_v60 }
 0x1fe   : > { %6365 = vmatmul.mubr.f32.gmra.mrb[52].mxu0 %v8844_v3  ;;  %v10018_v20 = vsel %vm8875_vm14, 4294967295, %v10017_v20  ;;  %v1263_v3 = vrot.slane %v8561_v34, 7  ;;  %10020 = vst [vmem:[#allocation77_spill] sm:$0xff] %v8890_v2 }
 0x1ff   : > { %6367 = vmatprep.mubr.msk.f32.mxu0 %vm8853_vm13, %v8851_v5  ;;  %10019 = vst [vmem:[#allocation76_spill] sm:$0xff] %v10018_v20  ;;  %v723_v5 = vadd.s32 224, %v8569_v42  ;;  %v1267_v20 = vrot.slane %v8581_v56, 7 }
 0x200   : > { %6525 = vmatmul.mubr.f32.gmra.mrb[20].mxu1 %v8867_v29  ;;  %v8900_v54 = vsel %vm1271_vm0, %v1262_v60, %v1263_v3  ;;  %v8913_v6 = vsel %vm1271_vm0, %v1263_v3, %v1264_v32  ;;  %v1266_v60 = vrot.slane %v8573_v47, 7 }
 0x201   : > { %6527 = vmatprep.mubr.msk.f32.mxu1 %vm8853_vm13, %v8873_v38  ;;  %10024 = vst [vmem:[#allocation79_spill] sm:$0xff] %v8900_v54  ;;  %10025 = vst [vmem:[#allocation80_spill] sm:$0xff] %v8913_v6 }
 0x202   : > { %6368 = vmatmul.mubr.f32.gmra.mrb[54].mxu0 %v8867_v29  ;;  %v927_v29 = vand.u32 15, %v723_v5  ;;  %v8919_v5 = vsel %vm1271_vm0, %v1264_v32, %v1265_v53  ;;  %v8935_v3 = vsel %vm1271_vm0, %v1265_v53, %v1266_v60  ;;  %v1269_v32 = vrot.slane %v8593_v11, 7 }
 0x203   : > { %6370 = vmatprep.mubr.msk.f32.mxu0 %vm8875_vm14, %v8873_v38  ;;  %v725_v38 = vadd.s32 240, %v8569_v42  ;;  %10026 = vst [vmem:[#allocation81_spill] sm:$0xff] %v8919_v5  ;;  %10030 = vst [vmem:[#allocation83_spill] sm:$0xff] %v8935_v3 }
 0x204   : > { %6528 = vmatmul.mubr.f32.gmra.mrb[22].mxu1 %v8890_v2  ;;  %vm8921_vm4 = vcmp.ge.s32.totalorder %v927_v29, 1  ;;  %v1268_v29 = vrot.slane %v8583_v59, 7 }
 0x205   : > { %6530 = vmatprep.mubr.msk.f32.mxu1 %vm8875_vm14, %v8900_v54  ;;  %v10028_v52 = vsel %vm8921_vm4, 4294967295, %v10027_v52 }
 0x206   : > { %6371 = vmatmul.mubr.f32.gmra.mrb[56].mxu0 %v8890_v2  ;;  %10029 = vst [vmem:[#allocation82_spill] sm:$0xff] %v10028_v52  ;;  %v941_v2 = vand.u32 15, %v725_v38  ;;  %v8941_v38 = vsel %vm1271_vm0, %v1266_v60, %v1267_v20  ;;  %v8951_v53 = vsel %vm1271_vm0, %v1267_v20, %v1268_v29  ;;  %v2012_v60 = vrot.slane %v8467_v14, 1 }
 0x207   : > { %6373 = vmatprep.mubr.msk.f32.mxu0 %vm8892_vm15, %v8900_v54  ;;  %10031 = vst [vmem:[#allocation84_spill] sm:$0xff] %v8941_v38  ;;  %10032 = vst [vmem:[#allocation85_spill] sm:$0xff] %v8951_v53  ;;  %v10034_v52 = vrot.slane %v8589_v9, 7 }
 0x208   : > { %6531 = vmatmul.mubr.f32.gmra.mrb[24].mxu1 %v8913_v6  ;;  %vm1205_vm14 = vcmp.ge.s32.totalorder %v941_v2, 1  ;;  %v8957_v2 = vsel %vm1271_vm0, %v1268_v29, %v1269_v32  ;;  %v3222_v29 = vld [vmem:[#allocation7 + $0x298] sm:$0xff] }
 0x209   : > { %6533 = vmatprep.mubr.msk.f32.mxu1 %vm8892_vm15, %v8919_v5  ;;  %10033 = vst [vmem:[#allocation86_spill] sm:$0xff] %v8957_v2  ;;  %v8966_v20 = vsel %vm1271_vm0, %v1269_v32, %v10034_v52  ;;  %vm10038_vm0 = vcmp.lt.s32.totalorder %v8569_v42, 7 }
 0x20a   : > { %6374 = vmatmul.mubr.f32.gmra.mrb[58].mxu0 %v8913_v6  ;;  %10035 = vst [vmem:[#allocation87_spill] sm:$0xff] %v8966_v20  ;;  %v3221_v6 = vld [vmem:[#allocation7 + $0x290] sm:$0xff]  ;;  %vm10062_vm8 = vmmov %vm10038_vm0 }
 0x20b   : > { %6376 = vmatprep.mubr.msk.f32.mxu0 %vm8921_vm4, %v8919_v5  ;;  %v700_v5 = vadd.s32 40, %v8569_v42  ;;  %v7298_v32 = vpack.c.bf16 %v3222_v29, %v3221_v6  ;;  %v2015_v6 = vrot.slane %v8481_v25, 1  ;;  %v3225_v29 = vld [vmem:[#allocation7 + $0x2b0] sm:$0xff] }
 0x20c   : > { %6534 = vmatmul.mubr.f32.gmra.mrb[26].mxu1 %v8935_v3 }
 0x20d   : > { %6536 = vmatprep.mubr.msk.f32.mxu1 %vm8921_vm4, %v8941_v38  ;;  %vm10041_vm4 = vmmov %vm10038_vm0 }
 0x20e   : > { %6377 = vmatmul.mubr.f32.gmra.mrb[60].mxu0 %v8935_v3  ;;  %v752_v3 = vand.u32 15, %v698_v58  ;;  %v2014_v58 = vrot.slane %v8475_v21, 1 }
 0x20f   : > { %6379 = vmatprep.mubr.msk.f32.mxu0 %vm1205_vm14, %v8941_v38  ;;  %v10036_v38 = vmov 0.0  }
 0x210   : > { %6537 = vmatmul.mubr.f32.gmra.mrb[28].mxu1 %v8951_v53 }
 0x211   : > { %6539 = vmatprep.mubr.msk.f32.mxu1 %vm1205_vm14, %v8957_v2  ;;  %v2013_v2 = vrot.slane %v8473_v19, 1  ;;  %vm8982_vm14 = vcmp.le.s32.totalorder %v752_v3, 14 }
 0x212   : > { %6380 = vmatmul.mubr.f32.gmra.mrb[62].mxu0 %v8951_v53  ;;  %v10037_v53 = vrot.slane %v8465_v12, 1 }
 0x213   : > { %6414 = vmatprep.mubr.f32.mxu0 %v10036_v38 }
 0x214   : > { %6540 = vmatmul.mubr.f32.gmra.mrb[30].mxu1 %v8966_v20  ;;  %v8978_v52 = vsel %vm10038_vm0, %v10037_v53, %v2012_v60  ;;  %v766_v20 = vand.u32 15, %v700_v5  ;;  %v9000_v5 = vsel %vm10041_vm4, %v2013_v2, %v2014_v58  ;;  %v780_v53 = vand.u32 15, %v702_v1  ;;  %vm10044_vm4 = vmmov %vm10038_vm0 }
 0x215   : > { %6574 = vmatprep.mubr.f32.mxu1 %v8465_v12  ;;  %v8992_v12 = vsel %vm10038_vm0, %v2012_v60, %v2013_v2  ;;  %v704_v60 = vadd.s32 72, %v8569_v42  ;;  %v9013_v2 = vsel %vm10044_vm4, %v2014_v58, %v2015_v6  ;;  %vm10047_vm4 = vmmov %vm10038_vm0  ;;  %v7892_v58 = vld [vmem:[%s8404_s27 + $0xd0] sm:$0xff] }
 0x216   : > { %6415 = vmatmul.mubr.f32.vlgmr.msra.gmra.mrb[32].mxu0 %v10036_v38  ;;  %v3224_v38 = vld [vmem:[#allocation7 + $0x2a8] sm:$0xff]  ;;  %vm9004_vm15 = vcmp.le.s32.totalorder %v766_v20, 14  ;;  %vm9025_vm13 = vcmp.le.s32.totalorder %v780_v53, 14 }
 0x217   : > { %6417 = vmatprep.mubr.f32.mxu0 %v8978_v52 }
 0x218   : > { %6575 = vmatmul.mubr.f32.vlgmr.msra.gmra.mrb[0].mxu1 %v8467_v14  ;;  %v2016_v14 = vrot.slane %v8483_v27, 1 }
 0x219   : > { %7297 = vmatpush3.bf16.msra.mxu1 %v8790_v50  ;;  %6577 = vmatprep.mubr.f32.mxu1 %v8473_v19  ;;  %v7302_v50 = vpack.c.bf16 %v3224_v38, %v3223_v41  ;;  %v3226_v19 = vld [vmem:[#allocation7 + $0x2b8] sm:$0xff]  ;;  %v2017_v41 = vrot.slane %v8489_v31, 1  ;;  %v2018_v38 = vrot.slane %v8491_v33, 1 }
 0x21a   : > { %6418 = vmatmul.mubr.msk.f32.gmra.mrb[34].mxu0 %vm8982_vm14, %v8992_v12  ;;  %7299 = vmatprep.subr.bf16.mxu1 %v7298_v32  ;;  %v9021_v1 = vsel %vm10038_vm0, %v2015_v6, %v2016_v14  ;;  %v7306_v20 = vpack.c.bf16 %v3226_v19, %v3225_v29  ;;  %v2019_v19 = vrot.slane %v8497_v37, 1 }
 0x21b   : > { %6420 = vmatprep.mubr.f32.mxu0 %v9000_v5  ;;  %v9034_v6 = vsel %vm10047_vm4, %v2016_v14, %v2017_v41  ;;  %v9042_v53 = vsel %vm10038_vm0, %v2017_v41, %v2018_v38  ;;  %vm10050_vm4 = vmmov %vm10038_vm0  ;;  %v7896_v14 = vld [vmem:[%s8404_s27 + $0xf0] sm:$0xff] }
 0x21c   : > { %6578 = vmatmul.mubr.f32.gmra.mrb[2].mxu1 %v8475_v21  ;;  %v3227_v21 = vld [vmem:[#allocation7 + $0x2c0] sm:$0xff]  ;;  %v9055_v41 = vsel %vm10050_vm4, %v2018_v38, %v2019_v19  ;;  %vm10053_vm4 = vmmov %vm10038_vm0 }
 0x21d   : > { %6580 = vmatprep.mubr.f32.mxu1 %v8481_v25  ;;  %7301 = vmatpush3.bf16.msra.mxu1 %v7298_v32  ;;  %v794_v32 = vand.u32 15, %v704_v60  ;;  %v706_v25 = vadd.s32 88, %v8569_v42  ;;  %v2020_v60 = vrot.slane %v8499_v39, 1  ;;  %v7310_v29 = vpack.c.bf16 %v3228_v35, %v3227_v21 }
 0x21e   : > { %6421 = vmatmul.mubr.msk.f32.gmra.mrb[36].mxu0 %vm9004_vm15, %v9013_v2  ;;  %7303 = vmatprep.subr.bf16.mxu1 %v7302_v50  ;;  %v2021_v21 = vrot.slane %v8505_v43, 1  ;;  %v2022_v35 = vrot.slane %v8507_v45, 1 }
 0x21f   : > { %6423 = vmatprep.mubr.f32.mxu0 %v9021_v1  ;;  %vm9046_vm12 = vcmp.le.s32.totalorder %v794_v32, 14 }
 0x220   : > { %6581 = vmatmul.mubr.f32.gmra.mrb[4].mxu1 %v8483_v27  ;;  %v3229_v27 = vld [vmem:[#allocation7 + $0x2d0] sm:$0xff] }
 0x221   : > { %6583 = vmatprep.mubr.f32.mxu1 %v8489_v31  ;;  %7305 = vmatpush3.bf16.msra.mxu1 %v7302_v50  ;;  %v808_v31 = vand.u32 15, %v706_v25  ;;  %v708_v50 = vadd.s32 104, %v8569_v42  ;;  %v9063_v25 = vsel %vm10038_vm0, %v2019_v19, %v2020_v60  ;;  %v7314_v32 = vpack.c.bf16 %v3230_v16, %v3229_v27 }
 0x222   : > { %6424 = vmatmul.mubr.msk.f32.gmra.mrb[38].mxu0 %vm9025_vm13, %v9034_v6  ;;  %7307 = vmatprep.subr.bf16.mxu1 %v7306_v20  ;;  %v9076_v19 = vsel %vm10053_vm4, %v2020_v60, %v2021_v21  ;;  %v2023_v27 = vrot.slane %v8513_v49, 1  ;;  %v2024_v16 = vrot.slane %v8515_v51, 1  ;;  %vm10056_vm4 = vmmov %vm10038_vm0 }
 0x223   : > { %6426 = vmatprep.mubr.f32.mxu0 %v9042_v53  ;;  %vm9067_vm11 = vcmp.le.s32.totalorder %v808_v31, 14  ;;  %v9084_v31 = vsel %vm10038_vm0, %v2021_v21, %v2022_v35 }
 0x224   : > { %6584 = vmatmul.mubr.f32.gmra.mrb[6].mxu1 %v8491_v33  ;;  %v3231_v33 = vld [vmem:[#allocation7 + $0x2e0] sm:$0xff]  ;;  %v9097_v21 = vsel %vm10056_vm4, %v2022_v35, %v2023_v27  ;;  %vm10059_vm4 = vmmov %vm10038_vm0 }
 0x225   : > { %6586 = vmatprep.mubr.f32.mxu1 %v8497_v37  ;;  %7309 = vmatpush3.bf16.msra.mxu1 %v7306_v20  ;;  %v822_v37 = vand.u32 15, %v708_v50  ;;  %v710_v20 = vadd.s32 120, %v8569_v42  ;;  %v7318_v50 = vpack.c.bf16 %v3232_v48, %v3231_v33  ;;  %v2025_v33 = vrot.slane %v8521_v55, 1 }
 0x226   : > { %6427 = vmatmul.mubr.msk.f32.gmra.mrb[40].mxu0 %vm9046_vm12, %v9055_v41  ;;  %7311 = vmatprep.subr.bf16.mxu1 %v7310_v29  ;;  %v2026_v48 = vrot.slane %v8523_v57, 1 }
 0x227   : > { %6429 = vmatprep.mubr.f32.mxu0 %v9063_v25  ;;  %vm9088_vm10 = vcmp.le.s32.totalorder %v822_v37, 14  ;;  %v9105_v37 = vsel %vm10038_vm0, %v2023_v27, %v2024_v16  ;;  %v9118_v27 = vsel %vm10059_vm4, %v2024_v16, %v2025_v33 }
 0x228   : > { %6587 = vmatmul.mubr.f32.gmra.mrb[8].mxu1 %v8499_v39  ;;  %v3233_v39 = vld [vmem:[#allocation7 + $0x2f0] sm:$0xff] }
 0x229   : > { %6589 = vmatprep.mubr.f32.mxu1 %v8505_v43  ;;  %7313 = vmatpush3.bf16.msra.mxu1 %v7310_v29  ;;  %v836_v43 = vand.u32 15, %v710_v20  ;;  %v712_v29 = vadd.s32 136, %v8569_v42  ;;  %v7322_v20 = vpack.c.bf16 %v3234_v62, %v3233_v39  ;;  %v2027_v39 = vrot.slane %v8529_v61, 1 }
 0x22a   : > { %6430 = vmatmul.mubr.msk.f32.gmra.mrb[42].mxu0 %vm9067_vm11, %v9076_v19  ;;  %7315 = vmatprep.subr.bf16.mxu1 %v7314_v32  ;;  %v2028_v62 = vrot.slane %v8531_v63, 1 }
 0x22b   : > { %6432 = vmatprep.mubr.f32.mxu0 %v9084_v31  ;;  %vm9109_vm9 = vcmp.le.s32.totalorder %v836_v43, 14  ;;  %v9126_v43 = vsel %vm10038_vm0, %v2025_v33, %v2026_v48  ;;  %v9141_v33 = vsel %vm10038_vm0, %v2026_v48, %v2027_v39 }
 0x22c   : > { %6590 = vmatmul.mubr.f32.gmra.mrb[10].mxu1 %v8507_v45  ;;  %v3621_v45 = vld [vmem:[#allocation7 + $0x300] sm:$0xff] }
 0x22d   : > { %6592 = vmatprep.mubr.f32.mxu1 %v8513_v49  ;;  %7317 = vmatpush3.bf16.msra.mxu1 %v7314_v32  ;;  %v850_v49 = vand.u32 15, %v712_v29  ;;  %v714_v32 = vadd.s32 152, %v8569_v42  ;;  %v9129_v29 = vpack.c.bf16 %v3622_v24, %v3621_v45  ;;  %v2029_v45 = vrot.slane %v8537_v4, 1 }
 0x22e   : > { %6433 = vmatmul.mubr.msk.f32.gmra.mrb[44].mxu0 %vm9088_vm10, %v9097_v21  ;;  %7319 = vmatprep.subr.bf16.mxu1 %v7318_v50  ;;  %v2030_v24 = vrot.slane %v8539_v8, 1 }
 0x22f   : > { %6435 = vmatprep.mubr.f32.mxu0 %v9105_v37  ;;  %vm9132_vm4 = vcmp.le.s32.totalorder %v850_v49, 14  ;;  %v9149_v49 = vsel %vm10062_vm8, %v2027_v39, %v2028_v62  ;;  %vm10065_vm8 = vmmov %vm10038_vm0 }
 0x230   : > { %6593 = vmatmul.mubr.f32.gmra.mrb[12].mxu1 %v8515_v51  ;;  %v9163_v39 = vsel %vm10065_vm8, %v2028_v62, %v2029_v45  ;;  %vm10068_vm8 = vmmov %vm10038_vm0 }
 0x231   : > { %6595 = vmatprep.mubr.f32.mxu1 %v8521_v55  ;;  %7321 = vmatpush3.bf16.msra.mxu1 %v7318_v50  ;;  %v864_v50 = vand.u32 15, %v714_v32  ;;  %v716_v55 = vadd.s32 168, %v8569_v42 }
 0x232   : > { %6436 = vmatmul.mubr.msk.f32.gmra.mrb[46].mxu0 %vm9109_vm9, %v9118_v27  ;;  %7323 = vmatprep.subr.bf16.mxu1 %v7322_v20 }
 0x233   : > { %6438 = vmatprep.mubr.f32.mxu0 %v9126_v43  ;;  %vm9154_vm7 = vcmp.le.s32.totalorder %v864_v50, 14  ;;  %v878_v32 = vand.u32 15, %v716_v55  ;;  %v9171_v50 = vsel %vm10038_vm0, %v2029_v45, %v2030_v24  ;;  %v2032_v55 = vrot.slane %v8547_v17, 1 }
 0x234   : > { %6596 = vmatmul.mubr.f32.gmra.mrb[14].mxu1 %v8523_v57  ;;  %v2033_v45 = vrot.slane %v8553_v23, 1 }
 0x235   : > { %6598 = vmatprep.mubr.f32.mxu1 %v8529_v61  ;;  %7325 = vmatpush3.bf16.msra.mxu1 %v7322_v20  ;;  %v718_v20 = vadd.s32 184, %v8569_v42  ;;  %v2031_v61 = vrot.slane %v8545_v13, 1  ;;  %vm9175_vm6 = vcmp.le.s32.totalorder %v878_v32, 14 }
 0x236   : > { %6439 = vmatmul.mubr.msk.f32.gmra.mrb[48].mxu0 %vm9132_vm4, %v9141_v33  ;;  %7327 = vmatprep.subr.bf16.mxu1 %v9129_v29 }
 0x237   : > { %6441 = vmatprep.mubr.f32.mxu0 %v9149_v49  ;;  %v892_v62 = vand.u32 15, %v718_v20  ;;  %v9184_v57 = vsel %vm10068_vm8, %v2030_v24, %v2031_v61  ;;  %v9192_v32 = vsel %vm10038_vm0, %v2031_v61, %v2032_v55  ;;  %v2034_v20 = vrot.slane %v8555_v26, 1  ;;  %vm10071_vm8 = vmmov %vm10038_vm0 }
 0x238   : > { %6599 = vmatmul.mubr.f32.gmra.mrb[16].mxu1 %v8531_v63  ;;  %v720_v63 = vadd.s32 200, %v8569_v42  ;;  %v9205_v51 = vsel %vm10071_vm8, %v2032_v55, %v2033_v45  ;;  %v2035_v61 = vrot.slane %v8561_v34, 1  ;;  %vm10074_vm8 = vmmov %vm10038_vm0 }
 0x239   : > { %6601 = vmatprep.mubr.f32.mxu1 %v8537_v4  ;;  %vm9196_vm5 = vcmp.le.s32.totalorder %v892_v62, 14  ;;  %v9213_v62 = vsel %vm10038_vm0, %v2033_v45, %v2034_v20  ;;  %v2037_v45 = vrot.slane %v8571_v44, 1  ;;  %v4751_v4 = vld [vmem:[#allocation8 + $0x70] sm:$0xff] }
 0x23a   : > { %6442 = vmatmul.mubr.msk.f32.gmra.mrb[50].mxu0 %vm9154_vm7, %v9163_v39  ;;  %v906_v24 = vand.u32 15, %v720_v63  ;;  %v2036_v63 = vrot.slane %v8563_v36, 1  ;;  %v9226_v7 = vsel %vm10074_vm8, %v2034_v20, %v2035_v61  ;;  %vm10077_vm8 = vmmov %vm10038_vm0 }
 0x23b   : > { %6444 = vmatprep.mubr.f32.mxu0 %v9171_v50 }
 0x23c   : > { %6602 = vmatmul.mubr.f32.gmra.mrb[18].mxu1 %v8539_v8  ;;  %v722_v8 = vadd.s32 216, %v8569_v42  ;;  %vm9217_vm3 = vcmp.le.s32.totalorder %v906_v24, 14  ;;  %v9234_v24 = vsel %vm10038_vm0, %v2035_v61, %v2036_v63  ;;  %v9247_v30 = vsel %vm10077_vm8, %v2036_v63, %v2037_v45  ;;  %vm10081_vm8 = vmmov %vm10038_vm0 }
 0x23d   : > { %6604 = vmatprep.mubr.f32.mxu1 %v8545_v13  ;;  %v2039_v61 = vrot.slane %v8581_v56, 1  ;;  %v4752_v13 = vld [vmem:[#allocation8 + $0x78] sm:$0xff] }
 0x23e   : > { %6445 = vmatmul.mubr.msk.f32.gmra.mrb[52].mxu0 %vm9175_vm6, %v9184_v57  ;;  %v920_v55 = vand.u32 15, %v722_v8  ;;  %v2038_v8 = vrot.slane %v8573_v47, 1 }
 0x23f   : > { %6447 = vmatprep.mubr.f32.mxu0 %v9192_v32 }
 0x240   : > { %6605 = vmatmul.mubr.f32.gmra.mrb[20].mxu1 %v8547_v17  ;;  %v724_v17 = vadd.s32 232, %v8569_v42  ;;  %vm9238_vm1 = vcmp.le.s32.totalorder %v920_v55, 14  ;;  %v9255_v55 = vsel %vm10038_vm0, %v2037_v45, %v2038_v8  ;;  %v696_v45 = vadd.s32 8, %v8569_v42 }
 0x241   : > { %6607 = vmatprep.mubr.f32.mxu1 %v8553_v23  ;;  %v10072_v23 = vmov 0 }
 0x242   : > { %6448 = vmatmul.mubr.msk.f32.gmra.mrb[54].mxu0 %vm9196_vm5, %v9205_v51  ;;  %v10073_v23 = vsel %vm9217_vm3, 4294967295, %v10072_v23  ;;  %v934_v20 = vand.u32 15, %v724_v17  ;;  %v2040_v17 = vrot.slane %v8583_v59, 1 }
 0x243   : > { %6450 = vmatprep.mubr.f32.mxu0 %v9213_v62 }
 0x244   : > { %6608 = vmatmul.mubr.f32.gmra.mrb[22].mxu1 %v8555_v26  ;;  %v726_v26 = vadd.s32 248, %v8569_v42  ;;  %vm9259_vm2 = vcmp.le.s32.totalorder %v934_v20, 14  ;;  %v9275_v20 = vsel %vm10038_vm0, %v2039_v61, %v2040_v17 }
 0x245   : > { %6610 = vmatprep.mubr.f32.mxu1 %v8561_v34  ;;  %v10075_v34 = vmov 0 }
 0x246   : > { %6451 = vmatmul.mubr.msk.f32.gmra.mrb[56].mxu0 %vm9217_vm3, %v9226_v7  ;;  %v10076_v34 = vsel %vm9238_vm1, 4294967295, %v10075_v34  ;;  %v948_v63 = vand.u32 15, %v726_v26  ;;  %v10091_v26 = vld [vmem:[#allocation50_spill] sm:$0xff] }
 0x247   : > { %6453 = vmatprep.mubr.f32.mxu0 %v9234_v24 }
 0x248   : > { %6611 = vmatmul.mubr.f32.gmra.mrb[24].mxu1 %v8563_v36  ;;  %v9267_v36 = vsel %vm10081_vm8, %v2038_v8, %v2039_v61  ;;  %v10084_v8 = vrot.slane %v8593_v11, 1  ;;  %vm10085_vm8 = vmmov %vm10038_vm0  ;;  %v3623_v61 = vld [vmem:[#allocation7 + $0x310] sm:$0xff] }
 0x249   : > { %6613 = vmatprep.mubr.f32.mxu1 %v8571_v44  ;;  %v10078_v44 = vmov 0 }
 0x24a   : > { %6454 = vmatmul.mubr.msk.f32.gmra.mrb[58].mxu0 %vm9238_vm1, %v9247_v30  ;;  %v10079_v44 = vsel %vm9259_vm2, 4294967295, %v10078_v44  ;;  %vm9278_vm1 = vcmp.le.s32.totalorder %v948_v63, 14  ;;  %v3624_v63 = vld [vmem:[#allocation7 + $0x318] sm:$0xff] }
 0x24b   : > { %6456 = vmatprep.mubr.f32.mxu0 %v9255_v55  ;;  %10080 = vst [vmem:[#allocation88_spill] sm:$0xff] %v10079_v44  ;;  %v7330_v42 = vpack.c.bf16 %v3624_v63, %v3623_v61  ;;  %v3630_v61 = vld [vmem:[#allocation7 + $0x348] sm:$0xff]  ;;  %v3632_v63 = vld [vmem:[#allocation7 + $0x358] sm:$0xff] }
 0x24c   : > { %6614 = vmatmul.mubr.f32.gmra.mrb[26].mxu1 %v8573_v47  ;;  %v738_v47 = vand.u32 15, %v696_v45  ;;  %v3627_v45 = vld [vmem:[#allocation7 + $0x330] sm:$0xff] }
 0x24d   : > { %6616 = vmatprep.mubr.f32.mxu1 %v8581_v56  ;;  %v9288_v56 = vsel %vm10085_vm8, %v2040_v17, %v10084_v8  ;;  %v3625_v17 = vld [vmem:[#allocation7 + $0x320] sm:$0xff]  ;;  %v3626_v8 = vld [vmem:[#allocation7 + $0x328] sm:$0xff]  ;;  %vm10088_vm8 = vnez %v10076_v34 }
 0x24e   : > { %6457 = vmatmul.mubr.msk.f32.gmra.mrb[60].mxu0 %vm9259_vm2, %v9267_v36  ;;  %vm9296_vm0 = vcmp.le.s32.totalorder %v738_v47, 14 }
 0x24f   : > { %6459 = vmatprep.mubr.f32.mxu0 %v9275_v20 }
 0x250   : > { %6617 = vmatmul.mubr.f32.gmra.mrb[28].mxu1 %v8583_v59 }
 0x251   : > { %6619 = vmatprep.mubr.f32.mxu1 %v8593_v11 }
 0x252   : > { %6460 = vmatmul.mubr.msk.f32.gmra.mrb[62].mxu0 %vm9278_vm1, %v9288_v56 }
 0x253   : > { %6974 = vmatprep.mubr.f32.mxu0 %v7866_v46  ;;  %v7334_v46 = vpack.c.bf16 %v3626_v8, %v3625_v17  ;;  %v3634_v17 = vld [vmem:[#allocation7 + $0x368] sm:$0xff] }
 0x254   : > { %6620 = vmatmul.mubr.f32.gmra.mrb[30].mxu1 %v8589_v9  ;;  %v3628_v9 = vld [vmem:[#allocation7 + $0x338] sm:$0xff] }
 0x255   : > { %6654 = vmatprep.mubr.f32.mxu1 %v8978_v52  ;;  %v7338_v47 = vpack.c.bf16 %v3628_v9, %v3627_v45  ;;  %v3629_v52 = vld [vmem:[#allocation7 + $0x340] sm:$0xff]  ;;  %v3636_v45 = vld [vmem:[#allocation7 + $0x378] sm:$0xff] }
 0x258   : > { %6655 = vmatmul.mubr.msk.f32.vlgmr.msra.gmra.mrb[0].mxu1 %vm9296_vm0, %v8992_v12  ;;  %v7342_v12 = vpack.c.bf16 %v3630_v61, %v3629_v52  ;;  %v3991_v52 = vld [vmem:[#allocation7 + $0x380] sm:$0xff]  ;;  %v3992_v61 = vld [vmem:[#allocation7 + $0x388] sm:$0xff] }
 0x259   : > { %7329 = vmatpush3.bf16.msra.mxu1 %v9129_v29  ;;  %6657 = vmatprep.mubr.f32.mxu1 %v9000_v5  ;;  %v3631_v29 = vld [vmem:[#allocation7 + $0x350] sm:$0xff] }
 0x25a   : > { %7331 = vmatprep.subr.bf16.mxu1 %v7330_v42  ;;  %v7346_v9 = vpack.c.bf16 %v3632_v63, %v3631_v29  ;;  %v3993_v29 = vld [vmem:[#allocation7 + $0x390] sm:$0xff]  ;;  %v3994_v63 = vld [vmem:[#allocation7 + $0x398] sm:$0xff] }
 0x25c   : > { %6658 = vmatmul.mubr.msk.f32.gmra.mrb[2].mxu1 %vm8982_vm14, %v9013_v2 }
 0x25d   : > { %6660 = vmatprep.mubr.f32.mxu1 %v9021_v1  ;;  %7333 = vmatpush3.bf16.msra.mxu1 %v7330_v42  ;;  %v3633_v42 = vld [vmem:[#allocation7 + $0x360] sm:$0xff] }
 0x25e   : > { %7335 = vmatprep.subr.bf16.mxu1 %v7334_v46  ;;  %v7350_v8 = vpack.c.bf16 %v3634_v17, %v3633_v42  ;;  %v3995_v42 = vld [vmem:[#allocation7 + $0x3a0] sm:$0xff]  ;;  %v3996_v17 = vld [vmem:[#allocation7 + $0x3a8] sm:$0xff] }
 0x260   : > { %6661 = vmatmul.mubr.msk.f32.gmra.mrb[4].mxu1 %vm9004_vm15, %v9034_v6 }
 0x261   : > { %6663 = vmatprep.mubr.f32.mxu1 %v9042_v53  ;;  %7337 = vmatpush3.bf16.msra.mxu1 %v7334_v46  ;;  %v3635_v46 = vld [vmem:[#allocation7 + $0x370] sm:$0xff] }
 0x262   : > { %7339 = vmatprep.subr.bf16.mxu1 %v7338_v47 }
 0x264   : > { %6664 = vmatmul.mubr.msk.f32.gmra.mrb[6].mxu1 %vm9025_vm13, %v9055_v41 }
 0x265   : > { %6666 = vmatprep.mubr.f32.mxu1 %v9063_v25  ;;  %7341 = vmatpush3.bf16.msra.mxu1 %v7338_v47  ;;  %v7354_v47 = vpack.c.bf16 %v3636_v45, %v3635_v46  ;;  %v3997_v46 = vld [vmem:[#allocation7 + $0x3b0] sm:$0xff]  ;;  %v3998_v45 = vld [vmem:[#allocation7 + $0x3b8] sm:$0xff] }
 0x266   : > { %7343 = vmatprep.subr.bf16.mxu1 %v7342_v12 }
 0x268   : > { %6667 = vmatmul.mubr.msk.f32.gmra.mrb[8].mxu1 %vm9046_vm12, %v9076_v19 }
 0x269   : > { %6669 = vmatprep.mubr.f32.mxu1 %v9084_v31  ;;  %7345 = vmatpush3.bf16.msra.mxu1 %v7342_v12  ;;  %v7358_v12 = vpack.c.bf16 %v3992_v61, %v3991_v52  ;;  %v10093_v52 = vld [vmem:[#allocation47_spill] sm:$0xff]  ;;  %v10095_v61 = vld [vmem:[#allocation53_spill] sm:$0xff] }
 0x26a   : > { %7347 = vmatprep.subr.bf16.mxu1 %v7346_v9 }
 0x26c   : > { %6670 = vmatmul.mubr.msk.f32.gmra.mrb[10].mxu1 %vm9067_vm11, %v9097_v21 }
 0x26d   : > { %6672 = vmatprep.mubr.f32.mxu1 %v9105_v37  ;;  %7349 = vmatpush3.bf16.msra.mxu1 %v7346_v9  ;;  %v7362_v9 = vpack.c.bf16 %v3994_v63, %v3993_v29  ;;  %v4001_v29 = vld [vmem:[#allocation7 + $0x3d0] sm:$0xff]  ;;  %v4002_v63 = vld [vmem:[#allocation7 + $0x3d8] sm:$0xff] }
 0x26e   : > { %7351 = vmatprep.subr.bf16.mxu1 %v7350_v8 }
 0x270   : > { %6673 = vmatmul.mubr.msk.f32.gmra.mrb[12].mxu1 %vm9088_vm10, %v9118_v27 }
 0x271   : > { %6675 = vmatprep.mubr.f32.mxu1 %v9126_v43  ;;  %7353 = vmatpush3.bf16.msra.mxu1 %v7350_v8  ;;  %v7366_v8 = vpack.c.bf16 %v3996_v17, %v3995_v42  ;;  %v10099_v42 = vld [vmem:[#allocation56_spill] sm:$0xff]  ;;  %v10100_v17 = vld [vmem:[#allocation57_spill] sm:$0xff] }
 0x272   : > { %7355 = vmatprep.subr.bf16.mxu1 %v7354_v47 }
 0x274   : > { %6676 = vmatmul.mubr.msk.f32.gmra.mrb[14].mxu1 %vm9109_vm9, %v9141_v33 }
 0x275   : > { %6678 = vmatprep.mubr.f32.mxu1 %v9149_v49  ;;  %7357 = vmatpush3.bf16.msra.mxu1 %v7354_v47  ;;  %v10092_v47 = vld [vmem:[#allocation52_spill] sm:$0xff] }
 0x276   : > { %7359 = vmatprep.subr.bf16.mxu1 %v7358_v12 }
 0x278   : > { %6679 = vmatmul.mubr.msk.f32.gmra.mrb[16].mxu1 %vm9132_vm4, %v9163_v39 }
 0x279   : > { %6681 = vmatprep.mubr.f32.mxu1 %v9171_v50 }
 0x27c   : > { %6682 = vmatmul.mubr.msk.f32.gmra.mrb[18].mxu1 %vm9154_vm7, %v9184_v57 }
 0x27d   : > { %6684 = vmatprep.mubr.f32.mxu1 %v9192_v32 }
 0x280   : > { %6685 = vmatmul.mubr.msk.f32.gmra.mrb[20].mxu1 %vm9175_vm6, %v9205_v51 }
 0x281   : > { %6687 = vmatprep.mubr.f32.mxu1 %v9213_v62 }
 0x284   : > { %6688 = vmatmul.mubr.msk.f32.gmra.mrb[22].mxu1 %vm9196_vm5, %v9226_v7 }
 0x285   : > { %6690 = vmatprep.mubr.f32.mxu1 %v9234_v24 }
 0x288   : > { %6691 = vmatmul.mubr.msk.f32.gmra.mrb[24].mxu1 %vm9217_vm3, %v9247_v30  ;;  %vm10089_vm3 = vnez %v9967_v28  ;;  %v7370_v28 = vpack.c.bf16 %v3998_v45, %v3997_v46  ;;  %v4003_v46 = vld [vmem:[#allocation7 + $0x3e0] sm:$0xff]  ;;  %v4004_v45 = vld [vmem:[#allocation7 + $0x3e8] sm:$0xff] }
 0x289   : > { %6693 = vmatprep.mubr.f32.mxu1 %v9255_v55 }
 0x28c   : > { %6694 = vmatmul.mubr.msk.f32.gmra.mrb[26].mxu1 %vm10088_vm8, %v9267_v36 }
 0x28d   : > { %6696 = vmatprep.mubr.f32.mxu1 %v9275_v20 }
 0x290   : > { %6697 = vmatmul.mubr.msk.f32.gmra.mrb[28].mxu1 %vm9259_vm2, %v9288_v56  ;;  %vm10090_vm2 = vnez %v9965_v22  ;;  %v10097_v22 = vld [vmem:[#allocation49_spill] sm:$0xff] }
 0x291   : > { %6699 = vmatprep.mubr.f32.mxu1 %v8640_v10 }
 0x294   : > { %6700 = vmatmul.mubr.msk.f32.gmra.mrb[30].mxu1 %vm9278_vm1, %v8646_v15  ;;  %vm10094_vm1 = vnez %v10093_v52  ;;  %v10104_v52 = vld [vmem:[#allocation61_spill] sm:$0xff]  ;;  %v4399_v15 = vld [vmem:[#allocation7 + $0x430] sm:$0xff] }
 0x295   : > { %6734 = vmatprep.mubr.msk.f32.mxu1 %vm10089_vm3, %v8632_v0  ;;  %v3999_v0 = vld [vmem:[#allocation7 + $0x3c0] sm:$0xff] }
 0x298   : > { %6735 = vmatmul.mubr.f32.vlgmr.msra.gmra.mrb[0].mxu1 %v8657_v18  ;;  %v4000_v18 = vld [vmem:[#allocation7 + $0x3c8] sm:$0xff] }
 0x299   : > { %7361 = vmatpush3.bf16.msra.mxu1 %v7358_v12  ;;  %6737 = vmatprep.mubr.msk.f32.mxu1 %vm10090_vm2, %v8663_v40  ;;  %v10096_v12 = vld [vmem:[#allocation54_spill] sm:$0xff]  ;;  %vm10098_vm2 = vnez %v10097_v22  ;;  %v7374_v40 = vpack.c.bf16 %v4000_v18, %v3999_v0  ;;  %v4005_v0 = vld [vmem:[#allocation7 + $0x3f0] sm:$0xff]  ;;  %v4006_v18 = vld [vmem:[#allocation7 + $0x3f8] sm:$0xff] }
 0x29a   : > { %7363 = vmatprep.subr.bf16.mxu1 %v7362_v9  ;;  %v10108_v22 = vld [vmem:[#allocation63_spill] sm:$0xff] }
 0x29c   : > { %6738 = vmatmul.mubr.f32.gmra.mrb[2].mxu1 %v10091_v26  ;;  %v10101_v26 = vld [vmem:[#allocation51_spill] sm:$0xff] }
 0x29d   : > { %6740 = vmatprep.mubr.msk.f32.mxu1 %vm10094_vm1, %v10092_v47  ;;  %7365 = vmatpush3.bf16.msra.mxu1 %v7362_v9  ;;  %vm10102_vm3 = vnez %v10101_v26  ;;  %v7378_v9 = vpack.c.bf16 %v4002_v63, %v4001_v29  ;;  %v10103_v47 = vld [vmem:[#allocation59_spill] sm:$0xff]  ;;  %v4393_v29 = vld [vmem:[#allocation7 + $0x400] sm:$0xff] }
 0x29e   : > { %7367 = vmatprep.subr.bf16.mxu1 %v7366_v8  ;;  %v4394_v63 = vld [vmem:[#allocation7 + $0x408] sm:$0xff]  ;;  %v10112_v26 = vld [vmem:[#allocation66_spill] sm:$0xff] }
 0x2a0   : > { %6741 = vmatmul.mubr.f32.gmra.mrb[4].mxu1 %v10095_v61  ;;  %v10105_v61 = vld [vmem:[#allocation55_spill] sm:$0xff] }
 0x2a1   : > { %6743 = vmatprep.mubr.msk.f32.mxu1 %vm10098_vm2, %v10096_v12  ;;  %7369 = vmatpush3.bf16.msra.mxu1 %v7366_v8  ;;  %vm10106_vm1 = vnez %v10105_v61  ;;  %v7382_v8 = vpack.c.bf16 %v4004_v45, %v4003_v46  ;;  %v10107_v12 = vld [vmem:[#allocation62_spill] sm:$0xff]  ;;  %v10115_v46 = vld [vmem:[#allocation68_spill] sm:$0xff] }
 0x2a2   : > { %7371 = vmatprep.subr.bf16.mxu1 %v7370_v28  ;;  %v10116_v45 = vld [vmem:[#allocation70_spill] sm:$0xff]  ;;  %v10120_v61 = vld [vmem:[#allocation72_spill] sm:$0xff] }
 0x2a4   : > { %6744 = vmatmul.mubr.f32.gmra.mrb[6].mxu1 %v10099_v42  ;;  %v10109_v42 = vld [vmem:[#allocation58_spill] sm:$0xff] }
 0x2a5   : > { %6746 = vmatprep.mubr.msk.f32.mxu1 %vm10102_vm3, %v10100_v17  ;;  %7373 = vmatpush3.bf16.msra.mxu1 %v7370_v28  ;;  %vm10110_vm2 = vnez %v10109_v42  ;;  %v7386_v28 = vpack.c.bf16 %v4006_v18, %v4005_v0  ;;  %v10111_v17 = vld [vmem:[#allocation65_spill] sm:$0xff]  ;;  %v10121_v0 = vld [vmem:[#allocation67_spill] sm:$0xff]  ;;  %v10123_v18 = vld [vmem:[#allocation74_spill] sm:$0xff] }
 0x2a6   : > { %7375 = vmatprep.subr.bf16.mxu1 %v7374_v40  ;;  %v10128_v42 = vld [vmem:[#allocation79_spill] sm:$0xff] }
 0x2a8   : > { %6747 = vmatmul.mubr.f32.gmra.mrb[8].mxu1 %v10103_v47  ;;  %v10113_v47 = vld [vmem:[#allocation60_spill] sm:$0xff] }
 0x2a9   : > { %6749 = vmatprep.mubr.msk.f32.mxu1 %vm10106_vm1, %v10104_v52  ;;  %7377 = vmatpush3.bf16.msra.mxu1 %v7374_v40  ;;  %vm10114_vm3 = vnez %v10113_v47  ;;  %v7390_v40 = vpack.c.bf16 %v4394_v63, %v4393_v29  ;;  %v10117_v52 = vld [vmem:[#allocation64_spill] sm:$0xff]  ;;  %v10129_v29 = vld [vmem:[#allocation73_spill] sm:$0xff] }
 0x2aa   : > { %7379 = vmatprep.subr.bf16.mxu1 %v7378_v9  ;;  %vm10118_vm1 = vnez %v10117_v52  ;;  %vm10130_vm8 = vnez %v10129_v29  ;;  %v10132_v63 = vld [vmem:[#allocation81_spill] sm:$0xff]  ;;  %v10136_v47 = vld [vmem:[#allocation84_spill] sm:$0xff]  ;;  %v10140_v52 = vld [vmem:[#allocation86_spill] sm:$0xff] }
 0x2ab   : > { %v10145_v29 = vld [vmem:[#allocation18_spill] sm:$0xff] }
 0x2ac   : > { %6750 = vmatmul.mubr.f32.gmra.mrb[10].mxu1 %v10107_v12  ;;  %v10124_v12 = vld [vmem:[#allocation75_spill] sm:$0xff] }
 0x2ad   : > { %6752 = vmatprep.mubr.msk.f32.mxu1 %vm10110_vm2, %v10108_v22  ;;  %7381 = vmatpush3.bf16.msra.mxu1 %v7378_v9  ;;  %v10119_v9 = vld [vmem:[#allocation71_spill] sm:$0xff]  ;;  %vm10122_vm2 = vnez %v10121_v0  ;;  %v10127_v22 = vld [vmem:[#allocation77_spill] sm:$0xff]  ;;  %v10144_v0 = vmov 0.0  }
 0x2ae   : > { %7383 = vmatprep.subr.bf16.mxu1 %v7382_v8 }
 0x2b0   : > { %6753 = vmatmul.mubr.f32.gmra.mrb[12].mxu1 %v10111_v17  ;;  %v10133_v17 = vld [vmem:[#allocation76_spill] sm:$0xff] }
 0x2b1   : > { %6755 = vmatprep.mubr.msk.f32.mxu1 %vm10114_vm3, %v10112_v26  ;;  %7385 = vmatpush3.bf16.msra.mxu1 %v7382_v8  ;;  %v10125_v8 = vld [vmem:[#allocation69_spill] sm:$0xff]  ;;  %v10135_v26 = vld [vmem:[#allocation83_spill] sm:$0xff] }
 0x2b2   : > { %7387 = vmatprep.subr.bf16.mxu1 %v7386_v28  ;;  %vm10126_vm3 = vnez %v10125_v8  ;;  %v4753_v8 = vld [vmem:[#allocation10] sm:$0xff] }
 0x2b4   : > { %6756 = vmatmul.mubr.f32.gmra.mrb[14].mxu1 %v10115_v46  ;;  %v10137_v46 = vld [vmem:[#allocation78_spill] sm:$0xff] }
 0x2b5   : > { %6758 = vmatprep.mubr.msk.f32.mxu1 %vm10118_vm1, %v10116_v45  ;;  %7389 = vmatpush3.bf16.msra.mxu1 %v7386_v28  ;;  %v10131_v28 = vld [vmem:[#allocation80_spill] sm:$0xff]  ;;  %vm10134_vm1 = vnez %v10133_v17  ;;  %v10139_v45 = vld [vmem:[#allocation85_spill] sm:$0xff] }
 0x2b6   : > { %7391 = vmatprep.subr.bf16.mxu1 %v7390_v40 }
 0x2b8   : > { %6759 = vmatmul.mubr.f32.gmra.mrb[16].mxu1 %v10119_v9  ;;  %v10141_v9 = vld [vmem:[#allocation82_spill] sm:$0xff] }
 0x2b9   : > { %6761 = vmatprep.mubr.msk.f32.mxu1 %vm10122_vm2, %v10120_v61  ;;  %vm10138_vm2 = vnez %v10137_v46  ;;  %v10143_v61 = vld [vmem:[#allocation87_spill] sm:$0xff] }
 0x2ba   : > { %v4398_v46 = vld [vmem:[#allocation7 + $0x428] sm:$0xff] }
 0x2bc   : > { %6762 = vmatmul.mubr.f32.gmra.mrb[18].mxu1 %v10123_v18  ;;  %v4395_v18 = vld [vmem:[#allocation7 + $0x410] sm:$0xff] }
 0x2bd   : > { %6764 = vmatprep.mubr.msk.f32.mxu1 %vm10126_vm3, %v10124_v12  ;;  %vm10142_vm3 = vnez %v10141_v9  ;;  %v4396_v12 = vld [vmem:[#allocation7 + $0x418] sm:$0xff]  ;;  %v10146_v9 = vld [vmem:[#allocation19_spill] sm:$0xff] }
 0x2be   : > { %v7394_v17 = vpack.c.bf16 %v4396_v12, %v4395_v18  ;;  %v4760_v18 = vld [vmem:[#allocation10 + $0x38] sm:$0xff] }
 0x2bf   : > { %v10148_v12 = vld [vmem:[#allocation21_spill] sm:$0xff] }
 0x2c0   : > { %6765 = vmatmul.mubr.f32.gmra.mrb[20].mxu1 %v10127_v22  ;;  %v4754_v22 = vld [vmem:[#allocation10 + $0x8] sm:$0xff] }
 0x2c1   : > { %6767 = vmatprep.mubr.msk.f32.mxu1 %vm10130_vm8, %v10128_v42  ;;  %v4755_v42 = vld [vmem:[#allocation10 + $0x10] sm:$0xff] }
 0x2c4   : > { %6768 = vmatmul.mubr.f32.gmra.mrb[22].mxu1 %v10131_v28  ;;  %v7422_v28 = vpack.c.bf16 %v4754_v22, %v4753_v8  ;;  %v4400_v8 = vld [vmem:[#allocation7 + $0x438] sm:$0xff]  ;;  %v4759_v22 = vld [vmem:[#allocation10 + $0x30] sm:$0xff] }
 0x2c5   : > { %6770 = vmatprep.mubr.msk.f32.mxu1 %vm10134_vm1, %v10132_v63  ;;  %v4756_v63 = vld [vmem:[#allocation10 + $0x18] sm:$0xff] }
 0x2c6   : > { %7423 = vmatprep.subr.bf16.mxu0 %v7422_v28 }
 0x2c7   : > { %7425 = vmatpush3.bf16.msra.mxu0 %v7422_v28  ;;  %v4401_v28 = vld [vmem:[#allocation7 + $0x440] sm:$0xff] }
 0x2c8   : > { %6771 = vmatmul.mubr.f32.gmra.mrb[24].mxu1 %v10135_v26  ;;  %v4397_v26 = vld [vmem:[#allocation7 + $0x420] sm:$0xff] }
 0x2c9   : > { %6773 = vmatprep.mubr.msk.f32.mxu1 %vm10138_vm2, %v10136_v47  ;;  %v7426_v47 = vpack.c.bf16 %v4756_v63, %v4755_v42  ;;  %v7398_v44 = vpack.c.bf16 %v4398_v46, %v4397_v26  ;;  %v10149_v42 = vld [vmem:[#allocation22_spill] sm:$0xff]  ;;  %v7402_v63 = vpack.c.bf16 %v4400_v8, %v4399_v15  ;;  %v4762_v26 = vld [vmem:[#allocation10 + $0x48] sm:$0xff]  ;;  %v4764_v15 = vld [vmem:[#allocation10 + $0x58] sm:$0xff] }
 0x2ca   : > { %v10150_v46 = vld [vmem:[#allocation23_spill] sm:$0xff]  ;;  %v10152_v8 = vld [vmem:[#allocation25_spill] sm:$0xff] }
 0x2cb   : > { %7427 = vmatprep.subr.bf16.mxu0 %v7426_v47 }
 0x2cc   : > { %6774 = vmatmul.mubr.f32.gmra.mrb[26].mxu1 %v10139_v45  ;;  %v4757_v45 = vld [vmem:[#allocation10 + $0x20] sm:$0xff]  ;;  %7429 = vmatpush3.bf16.msra.mxu0 %v7426_v47  ;;  %v4403_v47 = vld [vmem:[#allocation7 + $0x450] sm:$0xff] }
 0x2cd   : > { %6776 = vmatprep.mubr.msk.f32.mxu1 %vm10142_vm3, %v10140_v52  ;;  %v4758_v52 = vld [vmem:[#allocation10 + $0x28] sm:$0xff] }
 0x2d0   : > { %6777 = vmatmul.mubr.f32.gmra.mrb[28].mxu1 %v10143_v61  ;;  %v10147_v61 = vld [vmem:[#allocation20_spill] sm:$0xff] }
 0x2d1   : > { %6779 = vmatprep.mubr.f32.mxu1 %v10144_v0 }
 0x2d4   : > { %6780 = vmatmul.mubr.f32.gmra.mrb[30].mxu1 %v10144_v0 }
 0x2d5   : > { %6814 = vmatprep.mubr.f32.mxu1 %v10145_v29  ;;  %v7430_v29 = vpack.c.bf16 %v4758_v52, %v4757_v45  ;;  %v10151_v45 = vld [vmem:[#allocation24_spill] sm:$0xff] }
 0x2d7   : > { %7431 = vmatprep.subr.bf16.mxu0 %v7430_v29 }
 0x2d8   : > { %6815 = vmatmul.mubr.f32.vlgmr.msra.gmra.mrb[0].mxu1 %v10146_v9  ;;  %v4402_v9 = vld [vmem:[#allocation7 + $0x448] sm:$0xff]  ;;  %7433 = vmatpush3.bf16.msra.mxu0 %v7430_v29  ;;  %v4405_v29 = vld [vmem:[#allocation7 + $0x460] sm:$0xff] }
 0x2d9   : > { %7393 = vmatpush3.bf16.msra.mxu1 %v7390_v40  ;;  %6817 = vmatprep.mubr.f32.mxu1 %v10147_v61  ;;  %v7434_v40 = vpack.c.bf16 %v4760_v18, %v4759_v22  ;;  %v4761_v61 = vld [vmem:[#allocation10 + $0x40] sm:$0xff]  ;;  %v7406_v52 = vpack.c.bf16 %v4402_v9, %v4401_v28  ;;  %v4766_v28 = vld [vmem:[#allocation10 + $0x68] sm:$0xff] }
 0x2da   : > { %7395 = vmatprep.subr.bf16.mxu1 %v7394_v17  ;;  %v10153_v22 = vld [vmem:[#allocation26_spill] sm:$0xff]  ;;  %v10154_v9 = vld [vmem:[#allocation27_spill] sm:$0xff] }
 0x2db   : > { %7435 = vmatprep.subr.bf16.mxu0 %v7434_v40 }
 0x2dc   : > { %6818 = vmatmul.mubr.f32.gmra.mrb[2].mxu1 %v10148_v12  ;;  %v7438_v12 = vpack.c.bf16 %v4762_v26, %v4761_v61  ;;  %7437 = vmatpush3.bf16.msra.mxu0 %v7434_v40  ;;  %v10155_v61 = vld [vmem:[#allocation28_spill] sm:$0xff] }
 0x2dd   : > { %6820 = vmatprep.mubr.f32.mxu1 %v10149_v42  ;;  %7397 = vmatpush3.bf16.msra.mxu1 %v7394_v17  ;;  %v4404_v17 = vld [vmem:[#allocation7 + $0x458] sm:$0xff]  ;;  %v4763_v42 = vld [vmem:[#allocation10 + $0x50] sm:$0xff] }
 0x2de   : > { %7399 = vmatprep.subr.bf16.mxu1 %v7398_v44  ;;  %v7410_v18 = vpack.c.bf16 %v4404_v17, %v4403_v47  ;;  %7439 = vmatprep.subr.bf16.mxu0 %v7438_v12  ;;  %v4408_v17 = vld [vmem:[#allocation7 + $0x478] sm:$0xff] }
 0x2e0   : > { %6821 = vmatmul.mubr.f32.gmra.mrb[4].mxu1 %v10150_v46  ;;  %v7442_v46 = vpack.c.bf16 %v4764_v15, %v4763_v42  ;;  %7441 = vmatpush3.bf16.msra.mxu0 %v7438_v12  ;;  %v4767_v42 = vld [vmem:[#allocation10 + $0x70] sm:$0xff]  ;;  %v4768_v15 = vld [vmem:[#allocation10 + $0x78] sm:$0xff]  ;;  %v10158_v12 = vld [vmem:[#allocation30_spill] sm:$0xff] }
 0x2e1   : > { %6823 = vmatprep.mubr.f32.mxu1 %v10151_v45  ;;  %7401 = vmatpush3.bf16.msra.mxu1 %v7398_v44  ;;  %v4406_v44 = vld [vmem:[#allocation7 + $0x468] sm:$0xff]  ;;  %v4765_v45 = vld [vmem:[#allocation10 + $0x60] sm:$0xff] }
 0x2e2   : > { %7403 = vmatprep.subr.bf16.mxu1 %v7402_v63  ;;  %7443 = vmatprep.subr.bf16.mxu0 %v7442_v46  ;;  %v7446_v47 = vpack.c.bf16 %v4766_v28, %v4765_v45  ;;  %v10159_v45 = vld [vmem:[#allocation31_spill] sm:$0xff] }
 0x2e4   : > { %6824 = vmatmul.mubr.f32.gmra.mrb[6].mxu1 %v10152_v8  ;;  %v4407_v8 = vld [vmem:[#allocation7 + $0x470] sm:$0xff]  ;;  %7445 = vmatpush3.bf16.msra.mxu0 %v7442_v46 }
 0x2e5   : > { %6826 = vmatprep.mubr.f32.mxu1 %v10153_v22  ;;  %7405 = vmatpush3.bf16.msra.mxu1 %v7402_v63  ;;  %v7414_v63 = vpack.c.bf16 %v4406_v44, %v4405_v29  ;;  %v10157_v22 = vld [vmem:[#allocation29_spill] sm:$0xff]  ;;  %v7450_v29 = vpack.c.bf16 %v4768_v15, %v4767_v42  ;;  %v4737_v44 = vld [vmem:[#allocation8] sm:$0xff] }
 0x2e6   : > { %7407 = vmatprep.subr.bf16.mxu1 %v7406_v52  ;;  %7447 = vmatprep.subr.bf16.mxu0 %v7446_v47 }
 0x2e8   : > { %6827 = vmatmul.mubr.f32.gmra.mrb[8].mxu1 %v10154_v9  ;;  %7449 = vmatpush3.bf16.msra.mxu0 %v7446_v47  ;;  %v10163_v47 = vld [vmem:[#allocation34_spill] sm:$0xff] }
 0x2e9   : > { %6829 = vmatprep.mubr.f32.mxu1 %v10155_v61  ;;  %v9437_v26 = vpop.f32.mrb[32].mxu0  ;;  %7409 = vmatpush3.bf16.msra.mxu1 %v7406_v52  ;;  %v7418_v52 = vpack.c.bf16 %v4408_v17, %v4407_v8  ;;  %v4740_v8 = vld [vmem:[#allocation8 + $0x18] sm:$0xff] }
 0x2ea   : > { %v9439_v40 = vpop.f32.mrb[33].mxu0  ;;  %7411 = vmatprep.subr.bf16.mxu1 %v7410_v18  ;;  %7451 = vmatprep.subr.bf16.mxu0 %v7450_v29  ;;  %v10161_v17 = vld [vmem:[#allocation33_spill] sm:$0xff] }
 0x2eb   : > { %10156 = vst [vmem:[#allocation50_spill] sm:$0xff] %v9439_v40  ;;  %v4738_v40 = vld [vmem:[#allocation8 + $0x8] sm:$0xff] }
 0x2ec   : > { %6830 = vmatmul.mubr.f32.gmra.mrb[10].mxu1 %v10157_v22  ;;  %v10160_v22 = vld [vmem:[#allocation32_spill] sm:$0xff]  ;;  %7453 = vmatpush3.bf16.msra.mxu0 %v7450_v29 }
 0x2ed   : > { %v9442_v9 = vpop.f32.mrb[34].mxu0  ;;  %6832 = vmatprep.mubr.f32.mxu1 %v10158_v12  ;;  %7413 = vmatpush3.bf16.msra.mxu1 %v7410_v18  ;;  %v7454_v18 = vpack.c.bf16 %v4738_v40, %v4737_v44  ;;  %v4739_v12 = vld [vmem:[#allocation8 + $0x10] sm:$0xff]  ;;  %v4742_v40 = vld [vmem:[#allocation8 + $0x28] sm:$0xff] }
 0x2ee   : > { %v9445_v61 = vpop.f32.mrb[35].mxu0  ;;  %7415 = vmatprep.subr.bf16.mxu1 %v7414_v63  ;;  %v10165_v44 = vld [vmem:[#allocation35_spill] sm:$0xff]  ;;  %v10167_v29 = vld [vmem:[#allocation36_spill] sm:$0xff] }
 0x2ef   : > { %7455 = vmatprep.subr.bf16.mxu0 %v7454_v18 }
 0x2f0   : > { %6833 = vmatmul.mubr.f32.gmra.mrb[12].mxu1 %v10159_v45  ;;  %v7867_v45 = vld [vmem:[%s8404_s27 + $0x8] sm:$0xff] }
 0x2f1   : > { %v9448_v28 = vpop.f32.mrb[36].mxu0  ;;  %6835 = vmatprep.mubr.f32.mxu1 %v10160_v22  ;;  %7417 = vmatpush3.bf16.msra.mxu1 %v7414_v63  ;;  %v7458_v63 = vpack.c.bf16 %v4740_v8, %v4739_v12  ;;  %v4741_v22 = vld [vmem:[#allocation8 + $0x20] sm:$0xff]  ;;  %v7869_v12 = vld [vmem:[%s8404_s27 + $0x18] sm:$0xff]  ;;  %v4743_v8 = vld [vmem:[#allocation8 + $0x30] sm:$0xff] }
 0x2f2   : > { %v9451_v46 = vpop.f32.mrb[37].mxu0  ;;  %7419 = vmatprep.subr.bf16.mxu1 %v7418_v52  ;;  %6975 = vmatmul.mubr.f32.vlgmr.msra.gmra.mrb[64].mxu0 %v7867_v45  ;;  %v4744_v45 = vld [vmem:[#allocation8 + $0x38] sm:$0xff] }
 0x2f3   : > { %7457 = vmatpush3.bf16.msra.mxu0 %v7454_v18 }
 0x2f4   : > { %6836 = vmatmul.mubr.f32.gmra.mrb[14].mxu1 %v10161_v17  ;;  %7459 = vmatprep.subr.bf16.mxu0 %v7458_v63 }
 0x2f5   : > { %v9454_v42 = vpop.f32.mrb[38].mxu0  ;;  %6838 = vmatprep.mubr.f32.mxu1 %v10163_v47  ;;  %7421 = vmatpush3.bf16.msra.mxu1 %v7418_v52  ;;  %v7462_v47 = vpack.c.bf16 %v4742_v40, %v4741_v22  ;;  %v7871_v22 = vld [vmem:[%s8404_s27 + $0x28] sm:$0xff]  ;;  %v4745_v40 = vld [vmem:[#allocation8 + $0x40] sm:$0xff] }
 0x2f6   : > { %10162 = vst [vmem:[#allocation52_spill] sm:$0xff] %v9454_v42  ;;  %v9457_v15 = vpop.f32.mrb[39].mxu0  ;;  %v7868_v42 = vld [vmem:[%s8404_s27 + $0x10] sm:$0xff] }
 0x2f7   : > { %10164 = vst [vmem:[#allocation47_spill] sm:$0xff] %v9457_v15  ;;  %6977 = vmatprep.mubr.f32.mxu0 %v7868_v42  ;;  %v10169_v15 = vld [vmem:[#allocation37_spill] sm:$0xff]  ;;  %7461 = vmatpush3.bf16.msra.mxu0 %v7458_v63 }
 0x2f8   : > { %6839 = vmatmul.mubr.f32.gmra.mrb[16].mxu1 %v10165_v44  ;;  %6978 = vmatmul.mubr.f32.gmra.mrb[66].mxu0 %v7869_v12  ;;  %v7870_v44 = vld [vmem:[%s8404_s27 + $0x20] sm:$0xff]  ;;  %v4746_v12 = vld [vmem:[#allocation8 + $0x48] sm:$0xff] }
 0x2f9   : > { %v9461_v17 = vpop.f32.mrb[40].mxu0  ;;  %6841 = vmatprep.mubr.f32.mxu1 %v10167_v29  ;;  %6980 = vmatprep.mubr.f32.mxu0 %v7870_v44  ;;  %v7466_v29 = vpack.c.bf16 %v4744_v45, %v4743_v8  ;;  %v7873_v8 = vld [vmem:[%s8404_s27 + $0x38] sm:$0xff]  ;;  %v4747_v45 = vld [vmem:[#allocation8 + $0x50] sm:$0xff] }
 0x2fa   : > { %10166 = vst [vmem:[#allocation53_spill] sm:$0xff] %v9461_v17  ;;  %v9465_v52 = vpop.f32.mrb[41].mxu0  ;;  %v10171_v17 = vld [vmem:[#allocation38_spill] sm:$0xff]  ;;  %7463 = vmatprep.subr.bf16.mxu0 %v7462_v47 }
 0x2fb   : > { %10168 = vst [vmem:[#allocation54_spill] sm:$0xff] %v9465_v52  ;;  %v10173_v52 = vld [vmem:[#allocation39_spill] sm:$0xff]  ;;  %7465 = vmatpush3.bf16.msra.mxu0 %v7462_v47 }
 0x2fc   : > { %6842 = vmatmul.mubr.f32.gmra.mrb[18].mxu1 %v10169_v15  ;;  %6981 = vmatmul.mubr.f32.gmra.mrb[68].mxu0 %v7871_v22  ;;  %v7872_v15 = vld [vmem:[%s8404_s27 + $0x30] sm:$0xff]  ;;  %v4748_v22 = vld [vmem:[#allocation8 + $0x58] sm:$0xff] }
 0x2fd   : > { %v9470_v18 = vpop.f32.mrb[42].mxu0  ;;  %6844 = vmatprep.mubr.f32.mxu1 %v10171_v17  ;;  %6983 = vmatprep.mubr.f32.mxu0 %v7872_v15  ;;  %v7470_v17 = vpack.c.bf16 %v4746_v12, %v4745_v40  ;;  %v7875_v40 = vld [vmem:[%s8404_s27 + $0x48] sm:$0xff]  ;;  %v4749_v12 = vld [vmem:[#allocation8 + $0x60] sm:$0xff] }
 0x2fe   : > { %10170 = vst [vmem:[#allocation49_spill] sm:$0xff] %v9470_v18  ;;  %v9473_v42 = vpop.f32.mrb[43].mxu0  ;;  %v10175_v18 = vld [vmem:[#allocation40_spill] sm:$0xff]  ;;  %7467 = vmatprep.subr.bf16.mxu0 %v7466_v29 }
 0x2ff   : > { %10172 = vst [vmem:[#allocation56_spill] sm:$0xff] %v9473_v42  ;;  %v10177_v42 = vld [vmem:[#allocation41_spill] sm:$0xff]  ;;  %7469 = vmatpush3.bf16.msra.mxu0 %v7466_v29 }
 0x300   : > { %6845 = vmatmul.mubr.f32.gmra.mrb[20].mxu1 %v10173_v52  ;;  %6984 = vmatmul.mubr.f32.gmra.mrb[70].mxu0 %v7873_v8  ;;  %v7874_v52 = vld [vmem:[%s8404_s27 + $0x40] sm:$0xff]  ;;  %v4750_v8 = vld [vmem:[#allocation8 + $0x68] sm:$0xff] }
 0x301   : > { %v9478_v44 = vpop.f32.mrb[44].mxu0  ;;  %6847 = vmatprep.mubr.f32.mxu1 %v10175_v18  ;;  %6986 = vmatprep.mubr.f32.mxu0 %v7874_v52  ;;  %v7474_v18 = vpack.c.bf16 %v4748_v22, %v4747_v45  ;;  %v7877_v45 = vld [vmem:[%s8404_s27 + $0x58] sm:$0xff] }
 0x302   : > { %10174 = vst [vmem:[#allocation57_spill] sm:$0xff] %v9478_v44  ;;  %v9481_v63 = vpop.f32.mrb[45].mxu0  ;;  %v10179_v44 = vld [vmem:[#allocation42_spill] sm:$0xff]  ;;  %7471 = vmatprep.subr.bf16.mxu0 %v7470_v17  ;;  %v10182_v22 = vld [vmem:[#allocation45_spill] sm:$0xff] }
 0x303   : > { %10176 = vst [vmem:[#allocation51_spill] sm:$0xff] %v9481_v63  ;;  %v10180_v63 = vld [vmem:[#allocation43_spill] sm:$0xff]  ;;  %7473 = vmatpush3.bf16.msra.mxu0 %v7470_v17 }
 0x304   : > { %6848 = vmatmul.mubr.f32.gmra.mrb[22].mxu1 %v10177_v42  ;;  %6987 = vmatmul.mubr.f32.gmra.mrb[72].mxu0 %v7875_v40  ;;  %v7876_v42 = vld [vmem:[%s8404_s27 + $0x50] sm:$0xff]  ;;  %v7878_v40 = vld [vmem:[%s8404_s27 + $0x60] sm:$0xff]  ;;  %v7879_v17 = vld [vmem:[%s8404_s27 + $0x68] sm:$0xff] }
 0x305   : > { %v9486_v15 = vpop.f32.mrb[46].mxu0  ;;  %6850 = vmatprep.mubr.f32.mxu1 %v10179_v44  ;;  %6989 = vmatprep.mubr.f32.mxu0 %v7876_v42  ;;  %v7478_v44 = vpack.c.bf16 %v4750_v8, %v4749_v12  ;;  %v10183_v42 = vld [vmem:[#allocation46_spill] sm:$0xff]  ;;  %v7880_v12 = vld [vmem:[%s8404_s27 + $0x70] sm:$0xff] }
 0x306   : > { %10178 = vst [vmem:[#allocation59_spill] sm:$0xff] %v9486_v15  ;;  %v9489_v47 = vpop.f32.mrb[47].mxu0  ;;  %v10181_v15 = vld [vmem:[#allocation44_spill] sm:$0xff]  ;;  %7475 = vmatprep.subr.bf16.mxu0 %v7474_v18 }
 0x307   : > { %7477 = vmatpush3.bf16.msra.mxu0 %v7474_v18  ;;  %v7882_v18 = vld [vmem:[%s8404_s27 + $0x80] sm:$0xff] }
 0x308   : > { %6851 = vmatmul.mubr.f32.gmra.mrb[24].mxu1 %v10180_v63  ;;  %6990 = vmatmul.mubr.f32.gmra.mrb[74].mxu0 %v7877_v45 }
 0x309   : > { %v9494_v52 = vpop.f32.mrb[48].mxu0  ;;  %6853 = vmatprep.mubr.f32.mxu1 %v10181_v15  ;;  %6992 = vmatprep.mubr.f32.mxu0 %v7878_v40 }
 0x30a   : > { %v9497_v29 = vpop.f32.mrb[49].mxu0  ;;  %7479 = vmatprep.subr.bf16.mxu0 %v7478_v44 }
 0x30b   : > { %7481 = vmatpush3.bf16.msra.mxu0 %v7478_v44  ;;  %v7884_v44 = vld [vmem:[%s8404_s27 + $0x90] sm:$0xff] }
 0x30c   : > { %6854 = vmatmul.mubr.f32.gmra.mrb[26].mxu1 %v10182_v22  ;;  %6993 = vmatmul.mubr.f32.gmra.mrb[76].mxu0 %v7879_v17  ;;  %v7883_v17 = vld [vmem:[%s8404_s27 + $0x88] sm:$0xff] }
 0x30d   : > { %v9502_v63 = vpop.f32.mrb[50].mxu0  ;;  %6856 = vmatprep.mubr.f32.mxu1 %v8593_v11  ;;  %6995 = vmatprep.mubr.f32.mxu0 %v7880_v12  ;;  %v7881_v11 = vld [vmem:[%s8404_s27 + $0x78] sm:$0xff] }
 0x30e   : > { %v9505_v15 = vpop.f32.mrb[51].mxu0 }
 0x310   : > { %6857 = vmatmul.mubr.f32.gmra.mrb[28].mxu1 %v10183_v42  ;;  %6996 = vmatmul.mubr.f32.gmra.mrb[78].mxu0 %v7881_v11  ;;  %v7885_v11 = vld [vmem:[%s8404_s27 + $0x98] sm:$0xff] }
 0x311   : > { %v9510_v8 = vpop.f32.mrb[52].mxu0  ;;  %6859 = vmatprep.mubr.f32.mxu1 %v10144_v0  ;;  %6998 = vmatprep.mubr.f32.mxu0 %v7882_v18  ;;  %v7887_v18 = vld [vmem:[%s8404_s27 + $0xa8] sm:$0xff] }
 0x312   : > { %v9513_v45 = vpop.f32.mrb[53].mxu0 }
 0x314   : > { %6860 = vmatmul.mubr.f32.gmra.mrb[30].mxu1 %v10144_v0  ;;  %6999 = vmatmul.mubr.f32.gmra.mrb[80].mxu0 %v7883_v17  ;;  %v7890_v17 = vld [vmem:[%s8404_s27 + $0xc0] sm:$0xff] }
 0x315   : > { %v9518_v22 = vpop.f32.mrb[54].mxu0  ;;  %6894 = vmatprep.mubr.f32.mxu1 %v9000_v5  ;;  %7001 = vmatprep.mubr.f32.mxu0 %v7884_v44  ;;  %v7886_v5 = vld [vmem:[%s8404_s27 + $0xa0] sm:$0xff]  ;;  %v7895_v44 = vld [vmem:[%s8404_s27 + $0xe8] sm:$0xff] }
 0x316   : > { %v9521_v40 = vpop.f32.mrb[55].mxu0 }
 0x318   : > { %6895 = vmatmul.mubr.msk.f32.vlgmr.msra.gmra.mrb[0].mxu1 %vm9296_vm0, %v9013_v2  ;;  %7002 = vmatmul.mubr.f32.gmra.mrb[82].mxu0 %v7885_v11 }
 0x319   : > { %v9528_v42 = vpop.f32.mrb[56].mxu0  ;;  %6897 = vmatprep.mubr.f32.mxu1 %v9021_v1  ;;  %7004 = vmatprep.mubr.f32.mxu0 %v7886_v5  ;;  %v7888_v1 = vld [vmem:[%s8404_s27 + $0xb0] sm:$0xff] }
 0x31a   : > { %v9531_v12 = vpop.f32.mrb[57].mxu0 }
 0x31c   : > { %6898 = vmatmul.mubr.msk.f32.gmra.mrb[2].mxu1 %vm8982_vm14, %v9034_v6  ;;  %7005 = vmatmul.mubr.f32.gmra.mrb[84].mxu0 %v7887_v18  ;;  %v10191_v18 = vld [vmem:[#allocation47_spill] sm:$0xff] }
 0x31d   : > { %v9538_v59 = vpop.f32.mrb[58].mxu0  ;;  %6900 = vmatprep.mubr.f32.mxu1 %v9042_v53  ;;  %7007 = vmatprep.mubr.f32.mxu0 %v7888_v1  ;;  %v7889_v53 = vld [vmem:[%s8404_s27 + $0xb8] sm:$0xff] }
 0x31e   : > { %v9541_v2 = vpop.f32.mrb[59].mxu0 }
 0x320   : > { %6901 = vmatmul.mubr.msk.f32.gmra.mrb[4].mxu1 %vm9004_vm15, %v9055_v41  ;;  %7008 = vmatmul.mubr.f32.gmra.mrb[86].mxu0 %v7889_v53 }
 0x321   : > { %v9548_v54 = vpop.f32.mrb[60].mxu0  ;;  %6903 = vmatprep.mubr.f32.mxu1 %v9063_v25  ;;  %7010 = vmatprep.mubr.f32.mxu0 %v7890_v17  ;;  %v7891_v25 = vld [vmem:[%s8404_s27 + $0xc8] sm:$0xff] }
 0x322   : > { %v9551_v6 = vpop.f32.mrb[61].mxu0 }
 0x324   : > { %6904 = vmatmul.mubr.msk.f32.gmra.mrb[6].mxu1 %vm9025_vm13, %v9076_v19  ;;  %7011 = vmatmul.mubr.f32.gmra.mrb[88].mxu0 %v7891_v25  ;;  %v7893_v19 = vld [vmem:[%s8404_s27 + $0xd8] sm:$0xff] }
 0x325   : > { %v9558_v3 = vpop.f32.mrb[62].mxu0  ;;  %6906 = vmatprep.mubr.f32.mxu1 %v9084_v31  ;;  %7013 = vmatprep.mubr.f32.mxu0 %v7892_v58  ;;  %v7894_v31 = vld [vmem:[%s8404_s27 + $0xe0] sm:$0xff]  ;;  %v10192_v25 = vld [vmem:[#allocation53_spill] sm:$0xff] }
 0x326   : > { %v9561_v41 = vpop.f32.mrb[63].mxu0 }
 0x328   : > { %6907 = vmatmul.mubr.msk.f32.gmra.mrb[8].mxu1 %vm9046_vm12, %v9097_v21  ;;  %7014 = vmatmul.mubr.f32.gmra.mrb[90].mxu0 %v7893_v19  ;;  %v7897_v21 = vld [vmem:[%s8404_s27 + $0xf8] sm:$0xff]  ;;  %s8124_s27 = smov [#allocation11]  }
 0x329   : > { %6909 = vmatprep.mubr.f32.mxu1 %v9105_v37  ;;  %7016 = vmatprep.mubr.f32.mxu0 %v7894_v31  ;;  %s8044_s11 = sshll.u32 %s8124_s27, 4  ;;  %s8045_s11 = int_to_ptr.vmem [resolvable:$false] %s8044_s11 }
 0x32a   : > { %s8046_s13 = scalar_lea.vmem %s8045_s11, 8192  ;;  %p8047_p12 = scmp.lt.s32.totalorder %s9762_s10, %s8045_s11 }
 0x32b   : > { %p8048_p1 = scmp.lt.s32.totalorder %s8046_s13, %s8040_s20 }
 0x32c   : > { %6910 = vmatmul.mubr.msk.f32.gmra.mrb[10].mxu1 %vm9067_vm11, %v9118_v27  ;;  %7017 = vmatmul.mubr.f32.gmra.mrb[92].mxu0 %v7895_v44  ;;  %v10193_v44 = vld [vmem:[#allocation54_spill] sm:$0xff] }
 0x32d   : > { %6912 = vmatprep.mubr.f32.mxu1 %v9126_v43  ;;  %7019 = vmatprep.mubr.f32.mxu0 %v7896_v14  ;;  %p8049_p2 = por %p8048_p1, %p8047_p12 }
 0x32f   : > { %p8050_p13 = pnand %p8049_p2, %p8043_p7 }
 0x330   : > { %6913 = vmatmul.mubr.msk.f32.gmra.mrb[12].mxu1 %vm9088_vm10, %v9141_v33  ;;  %7020 = vmatmul.mubr.f32.gmra.mrb[94].mxu0 %v7897_v21 }
 0x331   : > { %6915 = vmatprep.mubr.f32.mxu1 %v9149_v49 }
 0x334   : > { %6916 = vmatmul.mubr.msk.f32.gmra.mrb[14].mxu1 %vm9109_vm9, %v9163_v39  ;;  %vm10184_vm9 = vnez %v10073_v23  ;;  %v7482_v23 = vpack.c.bf16 %v4752_v13, %v4751_v4  ;;  %v10194_v13 = vld [vmem:[#allocation49_spill] sm:$0xff] }
 0x335   : > { %6918 = vmatprep.mubr.f32.mxu1 %v9171_v50 }
 0x336   : > { %7483 = vmatprep.subr.bf16.mxu0 %v7482_v23 }
 0x337   : > { %7485 = vmatpush3.bf16.msra.mxu0 %v7482_v23 }
 0x338   : > { %6919 = vmatmul.mubr.msk.f32.gmra.mrb[16].mxu1 %vm9132_vm4, %v9184_v57  ;;  %v10187_v57 = vld [vmem:[#allocation88_spill] sm:$0xff] }
 0x339   : > { %6921 = vmatprep.mubr.f32.mxu1 %v9192_v32 }
 0x33c   : > { %6922 = vmatmul.mubr.msk.f32.gmra.mrb[18].mxu1 %vm9154_vm7, %v9205_v51  ;;  %vm10185_vm7 = vnez %v10076_v34  ;;  %v10186_v51 = vld [vmem:[#allocation48_spill] sm:$0xff]  ;;  %v9618_v34 = vld [vmem:[%s9812_s4] ss:$0 sm:$0xff] }
 0x33d   : > { %6924 = vmatprep.mubr.f32.mxu1 %v9213_v62 }
 0x340   : > { %6925 = vmatmul.mubr.msk.f32.gmra.mrb[20].mxu1 %vm9175_vm6, %v9226_v7  ;;  %vm10188_vm6 = vnez %v10187_v57 }
 0x341   : > { %6927 = vmatprep.mubr.f32.mxu1 %v9234_v24 }
 0x344   : > { %6928 = vmatmul.mubr.msk.f32.gmra.mrb[22].mxu1 %vm9196_vm5, %v9247_v30  ;;  %v10189_v30 = vld [vmem:[#allocation50_spill] sm:$0xff] }
 0x345   : > { %6930 = vmatprep.mubr.f32.mxu1 %v9255_v55 }
 0x348   : > { %6931 = vmatmul.mubr.msk.f32.gmra.mrb[24].mxu1 %vm10184_vm9, %v9267_v36 }
 0x349   : > { %6933 = vmatprep.mubr.f32.mxu1 %v9275_v20 }
 0x34c   : > { %6934 = vmatmul.mubr.msk.f32.gmra.mrb[26].mxu1 %vm10185_vm7, %v9288_v56 }
 0x34d   : > { %6936 = vmatprep.mubr.f32.mxu1 %v8640_v10 }
 0x350   : > { %6937 = vmatmul.mubr.msk.f32.gmra.mrb[28].mxu1 %vm10188_vm6, %v10186_v51 }
 0x351   : > { %6939 = vmatprep.mubr.f32.mxu1 %v10144_v0 }
 0x354   : > { %6940 = vmatmul.mubr.f32.gmra.mrb[30].mxu1 %v10144_v0 }
 0x3eb   : > { %v6896_v36 = vpop.f32.mrb[0].mxu1 }
 0x3ec   : > { %v7486_v56 = vadd.f32 %v6896_v36, %v9437_v26  ;;  %v4475_v10 = vpop.f32.mrb[1].mxu1 }
 0x3ed   : > { %v7487_v7 = vadd.f32 %v4475_v10, %v10189_v30  ;;  %v10195_v10 = vld [vmem:[#allocation56_spill] sm:$0xff] }
 0x3ee   : > { %v4674_v38 = vadd.f32 %v7486_v56, %v9618_v34 }
 0x3ef   : > { %v4673_v60 = vadd.f32 %v7487_v7, %v9618_v34  ;;  %v6899_v37 = vpop.f32.mrb[2].mxu1 }
 0x3f0   : > { %v7488_v35 = vadd.f32 %v6899_v37, %v9442_v9  ;;  %v4485_v27 = vpop.f32.mrb[3].mxu1  ;;  %v4706_v33 = vmax.f32 %v4674_v38, 0.0  ;;  %v10190_v9 = vld [vmem:[#allocation52_spill] sm:$0xff] }
 0x3f1   : > { %v4705_v43 = vmax.f32 %v4673_v60, 0.0  ;;  %v7489_v16 = vadd.f32 %v4485_v27, %v9445_v61 }
 0x3f2   : > { %v4676_v49 = vadd.f32 %v7488_v35, %v9618_v34  ;;  %v10196_v35 = vld [vmem:[#allocation57_spill] sm:$0xff] }
 0x3f3   : > { %v4675_v48 = vadd.f32 %v7489_v16, %v9618_v34  ;;  %v6902_v39 = vpop.f32.mrb[4].mxu1  ;;  %7054 = vmatprep.mubr.f32.mxu0 %v4705_v43 }
 0x3f4   : > { %v7490_v50 = vadd.f32 %v6902_v39, %v9448_v28  ;;  %v4495_v32 = vpop.f32.mrb[5].mxu1  ;;  %7055 = vmatmul.mubr.f32.vlgmr.msra.gmra.mrb[64].mxu0 %v4706_v33  ;;  %v4708_v55 = vmax.f32 %v4676_v49, 0.0  ;;  %v10197_v33 = vld [vmem:[#allocation51_spill] sm:$0xff] }
 0x3f5   : > { %v4707_v62 = vmax.f32 %v4675_v48, 0.0  ;;  %v7491_v24 = vadd.f32 %v4495_v32, %v9451_v46 }
 0x3f6   : > { %v4678_v20 = vadd.f32 %v7490_v50, %v9618_v34 }
 0x3f7   : > { %v4677_v0 = vadd.f32 %v7491_v24, %v9618_v34  ;;  %v6905_v26 = vpop.f32.mrb[6].mxu1  ;;  %7057 = vmatprep.mubr.f32.mxu0 %v4707_v62  ;;  %v10198_v62 = vld [vmem:[#allocation59_spill] sm:$0xff] }
 0x3f8   : > { %v7492_v61 = vadd.f32 %v6905_v26, %v10190_v9  ;;  %v4505_v11 = vpop.f32.mrb[7].mxu1  ;;  %7058 = vmatmul.mubr.f32.gmra.mrb[66].mxu0 %v4708_v55  ;;  %v4710_v28 = vmax.f32 %v4678_v20, 0.0 }
 0x3f9   : > { %v4709_v5 = vmax.f32 %v4677_v0, 0.0  ;;  %v7493_v1 = vadd.f32 %v4505_v11, %v10191_v18 }
 0x3fa   : > { %v4680_v53 = vadd.f32 %v7492_v61, %v9618_v34 }
 0x3fb   : > { %v4679_v17 = vadd.f32 %v7493_v1, %v9618_v34  ;;  %v6908_v46 = vpop.f32.mrb[8].mxu1  ;;  %7060 = vmatprep.mubr.f32.mxu0 %v4709_v5 }
 0x3fc   : > { %v7494_v58 = vadd.f32 %v6908_v46, %v10192_v25  ;;  %v4515_v19 = vpop.f32.mrb[9].mxu1  ;;  %7061 = vmatmul.mubr.f32.gmra.mrb[68].mxu0 %v4710_v28  ;;  %v4712_v21 = vmax.f32 %v4680_v53, 0.0 }
 0x3fd   : > { %v4711_v31 = vmax.f32 %v4679_v17, 0.0  ;;  %v7495_v14 = vadd.f32 %v4515_v19, %v10193_v44 }
 0x3fe   : > { %v4682_v51 = vadd.f32 %v7494_v58, %v9618_v34 }
 0x3ff   : > { %v4681_v57 = vadd.f32 %v7495_v14, %v9618_v34  ;;  %v6911_v4 = vpop.f32.mrb[10].mxu1  ;;  %7063 = vmatprep.mubr.f32.mxu0 %v4711_v31 }
 0x400   : > { %v7496_v23 = vadd.f32 %v6911_v4, %v10194_v13  ;;  %v4525_v36 = vpop.f32.mrb[11].mxu1  ;;  %7064 = vmatmul.mubr.f32.gmra.mrb[70].mxu0 %v4712_v21  ;;  %v4714_v7 = vmax.f32 %v4682_v51, 0.0 }
 0x401   : > { %v4713_v56 = vmax.f32 %v4681_v57, 0.0  ;;  %v7497_v30 = vadd.f32 %v4525_v36, %v10195_v10 }
 0x402   : > { %v4684_v38 = vadd.f32 %v7496_v23, %v9618_v34 }
 0x403   : > { %v4683_v60 = vadd.f32 %v7497_v30, %v9618_v34  ;;  %v6914_v37 = vpop.f32.mrb[12].mxu1  ;;  %7066 = vmatprep.mubr.f32.mxu0 %v4713_v56 }
 0x404   : > { %v7498_v27 = vadd.f32 %v6914_v37, %v10196_v35  ;;  %v4535_v43 = vpop.f32.mrb[13].mxu1  ;;  %7067 = vmatmul.mubr.f32.gmra.mrb[72].mxu0 %v4714_v7  ;;  %v4716_v48 = vmax.f32 %v4684_v38, 0.0 }
 0x405   : > { %v4715_v16 = vmax.f32 %v4683_v60, 0.0  ;;  %v7499_v49 = vadd.f32 %v4535_v43, %v10197_v33 }
 0x406   : > { %v4686_v39 = vadd.f32 %v7498_v27, %v9618_v34 }
 0x407   : > { %v4685_v50 = vadd.f32 %v7499_v49, %v9618_v34  ;;  %v6917_v32 = vpop.f32.mrb[14].mxu1  ;;  %7069 = vmatprep.mubr.f32.mxu0 %v4715_v16 }
 0x408   : > { %v7500_v24 = vadd.f32 %v6917_v32, %v10198_v62  ;;  %v4545_v55 = vpop.f32.mrb[15].mxu1  ;;  %7070 = vmatmul.mubr.f32.gmra.mrb[74].mxu0 %v4716_v48  ;;  %v4718_v26 = vmax.f32 %v4686_v39, 0.0 }
 0x409   : > { %v4717_v20 = vmax.f32 %v4685_v50, 0.0  ;;  %v7501_v0 = vadd.f32 %v4545_v55, %v9489_v47 }
 0x40a   : > { %v4688_v9 = vadd.f32 %v7500_v24, %v9618_v34 }
 0x40b   : > { %v4687_v61 = vadd.f32 %v7501_v0, %v9618_v34  ;;  %v6920_v11 = vpop.f32.mrb[16].mxu1  ;;  %7072 = vmatprep.mubr.f32.mxu0 %v4717_v20 }
 0x40c   : > { %v7502_v5 = vadd.f32 %v6920_v11, %v9494_v52  ;;  %v4555_v18 = vpop.f32.mrb[17].mxu1  ;;  %7073 = vmatmul.mubr.f32.gmra.mrb[76].mxu0 %v4718_v26  ;;  %v4720_v53 = vmax.f32 %v4688_v9, 0.0 }
 0x40d   : > { %v4719_v1 = vmax.f32 %v4687_v61, 0.0  ;;  %v7503_v28 = vadd.f32 %v4555_v18, %v9497_v29 }
 0x40e   : > { %v4690_v17 = vadd.f32 %v7502_v5, %v9618_v34 }
 0x40f   : > { %v4689_v46 = vadd.f32 %v7503_v28, %v9618_v34  ;;  %v6923_v47 = vpop.f32.mrb[18].mxu1  ;;  %7075 = vmatprep.mubr.f32.mxu0 %v4719_v1 }
 0x410   : > { %v7504_v25 = vadd.f32 %v6923_v47, %v9502_v63  ;;  %v4565_v58 = vpop.f32.mrb[19].mxu1  ;;  %7076 = vmatmul.mubr.f32.gmra.mrb[78].mxu0 %v4720_v53  ;;  %v4722_v52 = vmax.f32 %v4690_v17, 0.0 }
 0x411   : > { %v4721_v19 = vmax.f32 %v4689_v46, 0.0  ;;  %v7505_v31 = vadd.f32 %v4565_v58, %v9505_v15 }
 0x412   : > { %v4692_v44 = vadd.f32 %v7504_v25, %v9618_v34 }
 0x413   : > { %v4691_v14 = vadd.f32 %v7505_v31, %v9618_v34  ;;  %v6926_v29 = vpop.f32.mrb[20].mxu1  ;;  %7078 = vmatprep.mubr.f32.mxu0 %v4721_v19 }
 0x414   : > { %v7506_v21 = vadd.f32 %v6926_v29, %v9510_v8  ;;  %v4575_v51 = vpop.f32.mrb[21].mxu1  ;;  %7079 = vmatmul.mubr.f32.gmra.mrb[80].mxu0 %v4722_v52  ;;  %v4724_v63 = vmax.f32 %v4692_v44, 0.0 }
 0x415   : > { %v4723_v57 = vmax.f32 %v4691_v14, 0.0  ;;  %v7507_v4 = vadd.f32 %v4575_v51, %v9513_v45 }
 0x416   : > { %v4694_v13 = vadd.f32 %v7506_v21, %v9618_v34 }
 0x417   : > { %v4693_v23 = vadd.f32 %v7507_v4, %v9618_v34  ;;  %v6929_v15 = vpop.f32.mrb[22].mxu1  ;;  %7081 = vmatprep.mubr.f32.mxu0 %v4723_v57 }
 0x418   : > { %v7508_v36 = vadd.f32 %v6929_v15, %v9518_v22  ;;  %v4585_v56 = vpop.f32.mrb[23].mxu1  ;;  %7082 = vmatmul.mubr.f32.gmra.mrb[82].mxu0 %v4724_v63  ;;  %v4726_v8 = vmax.f32 %v4694_v13, 0.0 }
 0x419   : > { %v4725_v10 = vmax.f32 %v4693_v23, 0.0  ;;  %v7509_v30 = vadd.f32 %v4585_v56, %v9521_v40 }
 0x41a   : > { %v4696_v7 = vadd.f32 %v7508_v36, %v9618_v34 }
 0x41b   : > { %v4695_v38 = vadd.f32 %v7509_v30, %v9618_v34  ;;  %v6932_v45 = vpop.f32.mrb[24].mxu1  ;;  %7084 = vmatprep.mubr.f32.mxu0 %v4725_v10 }
 0x41c   : > { %v7510_v60 = vadd.f32 %v6932_v45, %v9528_v42  ;;  %v4595_v37 = vpop.f32.mrb[25].mxu1  ;;  %7085 = vmatmul.mubr.f32.gmra.mrb[84].mxu0 %v4726_v8  ;;  %v4728_v22 = vmax.f32 %v4696_v7, 0.0 }
 0x41d   : > { %v4727_v35 = vmax.f32 %v4695_v38, 0.0  ;;  %v7511_v27 = vadd.f32 %v4595_v37, %v9531_v12 }
 0x41e   : > { %v4698_v43 = vadd.f32 %v7510_v60, %v9618_v34 }
 0x41f   : > { %v4697_v16 = vadd.f32 %v7511_v27, %v9618_v34  ;;  %v6935_v40 = vpop.f32.mrb[26].mxu1  ;;  %7087 = vmatprep.mubr.f32.mxu0 %v4727_v35 }
 0x420   : > { %v7512_v33 = vadd.f32 %v6935_v40, %v9538_v59  ;;  %v4605_v49 = vpop.f32.mrb[27].mxu1  ;;  %7088 = vmatmul.mubr.f32.gmra.mrb[86].mxu0 %v4728_v22  ;;  %v4730_v42 = vmax.f32 %v4698_v43, 0.0 }
 0x421   : > { %v4729_v48 = vmax.f32 %v4697_v16, 0.0  ;;  %v7513_v39 = vadd.f32 %v4605_v49, %v9541_v2 }
 0x422   : > { %v4700_v50 = vadd.f32 %v7512_v33, %v9618_v34 }
 0x423   : > { %v4699_v32 = vadd.f32 %v7513_v39, %v9618_v34  ;;  %v6938_v12 = vpop.f32.mrb[28].mxu1  ;;  %7090 = vmatprep.mubr.f32.mxu0 %v4729_v48 }
 0x424   : > { %v7514_v62 = vadd.f32 %v6938_v12, %v9548_v54  ;;  %v4615_v24 = vpop.f32.mrb[29].mxu1  ;;  %7091 = vmatmul.mubr.f32.gmra.mrb[88].mxu0 %v4730_v42  ;;  %v4732_v59 = vmax.f32 %v4700_v50, 0.0 }
 0x425   : > { %v4731_v55 = vmax.f32 %v4699_v32, 0.0  ;;  %v7515_v20 = vadd.f32 %v4615_v24, %v9551_v6 }
 0x426   : > { %v4702_v0 = vadd.f32 %v7514_v62, %v9618_v34 }
 0x427   : > { %v4701_v26 = vadd.f32 %v7515_v20, %v9618_v34  ;;  %v6941_v2 = vpop.f32.mrb[30].mxu1  ;;  %7093 = vmatprep.mubr.f32.mxu0 %v4731_v55 }
 0x428   : > { %v7516_v9 = vadd.f32 %v6941_v2, %v9558_v3  ;;  %v4625_v61 = vpop.f32.mrb[31].mxu1  ;;  %7094 = vmatmul.mubr.f32.gmra.mrb[90].mxu0 %v4732_v59  ;;  %v4734_v54 = vmax.f32 %v4702_v0, 0.0  ;;  %v9687_v3 = vld [vmem:[%s9814_s6] ss:$0 sm:$0xff] }
 0x429   : > { %v4733_v11 = vmax.f32 %v4701_v26, 0.0  ;;  %v7517_v5 = vadd.f32 %v4625_v61, %v9561_v41 }
 0x42a   : > { %v4704_v18 = vadd.f32 %v7516_v9, %v9618_v34 }
 0x42b   : > { %v4703_v6 = vadd.f32 %v7517_v5, %v9618_v34  ;;  %7096 = vmatprep.mubr.f32.mxu0 %v4733_v11 }
 0x42c   : > { %7097 = vmatmul.mubr.f32.gmra.mrb[92].mxu0 %v4734_v54  ;;  %v4736_v28 = vmax.f32 %v4704_v18, 0.0 }
 0x42d   : > { %v4735_v1 = vmax.f32 %v4703_v6, 0.0 }
 0x42f   : > { %7099 = vmatprep.mubr.f32.mxu0 %v4735_v1 }
 0x430   : > { %7100 = vmatmul.mubr.f32.gmra.mrb[94].mxu0 %v4736_v28 }
 0x4c7   : > { %v7056_v53 = vpop.f32.mrb[64].mxu0 }
 0x4c8   : > { %v5227_v41 = vadd.f32 %v7056_v53, %v9687_v3  ;;  %v5060_v17 = vpop.f32.mrb[65].mxu0 }
 0x4c9   : > { %v5226_v46 = vadd.f32 %v9687_v3, %v5060_v17 }
 0x4ca   : > { %v5259_v47 = vmax.f32 %v5227_v41, 0.0 }
 0x4cb   : > { %v5258_v25 = vmax.f32 %v5226_v46, 0.0  ;;  %v7059_v34 = vpop.f32.mrb[66].mxu0 }
 0x4cc   : > { %5291 = vst [vmem:[%s9693_s16 + $0x8] sm:$0xff] %v5259_v47  ;;  %v5229_v58 = vadd.f32 %v7059_v34, %v9687_v3  ;;  %v5070_v19 = vpop.f32.mrb[67].mxu0 }
 0x4cd   : > { %5290 = vst [vmem:[%s9693_s16] sm:$0xff] %v5258_v25  ;;  %v5228_v31 = vadd.f32 %v9687_v3, %v5070_v19 }
 0x4ce   : > { %v5261_v52 = vmax.f32 %v5229_v58, 0.0 }
 0x4cf   : > { %v5260_v44 = vmax.f32 %v5228_v31, 0.0  ;;  %v7062_v14 = vpop.f32.mrb[68].mxu0 }
 0x4d0   : > { %5293 = vst [vmem:[%s9693_s16 + $0x18] sm:$0xff] %v5261_v52  ;;  %v5231_v29 = vadd.f32 %v7062_v14, %v9687_v3  ;;  %v5080_v21 = vpop.f32.mrb[69].mxu0 }
 0x4d1   : > { %5292 = vst [vmem:[%s9693_s16 + $0x10] sm:$0xff] %v5260_v44  ;;  %v5230_v51 = vadd.f32 %v9687_v3, %v5080_v21 }
 0x4d2   : > { %v5263_v57 = vmax.f32 %v5231_v29, 0.0 }
 0x4d3   : > { %v5262_v4 = vmax.f32 %v5230_v51, 0.0  ;;  %v7065_v63 = vpop.f32.mrb[70].mxu0 }
 0x4d4   : > { %5295 = vst [vmem:[%s9693_s16 + $0x28] sm:$0xff] %v5263_v57  ;;  %v5233_v13 = vadd.f32 %v7065_v63, %v9687_v3  ;;  %v5090_v23 = vpop.f32.mrb[71].mxu0 }
 0x4d5   : > { %5294 = vst [vmem:[%s9693_s16 + $0x20] sm:$0xff] %v5262_v4  ;;  %v5232_v15 = vadd.f32 %v9687_v3, %v5090_v23 }
 0x4d6   : > { %v5265_v36 = vmax.f32 %v5233_v13, 0.0 }
 0x4d7   : > { %v5264_v56 = vmax.f32 %v5232_v15, 0.0  ;;  %v7068_v10 = vpop.f32.mrb[72].mxu0 }
 0x4d8   : > { %5297 = vst [vmem:[%s9693_s16 + $0x38] sm:$0xff] %v5265_v36  ;;  %v5235_v30 = vadd.f32 %v7068_v10, %v9687_v3  ;;  %v5100_v8 = vpop.f32.mrb[73].mxu0 }
 0x4d9   : > { %5296 = vst [vmem:[%s9693_s16 + $0x30] sm:$0xff] %v5264_v56  ;;  %v5234_v7 = vadd.f32 %v9687_v3, %v5100_v8 }
 0x4da   : > { %v5267_v38 = vmax.f32 %v5235_v30, 0.0 }
 0x4db   : > { %v5266_v45 = vmax.f32 %v5234_v7, 0.0  ;;  %v7071_v60 = vpop.f32.mrb[74].mxu0 }
 0x4dc   : > { %5299 = vst [vmem:[%s9693_s16 + $0x48] sm:$0xff] %v5267_v38  ;;  %v5237_v37 = vadd.f32 %v7071_v60, %v9687_v3  ;;  %v5110_v35 = vpop.f32.mrb[75].mxu0 }
 0x4dd   : > { %5298 = vst [vmem:[%s9693_s16 + $0x40] sm:$0xff] %v5266_v45  ;;  %v5236_v27 = vadd.f32 %v9687_v3, %v5110_v35 }
 0x4de   : > { %v5269_v22 = vmax.f32 %v5237_v37, 0.0 }
 0x4df   : > { %v5268_v43 = vmax.f32 %v5236_v27, 0.0  ;;  %v7074_v16 = vpop.f32.mrb[76].mxu0 }
 0x4e0   : > { %5301 = vst [vmem:[%s9693_s16 + $0x58] sm:$0xff] %v5269_v22  ;;  %v5239_v40 = vadd.f32 %v7074_v16, %v9687_v3  ;;  %v5120_v33 = vpop.f32.mrb[77].mxu0 }
 0x4e1   : > { %5300 = vst [vmem:[%s9693_s16 + $0x50] sm:$0xff] %v5268_v43  ;;  %v5238_v49 = vadd.f32 %v9687_v3, %v5120_v33 }
 0x4e2   : > { %v5271_v48 = vmax.f32 %v5239_v40, 0.0 }
 0x4e3   : > { %v5270_v39 = vmax.f32 %v5238_v49, 0.0  ;;  %v7077_v42 = vpop.f32.mrb[78].mxu0 }
 0x4e4   : > { %5303 = vst [vmem:[%s9693_s16 + $0x68] sm:$0xff] %v5271_v48  ;;  %v5241_v50 = vadd.f32 %v7077_v42, %v9687_v3  ;;  %v5130_v32 = vpop.f32.mrb[79].mxu0 }
 0x4e5   : > { %5302 = vst [vmem:[%s9693_s16 + $0x60] sm:$0xff] %v5270_v39  ;;  %v5240_v12 = vadd.f32 %v9687_v3, %v5130_v32 }
 0x4e6   : > { %v5273_v62 = vmax.f32 %v5241_v50, 0.0 }
 0x4e7   : > { %v5272_v24 = vmax.f32 %v5240_v12, 0.0  ;;  %v7080_v55 = vpop.f32.mrb[80].mxu0 }
 0x4e8   : > { %5305 = vst [vmem:[%s9693_s16 + $0x78] sm:$0xff] %v5273_v62  ;;  %v5243_v20 = vadd.f32 %v7080_v55, %v9687_v3  ;;  %v5140_v59 = vpop.f32.mrb[81].mxu0 }
 0x4e9   : > { %5304 = vst [vmem:[%s9693_s16 + $0x70] sm:$0xff] %v5272_v24  ;;  %v5242_v0 = vadd.f32 %v9687_v3, %v5140_v59 }
 0x4ea   : > { %v5275_v26 = vmax.f32 %v5243_v20, 0.0 }
 0x4eb   : > { %v5274_v2 = vmax.f32 %v5242_v0, 0.0  ;;  %v7083_v9 = vpop.f32.mrb[82].mxu0 }
 0x4ec   : > { %5307 = vst [vmem:[%s9693_s16 + $0x88] sm:$0xff] %v5275_v26  ;;  %v5245_v61 = vadd.f32 %v7083_v9, %v9687_v3  ;;  %v5150_v11 = vpop.f32.mrb[83].mxu0 }
 0x4ed   : > { %5306 = vst [vmem:[%s9693_s16 + $0x80] sm:$0xff] %v5274_v2  ;;  %v5244_v5 = vadd.f32 %v9687_v3, %v5150_v11 }
 0x4ee   : > { %v5277_v54 = vmax.f32 %v5245_v61, 0.0 }
 0x4ef   : > { %v5276_v18 = vmax.f32 %v5244_v5, 0.0  ;;  %v7086_v6 = vpop.f32.mrb[84].mxu0 }
 0x4f0   : > { %5309 = vst [vmem:[%s9693_s16 + $0x98] sm:$0xff] %v5277_v54  ;;  %v5247_v1 = vadd.f32 %v7086_v6, %v9687_v3  ;;  %v5160_v28 = vpop.f32.mrb[85].mxu0 }
 0x4f1   : > { %5308 = vst [vmem:[%s9693_s16 + $0x90] sm:$0xff] %v5276_v18  ;;  %v5246_v53 = vadd.f32 %v9687_v3, %v5160_v28 }
 0x4f2   : > { %v5279_v41 = vmax.f32 %v5247_v1, 0.0 }
 0x4f3   : > { %v5278_v17 = vmax.f32 %v5246_v53, 0.0  ;;  %v7089_v46 = vpop.f32.mrb[86].mxu0 }
 0x4f4   : > { %5311 = vst [vmem:[%s9693_s16 + $0xa8] sm:$0xff] %v5279_v41  ;;  %v5249_v47 = vadd.f32 %v7089_v46, %v9687_v3  ;;  %v5170_v25 = vpop.f32.mrb[87].mxu0 }
 0x4f5   : > { %5310 = vst [vmem:[%s9693_s16 + $0xa0] sm:$0xff] %v5278_v17  ;;  %v5248_v34 = vadd.f32 %v9687_v3, %v5170_v25 }
 0x4f6   : > { %v5281_v58 = vmax.f32 %v5249_v47, 0.0 }
 0x4f7   : > { %v5280_v19 = vmax.f32 %v5248_v34, 0.0  ;;  %v7092_v31 = vpop.f32.mrb[88].mxu0 }
 0x4f8   : > { %5313 = vst [vmem:[%s9693_s16 + $0xb8] sm:$0xff] %v5281_v58  ;;  %v5251_v52 = vadd.f32 %v7092_v31, %v9687_v3  ;;  %v5180_v44 = vpop.f32.mrb[89].mxu0 }
 0x4f9   : > { %5312 = vst [vmem:[%s9693_s16 + $0xb0] sm:$0xff] %v5280_v19  ;;  %v5250_v14 = vadd.f32 %v9687_v3, %v5180_v44 }
 0x4fa   : > { %v5283_v29 = vmax.f32 %v5251_v52, 0.0 }
 0x4fb   : > { %v5282_v21 = vmax.f32 %v5250_v14, 0.0  ;;  %v7095_v51 = vpop.f32.mrb[90].mxu0 }
 0x4fc   : > { %5315 = vst [vmem:[%s9693_s16 + $0xc8] sm:$0xff] %v5283_v29  ;;  %v5253_v57 = vadd.f32 %v7095_v51, %v9687_v3  ;;  %v5190_v4 = vpop.f32.mrb[91].mxu0 }
 0x4fd   : > { %5314 = vst [vmem:[%s9693_s16 + $0xc0] sm:$0xff] %v5282_v21  ;;  %v5252_v63 = vadd.f32 %v9687_v3, %v5190_v4 }
 0x4fe   : > { %v5285_v13 = vmax.f32 %v5253_v57, 0.0 }
 0x4ff   : > { %v5284_v23 = vmax.f32 %v5252_v63, 0.0  ;;  %v7098_v15 = vpop.f32.mrb[92].mxu0 }
 0x500   : > { %5317 = vst [vmem:[%s9693_s16 + $0xd8] sm:$0xff] %v5285_v13  ;;  %v5255_v36 = vadd.f32 %v7098_v15, %v9687_v3  ;;  %v5200_v56 = vpop.f32.mrb[93].mxu0 }
 0x501   : > { %5316 = vst [vmem:[%s9693_s16 + $0xd0] sm:$0xff] %v5284_v23  ;;  %v5254_v10 = vadd.f32 %v9687_v3, %v5200_v56 }
 0x502   : > { %v5287_v30 = vmax.f32 %v5255_v36, 0.0 }
 0x503   : > { %v5286_v8 = vmax.f32 %v5254_v10, 0.0  ;;  %v7101_v7 = vpop.f32.mrb[94].mxu0 }
 0x504   : > { %5319 = vst [vmem:[%s9693_s16 + $0xe8] sm:$0xff] %v5287_v30  ;;  %v5257_v38 = vadd.f32 %v7101_v7, %v9687_v3  ;;  %v5210_v45 = vpop.f32.mrb[95].mxu0 }
 0x505   : > { %5318 = vst [vmem:[%s9693_s16 + $0xe0] sm:$0xff] %v5286_v8  ;;  %v5256_v60 = vadd.f32 %v9687_v3, %v5210_v45 }
 0x506   : > { %v5289_v37 = vmax.f32 %v5257_v38, 0.0 }
 0x507   : > { %v5288_v35 = vmax.f32 %v5256_v60, 0.0 }
 0x508   : > { %5321 = vst [vmem:[%s9693_s16 + $0xf8] sm:$0xff] %v5289_v37 }
 0x509   : > { %5320 = vst [vmem:[%s9693_s16 + $0xf0] sm:$0xff] %v5288_v35 }
 0x50a   : > { %8053 = shalt.err (!%p8050_p13)
}
 0x50b   : > { %s8054_s19 = scalar_lea.hbm %s9760_s14, 4096  ;;  %s8058_s18 = scalar_lea.hbm %s9816_s8, 8192 }
 0x50c   : > { %p8055_p9 = scmp.ne.s32.totalorder %s9760_s14, %s8054_s19  ;;  %p8059_p4 = scmp.lt.u32.totalorder %s9760_s14, %s9816_s8 }
 0x50d   : > { %p8060_p8 = scmp.lt.u32.totalorder %s8058_s18, %s8054_s19  ;;  %p8062_p3 = scmp.lt.u32.totalorder %s8054_s19, %s9760_s14 }
 0x50e   : > { %p8056_p0 = pnand %p8055_p9, %p8343_p10 }
 0x50f   : > { %p8061_p6 = por %p8060_p8, %p8059_p4 }
 0x510   : > { %p8057_p11 = pneg %p8056_p0 }
 0x511   : > { %p8063_p5 = por %p8062_p3, %p8061_p6 }
 0x513   : > { %p8064_p7 = pnand %p8063_p5, %p8057_p11 }
 0x515   : > { %8067 = shalt.err (!%p8064_p7)
}
 0x516   : > { %s8125_s22 = smov 128   ;;  %s8126_s17 = smov 8  }
 0x517   : > { %7792 = dma.vmem_to_hbm [thread:$0]  (%p8343_p10), %s9762_s10, 4096, %s9760_s14, %s5323_s9, %s8125_s22, %s8125_s22, %s8126_s17  }
 0x518 PF: > { %s10199_s20 = sld [smem:[#allocation16_spill]]  ;;  %s10200_s27 = sld [smem:[#allocation17_spill]] }
 0x519   : > { %p10202_p1 = scmp.ge.s32.totalorder %s8114_s30, 2 }
 0x51e   : > { %s5351_s11 = sand.u32 1, %s10199_s20   ;;  %p10201_p12 = scmp.ne.s32.totalorder %s10200_s27, 0 }
 0x51f   : > { %s5352_s13 = scalar_lea.sflag [#allocation4], %s5351_s11 }
 0x520   : > { %p7812_p2 = pnand %p10202_p1, %p10201_p12 }
 0x522   : > { %8097 = dma.done.wait (!%p7812_p2), %s5352_s13, 4096  }
 0x523   : > { %8099 = vsyncadd (!%p7812_p2), %s5352_s13, 4294963200  ;;  %p23_p13 = scmp.ge.s32.totalorder %s8333_s26, 4   ;;  %s10203_s27 = smov %s8106_s28 }
 0x524   : > { %s10204_s28 = smov %s8110_s29  ;;  %s10205_s29 = smov %s8349_s24 }
 0x525   : > { %s10206_s30 = smov %s8333_s26  ;;  %25 = sbr.rel (!%p23_p13) target bundleno = 7 (0x7), region = 121 }
 0x52c   :  { %5357 = vsyncpa [#allocation3], 1 }
 0x52d   :  { %5359 = vsyncpa [#allocation3 + $0x1], 1 }
 0x52e   :  { %5360 = vsyncpa [#allocation6], 1 }
 0x52f   :  { %5361 = vsyncpa [#allocation9], 1 }
 0x530   :  { %5362 = vsyncpa [#allocation4], 1 }
 0x531   :  { %5364 = vsyncpa [#allocation4 + $0x1], 1 }

</bundles_post_ra>
